<compile_context>
chip_gen: v7x
topology: tpu7x:2x2x1
jax: 0.10.0
libtpu: 0.0.40
codegen_flags: <defaults>
</compile_context>

<pallas_src>
import functools

import jax
import jax.numpy as jnp
from jax.experimental import pallas as pl
from jax.experimental.pallas import tpu as pltpu


# ------------------------------ Pallas kernels ------------------------------ #
# Grid = (B, Do, kd). For each (b, d) output plane the kd depth-taps are
# accumulated into a f32 VMEM scratch; the affine shift (+ residual) + ReLU
# epilogue and the store happen on the last tap.

def _conv_acc_kernel(a_ref, w_ref, sh_ref, o_ref, acc_ref, *, relu):
    t = pl.program_id(2)

    @pl.when(t == 0)
    def _init():
        acc_ref[...] = jnp.zeros_like(acc_ref)

    acc_ref[...] += jnp.dot(a_ref[0, 0], w_ref[0],
                            preferred_element_type=jnp.float32)

    @pl.when(t == pl.num_programs(2) - 1)
    def _finish():
        y = acc_ref[...] + sh_ref[...]
        if relu:
            y = jnp.maximum(y, 0.0)
        o_ref[0, 0] = y.astype(o_ref.dtype)


def _conv_acc_res_kernel(a_ref, w_ref, sh_ref, r_ref, o_ref, acc_ref, *, relu):
    t = pl.program_id(2)

    @pl.when(t == 0)
    def _init():
        acc_ref[...] = jnp.zeros_like(acc_ref)

    acc_ref[...] += jnp.dot(a_ref[0, 0], w_ref[0],
                            preferred_element_type=jnp.float32)

    @pl.when(t == pl.num_programs(2) - 1)
    def _finish():
        y = acc_ref[...] + sh_ref[...] + r_ref[0, 0].astype(jnp.float32)
        if relu:
            y = jnp.maximum(y, 0.0)
        o_ref[0, 0] = y.astype(o_ref.dtype)


# ------------------------------ conv wrappers ------------------------------- #

def _build_tap_input(xp, kh, kw, stride, Ho, Wo):
    """Partial im2col over (kh, kw) only. xp: (B, Dp, Hp, Wp, C) padded, bf16.

    Returns A: (B, Dp, Ho*Wo, kh*kw*C).
    """
    B, Dp = xp.shape[0], xp.shape[1]
    C = xp.shape[-1]
    cols = []
    for i in range(kh):
        for j in range(kw):
            cols.append(xp[:, :, i:i + (Ho - 1) * stride + 1:stride,
                              j:j + (Wo - 1) * stride + 1:stride, :])
    A = cols[0] if len(cols) == 1 else jnp.concatenate(cols, axis=-1)
    return A.reshape(B, Dp, Ho * Wo, kh * kw * C)


def _fold_weight(w, scale):
    """w: (Cout, Cin, kd, kh, kw) conv layout, scale: (Cout,) BN scale.

    Returns bf16 stack of per-depth-tap matrices: (kd, kh*kw*Cin, Cout).
    Channel order matches _build_tap_input's (i, j, cin) concat order.
    """
    Cout, Cin, kd, kh, kw = w.shape
    w = w.astype(jnp.float32) * scale.astype(jnp.float32)[:, None, None, None, None]
    w = jnp.transpose(w, (2, 3, 4, 1, 0)).reshape(kd, kh * kw * Cin, Cout)
    return w.astype(jnp.bfloat16)


def fused_conv3d(x, w, scale, shift, *, stride=1, pads=1, residual=None,
                 relu=True, out_dtype=jnp.bfloat16):
    """Fused Conv3d + BN-affine [+ residual] [+ ReLU].

    x: (B, D, H, W, Cin) channels-last; w: (Cout, Cin, kd, kh, kw) conv layout.
    pads: int (symmetric) or ((d_lo,d_hi),(h_lo,h_hi),(w_lo,w_hi)).
    """
    if isinstance(pads, int):
        pads = ((pads, pads),) * 3
    (pd0, pd1), (ph0, ph1), (pw0, pw1) = pads

    B, D, H, W, Cin = x.shape
    Cout, _, kd, kh, kw = w.shape

    xp = x.astype(jnp.bfloat16)
    if pd0 or pd1 or ph0 or ph1 or pw0 or pw1:
        xp = jnp.pad(xp, ((0, 0), (pd0, pd1), (ph0, ph1), (pw0, pw1), (0, 0)))
    Dp, Hp, Wp = D + pd0 + pd1, H + ph0 + ph1, W + pw0 + pw1
    Do = (Dp - kd) // stride + 1
    Ho = (Hp - kh) // stride + 1
    Wo = (Wp - kw) // stride + 1

    A = _build_tap_input(xp, kh, kw, stride, Ho, Wo)       # (B, Dp, M, K) bf16
    Wst = _fold_weight(w, scale)                           # (kd, K, N)   bf16
    sh = shift.reshape(1, Cout).astype(jnp.float32)        # (1, N)       f32

    M = Ho * Wo
    K = kh * kw * Cin
    N = Cout

    in_specs = [
        pl.BlockSpec((1, 1, M, K), lambda b, d, t: (b, d * stride + t, 0, 0)),
        pl.BlockSpec((1, K, N), lambda b, d, t: (t, 0, 0)),
        pl.BlockSpec((1, N), lambda b, d, t: (0, 0)),
    ]
    args = [A, Wst, sh]
    if residual is not None:
        in_specs.append(pl.BlockSpec((1, 1, M, N), lambda b, d, t: (b, d, 0, 0)))
        args.append(residual.reshape(B, Do, M, N))
        kernel = functools.partial(_conv_acc_res_kernel, relu=relu)
    else:
        kernel = functools.partial(_conv_acc_kernel, relu=relu)

    out = pl.pallas_call(
        kernel,
        out_shape=jax.ShapeDtypeStruct((B, Do, M, N), out_dtype),
        grid=(B, Do, kd),
        in_specs=in_specs,
        out_specs=pl.BlockSpec((1, 1, M, N), lambda b, d, t: (b, d, 0, 0)),
        scratch_shapes=[pltpu.VMEM((M, N), jnp.float32)],
        compiler_params=pltpu.CompilerParams(
            dimension_semantics=("parallel", "parallel", "arbitrary"),
            vmem_limit_bytes=32 * 1024 * 1024),
    )(*args)
    return out.reshape(B, Do, Ho, Wo, N)


def fused_conv2d(x, w, scale, shift, *, stride, pad, relu=True,
                 out_dtype=jnp.bfloat16):
    """Conv2d as a depth-1 Conv3d. x: (B, H, W, Cin); w: (Cout, Cin, kh, kw)."""
    x3 = x[:, None]                 # (B, 1, H, W, Cin)
    w3 = w[:, :, None]              # (Cout, Cin, 1, kh, kw)
    y = fused_conv3d(x3, w3, scale, shift, stride=stride,
                     pads=((0, 0), (pad, pad), (pad, pad)),
                     relu=relu, out_dtype=out_dtype)
    return y[:, 0]                  # (B, Ho, Wo, Cout)


def convtranspose3d_subpixel(x, w_t, scale, shift, *, residual=None, relu=True,
                             out_dtype=jnp.bfloat16):
    """ConvTranspose3d(k=3, s=2, p=1, output_padding=1) via sub-pixel decomposition.

    x: (B, D, H, W, Cin); w_t: PyTorch layout (Cin, Cout, 3, 3, 3).
    Per output parity p (0/1 per dim): even outputs use kernel index 1;
    odd outputs use kernel indices (2, 0) on inputs (t, t+1) with a trailing
    zero pad. Each parity is a tiny stride-1 conv; outputs are interleaved.
    """
    B, D, H, W, Cin = x.shape
    Cout = w_t.shape[1]
    wc = jnp.transpose(w_t, (1, 0, 2, 3, 4))          # (Cout, Cin, 3, 3, 3)

    def taps(p):
        return [1] if p == 0 else [2, 0]

    parts_d = []
    for pd in (0, 1):
        parts_h = []
        for ph in (0, 1):
            parts_w = []
            for pw in (0, 1):
                td, th, tw = taps(pd), taps(ph), taps(pw)
                wsub = wc[:, :, td][:, :, :, th][:, :, :, :, tw]
                pads = ((0, 1 if pd else 0),
                        (0, 1 if ph else 0),
                        (0, 1 if pw else 0))
                res = None
                if residual is not None:
                    res = residual[:, pd::2, ph::2, pw::2, :]
                y = fused_conv3d(x, wsub, scale, shift, stride=1, pads=pads,
                                 residual=res, relu=relu, out_dtype=out_dtype)
                parts_w.append(y)                      # (B, D, H, W, Cout)
            parts_h.append(jnp.stack(parts_w, axis=4))  # (B, D, H, W, 2, C)
        parts_d.append(jnp.stack(parts_h, axis=3))      # (B, D, H, 2, W, 2, C)
    full = jnp.stack(parts_d, axis=2)                   # (B, D, 2, H, 2, W, 2, C)
    return full.reshape(B, 2 * D, 2 * H, 2 * W, Cout)


def cost_volume(left, right, maxdisp):
    """Two-sided concat cost volume (GC-Net style), shifts along W.

    left/right: (B, H, W, C) -> (B, 2*maxdisp, H, W, 2C).
    # TODO(synk): confirm two-sided semantics against the delineation helper.
    """
    B, H, W, C = left.shape
    planes = []
    for d in range(-maxdisp, maxdisp):
        if d > 0:
            l = jnp.pad(left[:, :, d:, :], ((0, 0), (0, 0), (d, 0), (0, 0)))
            r = jnp.pad(right[:, :, :W - d, :], ((0, 0), (0, 0), (d, 0), (0, 0)))
        elif d < 0:
            dd = -d
            l = jnp.pad(left[:, :, :W - dd, :], ((0, 0), (0, 0), (0, dd), (0, 0)))
            r = jnp.pad(right[:, :, dd:, :], ((0, 0), (0, 0), (0, dd), (0, 0)))
        else:
            l, r = left, right
        planes.append(jnp.concatenate([l, r], axis=-1))
    return jnp.stack(planes, axis=1)


# --------------------------- parameters & forward --------------------------- #

def bn_fold(conv_bias, bn_params, eps=1e-5):
    gamma, beta, mean, var = bn_params
    scale = gamma / jnp.sqrt(var + eps)
    shift = beta + scale * (conv_bias - mean)
    return scale, shift


def init_params(key, in_channels, out_channels, num_block):
    keys = jax.random.split(key, 32)
    it = iter(keys)

    def conv_w(shape):
        return jax.random.normal(next(it), shape, jnp.float32) * 0.05

    def bias(n):
        return jax.random.normal(next(it), (n,), jnp.float32) * 0.05

    def bn(n):
        # PyTorch defaults: gamma=1, beta=0, running_mean=0, running_var=1
        return (jnp.ones(n), jnp.zeros(n), jnp.zeros(n), jnp.ones(n))

    p = {}
    p['conv0_w'] = conv_w((32, in_channels, 5, 5)); p['conv0_b'] = bias(32); p['bn0'] = bn(32)
    p['conv3d_1_w'] = conv_w((32, 64, 3, 3, 3)); p['conv3d_1_b'] = bias(32); p['bn3d_1'] = bn(32)
    p['conv3d_2_w'] = conv_w((32, 32, 3, 3, 3)); p['conv3d_2_b'] = bias(32); p['bn3d_2'] = bn(32)

    def make_block(n):
        # strides ([2] + [1]*(n-1)) are structural -> NOT stored in the pytree
        # (fixes the tracer-stride failure); forward() picks 2 for layer 0.
        return [(conv_w((64, 64, 3, 3, 3)), bias(64), bn(64)) for _ in range(n)]

    p['block_3d_1'] = make_block(num_block[1])
    p['block_3d_2'] = make_block(num_block[1])
    p['deconv1_w'] = conv_w((64, 64, 3, 3, 3)); p['deconv1_b'] = bias(64); p['debn1'] = bn(64)
    p['deconv2_w'] = conv_w((64, 32, 3, 3, 3)); p['deconv2_b'] = bias(32); p['debn2'] = bn(32)
    p['deconv5_w'] = conv_w((32, out_channels, 3, 3, 3)); p['deconv5_b'] = bias(out_channels)
    return p


def scmnet_forward(params, left_im, right_im, *, maxdisp):
    # NCHW -> NHWC, bf16 activations end-to-end (final output f32)
    left = jnp.transpose(left_im, (0, 2, 3, 1)).astype(jnp.bfloat16)
    right = jnp.transpose(right_im, (0, 2, 3, 1)).astype(jnp.bfloat16)

    sc0, sh0 = bn_fold(params['conv0_b'], params['bn0'])
    right_fmap = fused_conv2d(right, params['conv0_w'], sc0, sh0, stride=2, pad=2)
    left_fmap = fused_conv2d(left, params['conv0_w'], sc0, sh0, stride=2, pad=2)

    cv = cost_volume(left_fmap, right_fmap, maxdisp // 2)   # (B, D, H/2, W/2, 64)

    sc, sh = bn_fold(params['conv3d_1_b'], params['bn3d_1'])
    c = fused_conv3d(cv, params['conv3d_1_w'], sc, sh, stride=1, pads=1)
    sc, sh = bn_fold(params['conv3d_2_b'], params['bn3d_2'])
    conv3d_out = fused_conv3d(c, params['conv3d_2_w'], sc, sh, stride=1, pads=1)

    x = cv
    for idx, (w, b, bnp) in enumerate(params['block_3d_1']):
        sc, sh = bn_fold(b, bnp)
        x = fused_conv3d(x, w, sc, sh, stride=2 if idx == 0 else 1, pads=1)
    conv3d_block_1 = x
    for idx, (w, b, bnp) in enumerate(params['block_3d_2']):
        sc, sh = bn_fold(b, bnp)
        x = fused_conv3d(x, w, sc, sh, stride=2 if idx == 0 else 1, pads=1)
    conv3d_block_2 = x

    sc, sh = bn_fold(params['deconv1_b'], params['debn1'])
    d = convtranspose3d_subpixel(conv3d_block_2, params['deconv1_w'], sc, sh,
                                 residual=conv3d_block_1)
    sc, sh = bn_fold(params['deconv2_b'], params['debn2'])
    d = convtranspose3d_subpixel(d, params['deconv2_w'], sc, sh,
                                 residual=conv3d_out)
    oc = params['deconv5_b'].shape[0]
    d = convtranspose3d_subpixel(d, params['deconv5_w'],
                                 jnp.ones((oc,), jnp.float32), params['deconv5_b'],
                                 residual=None, relu=False, out_dtype=jnp.float32)

    # back to PyTorch NCDHW: (B, C_out, 2*D_cv, H, W)
    return jnp.transpose(d, (0, 4, 1, 2, 3))


if __name__ == "__main__":
    B, C_in, C_out = 2, 3, 1
    H = W = 16
    maxdisp = 8
    num_block = (1, 2)   # num_block[0] (res_block) unused in forward

    key = jax.random.PRNGKey(0)
    k_p, k_l, k_r = jax.random.split(key, 3)
    params = init_params(k_p, C_in, C_out, num_block)
    left_im = jax.random.normal(k_l, (B, C_in, H, W), jnp.float32)
    right_im = jax.random.normal(k_r, (B, C_in, H, W), jnp.float32)

    fwd = jax.jit(functools.partial(scmnet_forward, maxdisp=maxdisp))
    out = fwd(params, left_im, right_im)
    jax.block_until_ready(out)

    expected = (B, C_out, 2 * (maxdisp // 2) * 2, H, W)  # (2, 1, 16, 16, 16)
    assert out.shape == expected, (out.shape, expected)
    assert bool(jnp.all(jnp.isfinite(out)))
    print("KERNEL_OK")
</pallas_src>

<mosaic_0001>
module attributes {stable_mosaic.version = 11 : i64} {
  func.func @_conv_acc_kernel(%arg0: i32, %arg1: i32, %arg2: i32, %arg3: memref<1x1x64x75xbf16, #tpu.memory_space<vmem>>, %arg4: memref<1x75x32xbf16, #tpu.memory_space<vmem>>, %arg5: memref<1x32xf32, #tpu.memory_space<vmem>>, %arg6: memref<1x1x64x32xbf16, #tpu.memory_space<vmem>>, %arg7: memref<64x32xf32, #tpu.memory_space<vmem>>) attributes {dimension_semantics = [#tpu.dimension_semantics<parallel>, #tpu.dimension_semantics<parallel>, #tpu.dimension_semantics<arbitrary>], iteration_bounds = array<i64: 2, 1, 1>, scalar_prefetch = 0 : i64, scratch_operands = 1 : i64, tpu.core_type = #tpu.core_type<tc>, window_params = [{transform_indices = @transform_0, window_bounds = array<i64: 1, 1, 64, 75>}, {transform_indices = @transform_1, window_bounds = array<i64: 1, 75, 32>}, {pipeline_mode = #tpu.pipeline_mode<synchronous>, transform_indices = @transform_2, window_bounds = array<i64: 1, 32>}, {transform_indices = @transform_3, window_bounds = array<i64: 1, 1, 64, 32>}]} {
    %c0_i32 = arith.constant 0 : i32
    %0 = arith.cmpi eq, %arg2, %c0_i32 : i32
    %1 = arith.extui %0 : i1 to i32
    %c0_i32_0 = arith.constant 0 : i32
    %2 = arith.cmpi ne, %1, %c0_i32_0 : i32
    scf.if %2 {
      %cst_13 = arith.constant 0.000000e+00 : f32
      %14 = vector.broadcast %cst_13 : f32 to vector<64x32xf32>
      %c0_14 = arith.constant 0 : index
      %c0_15 = arith.constant 0 : index
      %15 = vector.load %arg7[%c0_14, %c0_15] : memref<64x32xf32, #tpu.memory_space<vmem>>, vector<64x32xf32>
      tpu.vector_store %arg7[%c0_14, %c0_15], %14 {strides = array<i32>} : memref<64x32xf32, #tpu.memory_space<vmem>>, vector<64x32xf32>,
    } else {
    }
    %c0 = arith.constant 0 : index
    %c0_1 = arith.constant 0 : index
    %3 = vector.load %arg7[%c0, %c0_1] : memref<64x32xf32, #tpu.memory_space<vmem>>, vector<64x32xf32>
    %c0_2 = arith.constant 0 : index
    %c0_3 = arith.constant 0 : index
    %c0_4 = arith.constant 0 : index
    %c0_5 = arith.constant 0 : index
    %4 = vector.load %arg3[%c0_2, %c0_3, %c0_4, %c0_5] : memref<1x1x64x75xbf16, #tpu.memory_space<vmem>>, vector<1x1x64x75xbf16>
    %5 = vector.shape_cast %4 : vector<1x1x64x75xbf16> to vector<64x75xbf16>
    %c0_6 = arith.constant 0 : index
    %c0_7 = arith.constant 0 : index
    %c0_8 = arith.constant 0 : index
    %6 = vector.load %arg4[%c0_6, %c0_7, %c0_8] : memref<1x75x32xbf16, #tpu.memory_space<vmem>>, vector<1x75x32xbf16>
    %7 = vector.shape_cast %6 : vector<1x75x32xbf16> to vector<75x32xbf16>
    %cst = arith.constant dense<0.000000e+00> : vector<64x32xf32>
    %8 = tpu.matmul %5, %7, %cst {dimension_numbers = #tpu.dot_dimension_numbers<[1], [0], [0], [1], [0, 0, 1, 1], [], []>} : vector<64x75xbf16>, vector<75x32xbf16>, vector<64x32xf32> -> vector<64x32xf32>
    %9 = arith.addf %3, %8 : vector<64x32xf32>
    %c0_9 = arith.constant 0 : index
    %c0_10 = arith.constant 0 : index
    %10 = vector.load %arg7[%c0_9, %c0_10] : memref<64x32xf32, #tpu.memory_space<vmem>>, vector<64x32xf32>
    tpu.vector_store %arg7[%c0_9, %c0_10], %9 {strides = array<i32>} : memref<64x32xf32, #tpu.memory_space<vmem>>, vector<64x32xf32>,
    %c0_i32_11 = arith.constant 0 : i32
    %11 = arith.cmpi eq, %arg2, %c0_i32_11 : i32
    %12 = arith.extui %11 : i1 to i32
    %c0_i32_12 = arith.constant 0 : i32
    %13 = arith.cmpi ne, %12, %c0_i32_12 : i32
    scf.if %13 {
      %c0_13 = arith.constant 0 : index
      %c0_14 = arith.constant 0 : index
      %14 = vector.load %arg7[%c0_13, %c0_14] : memref<64x32xf32, #tpu.memory_space<vmem>>, vector<64x32xf32>
      %c0_15 = arith.constant 0 : index
      %c0_16 = arith.constant 0 : index
      %15 = vector.load %arg5[%c0_15, %c0_16] : memref<1x32xf32, #tpu.memory_space<vmem>>, vector<1x32xf32>
      %16 = vector.broadcast %15 : vector<1x32xf32> to vector<64x32xf32>
      %17 = arith.addf %14, %16 : vector<64x32xf32>
      %cst_17 = arith.constant 0.000000e+00 : f32
      %18 = vector.broadcast %cst_17 : f32 to vector<64x32xf32>
      %19 = arith.maximumf %17, %18 : vector<64x32xf32>
      %20 = arith.truncf %19 : vector<64x32xf32> to vector<64x32xbf16>
      %c0_18 = arith.constant 0 : index
      %c0_19 = arith.constant 0 : index
      %c0_20 = arith.constant 0 : index
      %c0_21 = arith.constant 0 : index
      %21 = vector.load %arg6[%c0_18, %c0_19, %c0_20, %c0_21] : memref<1x1x64x32xbf16, #tpu.memory_space<vmem>>, vector<1x1x64x32xbf16>
      %22 = vector.shape_cast %21 : vector<1x1x64x32xbf16> to vector<64x32xbf16>
      %23 = vector.shape_cast %20 : vector<64x32xbf16> to vector<1x1x64x32xbf16>
      tpu.vector_store %arg6[%c0_18, %c0_19, %c0_20, %c0_21], %23 {strides = array<i32>} : memref<1x1x64x32xbf16, #tpu.memory_space<vmem>>, vector<1x1x64x32xbf16>,
    } else {
    }
    return
  }
  func.func @transform_0(%arg0: i32, %arg1: i32, %arg2: i32) -> (i32, i32, i32, i32) {
    %c2_i32 = arith.constant 2 : i32
    %0 = arith.muli %arg1, %c2_i32 : i32
    %1 = arith.addi %0, %arg2 : i32
    %c0_i32 = arith.constant 0 : i32
    %c0_i32_0 = arith.constant 0 : i32
    %c0_i32_1 = arith.constant 0 : i32
    return %arg0, %1, %c0_i32, %c0_i32_0 : i32, i32, i32, i32
  }
  func.func @transform_1(%arg0: i32, %arg1: i32, %arg2: i32) -> (i32, i32, i32) {
    %c0_i32 = arith.constant 0 : i32
    %c0_i32_0 = arith.constant 0 : i32
    %c0_i32_1 = arith.constant 0 : i32
    return %arg2, %c0_i32, %c0_i32_0 : i32, i32, i32
  }
  func.func @transform_2(%arg0: i32, %arg1: i32, %arg2: i32) -> (i32, i32) {
    %c0_i32 = arith.constant 0 : i32
    %c0_i32_0 = arith.constant 0 : i32
    %c0_i32_1 = arith.constant 0 : i32
    return %c0_i32, %c0_i32_0 : i32, i32
  }
  func.func @transform_3(%arg0: i32, %arg1: i32, %arg2: i32) -> (i32, i32, i32, i32) {
    %c0_i32 = arith.constant 0 : i32
    %c0_i32_0 = arith.constant 0 : i32
    %c0_i32_1 = arith.constant 0 : i32
    return %arg0, %arg1, %c0_i32, %c0_i32_0 : i32, i32, i32, i32
  }
}

module attributes {stable_mosaic.version = 11 : i64} {
  func.func @_conv_acc_kernel(%arg0: i32, %arg1: i32, %arg2: i32, %arg3: memref<1x1x64x576xbf16, #tpu.memory_space<vmem>>, %arg4: memref<1x576x32xbf16, #tpu.memory_space<vmem>>, %arg5: memref<1x32xf32, #tpu.memory_space<vmem>>, %arg6: memref<1x1x64x32xbf16, #tpu.memory_space<vmem>>, %arg7: memref<64x32xf32, #tpu.memory_space<vmem>>) attributes {dimension_semantics = [#tpu.dimension_semantics<parallel>, #tpu.dimension_semantics<parallel>, #tpu.dimension_semantics<arbitrary>], iteration_bounds = array<i64: 2, 8, 3>, scalar_prefetch = 0 : i64, scratch_operands = 1 : i64, tpu.core_type = #tpu.core_type<tc>, window_params = [{transform_indices = @transform_0, window_bounds = array<i64: 1, 1, 64, 576>}, {transform_indices = @transform_1, window_bounds = array<i64: 1, 576, 32>}, {pipeline_mode = #tpu.pipeline_mode<synchronous>, transform_indices = @transform_2, window_bounds = array<i64: 1, 32>}, {transform_indices = @transform_3, window_bounds = array<i64: 1, 1, 64, 32>}]} {
    %c0_i32 = arith.constant 0 : i32
    %0 = arith.cmpi eq, %arg2, %c0_i32 : i32
    %1 = arith.extui %0 : i1 to i32
    %c0_i32_0 = arith.constant 0 : i32
    %2 = arith.cmpi ne, %1, %c0_i32_0 : i32
    scf.if %2 {
      %cst_12 = arith.constant 0.000000e+00 : f32
      %14 = vector.broadcast %cst_12 : f32 to vector<64x32xf32>
      %c0_13 = arith.constant 0 : index
      %c0_14 = arith.constant 0 : index
      %15 = vector.load %arg7[%c0_13, %c0_14] : memref<64x32xf32, #tpu.memory_space<vmem>>, vector<64x32xf32>
      tpu.vector_store %arg7[%c0_13, %c0_14], %14 {strides = array<i32>} : memref<64x32xf32, #tpu.memory_space<vmem>>, vector<64x32xf32>,
    } else {
    }
    %c0 = arith.constant 0 : index
    %c0_1 = arith.constant 0 : index
    %3 = vector.load %arg7[%c0, %c0_1] : memref<64x32xf32, #tpu.memory_space<vmem>>, vector<64x32xf32>
    %c0_2 = arith.constant 0 : index
    %c0_3 = arith.constant 0 : index
    %c0_4 = arith.constant 0 : index
    %c0_5 = arith.constant 0 : index
    %4 = vector.load %arg3[%c0_2, %c0_3, %c0_4, %c0_5] : memref<1x1x64x576xbf16, #tpu.memory_space<vmem>>, vector<1x1x64x576xbf16>
    %5 = vector.shape_cast %4 : vector<1x1x64x576xbf16> to vector<64x576xbf16>
    %c0_6 = arith.constant 0 : index
    %c0_7 = arith.constant 0 : index
    %c0_8 = arith.constant 0 : index
    %6 = vector.load %arg4[%c0_6, %c0_7, %c0_8] : memref<1x576x32xbf16, #tpu.memory_space<vmem>>, vector<1x576x32xbf16>
    %7 = vector.shape_cast %6 : vector<1x576x32xbf16> to vector<576x32xbf16>
    %cst = arith.constant dense<0.000000e+00> : vector<64x32xf32>
    %8 = tpu.matmul %5, %7, %cst {dimension_numbers = #tpu.dot_dimension_numbers<[1], [0], [0], [1], [0, 0, 1, 1], [], []>} : vector<64x576xbf16>, vector<576x32xbf16>, vector<64x32xf32> -> vector<64x32xf32>
    %9 = arith.addf %3, %8 : vector<64x32xf32>
    %c0_9 = arith.constant 0 : index
    %c0_10 = arith.constant 0 : index
    %10 = vector.load %arg7[%c0_9, %c0_10] : memref<64x32xf32, #tpu.memory_space<vmem>>, vector<64x32xf32>
    tpu.vector_store %arg7[%c0_9, %c0_10], %9 {strides = array<i32>} : memref<64x32xf32, #tpu.memory_space<vmem>>, vector<64x32xf32>,
    %c2_i32 = arith.constant 2 : i32
    %11 = arith.cmpi eq, %arg2, %c2_i32 : i32
    %12 = arith.extui %11 : i1 to i32
    %c0_i32_11 = arith.constant 0 : i32
    %13 = arith.cmpi ne, %12, %c0_i32_11 : i32
    scf.if %13 {
      %c0_12 = arith.constant 0 : index
      %c0_13 = arith.constant 0 : index
      %14 = vector.load %arg7[%c0_12, %c0_13] : memref<64x32xf32, #tpu.memory_space<vmem>>, vector<64x32xf32>
      %c0_14 = arith.constant 0 : index
      %c0_15 = arith.constant 0 : index
      %15 = vector.load %arg5[%c0_14, %c0_15] : memref<1x32xf32, #tpu.memory_space<vmem>>, vector<1x32xf32>
      %16 = vector.broadcast %15 : vector<1x32xf32> to vector<64x32xf32>
      %17 = arith.addf %14, %16 : vector<64x32xf32>
      %cst_16 = arith.constant 0.000000e+00 : f32
      %18 = vector.broadcast %cst_16 : f32 to vector<64x32xf32>
      %19 = arith.maximumf %17, %18 : vector<64x32xf32>
      %20 = arith.truncf %19 : vector<64x32xf32> to vector<64x32xbf16>
      %c0_17 = arith.constant 0 : index
      %c0_18 = arith.constant 0 : index
      %c0_19 = arith.constant 0 : index
      %c0_20 = arith.constant 0 : index
      %21 = vector.load %arg6[%c0_17, %c0_18, %c0_19, %c0_20] : memref<1x1x64x32xbf16, #tpu.memory_space<vmem>>, vector<1x1x64x32xbf16>
      %22 = vector.shape_cast %21 : vector<1x1x64x32xbf16> to vector<64x32xbf16>
      %23 = vector.shape_cast %20 : vector<64x32xbf16> to vector<1x1x64x32xbf16>
      tpu.vector_store %arg6[%c0_17, %c0_18, %c0_19, %c0_20], %23 {strides = array<i32>} : memref<1x1x64x32xbf16, #tpu.memory_space<vmem>>, vector<1x1x64x32xbf16>,
    } else {
    }
    return
  }
  func.func @transform_0(%arg0: i32, %arg1: i32, %arg2: i32) -> (i32, i32, i32, i32) {
    %c1_i32 = arith.constant 1 : i32
    %0 = arith.muli %arg1, %c1_i32 : i32
    %1 = arith.addi %0, %arg2 : i32
    %c0_i32 = arith.constant 0 : i32
    %c0_i32_0 = arith.constant 0 : i32
    %c0_i32_1 = arith.constant 0 : i32
    return %arg0, %1, %c0_i32, %c0_i32_0 : i32, i32, i32, i32
  }
  func.func @transform_1(%arg0: i32, %arg1: i32, %arg2: i32) -> (i32, i32, i32) {
    %c0_i32 = arith.constant 0 : i32
    %c0_i32_0 = arith.constant 0 : i32
    %c0_i32_1 = arith.constant 0 : i32
    return %arg2, %c0_i32, %c0_i32_0 : i32, i32, i32
  }
  func.func @transform_2(%arg0: i32, %arg1: i32, %arg2: i32) -> (i32, i32) {
    %c0_i32 = arith.constant 0 : i32
    %c0_i32_0 = arith.constant 0 : i32
    %c0_i32_1 = arith.constant 0 : i32
    return %c0_i32, %c0_i32_0 : i32, i32
  }
  func.func @transform_3(%arg0: i32, %arg1: i32, %arg2: i32) -> (i32, i32, i32, i32) {
    %c0_i32 = arith.constant 0 : i32
    %c0_i32_0 = arith.constant 0 : i32
    %c0_i32_1 = arith.constant 0 : i32
    return %arg0, %arg1, %c0_i32, %c0_i32_0 : i32, i32, i32, i32
  }
}

module attributes {stable_mosaic.version = 11 : i64} {
  func.func @_conv_acc_kernel(%arg0: i32, %arg1: i32, %arg2: i32, %arg3: memref<1x1x64x288xbf16, #tpu.memory_space<vmem>>, %arg4: memref<1x288x32xbf16, #tpu.memory_space<vmem>>, %arg5: memref<1x32xf32, #tpu.memory_space<vmem>>, %arg6: memref<1x1x64x32xbf16, #tpu.memory_space<vmem>>, %arg7: memref<64x32xf32, #tpu.memory_space<vmem>>) attributes {dimension_semantics = [#tpu.dimension_semantics<parallel>, #tpu.dimension_semantics<parallel>, #tpu.dimension_semantics<arbitrary>], iteration_bounds = array<i64: 2, 8, 3>, scalar_prefetch = 0 : i64, scratch_operands = 1 : i64, tpu.core_type = #tpu.core_type<tc>, window_params = [{transform_indices = @transform_0, window_bounds = array<i64: 1, 1, 64, 288>}, {transform_indices = @transform_1, window_bounds = array<i64: 1, 288, 32>}, {pipeline_mode = #tpu.pipeline_mode<synchronous>, transform_indices = @transform_2, window_bounds = array<i64: 1, 32>}, {transform_indices = @transform_3, window_bounds = array<i64: 1, 1, 64, 32>}]} {
    %c0_i32 = arith.constant 0 : i32
    %0 = arith.cmpi eq, %arg2, %c0_i32 : i32
    %1 = arith.extui %0 : i1 to i32
    %c0_i32_0 = arith.constant 0 : i32
    %2 = arith.cmpi ne, %1, %c0_i32_0 : i32
    scf.if %2 {
      %cst_12 = arith.constant 0.000000e+00 : f32
      %14 = vector.broadcast %cst_12 : f32 to vector<64x32xf32>
      %c0_13 = arith.constant 0 : index
      %c0_14 = arith.constant 0 : index
      %15 = vector.load %arg7[%c0_13, %c0_14] : memref<64x32xf32, #tpu.memory_space<vmem>>, vector<64x32xf32>
      tpu.vector_store %arg7[%c0_13, %c0_14], %14 {strides = array<i32>} : memref<64x32xf32, #tpu.memory_space<vmem>>, vector<64x32xf32>,
    } else {
    }
    %c0 = arith.constant 0 : index
    %c0_1 = arith.constant 0 : index
    %3 = vector.load %arg7[%c0, %c0_1] : memref<64x32xf32, #tpu.memory_space<vmem>>, vector<64x32xf32>
    %c0_2 = arith.constant 0 : index
    %c0_3 = arith.constant 0 : index
    %c0_4 = arith.constant 0 : index
    %c0_5 = arith.constant 0 : index
    %4 = vector.load %arg3[%c0_2, %c0_3, %c0_4, %c0_5] : memref<1x1x64x288xbf16, #tpu.memory_space<vmem>>, vector<1x1x64x288xbf16>
    %5 = vector.shape_cast %4 : vector<1x1x64x288xbf16> to vector<64x288xbf16>
    %c0_6 = arith.constant 0 : index
    %c0_7 = arith.constant 0 : index
    %c0_8 = arith.constant 0 : index
    %6 = vector.load %arg4[%c0_6, %c0_7, %c0_8] : memref<1x288x32xbf16, #tpu.memory_space<vmem>>, vector<1x288x32xbf16>
    %7 = vector.shape_cast %6 : vector<1x288x32xbf16> to vector<288x32xbf16>
    %cst = arith.constant dense<0.000000e+00> : vector<64x32xf32>
    %8 = tpu.matmul %5, %7, %cst {dimension_numbers = #tpu.dot_dimension_numbers<[1], [0], [0], [1], [0, 0, 1, 1], [], []>} : vector<64x288xbf16>, vector<288x32xbf16>, vector<64x32xf32> -> vector<64x32xf32>
    %9 = arith.addf %3, %8 : vector<64x32xf32>
    %c0_9 = arith.constant 0 : index
    %c0_10 = arith.constant 0 : index
    %10 = vector.load %arg7[%c0_9, %c0_10] : memref<64x32xf32, #tpu.memory_space<vmem>>, vector<64x32xf32>
    tpu.vector_store %arg7[%c0_9, %c0_10], %9 {strides = array<i32>} : memref<64x32xf32, #tpu.memory_space<vmem>>, vector<64x32xf32>,
    %c2_i32 = arith.constant 2 : i32
    %11 = arith.cmpi eq, %arg2, %c2_i32 : i32
    %12 = arith.extui %11 : i1 to i32
    %c0_i32_11 = arith.constant 0 : i32
    %13 = arith.cmpi ne, %12, %c0_i32_11 : i32
    scf.if %13 {
      %c0_12 = arith.constant 0 : index
      %c0_13 = arith.constant 0 : index
      %14 = vector.load %arg7[%c0_12, %c0_13] : memref<64x32xf32, #tpu.memory_space<vmem>>, vector<64x32xf32>
      %c0_14 = arith.constant 0 : index
      %c0_15 = arith.constant 0 : index
      %15 = vector.load %arg5[%c0_14, %c0_15] : memref<1x32xf32, #tpu.memory_space<vmem>>, vector<1x32xf32>
      %16 = vector.broadcast %15 : vector<1x32xf32> to vector<64x32xf32>
      %17 = arith.addf %14, %16 : vector<64x32xf32>
      %cst_16 = arith.constant 0.000000e+00 : f32
      %18 = vector.broadcast %cst_16 : f32 to vector<64x32xf32>
      %19 = arith.maximumf %17, %18 : vector<64x32xf32>
      %20 = arith.truncf %19 : vector<64x32xf32> to vector<64x32xbf16>
      %c0_17 = arith.constant 0 : index
      %c0_18 = arith.constant 0 : index
      %c0_19 = arith.constant 0 : index
      %c0_20 = arith.constant 0 : index
      %21 = vector.load %arg6[%c0_17, %c0_18, %c0_19, %c0_20] : memref<1x1x64x32xbf16, #tpu.memory_space<vmem>>, vector<1x1x64x32xbf16>
      %22 = vector.shape_cast %21 : vector<1x1x64x32xbf16> to vector<64x32xbf16>
      %23 = vector.shape_cast %20 : vector<64x32xbf16> to vector<1x1x64x32xbf16>
      tpu.vector_store %arg6[%c0_17, %c0_18, %c0_19, %c0_20], %23 {strides = array<i32>} : memref<1x1x64x32xbf16, #tpu.memory_space<vmem>>, vector<1x1x64x32xbf16>,
    } else {
    }
    return
  }
  func.func @transform_0(%arg0: i32, %arg1: i32, %arg2: i32) -> (i32, i32, i32, i32) {
    %c1_i32 = arith.constant 1 : i32
    %0 = arith.muli %arg1, %c1_i32 : i32
    %1 = arith.addi %0, %arg2 : i32
    %c0_i32 = arith.constant 0 : i32
    %c0_i32_0 = arith.constant 0 : i32
    %c0_i32_1 = arith.constant 0 : i32
    return %arg0, %1, %c0_i32, %c0_i32_0 : i32, i32, i32, i32
  }
  func.func @transform_1(%arg0: i32, %arg1: i32, %arg2: i32) -> (i32, i32, i32) {
    %c0_i32 = arith.constant 0 : i32
    %c0_i32_0 = arith.constant 0 : i32
    %c0_i32_1 = arith.constant 0 : i32
    return %arg2, %c0_i32, %c0_i32_0 : i32, i32, i32
  }
  func.func @transform_2(%arg0: i32, %arg1: i32, %arg2: i32) -> (i32, i32) {
    %c0_i32 = arith.constant 0 : i32
    %c0_i32_0 = arith.constant 0 : i32
    %c0_i32_1 = arith.constant 0 : i32
    return %c0_i32, %c0_i32_0 : i32, i32
  }
  func.func @transform_3(%arg0: i32, %arg1: i32, %arg2: i32) -> (i32, i32, i32, i32) {
    %c0_i32 = arith.constant 0 : i32
    %c0_i32_0 = arith.constant 0 : i32
    %c0_i32_1 = arith.constant 0 : i32
    return %arg0, %arg1, %c0_i32, %c0_i32_0 : i32, i32, i32, i32
  }
}

module attributes {stable_mosaic.version = 11 : i64} {
  func.func @_conv_acc_kernel(%arg0: i32, %arg1: i32, %arg2: i32, %arg3: memref<1x1x16x576xbf16, #tpu.memory_space<vmem>>, %arg4: memref<1x576x64xbf16, #tpu.memory_space<vmem>>, %arg5: memref<1x64xf32, #tpu.memory_space<vmem>>, %arg6: memref<1x1x16x64xbf16, #tpu.memory_space<vmem>>, %arg7: memref<16x64xf32, #tpu.memory_space<vmem>>) attributes {dimension_semantics = [#tpu.dimension_semantics<parallel>, #tpu.dimension_semantics<parallel>, #tpu.dimension_semantics<arbitrary>], iteration_bounds = array<i64: 2, 4, 3>, scalar_prefetch = 0 : i64, scratch_operands = 1 : i64, tpu.core_type = #tpu.core_type<tc>, window_params = [{transform_indices = @transform_0, window_bounds = array<i64: 1, 1, 16, 576>}, {transform_indices = @transform_1, window_bounds = array<i64: 1, 576, 64>}, {pipeline_mode = #tpu.pipeline_mode<synchronous>, transform_indices = @transform_2, window_bounds = array<i64: 1, 64>}, {transform_indices = @transform_3, window_bounds = array<i64: 1, 1, 16, 64>}]} {
    %c0_i32 = arith.constant 0 : i32
    %0 = arith.cmpi eq, %arg2, %c0_i32 : i32
    %1 = arith.extui %0 : i1 to i32
    %c0_i32_0 = arith.constant 0 : i32
    %2 = arith.cmpi ne, %1, %c0_i32_0 : i32
    scf.if %2 {
      %cst_12 = arith.constant 0.000000e+00 : f32
      %14 = vector.broadcast %cst_12 : f32 to vector<16x64xf32>
      %c0_13 = arith.constant 0 : index
      %c0_14 = arith.constant 0 : index
      %15 = vector.load %arg7[%c0_13, %c0_14] : memref<16x64xf32, #tpu.memory_space<vmem>>, vector<16x64xf32>
      tpu.vector_store %arg7[%c0_13, %c0_14], %14 {strides = array<i32>} : memref<16x64xf32, #tpu.memory_space<vmem>>, vector<16x64xf32>,
    } else {
    }
    %c0 = arith.constant 0 : index
    %c0_1 = arith.constant 0 : index
    %3 = vector.load %arg7[%c0, %c0_1] : memref<16x64xf32, #tpu.memory_space<vmem>>, vector<16x64xf32>
    %c0_2 = arith.constant 0 : index
    %c0_3 = arith.constant 0 : index
    %c0_4 = arith.constant 0 : index
    %c0_5 = arith.constant 0 : index
    %4 = vector.load %arg3[%c0_2, %c0_3, %c0_4, %c0_5] : memref<1x1x16x576xbf16, #tpu.memory_space<vmem>>, vector<1x1x16x576xbf16>
    %5 = vector.shape_cast %4 : vector<1x1x16x576xbf16> to vector<16x576xbf16>
    %c0_6 = arith.constant 0 : index
    %c0_7 = arith.constant 0 : index
    %c0_8 = arith.constant 0 : index
    %6 = vector.load %arg4[%c0_6, %c0_7, %c0_8] : memref<1x576x64xbf16, #tpu.memory_space<vmem>>, vector<1x576x64xbf16>
    %7 = vector.shape_cast %6 : vector<1x576x64xbf16> to vector<576x64xbf16>
    %cst = arith.constant dense<0.000000e+00> : vector<16x64xf32>
    %8 = tpu.matmul %5, %7, %cst {dimension_numbers = #tpu.dot_dimension_numbers<[1], [0], [0], [1], [0, 0, 1, 1], [], []>} : vector<16x576xbf16>, vector<576x64xbf16>, vector<16x64xf32> -> vector<16x64xf32>
    %9 = arith.addf %3, %8 : vector<16x64xf32>
    %c0_9 = arith.constant 0 : index
    %c0_10 = arith.constant 0 : index
    %10 = vector.load %arg7[%c0_9, %c0_10] : memref<16x64xf32, #tpu.memory_space<vmem>>, vector<16x64xf32>
    tpu.vector_store %arg7[%c0_9, %c0_10], %9 {strides = array<i32>} : memref<16x64xf32, #tpu.memory_space<vmem>>, vector<16x64xf32>,
    %c2_i32 = arith.constant 2 : i32
    %11 = arith.cmpi eq, %arg2, %c2_i32 : i32
    %12 = arith.extui %11 : i1 to i32
    %c0_i32_11 = arith.constant 0 : i32
    %13 = arith.cmpi ne, %12, %c0_i32_11 : i32
    scf.if %13 {
      %c0_12 = arith.constant 0 : index
      %c0_13 = arith.constant 0 : index
      %14 = vector.load %arg7[%c0_12, %c0_13] : memref<16x64xf32, #tpu.memory_space<vmem>>, vector<16x64xf32>
      %c0_14 = arith.constant 0 : index
      %c0_15 = arith.constant 0 : index
      %15 = vector.load %arg5[%c0_14, %c0_15] : memref<1x64xf32, #tpu.memory_space<vmem>>, vector<1x64xf32>
      %16 = vector.broadcast %15 : vector<1x64xf32> to vector<16x64xf32>
      %17 = arith.addf %14, %16 : vector<16x64xf32>
      %cst_16 = arith.constant 0.000000e+00 : f32
      %18 = vector.broadcast %cst_16 : f32 to vector<16x64xf32>
      %19 = arith.maximumf %17, %18 : vector<16x64xf32>
      %20 = arith.truncf %19 : vector<16x64xf32> to vector<16x64xbf16>
      %c0_17 = arith.constant 0 : index
      %c0_18 = arith.constant 0 : index
      %c0_19 = arith.constant 0 : index
      %c0_20 = arith.constant 0 : index
      %21 = vector.load %arg6[%c0_17, %c0_18, %c0_19, %c0_20] : memref<1x1x16x64xbf16, #tpu.memory_space<vmem>>, vector<1x1x16x64xbf16>
      %22 = vector.shape_cast %21 : vector<1x1x16x64xbf16> to vector<16x64xbf16>
      %23 = vector.shape_cast %20 : vector<16x64xbf16> to vector<1x1x16x64xbf16>
      tpu.vector_store %arg6[%c0_17, %c0_18, %c0_19, %c0_20], %23 {strides = array<i32>} : memref<1x1x16x64xbf16, #tpu.memory_space<vmem>>, vector<1x1x16x64xbf16>,
    } else {
    }
    return
  }
  func.func @transform_0(%arg0: i32, %arg1: i32, %arg2: i32) -> (i32, i32, i32, i32) {
    %c2_i32 = arith.constant 2 : i32
    %0 = arith.muli %arg1, %c2_i32 : i32
    %1 = arith.addi %0, %arg2 : i32
    %c0_i32 = arith.constant 0 : i32
    %c0_i32_0 = arith.constant 0 : i32
    %c0_i32_1 = arith.constant 0 : i32
    return %arg0, %1, %c0_i32, %c0_i32_0 : i32, i32, i32, i32
  }
  func.func @transform_1(%arg0: i32, %arg1: i32, %arg2: i32) -> (i32, i32, i32) {
    %c0_i32 = arith.constant 0 : i32
    %c0_i32_0 = arith.constant 0 : i32
    %c0_i32_1 = arith.constant 0 : i32
    return %arg2, %c0_i32, %c0_i32_0 : i32, i32, i32
  }
  func.func @transform_2(%arg0: i32, %arg1: i32, %arg2: i32) -> (i32, i32) {
    %c0_i32 = arith.constant 0 : i32
    %c0_i32_0 = arith.constant 0 : i32
    %c0_i32_1 = arith.constant 0 : i32
    return %c0_i32, %c0_i32_0 : i32, i32
  }
  func.func @transform_3(%arg0: i32, %arg1: i32, %arg2: i32) -> (i32, i32, i32, i32) {
    %c0_i32 = arith.constant 0 : i32
    %c0_i32_0 = arith.constant 0 : i32
    %c0_i32_1 = arith.constant 0 : i32
    return %arg0, %arg1, %c0_i32, %c0_i32_0 : i32, i32, i32, i32
  }
}

module attributes {stable_mosaic.version = 11 : i64} {
  func.func @_conv_acc_kernel(%arg0: i32, %arg1: i32, %arg2: i32, %arg3: memref<1x1x16x576xbf16, #tpu.memory_space<vmem>>, %arg4: memref<1x576x64xbf16, #tpu.memory_space<vmem>>, %arg5: memref<1x64xf32, #tpu.memory_space<vmem>>, %arg6: memref<1x1x16x64xbf16, #tpu.memory_space<vmem>>, %arg7: memref<16x64xf32, #tpu.memory_space<vmem>>) attributes {dimension_semantics = [#tpu.dimension_semantics<parallel>, #tpu.dimension_semantics<parallel>, #tpu.dimension_semantics<arbitrary>], iteration_bounds = array<i64: 2, 4, 3>, scalar_prefetch = 0 : i64, scratch_operands = 1 : i64, tpu.core_type = #tpu.core_type<tc>, window_params = [{transform_indices = @transform_0, window_bounds = array<i64: 1, 1, 16, 576>}, {transform_indices = @transform_1, window_bounds = array<i64: 1, 576, 64>}, {pipeline_mode = #tpu.pipeline_mode<synchronous>, transform_indices = @transform_2, window_bounds = array<i64: 1, 64>}, {transform_indices = @transform_3, window_bounds = array<i64: 1, 1, 16, 64>}]} {
    %c0_i32 = arith.constant 0 : i32
    %0 = arith.cmpi eq, %arg2, %c0_i32 : i32
    %1 = arith.extui %0 : i1 to i32
    %c0_i32_0 = arith.constant 0 : i32
    %2 = arith.cmpi ne, %1, %c0_i32_0 : i32
    scf.if %2 {
      %cst_12 = arith.constant 0.000000e+00 : f32
      %14 = vector.broadcast %cst_12 : f32 to vector<16x64xf32>
      %c0_13 = arith.constant 0 : index
      %c0_14 = arith.constant 0 : index
      %15 = vector.load %arg7[%c0_13, %c0_14] : memref<16x64xf32, #tpu.memory_space<vmem>>, vector<16x64xf32>
      tpu.vector_store %arg7[%c0_13, %c0_14], %14 {strides = array<i32>} : memref<16x64xf32, #tpu.memory_space<vmem>>, vector<16x64xf32>,
    } else {
    }
    %c0 = arith.constant 0 : index
    %c0_1 = arith.constant 0 : index
    %3 = vector.load %arg7[%c0, %c0_1] : memref<16x64xf32, #tpu.memory_space<vmem>>, vector<16x64xf32>
    %c0_2 = arith.constant 0 : index
    %c0_3 = arith.constant 0 : index
    %c0_4 = arith.constant 0 : index
    %c0_5 = arith.constant 0 : index
    %4 = vector.load %arg3[%c0_2, %c0_3, %c0_4, %c0_5] : memref<1x1x16x576xbf16, #tpu.memory_space<vmem>>, vector<1x1x16x576xbf16>
    %5 = vector.shape_cast %4 : vector<1x1x16x576xbf16> to vector<16x576xbf16>
    %c0_6 = arith.constant 0 : index
    %c0_7 = arith.constant 0 : index
    %c0_8 = arith.constant 0 : index
    %6 = vector.load %arg4[%c0_6, %c0_7, %c0_8] : memref<1x576x64xbf16, #tpu.memory_space<vmem>>, vector<1x576x64xbf16>
    %7 = vector.shape_cast %6 : vector<1x576x64xbf16> to vector<576x64xbf16>
    %cst = arith.constant dense<0.000000e+00> : vector<16x64xf32>
    %8 = tpu.matmul %5, %7, %cst {dimension_numbers = #tpu.dot_dimension_numbers<[1], [0], [0], [1], [0, 0, 1, 1], [], []>} : vector<16x576xbf16>, vector<576x64xbf16>, vector<16x64xf32> -> vector<16x64xf32>
    %9 = arith.addf %3, %8 : vector<16x64xf32>
    %c0_9 = arith.constant 0 : index
    %c0_10 = arith.constant 0 : index
    %10 = vector.load %arg7[%c0_9, %c0_10] : memref<16x64xf32, #tpu.memory_space<vmem>>, vector<16x64xf32>
    tpu.vector_store %arg7[%c0_9, %c0_10], %9 {strides = array<i32>} : memref<16x64xf32, #tpu.memory_space<vmem>>, vector<16x64xf32>,
    %c2_i32 = arith.constant 2 : i32
    %11 = arith.cmpi eq, %arg2, %c2_i32 : i32
    %12 = arith.extui %11 : i1 to i32
    %c0_i32_11 = arith.constant 0 : i32
    %13 = arith.cmpi ne, %12, %c0_i32_11 : i32
    scf.if %13 {
      %c0_12 = arith.constant 0 : index
      %c0_13 = arith.constant 0 : index
      %14 = vector.load %arg7[%c0_12, %c0_13] : memref<16x64xf32, #tpu.memory_space<vmem>>, vector<16x64xf32>
      %c0_14 = arith.constant 0 : index
      %c0_15 = arith.constant 0 : index
      %15 = vector.load %arg5[%c0_14, %c0_15] : memref<1x64xf32, #tpu.memory_space<vmem>>, vector<1x64xf32>
      %16 = vector.broadcast %15 : vector<1x64xf32> to vector<16x64xf32>
      %17 = arith.addf %14, %16 : vector<16x64xf32>
      %cst_16 = arith.constant 0.000000e+00 : f32
      %18 = vector.broadcast %cst_16 : f32 to vector<16x64xf32>
      %19 = arith.maximumf %17, %18 : vector<16x64xf32>
      %20 = arith.truncf %19 : vector<16x64xf32> to vector<16x64xbf16>
      %c0_17 = arith.constant 0 : index
      %c0_18 = arith.constant 0 : index
      %c0_19 = arith.constant 0 : index
      %c0_20 = arith.constant 0 : index
      %21 = vector.load %arg6[%c0_17, %c0_18, %c0_19, %c0_20] : memref<1x1x16x64xbf16, #tpu.memory_space<vmem>>, vector<1x1x16x64xbf16>
      %22 = vector.shape_cast %21 : vector<1x1x16x64xbf16> to vector<16x64xbf16>
      %23 = vector.shape_cast %20 : vector<16x64xbf16> to vector<1x1x16x64xbf16>
      tpu.vector_store %arg6[%c0_17, %c0_18, %c0_19, %c0_20], %23 {strides = array<i32>} : memref<1x1x16x64xbf16, #tpu.memory_space<vmem>>, vector<1x1x16x64xbf16>,
    } else {
    }
    return
  }
  func.func @transform_0(%arg0: i32, %arg1: i32, %arg2: i32) -> (i32, i32, i32, i32) {
    %c1_i32 = arith.constant 1 : i32
    %0 = arith.muli %arg1, %c1_i32 : i32
    %1 = arith.addi %0, %arg2 : i32
    %c0_i32 = arith.constant 0 : i32
    %c0_i32_0 = arith.constant 0 : i32
    %c0_i32_1 = arith.constant 0 : i32
    return %arg0, %1, %c0_i32, %c0_i32_0 : i32, i32, i32, i32
  }
  func.func @transform_1(%arg0: i32, %arg1: i32, %arg2: i32) -> (i32, i32, i32) {
    %c0_i32 = arith.constant 0 : i32
    %c0_i32_0 = arith.constant 0 : i32
    %c0_i32_1 = arith.constant 0 : i32
    return %arg2, %c0_i32, %c0_i32_0 : i32, i32, i32
  }
  func.func @transform_2(%arg0: i32, %arg1: i32, %arg2: i32) -> (i32, i32) {
    %c0_i32 = arith.constant 0 : i32
    %c0_i32_0 = arith.constant 0 : i32
    %c0_i32_1 = arith.constant 0 : i32
    return %c0_i32, %c0_i32_0 : i32, i32
  }
  func.func @transform_3(%arg0: i32, %arg1: i32, %arg2: i32) -> (i32, i32, i32, i32) {
    %c0_i32 = arith.constant 0 : i32
    %c0_i32_0 = arith.constant 0 : i32
    %c0_i32_1 = arith.constant 0 : i32
    return %arg0, %arg1, %c0_i32, %c0_i32_0 : i32, i32, i32, i32
  }
}

module attributes {stable_mosaic.version = 11 : i64} {
  func.func @_conv_acc_kernel(%arg0: i32, %arg1: i32, %arg2: i32, %arg3: memref<1x1x4x576xbf16, #tpu.memory_space<vmem>>, %arg4: memref<1x576x64xbf16, #tpu.memory_space<vmem>>, %arg5: memref<1x64xf32, #tpu.memory_space<vmem>>, %arg6: memref<1x1x4x64xbf16, #tpu.memory_space<vmem>>, %arg7: memref<4x64xf32, #tpu.memory_space<vmem>>) attributes {dimension_semantics = [#tpu.dimension_semantics<parallel>, #tpu.dimension_semantics<parallel>, #tpu.dimension_semantics<arbitrary>], iteration_bounds = array<i64: 2, 2, 3>, scalar_prefetch = 0 : i64, scratch_operands = 1 : i64, tpu.core_type = #tpu.core_type<tc>, window_params = [{transform_indices = @transform_0, window_bounds = array<i64: 1, 1, 4, 576>}, {transform_indices = @transform_1, window_bounds = array<i64: 1, 576, 64>}, {pipeline_mode = #tpu.pipeline_mode<synchronous>, transform_indices = @transform_2, window_bounds = array<i64: 1, 64>}, {transform_indices = @transform_3, window_bounds = array<i64: 1, 1, 4, 64>}]} {
    %c0_i32 = arith.constant 0 : i32
    %0 = arith.cmpi eq, %arg2, %c0_i32 : i32
    %1 = arith.extui %0 : i1 to i32
    %c0_i32_0 = arith.constant 0 : i32
    %2 = arith.cmpi ne, %1, %c0_i32_0 : i32
    scf.if %2 {
      %cst_12 = arith.constant 0.000000e+00 : f32
      %14 = vector.broadcast %cst_12 : f32 to vector<4x64xf32>
      %c0_13 = arith.constant 0 : index
      %c0_14 = arith.constant 0 : index
      %15 = vector.load %arg7[%c0_13, %c0_14] : memref<4x64xf32, #tpu.memory_space<vmem>>, vector<4x64xf32>
      tpu.vector_store %arg7[%c0_13, %c0_14], %14 {strides = array<i32>} : memref<4x64xf32, #tpu.memory_space<vmem>>, vector<4x64xf32>,
    } else {
    }
    %c0 = arith.constant 0 : index
    %c0_1 = arith.constant 0 : index
    %3 = vector.load %arg7[%c0, %c0_1] : memref<4x64xf32, #tpu.memory_space<vmem>>, vector<4x64xf32>
    %c0_2 = arith.constant 0 : index
    %c0_3 = arith.constant 0 : index
    %c0_4 = arith.constant 0 : index
    %c0_5 = arith.constant 0 : index
    %4 = vector.load %arg3[%c0_2, %c0_3, %c0_4, %c0_5] : memref<1x1x4x576xbf16, #tpu.memory_space<vmem>>, vector<1x1x4x576xbf16>
    %5 = vector.shape_cast %4 : vector<1x1x4x576xbf16> to vector<4x576xbf16>
    %c0_6 = arith.constant 0 : index
    %c0_7 = arith.constant 0 : index
    %c0_8 = arith.constant 0 : index
    %6 = vector.load %arg4[%c0_6, %c0_7, %c0_8] : memref<1x576x64xbf16, #tpu.memory_space<vmem>>, vector<1x576x64xbf16>
    %7 = vector.shape_cast %6 : vector<1x576x64xbf16> to vector<576x64xbf16>
    %cst = arith.constant dense<0.000000e+00> : vector<4x64xf32>
    %8 = tpu.matmul %5, %7, %cst {dimension_numbers = #tpu.dot_dimension_numbers<[1], [0], [0], [1], [0, 0, 1, 1], [], []>} : vector<4x576xbf16>, vector<576x64xbf16>, vector<4x64xf32> -> vector<4x64xf32>
    %9 = arith.addf %3, %8 : vector<4x64xf32>
    %c0_9 = arith.constant 0 : index
    %c0_10 = arith.constant 0 : index
    %10 = vector.load %arg7[%c0_9, %c0_10] : memref<4x64xf32, #tpu.memory_space<vmem>>, vector<4x64xf32>
    tpu.vector_store %arg7[%c0_9, %c0_10], %9 {strides = array<i32>} : memref<4x64xf32, #tpu.memory_space<vmem>>, vector<4x64xf32>,
    %c2_i32 = arith.constant 2 : i32
    %11 = arith.cmpi eq, %arg2, %c2_i32 : i32
    %12 = arith.extui %11 : i1 to i32
    %c0_i32_11 = arith.constant 0 : i32
    %13 = arith.cmpi ne, %12, %c0_i32_11 : i32
    scf.if %13 {
      %c0_12 = arith.constant 0 : index
      %c0_13 = arith.constant 0 : index
      %14 = vector.load %arg7[%c0_12, %c0_13] : memref<4x64xf32, #tpu.memory_space<vmem>>, vector<4x64xf32>
      %c0_14 = arith.constant 0 : index
      %c0_15 = arith.constant 0 : index
      %15 = vector.load %arg5[%c0_14, %c0_15] : memref<1x64xf32, #tpu.memory_space<vmem>>, vector<1x64xf32>
      %16 = vector.broadcast %15 : vector<1x64xf32> to vector<4x64xf32>
      %17 = arith.addf %14, %16 : vector<4x64xf32>
      %cst_16 = arith.constant 0.000000e+00 : f32
      %18 = vector.broadcast %cst_16 : f32 to vector<4x64xf32>
      %19 = arith.maximumf %17, %18 : vector<4x64xf32>
      %20 = arith.truncf %19 : vector<4x64xf32> to vector<4x64xbf16>
      %c0_17 = arith.constant 0 : index
      %c0_18 = arith.constant 0 : index
      %c0_19 = arith.constant 0 : index
      %c0_20 = arith.constant 0 : index
      %21 = vector.load %arg6[%c0_17, %c0_18, %c0_19, %c0_20] : memref<1x1x4x64xbf16, #tpu.memory_space<vmem>>, vector<1x1x4x64xbf16>
      %22 = vector.shape_cast %21 : vector<1x1x4x64xbf16> to vector<4x64xbf16>
      %23 = vector.shape_cast %20 : vector<4x64xbf16> to vector<1x1x4x64xbf16>
      tpu.vector_store %arg6[%c0_17, %c0_18, %c0_19, %c0_20], %23 {strides = array<i32>} : memref<1x1x4x64xbf16, #tpu.memory_space<vmem>>, vector<1x1x4x64xbf16>,
    } else {
    }
    return
  }
  func.func @transform_0(%arg0: i32, %arg1: i32, %arg2: i32) -> (i32, i32, i32, i32) {
    %c2_i32 = arith.constant 2 : i32
    %0 = arith.muli %arg1, %c2_i32 : i32
    %1 = arith.addi %0, %arg2 : i32
    %c0_i32 = arith.constant 0 : i32
    %c0_i32_0 = arith.constant 0 : i32
    %c0_i32_1 = arith.constant 0 : i32
    return %arg0, %1, %c0_i32, %c0_i32_0 : i32, i32, i32, i32
  }
  func.func @transform_1(%arg0: i32, %arg1: i32, %arg2: i32) -> (i32, i32, i32) {
    %c0_i32 = arith.constant 0 : i32
    %c0_i32_0 = arith.constant 0 : i32
    %c0_i32_1 = arith.constant 0 : i32
    return %arg2, %c0_i32, %c0_i32_0 : i32, i32, i32
  }
  func.func @transform_2(%arg0: i32, %arg1: i32, %arg2: i32) -> (i32, i32) {
    %c0_i32 = arith.constant 0 : i32
    %c0_i32_0 = arith.constant 0 : i32
    %c0_i32_1 = arith.constant 0 : i32
    return %c0_i32, %c0_i32_0 : i32, i32
  }
  func.func @transform_3(%arg0: i32, %arg1: i32, %arg2: i32) -> (i32, i32, i32, i32) {
    %c0_i32 = arith.constant 0 : i32
    %c0_i32_0 = arith.constant 0 : i32
    %c0_i32_1 = arith.constant 0 : i32
    return %arg0, %arg1, %c0_i32, %c0_i32_0 : i32, i32, i32, i32
  }
}

module attributes {stable_mosaic.version = 11 : i64} {
  func.func @_conv_acc_kernel(%arg0: i32, %arg1: i32, %arg2: i32, %arg3: memref<1x1x4x576xbf16, #tpu.memory_space<vmem>>, %arg4: memref<1x576x64xbf16, #tpu.memory_space<vmem>>, %arg5: memref<1x64xf32, #tpu.memory_space<vmem>>, %arg6: memref<1x1x4x64xbf16, #tpu.memory_space<vmem>>, %arg7: memref<4x64xf32, #tpu.memory_space<vmem>>) attributes {dimension_semantics = [#tpu.dimension_semantics<parallel>, #tpu.dimension_semantics<parallel>, #tpu.dimension_semantics<arbitrary>], iteration_bounds = array<i64: 2, 2, 3>, scalar_prefetch = 0 : i64, scratch_operands = 1 : i64, tpu.core_type = #tpu.core_type<tc>, window_params = [{transform_indices = @transform_0, window_bounds = array<i64: 1, 1, 4, 576>}, {transform_indices = @transform_1, window_bounds = array<i64: 1, 576, 64>}, {pipeline_mode = #tpu.pipeline_mode<synchronous>, transform_indices = @transform_2, window_bounds = array<i64: 1, 64>}, {transform_indices = @transform_3, window_bounds = array<i64: 1, 1, 4, 64>}]} {
    %c0_i32 = arith.constant 0 : i32
    %0 = arith.cmpi eq, %arg2, %c0_i32 : i32
    %1 = arith.extui %0 : i1 to i32
    %c0_i32_0 = arith.constant 0 : i32
    %2 = arith.cmpi ne, %1, %c0_i32_0 : i32
    scf.if %2 {
      %cst_12 = arith.constant 0.000000e+00 : f32
      %14 = vector.broadcast %cst_12 : f32 to vector<4x64xf32>
      %c0_13 = arith.constant 0 : index
      %c0_14 = arith.constant 0 : index
      %15 = vector.load %arg7[%c0_13, %c0_14] : memref<4x64xf32, #tpu.memory_space<vmem>>, vector<4x64xf32>
      tpu.vector_store %arg7[%c0_13, %c0_14], %14 {strides = array<i32>} : memref<4x64xf32, #tpu.memory_space<vmem>>, vector<4x64xf32>,
    } else {
    }
    %c0 = arith.constant 0 : index
    %c0_1 = arith.constant 0 : index
    %3 = vector.load %arg7[%c0, %c0_1] : memref<4x64xf32, #tpu.memory_space<vmem>>, vector<4x64xf32>
    %c0_2 = arith.constant 0 : index
    %c0_3 = arith.constant 0 : index
    %c0_4 = arith.constant 0 : index
    %c0_5 = arith.constant 0 : index
    %4 = vector.load %arg3[%c0_2, %c0_3, %c0_4, %c0_5] : memref<1x1x4x576xbf16, #tpu.memory_space<vmem>>, vector<1x1x4x576xbf16>
    %5 = vector.shape_cast %4 : vector<1x1x4x576xbf16> to vector<4x576xbf16>
    %c0_6 = arith.constant 0 : index
    %c0_7 = arith.constant 0 : index
    %c0_8 = arith.constant 0 : index
    %6 = vector.load %arg4[%c0_6, %c0_7, %c0_8] : memref<1x576x64xbf16, #tpu.memory_space<vmem>>, vector<1x576x64xbf16>
    %7 = vector.shape_cast %6 : vector<1x576x64xbf16> to vector<576x64xbf16>
    %cst = arith.constant dense<0.000000e+00> : vector<4x64xf32>
    %8 = tpu.matmul %5, %7, %cst {dimension_numbers = #tpu.dot_dimension_numbers<[1], [0], [0], [1], [0, 0, 1, 1], [], []>} : vector<4x576xbf16>, vector<576x64xbf16>, vector<4x64xf32> -> vector<4x64xf32>
    %9 = arith.addf %3, %8 : vector<4x64xf32>
    %c0_9 = arith.constant 0 : index
    %c0_10 = arith.constant 0 : index
    %10 = vector.load %arg7[%c0_9, %c0_10] : memref<4x64xf32, #tpu.memory_space<vmem>>, vector<4x64xf32>
    tpu.vector_store %arg7[%c0_9, %c0_10], %9 {strides = array<i32>} : memref<4x64xf32, #tpu.memory_space<vmem>>, vector<4x64xf32>,
    %c2_i32 = arith.constant 2 : i32
    %11 = arith.cmpi eq, %arg2, %c2_i32 : i32
    %12 = arith.extui %11 : i1 to i32
    %c0_i32_11 = arith.constant 0 : i32
    %13 = arith.cmpi ne, %12, %c0_i32_11 : i32
    scf.if %13 {
      %c0_12 = arith.constant 0 : index
      %c0_13 = arith.constant 0 : index
      %14 = vector.load %arg7[%c0_12, %c0_13] : memref<4x64xf32, #tpu.memory_space<vmem>>, vector<4x64xf32>
      %c0_14 = arith.constant 0 : index
      %c0_15 = arith.constant 0 : index
      %15 = vector.load %arg5[%c0_14, %c0_15] : memref<1x64xf32, #tpu.memory_space<vmem>>, vector<1x64xf32>
      %16 = vector.broadcast %15 : vector<1x64xf32> to vector<4x64xf32>
      %17 = arith.addf %14, %16 : vector<4x64xf32>
      %cst_16 = arith.constant 0.000000e+00 : f32
      %18 = vector.broadcast %cst_16 : f32 to vector<4x64xf32>
      %19 = arith.maximumf %17, %18 : vector<4x64xf32>
      %20 = arith.truncf %19 : vector<4x64xf32> to vector<4x64xbf16>
      %c0_17 = arith.constant 0 : index
      %c0_18 = arith.constant 0 : index
      %c0_19 = arith.constant 0 : index
      %c0_20 = arith.constant 0 : index
      %21 = vector.load %arg6[%c0_17, %c0_18, %c0_19, %c0_20] : memref<1x1x4x64xbf16, #tpu.memory_space<vmem>>, vector<1x1x4x64xbf16>
      %22 = vector.shape_cast %21 : vector<1x1x4x64xbf16> to vector<4x64xbf16>
      %23 = vector.shape_cast %20 : vector<4x64xbf16> to vector<1x1x4x64xbf16>
      tpu.vector_store %arg6[%c0_17, %c0_18, %c0_19, %c0_20], %23 {strides = array<i32>} : memref<1x1x4x64xbf16, #tpu.memory_space<vmem>>, vector<1x1x4x64xbf16>,
    } else {
    }
    return
  }
  func.func @transform_0(%arg0: i32, %arg1: i32, %arg2: i32) -> (i32, i32, i32, i32) {
    %c1_i32 = arith.constant 1 : i32
    %0 = arith.muli %arg1, %c1_i32 : i32
    %1 = arith.addi %0, %arg2 : i32
    %c0_i32 = arith.constant 0 : i32
    %c0_i32_0 = arith.constant 0 : i32
    %c0_i32_1 = arith.constant 0 : i32
    return %arg0, %1, %c0_i32, %c0_i32_0 : i32, i32, i32, i32
  }
  func.func @transform_1(%arg0: i32, %arg1: i32, %arg2: i32) -> (i32, i32, i32) {
    %c0_i32 = arith.constant 0 : i32
    %c0_i32_0 = arith.constant 0 : i32
    %c0_i32_1 = arith.constant 0 : i32
    return %arg2, %c0_i32, %c0_i32_0 : i32, i32, i32
  }
  func.func @transform_2(%arg0: i32, %arg1: i32, %arg2: i32) -> (i32, i32) {
    %c0_i32 = arith.constant 0 : i32
    %c0_i32_0 = arith.constant 0 : i32
    %c0_i32_1 = arith.constant 0 : i32
    return %c0_i32, %c0_i32_0 : i32, i32
  }
  func.func @transform_3(%arg0: i32, %arg1: i32, %arg2: i32) -> (i32, i32, i32, i32) {
    %c0_i32 = arith.constant 0 : i32
    %c0_i32_0 = arith.constant 0 : i32
    %c0_i32_1 = arith.constant 0 : i32
    return %arg0, %arg1, %c0_i32, %c0_i32_0 : i32, i32, i32, i32
  }
}

module attributes {stable_mosaic.version = 11 : i64} {
  func.func @_conv_acc_res_kernel(%arg0: i32, %arg1: i32, %arg2: i32, %arg3: memref<1x1x4x128xbf16, #tpu.memory_space<vmem>>, %arg4: memref<1x128x64xbf16, #tpu.memory_space<vmem>>, %arg5: memref<1x64xf32, #tpu.memory_space<vmem>>, %arg6: memref<1x1x4x64xbf16, #tpu.memory_space<vmem>>, %arg7: memref<1x1x4x64xbf16, #tpu.memory_space<vmem>>, %arg8: memref<4x64xf32, #tpu.memory_space<vmem>>) attributes {dimension_semantics = [#tpu.dimension_semantics<parallel>, #tpu.dimension_semantics<parallel>, #tpu.dimension_semantics<arbitrary>], iteration_bounds = array<i64: 2, 2, 1>, scalar_prefetch = 0 : i64, scratch_operands = 1 : i64, tpu.core_type = #tpu.core_type<tc>, window_params = [{transform_indices = @transform_0, window_bounds = array<i64: 1, 1, 4, 128>}, {transform_indices = @transform_1, window_bounds = array<i64: 1, 128, 64>}, {pipeline_mode = #tpu.pipeline_mode<synchronous>, transform_indices = @transform_2, window_bounds = array<i64: 1, 64>}, {transform_indices = @transform_3, window_bounds = array<i64: 1, 1, 4, 64>}, {transform_indices = @transform_4, window_bounds = array<i64: 1, 1, 4, 64>}]} {
    %c0_i32 = arith.constant 0 : i32
    %0 = arith.cmpi eq, %arg2, %c0_i32 : i32
    %1 = arith.extui %0 : i1 to i32
    %c0_i32_0 = arith.constant 0 : i32
    %2 = arith.cmpi ne, %1, %c0_i32_0 : i32
    scf.if %2 {
      %cst_13 = arith.constant 0.000000e+00 : f32
      %14 = vector.broadcast %cst_13 : f32 to vector<4x64xf32>
      %c0_14 = arith.constant 0 : index
      %c0_15 = arith.constant 0 : index
      %15 = vector.load %arg8[%c0_14, %c0_15] : memref<4x64xf32, #tpu.memory_space<vmem>>, vector<4x64xf32>
      tpu.vector_store %arg8[%c0_14, %c0_15], %14 {strides = array<i32>} : memref<4x64xf32, #tpu.memory_space<vmem>>, vector<4x64xf32>,
    } else {
    }
    %c0 = arith.constant 0 : index
    %c0_1 = arith.constant 0 : index
    %3 = vector.load %arg8[%c0, %c0_1] : memref<4x64xf32, #tpu.memory_space<vmem>>, vector<4x64xf32>
    %c0_2 = arith.constant 0 : index
    %c0_3 = arith.constant 0 : index
    %c0_4 = arith.constant 0 : index
    %c0_5 = arith.constant 0 : index
    %4 = vector.load %arg3[%c0_2, %c0_3, %c0_4, %c0_5] : memref<1x1x4x128xbf16, #tpu.memory_space<vmem>>, vector<1x1x4x128xbf16>
    %5 = vector.shape_cast %4 : vector<1x1x4x128xbf16> to vector<4x128xbf16>
    %c0_6 = arith.constant 0 : index
    %c0_7 = arith.constant 0 : index
    %c0_8 = arith.constant 0 : index
    %6 = vector.load %arg4[%c0_6, %c0_7, %c0_8] : memref<1x128x64xbf16, #tpu.memory_space<vmem>>, vector<1x128x64xbf16>
    %7 = vector.shape_cast %6 : vector<1x128x64xbf16> to vector<128x64xbf16>
    %cst = arith.constant dense<0.000000e+00> : vector<4x64xf32>
    %8 = tpu.matmul %5, %7, %cst {dimension_numbers = #tpu.dot_dimension_numbers<[1], [0], [0], [1], [0, 0, 1, 1], [], []>} : vector<4x128xbf16>, vector<128x64xbf16>, vector<4x64xf32> -> vector<4x64xf32>
    %9 = arith.addf %3, %8 : vector<4x64xf32>
    %c0_9 = arith.constant 0 : index
    %c0_10 = arith.constant 0 : index
    %10 = vector.load %arg8[%c0_9, %c0_10] : memref<4x64xf32, #tpu.memory_space<vmem>>, vector<4x64xf32>
    tpu.vector_store %arg8[%c0_9, %c0_10], %9 {strides = array<i32>} : memref<4x64xf32, #tpu.memory_space<vmem>>, vector<4x64xf32>,
    %c0_i32_11 = arith.constant 0 : i32
    %11 = arith.cmpi eq, %arg2, %c0_i32_11 : i32
    %12 = arith.extui %11 : i1 to i32
    %c0_i32_12 = arith.constant 0 : i32
    %13 = arith.cmpi ne, %12, %c0_i32_12 : i32
    scf.if %13 {
      %c0_13 = arith.constant 0 : index
      %c0_14 = arith.constant 0 : index
      %14 = vector.load %arg8[%c0_13, %c0_14] : memref<4x64xf32, #tpu.memory_space<vmem>>, vector<4x64xf32>
      %c0_15 = arith.constant 0 : index
      %c0_16 = arith.constant 0 : index
      %15 = vector.load %arg5[%c0_15, %c0_16] : memref<1x64xf32, #tpu.memory_space<vmem>>, vector<1x64xf32>
      %16 = vector.broadcast %15 : vector<1x64xf32> to vector<4x64xf32>
      %17 = arith.addf %14, %16 : vector<4x64xf32>
      %c0_17 = arith.constant 0 : index
      %c0_18 = arith.constant 0 : index
      %c0_19 = arith.constant 0 : index
      %c0_20 = arith.constant 0 : index
      %18 = vector.load %arg6[%c0_17, %c0_18, %c0_19, %c0_20] : memref<1x1x4x64xbf16, #tpu.memory_space<vmem>>, vector<1x1x4x64xbf16>
      %19 = vector.shape_cast %18 : vector<1x1x4x64xbf16> to vector<4x64xbf16>
      %20 = arith.extf %19 : vector<4x64xbf16> to vector<4x64xf32>
      %21 = arith.addf %17, %20 : vector<4x64xf32>
      %cst_21 = arith.constant 0.000000e+00 : f32
      %22 = vector.broadcast %cst_21 : f32 to vector<4x64xf32>
      %23 = arith.maximumf %21, %22 : vector<4x64xf32>
      %24 = arith.truncf %23 : vector<4x64xf32> to vector<4x64xbf16>
      %c0_22 = arith.constant 0 : index
      %c0_23 = arith.constant 0 : index
      %c0_24 = arith.constant 0 : index
      %c0_25 = arith.constant 0 : index
      %25 = vector.load %arg7[%c0_22, %c0_23, %c0_24, %c0_25] : memref<1x1x4x64xbf16, #tpu.memory_space<vmem>>, vector<1x1x4x64xbf16>
      %26 = vector.shape_cast %25 : vector<1x1x4x64xbf16> to vector<4x64xbf16>
      %27 = vector.shape_cast %24 : vector<4x64xbf16> to vector<1x1x4x64xbf16>
      tpu.vector_store %arg7[%c0_22, %c0_23, %c0_24, %c0_25], %27 {strides = array<i32>} : memref<1x1x4x64xbf16, #tpu.memory_space<vmem>>, vector<1x1x4x64xbf16>,
    } else {
    }
    return
  }
  func.func @transform_0(%arg0: i32, %arg1: i32, %arg2: i32) -> (i32, i32, i32, i32) {
    %c1_i32 = arith.constant 1 : i32
    %0 = arith.muli %arg1, %c1_i32 : i32
    %1 = arith.addi %0, %arg2 : i32
    %c0_i32 = arith.constant 0 : i32
    %c0_i32_0 = arith.constant 0 : i32
    %c0_i32_1 = arith.constant 0 : i32
    return %arg0, %1, %c0_i32, %c0_i32_0 : i32, i32, i32, i32
  }
  func.func @transform_1(%arg0: i32, %arg1: i32, %arg2: i32) -> (i32, i32, i32) {
    %c0_i32 = arith.constant 0 : i32
    %c0_i32_0 = arith.constant 0 : i32
    %c0_i32_1 = arith.constant 0 : i32
    return %arg2, %c0_i32, %c0_i32_0 : i32, i32, i32
  }
  func.func @transform_2(%arg0: i32, %arg1: i32, %arg2: i32) -> (i32, i32) {
    %c0_i32 = arith.constant 0 : i32
    %c0_i32_0 = arith.constant 0 : i32
    %c0_i32_1 = arith.constant 0 : i32
    return %c0_i32, %c0_i32_0 : i32, i32
  }
  func.func @transform_3(%arg0: i32, %arg1: i32, %arg2: i32) -> (i32, i32, i32, i32) {
    %c0_i32 = arith.constant 0 : i32
    %c0_i32_0 = arith.constant 0 : i32
    %c0_i32_1 = arith.constant 0 : i32
    return %arg0, %arg1, %c0_i32, %c0_i32_0 : i32, i32, i32, i32
  }
  func.func @transform_4(%arg0: i32, %arg1: i32, %arg2: i32) -> (i32, i32, i32, i32) {
    %c0_i32 = arith.constant 0 : i32
    %c0_i32_0 = arith.constant 0 : i32
    %c0_i32_1 = arith.constant 0 : i32
    return %arg0, %arg1, %c0_i32, %c0_i32_0 : i32, i32, i32, i32
  }
}

module attributes {stable_mosaic.version = 11 : i64} {
  func.func @_conv_acc_res_kernel(%arg0: i32, %arg1: i32, %arg2: i32, %arg3: memref<1x1x4x64xbf16, #tpu.memory_space<vmem>>, %arg4: memref<1x64x64xbf16, #tpu.memory_space<vmem>>, %arg5: memref<1x64xf32, #tpu.memory_space<vmem>>, %arg6: memref<1x1x4x64xbf16, #tpu.memory_space<vmem>>, %arg7: memref<1x1x4x64xbf16, #tpu.memory_space<vmem>>, %arg8: memref<4x64xf32, #tpu.memory_space<vmem>>) attributes {dimension_semantics = [#tpu.dimension_semantics<parallel>, #tpu.dimension_semantics<parallel>, #tpu.dimension_semantics<arbitrary>], iteration_bounds = array<i64: 2, 2, 1>, scalar_prefetch = 0 : i64, scratch_operands = 1 : i64, tpu.core_type = #tpu.core_type<tc>, window_params = [{transform_indices = @transform_0, window_bounds = array<i64: 1, 1, 4, 64>}, {transform_indices = @transform_1, window_bounds = array<i64: 1, 64, 64>}, {pipeline_mode = #tpu.pipeline_mode<synchronous>, transform_indices = @transform_2, window_bounds = array<i64: 1, 64>}, {transform_indices = @transform_3, window_bounds = array<i64: 1, 1, 4, 64>}, {transform_indices = @transform_4, window_bounds = array<i64: 1, 1, 4, 64>}]} {
    %c0_i32 = arith.constant 0 : i32
    %0 = arith.cmpi eq, %arg2, %c0_i32 : i32
    %1 = arith.extui %0 : i1 to i32
    %c0_i32_0 = arith.constant 0 : i32
    %2 = arith.cmpi ne, %1, %c0_i32_0 : i32
    scf.if %2 {
      %cst_13 = arith.constant 0.000000e+00 : f32
      %14 = vector.broadcast %cst_13 : f32 to vector<4x64xf32>
      %c0_14 = arith.constant 0 : index
      %c0_15 = arith.constant 0 : index
      %15 = vector.load %arg8[%c0_14, %c0_15] : memref<4x64xf32, #tpu.memory_space<vmem>>, vector<4x64xf32>
      tpu.vector_store %arg8[%c0_14, %c0_15], %14 {strides = array<i32>} : memref<4x64xf32, #tpu.memory_space<vmem>>, vector<4x64xf32>,
    } else {
    }
    %c0 = arith.constant 0 : index
    %c0_1 = arith.constant 0 : index
    %3 = vector.load %arg8[%c0, %c0_1] : memref<4x64xf32, #tpu.memory_space<vmem>>, vector<4x64xf32>
    %c0_2 = arith.constant 0 : index
    %c0_3 = arith.constant 0 : index
    %c0_4 = arith.constant 0 : index
    %c0_5 = arith.constant 0 : index
    %4 = vector.load %arg3[%c0_2, %c0_3, %c0_4, %c0_5] : memref<1x1x4x64xbf16, #tpu.memory_space<vmem>>, vector<1x1x4x64xbf16>
    %5 = vector.shape_cast %4 : vector<1x1x4x64xbf16> to vector<4x64xbf16>
    %c0_6 = arith.constant 0 : index
    %c0_7 = arith.constant 0 : index
    %c0_8 = arith.constant 0 : index
    %6 = vector.load %arg4[%c0_6, %c0_7, %c0_8] : memref<1x64x64xbf16, #tpu.memory_space<vmem>>, vector<1x64x64xbf16>
    %7 = vector.shape_cast %6 : vector<1x64x64xbf16> to vector<64x64xbf16>
    %cst = arith.constant dense<0.000000e+00> : vector<4x64xf32>
    %8 = tpu.matmul %5, %7, %cst {dimension_numbers = #tpu.dot_dimension_numbers<[1], [0], [0], [1], [0, 0, 1, 1], [], []>} : vector<4x64xbf16>, vector<64x64xbf16>, vector<4x64xf32> -> vector<4x64xf32>
    %9 = arith.addf %3, %8 : vector<4x64xf32>
    %c0_9 = arith.constant 0 : index
    %c0_10 = arith.constant 0 : index
    %10 = vector.load %arg8[%c0_9, %c0_10] : memref<4x64xf32, #tpu.memory_space<vmem>>, vector<4x64xf32>
    tpu.vector_store %arg8[%c0_9, %c0_10], %9 {strides = array<i32>} : memref<4x64xf32, #tpu.memory_space<vmem>>, vector<4x64xf32>,
    %c0_i32_11 = arith.constant 0 : i32
    %11 = arith.cmpi eq, %arg2, %c0_i32_11 : i32
    %12 = arith.extui %11 : i1 to i32
    %c0_i32_12 = arith.constant 0 : i32
    %13 = arith.cmpi ne, %12, %c0_i32_12 : i32
    scf.if %13 {
      %c0_13 = arith.constant 0 : index
      %c0_14 = arith.constant 0 : index
      %14 = vector.load %arg8[%c0_13, %c0_14] : memref<4x64xf32, #tpu.memory_space<vmem>>, vector<4x64xf32>
      %c0_15 = arith.constant 0 : index
      %c0_16 = arith.constant 0 : index
      %15 = vector.load %arg5[%c0_15, %c0_16] : memref<1x64xf32, #tpu.memory_space<vmem>>, vector<1x64xf32>
      %16 = vector.broadcast %15 : vector<1x64xf32> to vector<4x64xf32>
      %17 = arith.addf %14, %16 : vector<4x64xf32>
      %c0_17 = arith.constant 0 : index
      %c0_18 = arith.constant 0 : index
      %c0_19 = arith.constant 0 : index
      %c0_20 = arith.constant 0 : index
      %18 = vector.load %arg6[%c0_17, %c0_18, %c0_19, %c0_20] : memref<1x1x4x64xbf16, #tpu.memory_space<vmem>>, vector<1x1x4x64xbf16>
      %19 = vector.shape_cast %18 : vector<1x1x4x64xbf16> to vector<4x64xbf16>
      %20 = arith.extf %19 : vector<4x64xbf16> to vector<4x64xf32>
      %21 = arith.addf %17, %20 : vector<4x64xf32>
      %cst_21 = arith.constant 0.000000e+00 : f32
      %22 = vector.broadcast %cst_21 : f32 to vector<4x64xf32>
      %23 = arith.maximumf %21, %22 : vector<4x64xf32>
      %24 = arith.truncf %23 : vector<4x64xf32> to vector<4x64xbf16>
      %c0_22 = arith.constant 0 : index
      %c0_23 = arith.constant 0 : index
      %c0_24 = arith.constant 0 : index
      %c0_25 = arith.constant 0 : index
      %25 = vector.load %arg7[%c0_22, %c0_23, %c0_24, %c0_25] : memref<1x1x4x64xbf16, #tpu.memory_space<vmem>>, vector<1x1x4x64xbf16>
      %26 = vector.shape_cast %25 : vector<1x1x4x64xbf16> to vector<4x64xbf16>
      %27 = vector.shape_cast %24 : vector<4x64xbf16> to vector<1x1x4x64xbf16>
      tpu.vector_store %arg7[%c0_22, %c0_23, %c0_24, %c0_25], %27 {strides = array<i32>} : memref<1x1x4x64xbf16, #tpu.memory_space<vmem>>, vector<1x1x4x64xbf16>,
    } else {
    }
    return
  }
  func.func @transform_0(%arg0: i32, %arg1: i32, %arg2: i32) -> (i32, i32, i32, i32) {
    %c1_i32 = arith.constant 1 : i32
    %0 = arith.muli %arg1, %c1_i32 : i32
    %1 = arith.addi %0, %arg2 : i32
    %c0_i32 = arith.constant 0 : i32
    %c0_i32_0 = arith.constant 0 : i32
    %c0_i32_1 = arith.constant 0 : i32
    return %arg0, %1, %c0_i32, %c0_i32_0 : i32, i32, i32, i32
  }
  func.func @transform_1(%arg0: i32, %arg1: i32, %arg2: i32) -> (i32, i32, i32) {
    %c0_i32 = arith.constant 0 : i32
    %c0_i32_0 = arith.constant 0 : i32
    %c0_i32_1 = arith.constant 0 : i32
    return %arg2, %c0_i32, %c0_i32_0 : i32, i32, i32
  }
  func.func @transform_2(%arg0: i32, %arg1: i32, %arg2: i32) -> (i32, i32) {
    %c0_i32 = arith.constant 0 : i32
    %c0_i32_0 = arith.constant 0 : i32
    %c0_i32_1 = arith.constant 0 : i32
    return %c0_i32, %c0_i32_0 : i32, i32
  }
  func.func @transform_3(%arg0: i32, %arg1: i32, %arg2: i32) -> (i32, i32, i32, i32) {
    %c0_i32 = arith.constant 0 : i32
    %c0_i32_0 = arith.constant 0 : i32
    %c0_i32_1 = arith.constant 0 : i32
    return %arg0, %arg1, %c0_i32, %c0_i32_0 : i32, i32, i32, i32
  }
  func.func @transform_4(%arg0: i32, %arg1: i32, %arg2: i32) -> (i32, i32, i32, i32) {
    %c0_i32 = arith.constant 0 : i32
    %c0_i32_0 = arith.constant 0 : i32
    %c0_i32_1 = arith.constant 0 : i32
    return %arg0, %arg1, %c0_i32, %c0_i32_0 : i32, i32, i32, i32
  }
}

module attributes {stable_mosaic.version = 11 : i64} {
  func.func @_conv_acc_res_kernel(%arg0: i32, %arg1: i32, %arg2: i32, %arg3: memref<1x1x4x256xbf16, #tpu.memory_space<vmem>>, %arg4: memref<1x256x64xbf16, #tpu.memory_space<vmem>>, %arg5: memref<1x64xf32, #tpu.memory_space<vmem>>, %arg6: memref<1x1x4x64xbf16, #tpu.memory_space<vmem>>, %arg7: memref<1x1x4x64xbf16, #tpu.memory_space<vmem>>, %arg8: memref<4x64xf32, #tpu.memory_space<vmem>>) attributes {dimension_semantics = [#tpu.dimension_semantics<parallel>, #tpu.dimension_semantics<parallel>, #tpu.dimension_semantics<arbitrary>], iteration_bounds = array<i64: 2, 2, 1>, scalar_prefetch = 0 : i64, scratch_operands = 1 : i64, tpu.core_type = #tpu.core_type<tc>, window_params = [{transform_indices = @transform_0, window_bounds = array<i64: 1, 1, 4, 256>}, {transform_indices = @transform_1, window_bounds = array<i64: 1, 256, 64>}, {pipeline_mode = #tpu.pipeline_mode<synchronous>, transform_indices = @transform_2, window_bounds = array<i64: 1, 64>}, {transform_indices = @transform_3, window_bounds = array<i64: 1, 1, 4, 64>}, {transform_indices = @transform_4, window_bounds = array<i64: 1, 1, 4, 64>}]} {
    %c0_i32 = arith.constant 0 : i32
    %0 = arith.cmpi eq, %arg2, %c0_i32 : i32
    %1 = arith.extui %0 : i1 to i32
    %c0_i32_0 = arith.constant 0 : i32
    %2 = arith.cmpi ne, %1, %c0_i32_0 : i32
    scf.if %2 {
      %cst_13 = arith.constant 0.000000e+00 : f32
      %14 = vector.broadcast %cst_13 : f32 to vector<4x64xf32>
      %c0_14 = arith.constant 0 : index
      %c0_15 = arith.constant 0 : index
      %15 = vector.load %arg8[%c0_14, %c0_15] : memref<4x64xf32, #tpu.memory_space<vmem>>, vector<4x64xf32>
      tpu.vector_store %arg8[%c0_14, %c0_15], %14 {strides = array<i32>} : memref<4x64xf32, #tpu.memory_space<vmem>>, vector<4x64xf32>,
    } else {
    }
    %c0 = arith.constant 0 : index
    %c0_1 = arith.constant 0 : index
    %3 = vector.load %arg8[%c0, %c0_1] : memref<4x64xf32, #tpu.memory_space<vmem>>, vector<4x64xf32>
    %c0_2 = arith.constant 0 : index
    %c0_3 = arith.constant 0 : index
    %c0_4 = arith.constant 0 : index
    %c0_5 = arith.constant 0 : index
    %4 = vector.load %arg3[%c0_2, %c0_3, %c0_4, %c0_5] : memref<1x1x4x256xbf16, #tpu.memory_space<vmem>>, vector<1x1x4x256xbf16>
    %5 = vector.shape_cast %4 : vector<1x1x4x256xbf16> to vector<4x256xbf16>
    %c0_6 = arith.constant 0 : index
    %c0_7 = arith.constant 0 : index
    %c0_8 = arith.constant 0 : index
    %6 = vector.load %arg4[%c0_6, %c0_7, %c0_8] : memref<1x256x64xbf16, #tpu.memory_space<vmem>>, vector<1x256x64xbf16>
    %7 = vector.shape_cast %6 : vector<1x256x64xbf16> to vector<256x64xbf16>
    %cst = arith.constant dense<0.000000e+00> : vector<4x64xf32>
    %8 = tpu.matmul %5, %7, %cst {dimension_numbers = #tpu.dot_dimension_numbers<[1], [0], [0], [1], [0, 0, 1, 1], [], []>} : vector<4x256xbf16>, vector<256x64xbf16>, vector<4x64xf32> -> vector<4x64xf32>
    %9 = arith.addf %3, %8 : vector<4x64xf32>
    %c0_9 = arith.constant 0 : index
    %c0_10 = arith.constant 0 : index
    %10 = vector.load %arg8[%c0_9, %c0_10] : memref<4x64xf32, #tpu.memory_space<vmem>>, vector<4x64xf32>
    tpu.vector_store %arg8[%c0_9, %c0_10], %9 {strides = array<i32>} : memref<4x64xf32, #tpu.memory_space<vmem>>, vector<4x64xf32>,
    %c0_i32_11 = arith.constant 0 : i32
    %11 = arith.cmpi eq, %arg2, %c0_i32_11 : i32
    %12 = arith.extui %11 : i1 to i32
    %c0_i32_12 = arith.constant 0 : i32
    %13 = arith.cmpi ne, %12, %c0_i32_12 : i32
    scf.if %13 {
      %c0_13 = arith.constant 0 : index
      %c0_14 = arith.constant 0 : index
      %14 = vector.load %arg8[%c0_13, %c0_14] : memref<4x64xf32, #tpu.memory_space<vmem>>, vector<4x64xf32>
      %c0_15 = arith.constant 0 : index
      %c0_16 = arith.constant 0 : index
      %15 = vector.load %arg5[%c0_15, %c0_16] : memref<1x64xf32, #tpu.memory_space<vmem>>, vector<1x64xf32>
      %16 = vector.broadcast %15 : vector<1x64xf32> to vector<4x64xf32>
      %17 = arith.addf %14, %16 : vector<4x64xf32>
      %c0_17 = arith.constant 0 : index
      %c0_18 = arith.constant 0 : index
      %c0_19 = arith.constant 0 : index
      %c0_20 = arith.constant 0 : index
      %18 = vector.load %arg6[%c0_17, %c0_18, %c0_19, %c0_20] : memref<1x1x4x64xbf16, #tpu.memory_space<vmem>>, vector<1x1x4x64xbf16>
      %19 = vector.shape_cast %18 : vector<1x1x4x64xbf16> to vector<4x64xbf16>
      %20 = arith.extf %19 : vector<4x64xbf16> to vector<4x64xf32>
      %21 = arith.addf %17, %20 : vector<4x64xf32>
      %cst_21 = arith.constant 0.000000e+00 : f32
      %22 = vector.broadcast %cst_21 : f32 to vector<4x64xf32>
      %23 = arith.maximumf %21, %22 : vector<4x64xf32>
      %24 = arith.truncf %23 : vector<4x64xf32> to vector<4x64xbf16>
      %c0_22 = arith.constant 0 : index
      %c0_23 = arith.constant 0 : index
      %c0_24 = arith.constant 0 : index
      %c0_25 = arith.constant 0 : index
      %25 = vector.load %arg7[%c0_22, %c0_23, %c0_24, %c0_25] : memref<1x1x4x64xbf16, #tpu.memory_space<vmem>>, vector<1x1x4x64xbf16>
      %26 = vector.shape_cast %25 : vector<1x1x4x64xbf16> to vector<4x64xbf16>
      %27 = vector.shape_cast %24 : vector<4x64xbf16> to vector<1x1x4x64xbf16>
      tpu.vector_store %arg7[%c0_22, %c0_23, %c0_24, %c0_25], %27 {strides = array<i32>} : memref<1x1x4x64xbf16, #tpu.memory_space<vmem>>, vector<1x1x4x64xbf16>,
    } else {
    }
    return
  }
  func.func @transform_0(%arg0: i32, %arg1: i32, %arg2: i32) -> (i32, i32, i32, i32) {
    %c1_i32 = arith.constant 1 : i32
    %0 = arith.muli %arg1, %c1_i32 : i32
    %1 = arith.addi %0, %arg2 : i32
    %c0_i32 = arith.constant 0 : i32
    %c0_i32_0 = arith.constant 0 : i32
    %c0_i32_1 = arith.constant 0 : i32
    return %arg0, %1, %c0_i32, %c0_i32_0 : i32, i32, i32, i32
  }
  func.func @transform_1(%arg0: i32, %arg1: i32, %arg2: i32) -> (i32, i32, i32) {
    %c0_i32 = arith.constant 0 : i32
    %c0_i32_0 = arith.constant 0 : i32
    %c0_i32_1 = arith.constant 0 : i32
    return %arg2, %c0_i32, %c0_i32_0 : i32, i32, i32
  }
  func.func @transform_2(%arg0: i32, %arg1: i32, %arg2: i32) -> (i32, i32) {
    %c0_i32 = arith.constant 0 : i32
    %c0_i32_0 = arith.constant 0 : i32
    %c0_i32_1 = arith.constant 0 : i32
    return %c0_i32, %c0_i32_0 : i32, i32
  }
  func.func @transform_3(%arg0: i32, %arg1: i32, %arg2: i32) -> (i32, i32, i32, i32) {
    %c0_i32 = arith.constant 0 : i32
    %c0_i32_0 = arith.constant 0 : i32
    %c0_i32_1 = arith.constant 0 : i32
    return %arg0, %arg1, %c0_i32, %c0_i32_0 : i32, i32, i32, i32
  }
  func.func @transform_4(%arg0: i32, %arg1: i32, %arg2: i32) -> (i32, i32, i32, i32) {
    %c0_i32 = arith.constant 0 : i32
    %c0_i32_0 = arith.constant 0 : i32
    %c0_i32_1 = arith.constant 0 : i32
    return %arg0, %arg1, %c0_i32, %c0_i32_0 : i32, i32, i32, i32
  }
}

module attributes {stable_mosaic.version = 11 : i64} {
  func.func @_conv_acc_res_kernel(%arg0: i32, %arg1: i32, %arg2: i32, %arg3: memref<1x1x4x64xbf16, #tpu.memory_space<vmem>>, %arg4: memref<1x64x64xbf16, #tpu.memory_space<vmem>>, %arg5: memref<1x64xf32, #tpu.memory_space<vmem>>, %arg6: memref<1x1x4x64xbf16, #tpu.memory_space<vmem>>, %arg7: memref<1x1x4x64xbf16, #tpu.memory_space<vmem>>, %arg8: memref<4x64xf32, #tpu.memory_space<vmem>>) attributes {dimension_semantics = [#tpu.dimension_semantics<parallel>, #tpu.dimension_semantics<parallel>, #tpu.dimension_semantics<arbitrary>], iteration_bounds = array<i64: 2, 2, 2>, scalar_prefetch = 0 : i64, scratch_operands = 1 : i64, tpu.core_type = #tpu.core_type<tc>, window_params = [{transform_indices = @transform_0, window_bounds = array<i64: 1, 1, 4, 64>}, {transform_indices = @transform_1, window_bounds = array<i64: 1, 64, 64>}, {pipeline_mode = #tpu.pipeline_mode<synchronous>, transform_indices = @transform_2, window_bounds = array<i64: 1, 64>}, {transform_indices = @transform_3, window_bounds = array<i64: 1, 1, 4, 64>}, {transform_indices = @transform_4, window_bounds = array<i64: 1, 1, 4, 64>}]} {
    %c0_i32 = arith.constant 0 : i32
    %0 = arith.cmpi eq, %arg2, %c0_i32 : i32
    %1 = arith.extui %0 : i1 to i32
    %c0_i32_0 = arith.constant 0 : i32
    %2 = arith.cmpi ne, %1, %c0_i32_0 : i32
    scf.if %2 {
      %cst_12 = arith.constant 0.000000e+00 : f32
      %14 = vector.broadcast %cst_12 : f32 to vector<4x64xf32>
      %c0_13 = arith.constant 0 : index
      %c0_14 = arith.constant 0 : index
      %15 = vector.load %arg8[%c0_13, %c0_14] : memref<4x64xf32, #tpu.memory_space<vmem>>, vector<4x64xf32>
      tpu.vector_store %arg8[%c0_13, %c0_14], %14 {strides = array<i32>} : memref<4x64xf32, #tpu.memory_space<vmem>>, vector<4x64xf32>,
    } else {
    }
    %c0 = arith.constant 0 : index
    %c0_1 = arith.constant 0 : index
    %3 = vector.load %arg8[%c0, %c0_1] : memref<4x64xf32, #tpu.memory_space<vmem>>, vector<4x64xf32>
    %c0_2 = arith.constant 0 : index
    %c0_3 = arith.constant 0 : index
    %c0_4 = arith.constant 0 : index
    %c0_5 = arith.constant 0 : index
    %4 = vector.load %arg3[%c0_2, %c0_3, %c0_4, %c0_5] : memref<1x1x4x64xbf16, #tpu.memory_space<vmem>>, vector<1x1x4x64xbf16>
    %5 = vector.shape_cast %4 : vector<1x1x4x64xbf16> to vector<4x64xbf16>
    %c0_6 = arith.constant 0 : index
    %c0_7 = arith.constant 0 : index
    %c0_8 = arith.constant 0 : index
    %6 = vector.load %arg4[%c0_6, %c0_7, %c0_8] : memref<1x64x64xbf16, #tpu.memory_space<vmem>>, vector<1x64x64xbf16>
    %7 = vector.shape_cast %6 : vector<1x64x64xbf16> to vector<64x64xbf16>
    %cst = arith.constant dense<0.000000e+00> : vector<4x64xf32>
    %8 = tpu.matmul %5, %7, %cst {dimension_numbers = #tpu.dot_dimension_numbers<[1], [0], [0], [1], [0, 0, 1, 1], [], []>} : vector<4x64xbf16>, vector<64x64xbf16>, vector<4x64xf32> -> vector<4x64xf32>
    %9 = arith.addf %3, %8 : vector<4x64xf32>
    %c0_9 = arith.constant 0 : index
    %c0_10 = arith.constant 0 : index
    %10 = vector.load %arg8[%c0_9, %c0_10] : memref<4x64xf32, #tpu.memory_space<vmem>>, vector<4x64xf32>
    tpu.vector_store %arg8[%c0_9, %c0_10], %9 {strides = array<i32>} : memref<4x64xf32, #tpu.memory_space<vmem>>, vector<4x64xf32>,
    %c1_i32 = arith.constant 1 : i32
    %11 = arith.cmpi eq, %arg2, %c1_i32 : i32
    %12 = arith.extui %11 : i1 to i32
    %c0_i32_11 = arith.constant 0 : i32
    %13 = arith.cmpi ne, %12, %c0_i32_11 : i32
    scf.if %13 {
      %c0_12 = arith.constant 0 : index
      %c0_13 = arith.constant 0 : index
      %14 = vector.load %arg8[%c0_12, %c0_13] : memref<4x64xf32, #tpu.memory_space<vmem>>, vector<4x64xf32>
      %c0_14 = arith.constant 0 : index
      %c0_15 = arith.constant 0 : index
      %15 = vector.load %arg5[%c0_14, %c0_15] : memref<1x64xf32, #tpu.memory_space<vmem>>, vector<1x64xf32>
      %16 = vector.broadcast %15 : vector<1x64xf32> to vector<4x64xf32>
      %17 = arith.addf %14, %16 : vector<4x64xf32>
      %c0_16 = arith.constant 0 : index
      %c0_17 = arith.constant 0 : index
      %c0_18 = arith.constant 0 : index
      %c0_19 = arith.constant 0 : index
      %18 = vector.load %arg6[%c0_16, %c0_17, %c0_18, %c0_19] : memref<1x1x4x64xbf16, #tpu.memory_space<vmem>>, vector<1x1x4x64xbf16>
      %19 = vector.shape_cast %18 : vector<1x1x4x64xbf16> to vector<4x64xbf16>
      %20 = arith.extf %19 : vector<4x64xbf16> to vector<4x64xf32>
      %21 = arith.addf %17, %20 : vector<4x64xf32>
      %cst_20 = arith.constant 0.000000e+00 : f32
      %22 = vector.broadcast %cst_20 : f32 to vector<4x64xf32>
      %23 = arith.maximumf %21, %22 : vector<4x64xf32>
      %24 = arith.truncf %23 : vector<4x64xf32> to vector<4x64xbf16>
      %c0_21 = arith.constant 0 : index
      %c0_22 = arith.constant 0 : index
      %c0_23 = arith.constant 0 : index
      %c0_24 = arith.constant 0 : index
      %25 = vector.load %arg7[%c0_21, %c0_22, %c0_23, %c0_24] : memref<1x1x4x64xbf16, #tpu.memory_space<vmem>>, vector<1x1x4x64xbf16>
      %26 = vector.shape_cast %25 : vector<1x1x4x64xbf16> to vector<4x64xbf16>
      %27 = vector.shape_cast %24 : vector<4x64xbf16> to vector<1x1x4x64xbf16>
      tpu.vector_store %arg7[%c0_21, %c0_22, %c0_23, %c0_24], %27 {strides = array<i32>} : memref<1x1x4x64xbf16, #tpu.memory_space<vmem>>, vector<1x1x4x64xbf16>,
    } else {
    }
    return
  }
  func.func @transform_0(%arg0: i32, %arg1: i32, %arg2: i32) -> (i32, i32, i32, i32) {
    %c1_i32 = arith.constant 1 : i32
    %0 = arith.muli %arg1, %c1_i32 : i32
    %1 = arith.addi %0, %arg2 : i32
    %c0_i32 = arith.constant 0 : i32
    %c0_i32_0 = arith.constant 0 : i32
    %c0_i32_1 = arith.constant 0 : i32
    return %arg0, %1, %c0_i32, %c0_i32_0 : i32, i32, i32, i32
  }
  func.func @transform_1(%arg0: i32, %arg1: i32, %arg2: i32) -> (i32, i32, i32) {
    %c0_i32 = arith.constant 0 : i32
    %c0_i32_0 = arith.constant 0 : i32
    %c0_i32_1 = arith.constant 0 : i32
    return %arg2, %c0_i32, %c0_i32_0 : i32, i32, i32
  }
  func.func @transform_2(%arg0: i32, %arg1: i32, %arg2: i32) -> (i32, i32) {
    %c0_i32 = arith.constant 0 : i32
    %c0_i32_0 = arith.constant 0 : i32
    %c0_i32_1 = arith.constant 0 : i32
    return %c0_i32, %c0_i32_0 : i32, i32
  }
  func.func @transform_3(%arg0: i32, %arg1: i32, %arg2: i32) -> (i32, i32, i32, i32) {
    %c0_i32 = arith.constant 0 : i32
    %c0_i32_0 = arith.constant 0 : i32
    %c0_i32_1 = arith.constant 0 : i32
    return %arg0, %arg1, %c0_i32, %c0_i32_0 : i32, i32, i32, i32
  }
  func.func @transform_4(%arg0: i32, %arg1: i32, %arg2: i32) -> (i32, i32, i32, i32) {
    %c0_i32 = arith.constant 0 : i32
    %c0_i32_0 = arith.constant 0 : i32
    %c0_i32_1 = arith.constant 0 : i32
    return %arg0, %arg1, %c0_i32, %c0_i32_0 : i32, i32, i32, i32
  }
}

module attributes {stable_mosaic.version = 11 : i64} {
  func.func @_conv_acc_res_kernel(%arg0: i32, %arg1: i32, %arg2: i32, %arg3: memref<1x1x4x128xbf16, #tpu.memory_space<vmem>>, %arg4: memref<1x128x64xbf16, #tpu.memory_space<vmem>>, %arg5: memref<1x64xf32, #tpu.memory_space<vmem>>, %arg6: memref<1x1x4x64xbf16, #tpu.memory_space<vmem>>, %arg7: memref<1x1x4x64xbf16, #tpu.memory_space<vmem>>, %arg8: memref<4x64xf32, #tpu.memory_space<vmem>>) attributes {dimension_semantics = [#tpu.dimension_semantics<parallel>, #tpu.dimension_semantics<parallel>, #tpu.dimension_semantics<arbitrary>], iteration_bounds = array<i64: 2, 2, 2>, scalar_prefetch = 0 : i64, scratch_operands = 1 : i64, tpu.core_type = #tpu.core_type<tc>, window_params = [{transform_indices = @transform_0, window_bounds = array<i64: 1, 1, 4, 128>}, {transform_indices = @transform_1, window_bounds = array<i64: 1, 128, 64>}, {pipeline_mode = #tpu.pipeline_mode<synchronous>, transform_indices = @transform_2, window_bounds = array<i64: 1, 64>}, {transform_indices = @transform_3, window_bounds = array<i64: 1, 1, 4, 64>}, {transform_indices = @transform_4, window_bounds = array<i64: 1, 1, 4, 64>}]} {
    %c0_i32 = arith.constant 0 : i32
    %0 = arith.cmpi eq, %arg2, %c0_i32 : i32
    %1 = arith.extui %0 : i1 to i32
    %c0_i32_0 = arith.constant 0 : i32
    %2 = arith.cmpi ne, %1, %c0_i32_0 : i32
    scf.if %2 {
      %cst_12 = arith.constant 0.000000e+00 : f32
      %14 = vector.broadcast %cst_12 : f32 to vector<4x64xf32>
      %c0_13 = arith.constant 0 : index
      %c0_14 = arith.constant 0 : index
      %15 = vector.load %arg8[%c0_13, %c0_14] : memref<4x64xf32, #tpu.memory_space<vmem>>, vector<4x64xf32>
      tpu.vector_store %arg8[%c0_13, %c0_14], %14 {strides = array<i32>} : memref<4x64xf32, #tpu.memory_space<vmem>>, vector<4x64xf32>,
    } else {
    }
    %c0 = arith.constant 0 : index
    %c0_1 = arith.constant 0 : index
    %3 = vector.load %arg8[%c0, %c0_1] : memref<4x64xf32, #tpu.memory_space<vmem>>, vector<4x64xf32>
    %c0_2 = arith.constant 0 : index
    %c0_3 = arith.constant 0 : index
    %c0_4 = arith.constant 0 : index
    %c0_5 = arith.constant 0 : index
    %4 = vector.load %arg3[%c0_2, %c0_3, %c0_4, %c0_5] : memref<1x1x4x128xbf16, #tpu.memory_space<vmem>>, vector<1x1x4x128xbf16>
    %5 = vector.shape_cast %4 : vector<1x1x4x128xbf16> to vector<4x128xbf16>
    %c0_6 = arith.constant 0 : index
    %c0_7 = arith.constant 0 : index
    %c0_8 = arith.constant 0 : index
    %6 = vector.load %arg4[%c0_6, %c0_7, %c0_8] : memref<1x128x64xbf16, #tpu.memory_space<vmem>>, vector<1x128x64xbf16>
    %7 = vector.shape_cast %6 : vector<1x128x64xbf16> to vector<128x64xbf16>
    %cst = arith.constant dense<0.000000e+00> : vector<4x64xf32>
    %8 = tpu.matmul %5, %7, %cst {dimension_numbers = #tpu.dot_dimension_numbers<[1], [0], [0], [1], [0, 0, 1, 1], [], []>} : vector<4x128xbf16>, vector<128x64xbf16>, vector<4x64xf32> -> vector<4x64xf32>
    %9 = arith.addf %3, %8 : vector<4x64xf32>
    %c0_9 = arith.constant 0 : index
    %c0_10 = arith.constant 0 : index
    %10 = vector.load %arg8[%c0_9, %c0_10] : memref<4x64xf32, #tpu.memory_space<vmem>>, vector<4x64xf32>
    tpu.vector_store %arg8[%c0_9, %c0_10], %9 {strides = array<i32>} : memref<4x64xf32, #tpu.memory_space<vmem>>, vector<4x64xf32>,
    %c1_i32 = arith.constant 1 : i32
    %11 = arith.cmpi eq, %arg2, %c1_i32 : i32
    %12 = arith.extui %11 : i1 to i32
    %c0_i32_11 = arith.constant 0 : i32
    %13 = arith.cmpi ne, %12, %c0_i32_11 : i32
    scf.if %13 {
      %c0_12 = arith.constant 0 : index
      %c0_13 = arith.constant 0 : index
      %14 = vector.load %arg8[%c0_12, %c0_13] : memref<4x64xf32, #tpu.memory_space<vmem>>, vector<4x64xf32>
      %c0_14 = arith.constant 0 : index
      %c0_15 = arith.constant 0 : index
      %15 = vector.load %arg5[%c0_14, %c0_15] : memref<1x64xf32, #tpu.memory_space<vmem>>, vector<1x64xf32>
      %16 = vector.broadcast %15 : vector<1x64xf32> to vector<4x64xf32>
      %17 = arith.addf %14, %16 : vector<4x64xf32>
      %c0_16 = arith.constant 0 : index
      %c0_17 = arith.constant 0 : index
      %c0_18 = arith.constant 0 : index
      %c0_19 = arith.constant 0 : index
      %18 = vector.load %arg6[%c0_16, %c0_17, %c0_18, %c0_19] : memref<1x1x4x64xbf16, #tpu.memory_space<vmem>>, vector<1x1x4x64xbf16>
      %19 = vector.shape_cast %18 : vector<1x1x4x64xbf16> to vector<4x64xbf16>
      %20 = arith.extf %19 : vector<4x64xbf16> to vector<4x64xf32>
      %21 = arith.addf %17, %20 : vector<4x64xf32>
      %cst_20 = arith.constant 0.000000e+00 : f32
      %22 = vector.broadcast %cst_20 : f32 to vector<4x64xf32>
      %23 = arith.maximumf %21, %22 : vector<4x64xf32>
      %24 = arith.truncf %23 : vector<4x64xf32> to vector<4x64xbf16>
      %c0_21 = arith.constant 0 : index
      %c0_22 = arith.constant 0 : index
      %c0_23 = arith.constant 0 : index
      %c0_24 = arith.constant 0 : index
      %25 = vector.load %arg7[%c0_21, %c0_22, %c0_23, %c0_24] : memref<1x1x4x64xbf16, #tpu.memory_space<vmem>>, vector<1x1x4x64xbf16>
      %26 = vector.shape_cast %25 : vector<1x1x4x64xbf16> to vector<4x64xbf16>
      %27 = vector.shape_cast %24 : vector<4x64xbf16> to vector<1x1x4x64xbf16>
      tpu.vector_store %arg7[%c0_21, %c0_22, %c0_23, %c0_24], %27 {strides = array<i32>} : memref<1x1x4x64xbf16, #tpu.memory_space<vmem>>, vector<1x1x4x64xbf16>,
    } else {
    }
    return
  }
  func.func @transform_0(%arg0: i32, %arg1: i32, %arg2: i32) -> (i32, i32, i32, i32) {
    %c1_i32 = arith.constant 1 : i32
    %0 = arith.muli %arg1, %c1_i32 : i32
    %1 = arith.addi %0, %arg2 : i32
    %c0_i32 = arith.constant 0 : i32
    %c0_i32_0 = arith.constant 0 : i32
    %c0_i32_1 = arith.constant 0 : i32
    return %arg0, %1, %c0_i32, %c0_i32_0 : i32, i32, i32, i32
  }
  func.func @transform_1(%arg0: i32, %arg1: i32, %arg2: i32) -> (i32, i32, i32) {
    %c0_i32 = arith.constant 0 : i32
    %c0_i32_0 = arith.constant 0 : i32
    %c0_i32_1 = arith.constant 0 : i32
    return %arg2, %c0_i32, %c0_i32_0 : i32, i32, i32
  }
  func.func @transform_2(%arg0: i32, %arg1: i32, %arg2: i32) -> (i32, i32) {
    %c0_i32 = arith.constant 0 : i32
    %c0_i32_0 = arith.constant 0 : i32
    %c0_i32_1 = arith.constant 0 : i32
    return %c0_i32, %c0_i32_0 : i32, i32
  }
  func.func @transform_3(%arg0: i32, %arg1: i32, %arg2: i32) -> (i32, i32, i32, i32) {
    %c0_i32 = arith.constant 0 : i32
    %c0_i32_0 = arith.constant 0 : i32
    %c0_i32_1 = arith.constant 0 : i32
    return %arg0, %arg1, %c0_i32, %c0_i32_0 : i32, i32, i32, i32
  }
  func.func @transform_4(%arg0: i32, %arg1: i32, %arg2: i32) -> (i32, i32, i32, i32) {
    %c0_i32 = arith.constant 0 : i32
    %c0_i32_0 = arith.constant 0 : i32
    %c0_i32_1 = arith.constant 0 : i32
    return %arg0, %arg1, %c0_i32, %c0_i32_0 : i32, i32, i32, i32
  }
}

module attributes {stable_mosaic.version = 11 : i64} {
  func.func @_conv_acc_res_kernel(%arg0: i32, %arg1: i32, %arg2: i32, %arg3: memref<1x1x4x256xbf16, #tpu.memory_space<vmem>>, %arg4: memref<1x256x64xbf16, #tpu.memory_space<vmem>>, %arg5: memref<1x64xf32, #tpu.memory_space<vmem>>, %arg6: memref<1x1x4x64xbf16, #tpu.memory_space<vmem>>, %arg7: memref<1x1x4x64xbf16, #tpu.memory_space<vmem>>, %arg8: memref<4x64xf32, #tpu.memory_space<vmem>>) attributes {dimension_semantics = [#tpu.dimension_semantics<parallel>, #tpu.dimension_semantics<parallel>, #tpu.dimension_semantics<arbitrary>], iteration_bounds = array<i64: 2, 2, 2>, scalar_prefetch = 0 : i64, scratch_operands = 1 : i64, tpu.core_type = #tpu.core_type<tc>, window_params = [{transform_indices = @transform_0, window_bounds = array<i64: 1, 1, 4, 256>}, {transform_indices = @transform_1, window_bounds = array<i64: 1, 256, 64>}, {pipeline_mode = #tpu.pipeline_mode<synchronous>, transform_indices = @transform_2, window_bounds = array<i64: 1, 64>}, {transform_indices = @transform_3, window_bounds = array<i64: 1, 1, 4, 64>}, {transform_indices = @transform_4, window_bounds = array<i64: 1, 1, 4, 64>}]} {
    %c0_i32 = arith.constant 0 : i32
    %0 = arith.cmpi eq, %arg2, %c0_i32 : i32
    %1 = arith.extui %0 : i1 to i32
    %c0_i32_0 = arith.constant 0 : i32
    %2 = arith.cmpi ne, %1, %c0_i32_0 : i32
    scf.if %2 {
      %cst_12 = arith.constant 0.000000e+00 : f32
      %14 = vector.broadcast %cst_12 : f32 to vector<4x64xf32>
      %c0_13 = arith.constant 0 : index
      %c0_14 = arith.constant 0 : index
      %15 = vector.load %arg8[%c0_13, %c0_14] : memref<4x64xf32, #tpu.memory_space<vmem>>, vector<4x64xf32>
      tpu.vector_store %arg8[%c0_13, %c0_14], %14 {strides = array<i32>} : memref<4x64xf32, #tpu.memory_space<vmem>>, vector<4x64xf32>,
    } else {
    }
    %c0 = arith.constant 0 : index
    %c0_1 = arith.constant 0 : index
    %3 = vector.load %arg8[%c0, %c0_1] : memref<4x64xf32, #tpu.memory_space<vmem>>, vector<4x64xf32>
    %c0_2 = arith.constant 0 : index
    %c0_3 = arith.constant 0 : index
    %c0_4 = arith.constant 0 : index
    %c0_5 = arith.constant 0 : index
    %4 = vector.load %arg3[%c0_2, %c0_3, %c0_4, %c0_5] : memref<1x1x4x256xbf16, #tpu.memory_space<vmem>>, vector<1x1x4x256xbf16>
    %5 = vector.shape_cast %4 : vector<1x1x4x256xbf16> to vector<4x256xbf16>
    %c0_6 = arith.constant 0 : index
    %c0_7 = arith.constant 0 : index
    %c0_8 = arith.constant 0 : index
    %6 = vector.load %arg4[%c0_6, %c0_7, %c0_8] : memref<1x256x64xbf16, #tpu.memory_space<vmem>>, vector<1x256x64xbf16>
    %7 = vector.shape_cast %6 : vector<1x256x64xbf16> to vector<256x64xbf16>
    %cst = arith.constant dense<0.000000e+00> : vector<4x64xf32>
    %8 = tpu.matmul %5, %7, %cst {dimension_numbers = #tpu.dot_dimension_numbers<[1], [0], [0], [1], [0, 0, 1, 1], [], []>} : vector<4x256xbf16>, vector<256x64xbf16>, vector<4x64xf32> -> vector<4x64xf32>
    %9 = arith.addf %3, %8 : vector<4x64xf32>
    %c0_9 = arith.constant 0 : index
    %c0_10 = arith.constant 0 : index
    %10 = vector.load %arg8[%c0_9, %c0_10] : memref<4x64xf32, #tpu.memory_space<vmem>>, vector<4x64xf32>
    tpu.vector_store %arg8[%c0_9, %c0_10], %9 {strides = array<i32>} : memref<4x64xf32, #tpu.memory_space<vmem>>, vector<4x64xf32>,
    %c1_i32 = arith.constant 1 : i32
    %11 = arith.cmpi eq, %arg2, %c1_i32 : i32
    %12 = arith.extui %11 : i1 to i32
    %c0_i32_11 = arith.constant 0 : i32
    %13 = arith.cmpi ne, %12, %c0_i32_11 : i32
    scf.if %13 {
      %c0_12 = arith.constant 0 : index
      %c0_13 = arith.constant 0 : index
      %14 = vector.load %arg8[%c0_12, %c0_13] : memref<4x64xf32, #tpu.memory_space<vmem>>, vector<4x64xf32>
      %c0_14 = arith.constant 0 : index
      %c0_15 = arith.constant 0 : index
      %15 = vector.load %arg5[%c0_14, %c0_15] : memref<1x64xf32, #tpu.memory_space<vmem>>, vector<1x64xf32>
      %16 = vector.broadcast %15 : vector<1x64xf32> to vector<4x64xf32>
      %17 = arith.addf %14, %16 : vector<4x64xf32>
      %c0_16 = arith.constant 0 : index
      %c0_17 = arith.constant 0 : index
      %c0_18 = arith.constant 0 : index
      %c0_19 = arith.constant 0 : index
      %18 = vector.load %arg6[%c0_16, %c0_17, %c0_18, %c0_19] : memref<1x1x4x64xbf16, #tpu.memory_space<vmem>>, vector<1x1x4x64xbf16>
      %19 = vector.shape_cast %18 : vector<1x1x4x64xbf16> to vector<4x64xbf16>
      %20 = arith.extf %19 : vector<4x64xbf16> to vector<4x64xf32>
      %21 = arith.addf %17, %20 : vector<4x64xf32>
      %cst_20 = arith.constant 0.000000e+00 : f32
      %22 = vector.broadcast %cst_20 : f32 to vector<4x64xf32>
      %23 = arith.maximumf %21, %22 : vector<4x64xf32>
      %24 = arith.truncf %23 : vector<4x64xf32> to vector<4x64xbf16>
      %c0_21 = arith.constant 0 : index
      %c0_22 = arith.constant 0 : index
      %c0_23 = arith.constant 0 : index
      %c0_24 = arith.constant 0 : index
      %25 = vector.load %arg7[%c0_21, %c0_22, %c0_23, %c0_24] : memref<1x1x4x64xbf16, #tpu.memory_space<vmem>>, vector<1x1x4x64xbf16>
      %26 = vector.shape_cast %25 : vector<1x1x4x64xbf16> to vector<4x64xbf16>
      %27 = vector.shape_cast %24 : vector<4x64xbf16> to vector<1x1x4x64xbf16>
      tpu.vector_store %arg7[%c0_21, %c0_22, %c0_23, %c0_24], %27 {strides = array<i32>} : memref<1x1x4x64xbf16, #tpu.memory_space<vmem>>, vector<1x1x4x64xbf16>,
    } else {
    }
    return
  }
  func.func @transform_0(%arg0: i32, %arg1: i32, %arg2: i32) -> (i32, i32, i32, i32) {
    %c1_i32 = arith.constant 1 : i32
    %0 = arith.muli %arg1, %c1_i32 : i32
    %1 = arith.addi %0, %arg2 : i32
    %c0_i32 = arith.constant 0 : i32
    %c0_i32_0 = arith.constant 0 : i32
    %c0_i32_1 = arith.constant 0 : i32
    return %arg0, %1, %c0_i32, %c0_i32_0 : i32, i32, i32, i32
  }
  func.func @transform_1(%arg0: i32, %arg1: i32, %arg2: i32) -> (i32, i32, i32) {
    %c0_i32 = arith.constant 0 : i32
    %c0_i32_0 = arith.constant 0 : i32
    %c0_i32_1 = arith.constant 0 : i32
    return %arg2, %c0_i32, %c0_i32_0 : i32, i32, i32
  }
  func.func @transform_2(%arg0: i32, %arg1: i32, %arg2: i32) -> (i32, i32) {
    %c0_i32 = arith.constant 0 : i32
    %c0_i32_0 = arith.constant 0 : i32
    %c0_i32_1 = arith.constant 0 : i32
    return %c0_i32, %c0_i32_0 : i32, i32
  }
  func.func @transform_3(%arg0: i32, %arg1: i32, %arg2: i32) -> (i32, i32, i32, i32) {
    %c0_i32 = arith.constant 0 : i32
    %c0_i32_0 = arith.constant 0 : i32
    %c0_i32_1 = arith.constant 0 : i32
    return %arg0, %arg1, %c0_i32, %c0_i32_0 : i32, i32, i32, i32
  }
  func.func @transform_4(%arg0: i32, %arg1: i32, %arg2: i32) -> (i32, i32, i32, i32) {
    %c0_i32 = arith.constant 0 : i32
    %c0_i32_0 = arith.constant 0 : i32
    %c0_i32_1 = arith.constant 0 : i32
    return %arg0, %arg1, %c0_i32, %c0_i32_0 : i32, i32, i32, i32
  }
}

module attributes {stable_mosaic.version = 11 : i64} {
  func.func @_conv_acc_res_kernel(%arg0: i32, %arg1: i32, %arg2: i32, %arg3: memref<1x1x16x64xbf16, #tpu.memory_space<vmem>>, %arg4: memref<1x64x32xbf16, #tpu.memory_space<vmem>>, %arg5: memref<1x32xf32, #tpu.memory_space<vmem>>, %arg6: memref<1x1x16x32xbf16, #tpu.memory_space<vmem>>, %arg7: memref<1x1x16x32xbf16, #tpu.memory_space<vmem>>, %arg8: memref<16x32xf32, #tpu.memory_space<vmem>>) attributes {dimension_semantics = [#tpu.dimension_semantics<parallel>, #tpu.dimension_semantics<parallel>, #tpu.dimension_semantics<arbitrary>], iteration_bounds = array<i64: 2, 4, 1>, scalar_prefetch = 0 : i64, scratch_operands = 1 : i64, tpu.core_type = #tpu.core_type<tc>, window_params = [{transform_indices = @transform_0, window_bounds = array<i64: 1, 1, 16, 64>}, {transform_indices = @transform_1, window_bounds = array<i64: 1, 64, 32>}, {pipeline_mode = #tpu.pipeline_mode<synchronous>, transform_indices = @transform_2, window_bounds = array<i64: 1, 32>}, {transform_indices = @transform_3, window_bounds = array<i64: 1, 1, 16, 32>}, {transform_indices = @transform_4, window_bounds = array<i64: 1, 1, 16, 32>}]} {
    %c0_i32 = arith.constant 0 : i32
    %0 = arith.cmpi eq, %arg2, %c0_i32 : i32
    %1 = arith.extui %0 : i1 to i32
    %c0_i32_0 = arith.constant 0 : i32
    %2 = arith.cmpi ne, %1, %c0_i32_0 : i32
    scf.if %2 {
      %cst_13 = arith.constant 0.000000e+00 : f32
      %14 = vector.broadcast %cst_13 : f32 to vector<16x32xf32>
      %c0_14 = arith.constant 0 : index
      %c0_15 = arith.constant 0 : index
      %15 = vector.load %arg8[%c0_14, %c0_15] : memref<16x32xf32, #tpu.memory_space<vmem>>, vector<16x32xf32>
      tpu.vector_store %arg8[%c0_14, %c0_15], %14 {strides = array<i32>} : memref<16x32xf32, #tpu.memory_space<vmem>>, vector<16x32xf32>,
    } else {
    }
    %c0 = arith.constant 0 : index
    %c0_1 = arith.constant 0 : index
    %3 = vector.load %arg8[%c0, %c0_1] : memref<16x32xf32, #tpu.memory_space<vmem>>, vector<16x32xf32>
    %c0_2 = arith.constant 0 : index
    %c0_3 = arith.constant 0 : index
    %c0_4 = arith.constant 0 : index
    %c0_5 = arith.constant 0 : index
    %4 = vector.load %arg3[%c0_2, %c0_3, %c0_4, %c0_5] : memref<1x1x16x64xbf16, #tpu.memory_space<vmem>>, vector<1x1x16x64xbf16>
    %5 = vector.shape_cast %4 : vector<1x1x16x64xbf16> to vector<16x64xbf16>
    %c0_6 = arith.constant 0 : index
    %c0_7 = arith.constant 0 : index
    %c0_8 = arith.constant 0 : index
    %6 = vector.load %arg4[%c0_6, %c0_7, %c0_8] : memref<1x64x32xbf16, #tpu.memory_space<vmem>>, vector<1x64x32xbf16>
    %7 = vector.shape_cast %6 : vector<1x64x32xbf16> to vector<64x32xbf16>
    %cst = arith.constant dense<0.000000e+00> : vector<16x32xf32>
    %8 = tpu.matmul %5, %7, %cst {dimension_numbers = #tpu.dot_dimension_numbers<[1], [0], [0], [1], [0, 0, 1, 1], [], []>} : vector<16x64xbf16>, vector<64x32xbf16>, vector<16x32xf32> -> vector<16x32xf32>
    %9 = arith.addf %3, %8 : vector<16x32xf32>
    %c0_9 = arith.constant 0 : index
    %c0_10 = arith.constant 0 : index
    %10 = vector.load %arg8[%c0_9, %c0_10] : memref<16x32xf32, #tpu.memory_space<vmem>>, vector<16x32xf32>
    tpu.vector_store %arg8[%c0_9, %c0_10], %9 {strides = array<i32>} : memref<16x32xf32, #tpu.memory_space<vmem>>, vector<16x32xf32>,
    %c0_i32_11 = arith.constant 0 : i32
    %11 = arith.cmpi eq, %arg2, %c0_i32_11 : i32
    %12 = arith.extui %11 : i1 to i32
    %c0_i32_12 = arith.constant 0 : i32
    %13 = arith.cmpi ne, %12, %c0_i32_12 : i32
    scf.if %13 {
      %c0_13 = arith.constant 0 : index
      %c0_14 = arith.constant 0 : index
      %14 = vector.load %arg8[%c0_13, %c0_14] : memref<16x32xf32, #tpu.memory_space<vmem>>, vector<16x32xf32>
      %c0_15 = arith.constant 0 : index
      %c0_16 = arith.constant 0 : index
      %15 = vector.load %arg5[%c0_15, %c0_16] : memref<1x32xf32, #tpu.memory_space<vmem>>, vector<1x32xf32>
      %16 = vector.broadcast %15 : vector<1x32xf32> to vector<16x32xf32>
      %17 = arith.addf %14, %16 : vector<16x32xf32>
      %c0_17 = arith.constant 0 : index
      %c0_18 = arith.constant 0 : index
      %c0_19 = arith.constant 0 : index
      %c0_20 = arith.constant 0 : index
      %18 = vector.load %arg6[%c0_17, %c0_18, %c0_19, %c0_20] : memref<1x1x16x32xbf16, #tpu.memory_space<vmem>>, vector<1x1x16x32xbf16>
      %19 = vector.shape_cast %18 : vector<1x1x16x32xbf16> to vector<16x32xbf16>
      %20 = arith.extf %19 : vector<16x32xbf16> to vector<16x32xf32>
      %21 = arith.addf %17, %20 : vector<16x32xf32>
      %cst_21 = arith.constant 0.000000e+00 : f32
      %22 = vector.broadcast %cst_21 : f32 to vector<16x32xf32>
      %23 = arith.maximumf %21, %22 : vector<16x32xf32>
      %24 = arith.truncf %23 : vector<16x32xf32> to vector<16x32xbf16>
      %c0_22 = arith.constant 0 : index
      %c0_23 = arith.constant 0 : index
      %c0_24 = arith.constant 0 : index
      %c0_25 = arith.constant 0 : index
      %25 = vector.load %arg7[%c0_22, %c0_23, %c0_24, %c0_25] : memref<1x1x16x32xbf16, #tpu.memory_space<vmem>>, vector<1x1x16x32xbf16>
      %26 = vector.shape_cast %25 : vector<1x1x16x32xbf16> to vector<16x32xbf16>
      %27 = vector.shape_cast %24 : vector<16x32xbf16> to vector<1x1x16x32xbf16>
      tpu.vector_store %arg7[%c0_22, %c0_23, %c0_24, %c0_25], %27 {strides = array<i32>} : memref<1x1x16x32xbf16, #tpu.memory_space<vmem>>, vector<1x1x16x32xbf16>,
    } else {
    }
    return
  }
  func.func @transform_0(%arg0: i32, %arg1: i32, %arg2: i32) -> (i32, i32, i32, i32) {
    %c1_i32 = arith.constant 1 : i32
    %0 = arith.muli %arg1, %c1_i32 : i32
    %1 = arith.addi %0, %arg2 : i32
    %c0_i32 = arith.constant 0 : i32
    %c0_i32_0 = arith.constant 0 : i32
    %c0_i32_1 = arith.constant 0 : i32
    return %arg0, %1, %c0_i32, %c0_i32_0 : i32, i32, i32, i32
  }
  func.func @transform_1(%arg0: i32, %arg1: i32, %arg2: i32) -> (i32, i32, i32) {
    %c0_i32 = arith.constant 0 : i32
    %c0_i32_0 = arith.constant 0 : i32
    %c0_i32_1 = arith.constant 0 : i32
    return %arg2, %c0_i32, %c0_i32_0 : i32, i32, i32
  }
  func.func @transform_2(%arg0: i32, %arg1: i32, %arg2: i32) -> (i32, i32) {
    %c0_i32 = arith.constant 0 : i32
    %c0_i32_0 = arith.constant 0 : i32
    %c0_i32_1 = arith.constant 0 : i32
    return %c0_i32, %c0_i32_0 : i32, i32
  }
  func.func @transform_3(%arg0: i32, %arg1: i32, %arg2: i32) -> (i32, i32, i32, i32) {
    %c0_i32 = arith.constant 0 : i32
    %c0_i32_0 = arith.constant 0 : i32
    %c0_i32_1 = arith.constant 0 : i32
    return %arg0, %arg1, %c0_i32, %c0_i32_0 : i32, i32, i32, i32
  }
  func.func @transform_4(%arg0: i32, %arg1: i32, %arg2: i32) -> (i32, i32, i32, i32) {
    %c0_i32 = arith.constant 0 : i32
    %c0_i32_0 = arith.constant 0 : i32
    %c0_i32_1 = arith.constant 0 : i32
    return %arg0, %arg1, %c0_i32, %c0_i32_0 : i32, i32, i32, i32
  }
}

module attributes {stable_mosaic.version = 11 : i64} {
  func.func @_conv_acc_res_kernel(%arg0: i32, %arg1: i32, %arg2: i32, %arg3: memref<1x1x16x128xbf16, #tpu.memory_space<vmem>>, %arg4: memref<1x128x32xbf16, #tpu.memory_space<vmem>>, %arg5: memref<1x32xf32, #tpu.memory_space<vmem>>, %arg6: memref<1x1x16x32xbf16, #tpu.memory_space<vmem>>, %arg7: memref<1x1x16x32xbf16, #tpu.memory_space<vmem>>, %arg8: memref<16x32xf32, #tpu.memory_space<vmem>>) attributes {dimension_semantics = [#tpu.dimension_semantics<parallel>, #tpu.dimension_semantics<parallel>, #tpu.dimension_semantics<arbitrary>], iteration_bounds = array<i64: 2, 4, 1>, scalar_prefetch = 0 : i64, scratch_operands = 1 : i64, tpu.core_type = #tpu.core_type<tc>, window_params = [{transform_indices = @transform_0, window_bounds = array<i64: 1, 1, 16, 128>}, {transform_indices = @transform_1, window_bounds = array<i64: 1, 128, 32>}, {pipeline_mode = #tpu.pipeline_mode<synchronous>, transform_indices = @transform_2, window_bounds = array<i64: 1, 32>}, {transform_indices = @transform_3, window_bounds = array<i64: 1, 1, 16, 32>}, {transform_indices = @transform_4, window_bounds = array<i64: 1, 1, 16, 32>}]} {
    %c0_i32 = arith.constant 0 : i32
    %0 = arith.cmpi eq, %arg2, %c0_i32 : i32
    %1 = arith.extui %0 : i1 to i32
    %c0_i32_0 = arith.constant 0 : i32
    %2 = arith.cmpi ne, %1, %c0_i32_0 : i32
    scf.if %2 {
      %cst_13 = arith.constant 0.000000e+00 : f32
      %14 = vector.broadcast %cst_13 : f32 to vector<16x32xf32>
      %c0_14 = arith.constant 0 : index
      %c0_15 = arith.constant 0 : index
      %15 = vector.load %arg8[%c0_14, %c0_15] : memref<16x32xf32, #tpu.memory_space<vmem>>, vector<16x32xf32>
      tpu.vector_store %arg8[%c0_14, %c0_15], %14 {strides = array<i32>} : memref<16x32xf32, #tpu.memory_space<vmem>>, vector<16x32xf32>,
    } else {
    }
    %c0 = arith.constant 0 : index
    %c0_1 = arith.constant 0 : index
    %3 = vector.load %arg8[%c0, %c0_1] : memref<16x32xf32, #tpu.memory_space<vmem>>, vector<16x32xf32>
    %c0_2 = arith.constant 0 : index
    %c0_3 = arith.constant 0 : index
    %c0_4 = arith.constant 0 : index
    %c0_5 = arith.constant 0 : index
    %4 = vector.load %arg3[%c0_2, %c0_3, %c0_4, %c0_5] : memref<1x1x16x128xbf16, #tpu.memory_space<vmem>>, vector<1x1x16x128xbf16>
    %5 = vector.shape_cast %4 : vector<1x1x16x128xbf16> to vector<16x128xbf16>
    %c0_6 = arith.constant 0 : index
    %c0_7 = arith.constant 0 : index
    %c0_8 = arith.constant 0 : index
    %6 = vector.load %arg4[%c0_6, %c0_7, %c0_8] : memref<1x128x32xbf16, #tpu.memory_space<vmem>>, vector<1x128x32xbf16>
    %7 = vector.shape_cast %6 : vector<1x128x32xbf16> to vector<128x32xbf16>
    %cst = arith.constant dense<0.000000e+00> : vector<16x32xf32>
    %8 = tpu.matmul %5, %7, %cst {dimension_numbers = #tpu.dot_dimension_numbers<[1], [0], [0], [1], [0, 0, 1, 1], [], []>} : vector<16x128xbf16>, vector<128x32xbf16>, vector<16x32xf32> -> vector<16x32xf32>
    %9 = arith.addf %3, %8 : vector<16x32xf32>
    %c0_9 = arith.constant 0 : index
    %c0_10 = arith.constant 0 : index
    %10 = vector.load %arg8[%c0_9, %c0_10] : memref<16x32xf32, #tpu.memory_space<vmem>>, vector<16x32xf32>
    tpu.vector_store %arg8[%c0_9, %c0_10], %9 {strides = array<i32>} : memref<16x32xf32, #tpu.memory_space<vmem>>, vector<16x32xf32>,
    %c0_i32_11 = arith.constant 0 : i32
    %11 = arith.cmpi eq, %arg2, %c0_i32_11 : i32
    %12 = arith.extui %11 : i1 to i32
    %c0_i32_12 = arith.constant 0 : i32
    %13 = arith.cmpi ne, %12, %c0_i32_12 : i32
    scf.if %13 {
      %c0_13 = arith.constant 0 : index
      %c0_14 = arith.constant 0 : index
      %14 = vector.load %arg8[%c0_13, %c0_14] : memref<16x32xf32, #tpu.memory_space<vmem>>, vector<16x32xf32>
      %c0_15 = arith.constant 0 : index
      %c0_16 = arith.constant 0 : index
      %15 = vector.load %arg5[%c0_15, %c0_16] : memref<1x32xf32, #tpu.memory_space<vmem>>, vector<1x32xf32>
      %16 = vector.broadcast %15 : vector<1x32xf32> to vector<16x32xf32>
      %17 = arith.addf %14, %16 : vector<16x32xf32>
      %c0_17 = arith.constant 0 : index
      %c0_18 = arith.constant 0 : index
      %c0_19 = arith.constant 0 : index
      %c0_20 = arith.constant 0 : index
      %18 = vector.load %arg6[%c0_17, %c0_18, %c0_19, %c0_20] : memref<1x1x16x32xbf16, #tpu.memory_space<vmem>>, vector<1x1x16x32xbf16>
      %19 = vector.shape_cast %18 : vector<1x1x16x32xbf16> to vector<16x32xbf16>
      %20 = arith.extf %19 : vector<16x32xbf16> to vector<16x32xf32>
      %21 = arith.addf %17, %20 : vector<16x32xf32>
      %cst_21 = arith.constant 0.000000e+00 : f32
      %22 = vector.broadcast %cst_21 : f32 to vector<16x32xf32>
      %23 = arith.maximumf %21, %22 : vector<16x32xf32>
      %24 = arith.truncf %23 : vector<16x32xf32> to vector<16x32xbf16>
      %c0_22 = arith.constant 0 : index
      %c0_23 = arith.constant 0 : index
      %c0_24 = arith.constant 0 : index
      %c0_25 = arith.constant 0 : index
      %25 = vector.load %arg7[%c0_22, %c0_23, %c0_24, %c0_25] : memref<1x1x16x32xbf16, #tpu.memory_space<vmem>>, vector<1x1x16x32xbf16>
      %26 = vector.shape_cast %25 : vector<1x1x16x32xbf16> to vector<16x32xbf16>
      %27 = vector.shape_cast %24 : vector<16x32xbf16> to vector<1x1x16x32xbf16>
      tpu.vector_store %arg7[%c0_22, %c0_23, %c0_24, %c0_25], %27 {strides = array<i32>} : memref<1x1x16x32xbf16, #tpu.memory_space<vmem>>, vector<1x1x16x32xbf16>,
    } else {
    }
    return
  }
  func.func @transform_0(%arg0: i32, %arg1: i32, %arg2: i32) -> (i32, i32, i32, i32) {
    %c1_i32 = arith.constant 1 : i32
    %0 = arith.muli %arg1, %c1_i32 : i32
    %1 = arith.addi %0, %arg2 : i32
    %c0_i32 = arith.constant 0 : i32
    %c0_i32_0 = arith.constant 0 : i32
    %c0_i32_1 = arith.constant 0 : i32
    return %arg0, %1, %c0_i32, %c0_i32_0 : i32, i32, i32, i32
  }
  func.func @transform_1(%arg0: i32, %arg1: i32, %arg2: i32) -> (i32, i32, i32) {
    %c0_i32 = arith.constant 0 : i32
    %c0_i32_0 = arith.constant 0 : i32
    %c0_i32_1 = arith.constant 0 : i32
    return %arg2, %c0_i32, %c0_i32_0 : i32, i32, i32
  }
  func.func @transform_2(%arg0: i32, %arg1: i32, %arg2: i32) -> (i32, i32) {
    %c0_i32 = arith.constant 0 : i32
    %c0_i32_0 = arith.constant 0 : i32
    %c0_i32_1 = arith.constant 0 : i32
    return %c0_i32, %c0_i32_0 : i32, i32
  }
  func.func @transform_3(%arg0: i32, %arg1: i32, %arg2: i32) -> (i32, i32, i32, i32) {
    %c0_i32 = arith.constant 0 : i32
    %c0_i32_0 = arith.constant 0 : i32
    %c0_i32_1 = arith.constant 0 : i32
    return %arg0, %arg1, %c0_i32, %c0_i32_0 : i32, i32, i32, i32
  }
  func.func @transform_4(%arg0: i32, %arg1: i32, %arg2: i32) -> (i32, i32, i32, i32) {
    %c0_i32 = arith.constant 0 : i32
    %c0_i32_0 = arith.constant 0 : i32
    %c0_i32_1 = arith.constant 0 : i32
    return %arg0, %arg1, %c0_i32, %c0_i32_0 : i32, i32, i32, i32
  }
}

module attributes {stable_mosaic.version = 11 : i64} {
  func.func @_conv_acc_res_kernel(%arg0: i32, %arg1: i32, %arg2: i32, %arg3: memref<1x1x16x256xbf16, #tpu.memory_space<vmem>>, %arg4: memref<1x256x32xbf16, #tpu.memory_space<vmem>>, %arg5: memref<1x32xf32, #tpu.memory_space<vmem>>, %arg6: memref<1x1x16x32xbf16, #tpu.memory_space<vmem>>, %arg7: memref<1x1x16x32xbf16, #tpu.memory_space<vmem>>, %arg8: memref<16x32xf32, #tpu.memory_space<vmem>>) attributes {dimension_semantics = [#tpu.dimension_semantics<parallel>, #tpu.dimension_semantics<parallel>, #tpu.dimension_semantics<arbitrary>], iteration_bounds = array<i64: 2, 4, 1>, scalar_prefetch = 0 : i64, scratch_operands = 1 : i64, tpu.core_type = #tpu.core_type<tc>, window_params = [{transform_indices = @transform_0, window_bounds = array<i64: 1, 1, 16, 256>}, {transform_indices = @transform_1, window_bounds = array<i64: 1, 256, 32>}, {pipeline_mode = #tpu.pipeline_mode<synchronous>, transform_indices = @transform_2, window_bounds = array<i64: 1, 32>}, {transform_indices = @transform_3, window_bounds = array<i64: 1, 1, 16, 32>}, {transform_indices = @transform_4, window_bounds = array<i64: 1, 1, 16, 32>}]} {
    %c0_i32 = arith.constant 0 : i32
    %0 = arith.cmpi eq, %arg2, %c0_i32 : i32
    %1 = arith.extui %0 : i1 to i32
    %c0_i32_0 = arith.constant 0 : i32
    %2 = arith.cmpi ne, %1, %c0_i32_0 : i32
    scf.if %2 {
      %cst_13 = arith.constant 0.000000e+00 : f32
      %14 = vector.broadcast %cst_13 : f32 to vector<16x32xf32>
      %c0_14 = arith.constant 0 : index
      %c0_15 = arith.constant 0 : index
      %15 = vector.load %arg8[%c0_14, %c0_15] : memref<16x32xf32, #tpu.memory_space<vmem>>, vector<16x32xf32>
      tpu.vector_store %arg8[%c0_14, %c0_15], %14 {strides = array<i32>} : memref<16x32xf32, #tpu.memory_space<vmem>>, vector<16x32xf32>,
    } else {
    }
    %c0 = arith.constant 0 : index
    %c0_1 = arith.constant 0 : index
    %3 = vector.load %arg8[%c0, %c0_1] : memref<16x32xf32, #tpu.memory_space<vmem>>, vector<16x32xf32>
    %c0_2 = arith.constant 0 : index
    %c0_3 = arith.constant 0 : index
    %c0_4 = arith.constant 0 : index
    %c0_5 = arith.constant 0 : index
    %4 = vector.load %arg3[%c0_2, %c0_3, %c0_4, %c0_5] : memref<1x1x16x256xbf16, #tpu.memory_space<vmem>>, vector<1x1x16x256xbf16>
    %5 = vector.shape_cast %4 : vector<1x1x16x256xbf16> to vector<16x256xbf16>
    %c0_6 = arith.constant 0 : index
    %c0_7 = arith.constant 0 : index
    %c0_8 = arith.constant 0 : index
    %6 = vector.load %arg4[%c0_6, %c0_7, %c0_8] : memref<1x256x32xbf16, #tpu.memory_space<vmem>>, vector<1x256x32xbf16>
    %7 = vector.shape_cast %6 : vector<1x256x32xbf16> to vector<256x32xbf16>
    %cst = arith.constant dense<0.000000e+00> : vector<16x32xf32>
    %8 = tpu.matmul %5, %7, %cst {dimension_numbers = #tpu.dot_dimension_numbers<[1], [0], [0], [1], [0, 0, 1, 1], [], []>} : vector<16x256xbf16>, vector<256x32xbf16>, vector<16x32xf32> -> vector<16x32xf32>
    %9 = arith.addf %3, %8 : vector<16x32xf32>
    %c0_9 = arith.constant 0 : index
    %c0_10 = arith.constant 0 : index
    %10 = vector.load %arg8[%c0_9, %c0_10] : memref<16x32xf32, #tpu.memory_space<vmem>>, vector<16x32xf32>
    tpu.vector_store %arg8[%c0_9, %c0_10], %9 {strides = array<i32>} : memref<16x32xf32, #tpu.memory_space<vmem>>, vector<16x32xf32>,
    %c0_i32_11 = arith.constant 0 : i32
    %11 = arith.cmpi eq, %arg2, %c0_i32_11 : i32
    %12 = arith.extui %11 : i1 to i32
    %c0_i32_12 = arith.constant 0 : i32
    %13 = arith.cmpi ne, %12, %c0_i32_12 : i32
    scf.if %13 {
      %c0_13 = arith.constant 0 : index
      %c0_14 = arith.constant 0 : index
      %14 = vector.load %arg8[%c0_13, %c0_14] : memref<16x32xf32, #tpu.memory_space<vmem>>, vector<16x32xf32>
      %c0_15 = arith.constant 0 : index
      %c0_16 = arith.constant 0 : index
      %15 = vector.load %arg5[%c0_15, %c0_16] : memref<1x32xf32, #tpu.memory_space<vmem>>, vector<1x32xf32>
      %16 = vector.broadcast %15 : vector<1x32xf32> to vector<16x32xf32>
      %17 = arith.addf %14, %16 : vector<16x32xf32>
      %c0_17 = arith.constant 0 : index
      %c0_18 = arith.constant 0 : index
      %c0_19 = arith.constant 0 : index
      %c0_20 = arith.constant 0 : index
      %18 = vector.load %arg6[%c0_17, %c0_18, %c0_19, %c0_20] : memref<1x1x16x32xbf16, #tpu.memory_space<vmem>>, vector<1x1x16x32xbf16>
      %19 = vector.shape_cast %18 : vector<1x1x16x32xbf16> to vector<16x32xbf16>
      %20 = arith.extf %19 : vector<16x32xbf16> to vector<16x32xf32>
      %21 = arith.addf %17, %20 : vector<16x32xf32>
      %cst_21 = arith.constant 0.000000e+00 : f32
      %22 = vector.broadcast %cst_21 : f32 to vector<16x32xf32>
      %23 = arith.maximumf %21, %22 : vector<16x32xf32>
      %24 = arith.truncf %23 : vector<16x32xf32> to vector<16x32xbf16>
      %c0_22 = arith.constant 0 : index
      %c0_23 = arith.constant 0 : index
      %c0_24 = arith.constant 0 : index
      %c0_25 = arith.constant 0 : index
      %25 = vector.load %arg7[%c0_22, %c0_23, %c0_24, %c0_25] : memref<1x1x16x32xbf16, #tpu.memory_space<vmem>>, vector<1x1x16x32xbf16>
      %26 = vector.shape_cast %25 : vector<1x1x16x32xbf16> to vector<16x32xbf16>
      %27 = vector.shape_cast %24 : vector<16x32xbf16> to vector<1x1x16x32xbf16>
      tpu.vector_store %arg7[%c0_22, %c0_23, %c0_24, %c0_25], %27 {strides = array<i32>} : memref<1x1x16x32xbf16, #tpu.memory_space<vmem>>, vector<1x1x16x32xbf16>,
    } else {
    }
    return
  }
  func.func @transform_0(%arg0: i32, %arg1: i32, %arg2: i32) -> (i32, i32, i32, i32) {
    %c1_i32 = arith.constant 1 : i32
    %0 = arith.muli %arg1, %c1_i32 : i32
    %1 = arith.addi %0, %arg2 : i32
    %c0_i32 = arith.constant 0 : i32
    %c0_i32_0 = arith.constant 0 : i32
    %c0_i32_1 = arith.constant 0 : i32
    return %arg0, %1, %c0_i32, %c0_i32_0 : i32, i32, i32, i32
  }
  func.func @transform_1(%arg0: i32, %arg1: i32, %arg2: i32) -> (i32, i32, i32) {
    %c0_i32 = arith.constant 0 : i32
    %c0_i32_0 = arith.constant 0 : i32
    %c0_i32_1 = arith.constant 0 : i32
    return %arg2, %c0_i32, %c0_i32_0 : i32, i32, i32
  }
  func.func @transform_2(%arg0: i32, %arg1: i32, %arg2: i32) -> (i32, i32) {
    %c0_i32 = arith.constant 0 : i32
    %c0_i32_0 = arith.constant 0 : i32
    %c0_i32_1 = arith.constant 0 : i32
    return %c0_i32, %c0_i32_0 : i32, i32
  }
  func.func @transform_3(%arg0: i32, %arg1: i32, %arg2: i32) -> (i32, i32, i32, i32) {
    %c0_i32 = arith.constant 0 : i32
    %c0_i32_0 = arith.constant 0 : i32
    %c0_i32_1 = arith.constant 0 : i32
    return %arg0, %arg1, %c0_i32, %c0_i32_0 : i32, i32, i32, i32
  }
  func.func @transform_4(%arg0: i32, %arg1: i32, %arg2: i32) -> (i32, i32, i32, i32) {
    %c0_i32 = arith.constant 0 : i32
    %c0_i32_0 = arith.constant 0 : i32
    %c0_i32_1 = arith.constant 0 : i32
    return %arg0, %arg1, %c0_i32, %c0_i32_0 : i32, i32, i32, i32
  }
}

module attributes {stable_mosaic.version = 11 : i64} {
  func.func @_conv_acc_res_kernel(%arg0: i32, %arg1: i32, %arg2: i32, %arg3: memref<1x1x16x64xbf16, #tpu.memory_space<vmem>>, %arg4: memref<1x64x32xbf16, #tpu.memory_space<vmem>>, %arg5: memref<1x32xf32, #tpu.memory_space<vmem>>, %arg6: memref<1x1x16x32xbf16, #tpu.memory_space<vmem>>, %arg7: memref<1x1x16x32xbf16, #tpu.memory_space<vmem>>, %arg8: memref<16x32xf32, #tpu.memory_space<vmem>>) attributes {dimension_semantics = [#tpu.dimension_semantics<parallel>, #tpu.dimension_semantics<parallel>, #tpu.dimension_semantics<arbitrary>], iteration_bounds = array<i64: 2, 4, 2>, scalar_prefetch = 0 : i64, scratch_operands = 1 : i64, tpu.core_type = #tpu.core_type<tc>, window_params = [{transform_indices = @transform_0, window_bounds = array<i64: 1, 1, 16, 64>}, {transform_indices = @transform_1, window_bounds = array<i64: 1, 64, 32>}, {pipeline_mode = #tpu.pipeline_mode<synchronous>, transform_indices = @transform_2, window_bounds = array<i64: 1, 32>}, {transform_indices = @transform_3, window_bounds = array<i64: 1, 1, 16, 32>}, {transform_indices = @transform_4, window_bounds = array<i64: 1, 1, 16, 32>}]} {
    %c0_i32 = arith.constant 0 : i32
    %0 = arith.cmpi eq, %arg2, %c0_i32 : i32
    %1 = arith.extui %0 : i1 to i32
    %c0_i32_0 = arith.constant 0 : i32
    %2 = arith.cmpi ne, %1, %c0_i32_0 : i32
    scf.if %2 {
      %cst_12 = arith.constant 0.000000e+00 : f32
      %14 = vector.broadcast %cst_12 : f32 to vector<16x32xf32>
      %c0_13 = arith.constant 0 : index
      %c0_14 = arith.constant 0 : index
      %15 = vector.load %arg8[%c0_13, %c0_14] : memref<16x32xf32, #tpu.memory_space<vmem>>, vector<16x32xf32>
      tpu.vector_store %arg8[%c0_13, %c0_14], %14 {strides = array<i32>} : memref<16x32xf32, #tpu.memory_space<vmem>>, vector<16x32xf32>,
    } else {
    }
    %c0 = arith.constant 0 : index
    %c0_1 = arith.constant 0 : index
    %3 = vector.load %arg8[%c0, %c0_1] : memref<16x32xf32, #tpu.memory_space<vmem>>, vector<16x32xf32>
    %c0_2 = arith.constant 0 : index
    %c0_3 = arith.constant 0 : index
    %c0_4 = arith.constant 0 : index
    %c0_5 = arith.constant 0 : index
    %4 = vector.load %arg3[%c0_2, %c0_3, %c0_4, %c0_5] : memref<1x1x16x64xbf16, #tpu.memory_space<vmem>>, vector<1x1x16x64xbf16>
    %5 = vector.shape_cast %4 : vector<1x1x16x64xbf16> to vector<16x64xbf16>
    %c0_6 = arith.constant 0 : index
    %c0_7 = arith.constant 0 : index
    %c0_8 = arith.constant 0 : index
    %6 = vector.load %arg4[%c0_6, %c0_7, %c0_8] : memref<1x64x32xbf16, #tpu.memory_space<vmem>>, vector<1x64x32xbf16>
    %7 = vector.shape_cast %6 : vector<1x64x32xbf16> to vector<64x32xbf16>
    %cst = arith.constant dense<0.000000e+00> : vector<16x32xf32>
    %8 = tpu.matmul %5, %7, %cst {dimension_numbers = #tpu.dot_dimension_numbers<[1], [0], [0], [1], [0, 0, 1, 1], [], []>} : vector<16x64xbf16>, vector<64x32xbf16>, vector<16x32xf32> -> vector<16x32xf32>
    %9 = arith.addf %3, %8 : vector<16x32xf32>
    %c0_9 = arith.constant 0 : index
    %c0_10 = arith.constant 0 : index
    %10 = vector.load %arg8[%c0_9, %c0_10] : memref<16x32xf32, #tpu.memory_space<vmem>>, vector<16x32xf32>
    tpu.vector_store %arg8[%c0_9, %c0_10], %9 {strides = array<i32>} : memref<16x32xf32, #tpu.memory_space<vmem>>, vector<16x32xf32>,
    %c1_i32 = arith.constant 1 : i32
    %11 = arith.cmpi eq, %arg2, %c1_i32 : i32
    %12 = arith.extui %11 : i1 to i32
    %c0_i32_11 = arith.constant 0 : i32
    %13 = arith.cmpi ne, %12, %c0_i32_11 : i32
    scf.if %13 {
      %c0_12 = arith.constant 0 : index
      %c0_13 = arith.constant 0 : index
      %14 = vector.load %arg8[%c0_12, %c0_13] : memref<16x32xf32, #tpu.memory_space<vmem>>, vector<16x32xf32>
      %c0_14 = arith.constant 0 : index
      %c0_15 = arith.constant 0 : index
      %15 = vector.load %arg5[%c0_14, %c0_15] : memref<1x32xf32, #tpu.memory_space<vmem>>, vector<1x32xf32>
      %16 = vector.broadcast %15 : vector<1x32xf32> to vector<16x32xf32>
      %17 = arith.addf %14, %16 : vector<16x32xf32>
      %c0_16 = arith.constant 0 : index
      %c0_17 = arith.constant 0 : index
      %c0_18 = arith.constant 0 : index
      %c0_19 = arith.constant 0 : index
      %18 = vector.load %arg6[%c0_16, %c0_17, %c0_18, %c0_19] : memref<1x1x16x32xbf16, #tpu.memory_space<vmem>>, vector<1x1x16x32xbf16>
      %19 = vector.shape_cast %18 : vector<1x1x16x32xbf16> to vector<16x32xbf16>
      %20 = arith.extf %19 : vector<16x32xbf16> to vector<16x32xf32>
      %21 = arith.addf %17, %20 : vector<16x32xf32>
      %cst_20 = arith.constant 0.000000e+00 : f32
      %22 = vector.broadcast %cst_20 : f32 to vector<16x32xf32>
      %23 = arith.maximumf %21, %22 : vector<16x32xf32>
      %24 = arith.truncf %23 : vector<16x32xf32> to vector<16x32xbf16>
      %c0_21 = arith.constant 0 : index
      %c0_22 = arith.constant 0 : index
      %c0_23 = arith.constant 0 : index
      %c0_24 = arith.constant 0 : index
      %25 = vector.load %arg7[%c0_21, %c0_22, %c0_23, %c0_24] : memref<1x1x16x32xbf16, #tpu.memory_space<vmem>>, vector<1x1x16x32xbf16>
      %26 = vector.shape_cast %25 : vector<1x1x16x32xbf16> to vector<16x32xbf16>
      %27 = vector.shape_cast %24 : vector<16x32xbf16> to vector<1x1x16x32xbf16>
      tpu.vector_store %arg7[%c0_21, %c0_22, %c0_23, %c0_24], %27 {strides = array<i32>} : memref<1x1x16x32xbf16, #tpu.memory_space<vmem>>, vector<1x1x16x32xbf16>,
    } else {
    }
    return
  }
  func.func @transform_0(%arg0: i32, %arg1: i32, %arg2: i32) -> (i32, i32, i32, i32) {
    %c1_i32 = arith.constant 1 : i32
    %0 = arith.muli %arg1, %c1_i32 : i32
    %1 = arith.addi %0, %arg2 : i32
    %c0_i32 = arith.constant 0 : i32
    %c0_i32_0 = arith.constant 0 : i32
    %c0_i32_1 = arith.constant 0 : i32
    return %arg0, %1, %c0_i32, %c0_i32_0 : i32, i32, i32, i32
  }
  func.func @transform_1(%arg0: i32, %arg1: i32, %arg2: i32) -> (i32, i32, i32) {
    %c0_i32 = arith.constant 0 : i32
    %c0_i32_0 = arith.constant 0 : i32
    %c0_i32_1 = arith.constant 0 : i32
    return %arg2, %c0_i32, %c0_i32_0 : i32, i32, i32
  }
  func.func @transform_2(%arg0: i32, %arg1: i32, %arg2: i32) -> (i32, i32) {
    %c0_i32 = arith.constant 0 : i32
    %c0_i32_0 = arith.constant 0 : i32
    %c0_i32_1 = arith.constant 0 : i32
    return %c0_i32, %c0_i32_0 : i32, i32
  }
  func.func @transform_3(%arg0: i32, %arg1: i32, %arg2: i32) -> (i32, i32, i32, i32) {
    %c0_i32 = arith.constant 0 : i32
    %c0_i32_0 = arith.constant 0 : i32
    %c0_i32_1 = arith.constant 0 : i32
    return %arg0, %arg1, %c0_i32, %c0_i32_0 : i32, i32, i32, i32
  }
  func.func @transform_4(%arg0: i32, %arg1: i32, %arg2: i32) -> (i32, i32, i32, i32) {
    %c0_i32 = arith.constant 0 : i32
    %c0_i32_0 = arith.constant 0 : i32
    %c0_i32_1 = arith.constant 0 : i32
    return %arg0, %arg1, %c0_i32, %c0_i32_0 : i32, i32, i32, i32
  }
}

module attributes {stable_mosaic.version = 11 : i64} {
  func.func @_conv_acc_res_kernel(%arg0: i32, %arg1: i32, %arg2: i32, %arg3: memref<1x1x16x128xbf16, #tpu.memory_space<vmem>>, %arg4: memref<1x128x32xbf16, #tpu.memory_space<vmem>>, %arg5: memref<1x32xf32, #tpu.memory_space<vmem>>, %arg6: memref<1x1x16x32xbf16, #tpu.memory_space<vmem>>, %arg7: memref<1x1x16x32xbf16, #tpu.memory_space<vmem>>, %arg8: memref<16x32xf32, #tpu.memory_space<vmem>>) attributes {dimension_semantics = [#tpu.dimension_semantics<parallel>, #tpu.dimension_semantics<parallel>, #tpu.dimension_semantics<arbitrary>], iteration_bounds = array<i64: 2, 4, 2>, scalar_prefetch = 0 : i64, scratch_operands = 1 : i64, tpu.core_type = #tpu.core_type<tc>, window_params = [{transform_indices = @transform_0, window_bounds = array<i64: 1, 1, 16, 128>}, {transform_indices = @transform_1, window_bounds = array<i64: 1, 128, 32>}, {pipeline_mode = #tpu.pipeline_mode<synchronous>, transform_indices = @transform_2, window_bounds = array<i64: 1, 32>}, {transform_indices = @transform_3, window_bounds = array<i64: 1, 1, 16, 32>}, {transform_indices = @transform_4, window_bounds = array<i64: 1, 1, 16, 32>}]} {
    %c0_i32 = arith.constant 0 : i32
    %0 = arith.cmpi eq, %arg2, %c0_i32 : i32
    %1 = arith.extui %0 : i1 to i32
    %c0_i32_0 = arith.constant 0 : i32
    %2 = arith.cmpi ne, %1, %c0_i32_0 : i32
    scf.if %2 {
      %cst_12 = arith.constant 0.000000e+00 : f32
      %14 = vector.broadcast %cst_12 : f32 to vector<16x32xf32>
      %c0_13 = arith.constant 0 : index
      %c0_14 = arith.constant 0 : index
      %15 = vector.load %arg8[%c0_13, %c0_14] : memref<16x32xf32, #tpu.memory_space<vmem>>, vector<16x32xf32>
      tpu.vector_store %arg8[%c0_13, %c0_14], %14 {strides = array<i32>} : memref<16x32xf32, #tpu.memory_space<vmem>>, vector<16x32xf32>,
    } else {
    }
    %c0 = arith.constant 0 : index
    %c0_1 = arith.constant 0 : index
    %3 = vector.load %arg8[%c0, %c0_1] : memref<16x32xf32, #tpu.memory_space<vmem>>, vector<16x32xf32>
    %c0_2 = arith.constant 0 : index
    %c0_3 = arith.constant 0 : index
    %c0_4 = arith.constant 0 : index
    %c0_5 = arith.constant 0 : index
    %4 = vector.load %arg3[%c0_2, %c0_3, %c0_4, %c0_5] : memref<1x1x16x128xbf16, #tpu.memory_space<vmem>>, vector<1x1x16x128xbf16>
    %5 = vector.shape_cast %4 : vector<1x1x16x128xbf16> to vector<16x128xbf16>
    %c0_6 = arith.constant 0 : index
    %c0_7 = arith.constant 0 : index
    %c0_8 = arith.constant 0 : index
    %6 = vector.load %arg4[%c0_6, %c0_7, %c0_8] : memref<1x128x32xbf16, #tpu.memory_space<vmem>>, vector<1x128x32xbf16>
    %7 = vector.shape_cast %6 : vector<1x128x32xbf16> to vector<128x32xbf16>
    %cst = arith.constant dense<0.000000e+00> : vector<16x32xf32>
    %8 = tpu.matmul %5, %7, %cst {dimension_numbers = #tpu.dot_dimension_numbers<[1], [0], [0], [1], [0, 0, 1, 1], [], []>} : vector<16x128xbf16>, vector<128x32xbf16>, vector<16x32xf32> -> vector<16x32xf32>
    %9 = arith.addf %3, %8 : vector<16x32xf32>
    %c0_9 = arith.constant 0 : index
    %c0_10 = arith.constant 0 : index
    %10 = vector.load %arg8[%c0_9, %c0_10] : memref<16x32xf32, #tpu.memory_space<vmem>>, vector<16x32xf32>
    tpu.vector_store %arg8[%c0_9, %c0_10], %9 {strides = array<i32>} : memref<16x32xf32, #tpu.memory_space<vmem>>, vector<16x32xf32>,
    %c1_i32 = arith.constant 1 : i32
    %11 = arith.cmpi eq, %arg2, %c1_i32 : i32
    %12 = arith.extui %11 : i1 to i32
    %c0_i32_11 = arith.constant 0 : i32
    %13 = arith.cmpi ne, %12, %c0_i32_11 : i32
    scf.if %13 {
      %c0_12 = arith.constant 0 : index
      %c0_13 = arith.constant 0 : index
      %14 = vector.load %arg8[%c0_12, %c0_13] : memref<16x32xf32, #tpu.memory_space<vmem>>, vector<16x32xf32>
      %c0_14 = arith.constant 0 : index
      %c0_15 = arith.constant 0 : index
      %15 = vector.load %arg5[%c0_14, %c0_15] : memref<1x32xf32, #tpu.memory_space<vmem>>, vector<1x32xf32>
      %16 = vector.broadcast %15 : vector<1x32xf32> to vector<16x32xf32>
      %17 = arith.addf %14, %16 : vector<16x32xf32>
      %c0_16 = arith.constant 0 : index
      %c0_17 = arith.constant 0 : index
      %c0_18 = arith.constant 0 : index
      %c0_19 = arith.constant 0 : index
      %18 = vector.load %arg6[%c0_16, %c0_17, %c0_18, %c0_19] : memref<1x1x16x32xbf16, #tpu.memory_space<vmem>>, vector<1x1x16x32xbf16>
      %19 = vector.shape_cast %18 : vector<1x1x16x32xbf16> to vector<16x32xbf16>
      %20 = arith.extf %19 : vector<16x32xbf16> to vector<16x32xf32>
      %21 = arith.addf %17, %20 : vector<16x32xf32>
      %cst_20 = arith.constant 0.000000e+00 : f32
      %22 = vector.broadcast %cst_20 : f32 to vector<16x32xf32>
      %23 = arith.maximumf %21, %22 : vector<16x32xf32>
      %24 = arith.truncf %23 : vector<16x32xf32> to vector<16x32xbf16>
      %c0_21 = arith.constant 0 : index
      %c0_22 = arith.constant 0 : index
      %c0_23 = arith.constant 0 : index
      %c0_24 = arith.constant 0 : index
      %25 = vector.load %arg7[%c0_21, %c0_22, %c0_23, %c0_24] : memref<1x1x16x32xbf16, #tpu.memory_space<vmem>>, vector<1x1x16x32xbf16>
      %26 = vector.shape_cast %25 : vector<1x1x16x32xbf16> to vector<16x32xbf16>
      %27 = vector.shape_cast %24 : vector<16x32xbf16> to vector<1x1x16x32xbf16>
      tpu.vector_store %arg7[%c0_21, %c0_22, %c0_23, %c0_24], %27 {strides = array<i32>} : memref<1x1x16x32xbf16, #tpu.memory_space<vmem>>, vector<1x1x16x32xbf16>,
    } else {
    }
    return
  }
  func.func @transform_0(%arg0: i32, %arg1: i32, %arg2: i32) -> (i32, i32, i32, i32) {
    %c1_i32 = arith.constant 1 : i32
    %0 = arith.muli %arg1, %c1_i32 : i32
    %1 = arith.addi %0, %arg2 : i32
    %c0_i32 = arith.constant 0 : i32
    %c0_i32_0 = arith.constant 0 : i32
    %c0_i32_1 = arith.constant 0 : i32
    return %arg0, %1, %c0_i32, %c0_i32_0 : i32, i32, i32, i32
  }
  func.func @transform_1(%arg0: i32, %arg1: i32, %arg2: i32) -> (i32, i32, i32) {
    %c0_i32 = arith.constant 0 : i32
    %c0_i32_0 = arith.constant 0 : i32
    %c0_i32_1 = arith.constant 0 : i32
    return %arg2, %c0_i32, %c0_i32_0 : i32, i32, i32
  }
  func.func @transform_2(%arg0: i32, %arg1: i32, %arg2: i32) -> (i32, i32) {
    %c0_i32 = arith.constant 0 : i32
    %c0_i32_0 = arith.constant 0 : i32
    %c0_i32_1 = arith.constant 0 : i32
    return %c0_i32, %c0_i32_0 : i32, i32
  }
  func.func @transform_3(%arg0: i32, %arg1: i32, %arg2: i32) -> (i32, i32, i32, i32) {
    %c0_i32 = arith.constant 0 : i32
    %c0_i32_0 = arith.constant 0 : i32
    %c0_i32_1 = arith.constant 0 : i32
    return %arg0, %arg1, %c0_i32, %c0_i32_0 : i32, i32, i32, i32
  }
  func.func @transform_4(%arg0: i32, %arg1: i32, %arg2: i32) -> (i32, i32, i32, i32) {
    %c0_i32 = arith.constant 0 : i32
    %c0_i32_0 = arith.constant 0 : i32
    %c0_i32_1 = arith.constant 0 : i32
    return %arg0, %arg1, %c0_i32, %c0_i32_0 : i32, i32, i32, i32
  }
}

module attributes {stable_mosaic.version = 11 : i64} {
  func.func @_conv_acc_res_kernel(%arg0: i32, %arg1: i32, %arg2: i32, %arg3: memref<1x1x16x256xbf16, #tpu.memory_space<vmem>>, %arg4: memref<1x256x32xbf16, #tpu.memory_space<vmem>>, %arg5: memref<1x32xf32, #tpu.memory_space<vmem>>, %arg6: memref<1x1x16x32xbf16, #tpu.memory_space<vmem>>, %arg7: memref<1x1x16x32xbf16, #tpu.memory_space<vmem>>, %arg8: memref<16x32xf32, #tpu.memory_space<vmem>>) attributes {dimension_semantics = [#tpu.dimension_semantics<parallel>, #tpu.dimension_semantics<parallel>, #tpu.dimension_semantics<arbitrary>], iteration_bounds = array<i64: 2, 4, 2>, scalar_prefetch = 0 : i64, scratch_operands = 1 : i64, tpu.core_type = #tpu.core_type<tc>, window_params = [{transform_indices = @transform_0, window_bounds = array<i64: 1, 1, 16, 256>}, {transform_indices = @transform_1, window_bounds = array<i64: 1, 256, 32>}, {pipeline_mode = #tpu.pipeline_mode<synchronous>, transform_indices = @transform_2, window_bounds = array<i64: 1, 32>}, {transform_indices = @transform_3, window_bounds = array<i64: 1, 1, 16, 32>}, {transform_indices = @transform_4, window_bounds = array<i64: 1, 1, 16, 32>}]} {
    %c0_i32 = arith.constant 0 : i32
    %0 = arith.cmpi eq, %arg2, %c0_i32 : i32
    %1 = arith.extui %0 : i1 to i32
    %c0_i32_0 = arith.constant 0 : i32
    %2 = arith.cmpi ne, %1, %c0_i32_0 : i32
    scf.if %2 {
      %cst_12 = arith.constant 0.000000e+00 : f32
      %14 = vector.broadcast %cst_12 : f32 to vector<16x32xf32>
      %c0_13 = arith.constant 0 : index
      %c0_14 = arith.constant 0 : index
      %15 = vector.load %arg8[%c0_13, %c0_14] : memref<16x32xf32, #tpu.memory_space<vmem>>, vector<16x32xf32>
      tpu.vector_store %arg8[%c0_13, %c0_14], %14 {strides = array<i32>} : memref<16x32xf32, #tpu.memory_space<vmem>>, vector<16x32xf32>,
    } else {
    }
    %c0 = arith.constant 0 : index
    %c0_1 = arith.constant 0 : index
    %3 = vector.load %arg8[%c0, %c0_1] : memref<16x32xf32, #tpu.memory_space<vmem>>, vector<16x32xf32>
    %c0_2 = arith.constant 0 : index
    %c0_3 = arith.constant 0 : index
    %c0_4 = arith.constant 0 : index
    %c0_5 = arith.constant 0 : index
    %4 = vector.load %arg3[%c0_2, %c0_3, %c0_4, %c0_5] : memref<1x1x16x256xbf16, #tpu.memory_space<vmem>>, vector<1x1x16x256xbf16>
    %5 = vector.shape_cast %4 : vector<1x1x16x256xbf16> to vector<16x256xbf16>
    %c0_6 = arith.constant 0 : index
    %c0_7 = arith.constant 0 : index
    %c0_8 = arith.constant 0 : index
    %6 = vector.load %arg4[%c0_6, %c0_7, %c0_8] : memref<1x256x32xbf16, #tpu.memory_space<vmem>>, vector<1x256x32xbf16>
    %7 = vector.shape_cast %6 : vector<1x256x32xbf16> to vector<256x32xbf16>
    %cst = arith.constant dense<0.000000e+00> : vector<16x32xf32>
    %8 = tpu.matmul %5, %7, %cst {dimension_numbers = #tpu.dot_dimension_numbers<[1], [0], [0], [1], [0, 0, 1, 1], [], []>} : vector<16x256xbf16>, vector<256x32xbf16>, vector<16x32xf32> -> vector<16x32xf32>
    %9 = arith.addf %3, %8 : vector<16x32xf32>
    %c0_9 = arith.constant 0 : index
    %c0_10 = arith.constant 0 : index
    %10 = vector.load %arg8[%c0_9, %c0_10] : memref<16x32xf32, #tpu.memory_space<vmem>>, vector<16x32xf32>
    tpu.vector_store %arg8[%c0_9, %c0_10], %9 {strides = array<i32>} : memref<16x32xf32, #tpu.memory_space<vmem>>, vector<16x32xf32>,
    %c1_i32 = arith.constant 1 : i32
    %11 = arith.cmpi eq, %arg2, %c1_i32 : i32
    %12 = arith.extui %11 : i1 to i32
    %c0_i32_11 = arith.constant 0 : i32
    %13 = arith.cmpi ne, %12, %c0_i32_11 : i32
    scf.if %13 {
      %c0_12 = arith.constant 0 : index
      %c0_13 = arith.constant 0 : index
      %14 = vector.load %arg8[%c0_12, %c0_13] : memref<16x32xf32, #tpu.memory_space<vmem>>, vector<16x32xf32>
      %c0_14 = arith.constant 0 : index
      %c0_15 = arith.constant 0 : index
      %15 = vector.load %arg5[%c0_14, %c0_15] : memref<1x32xf32, #tpu.memory_space<vmem>>, vector<1x32xf32>
      %16 = vector.broadcast %15 : vector<1x32xf32> to vector<16x32xf32>
      %17 = arith.addf %14, %16 : vector<16x32xf32>
      %c0_16 = arith.constant 0 : index
      %c0_17 = arith.constant 0 : index
      %c0_18 = arith.constant 0 : index
      %c0_19 = arith.constant 0 : index
      %18 = vector.load %arg6[%c0_16, %c0_17, %c0_18, %c0_19] : memref<1x1x16x32xbf16, #tpu.memory_space<vmem>>, vector<1x1x16x32xbf16>
      %19 = vector.shape_cast %18 : vector<1x1x16x32xbf16> to vector<16x32xbf16>
      %20 = arith.extf %19 : vector<16x32xbf16> to vector<16x32xf32>
      %21 = arith.addf %17, %20 : vector<16x32xf32>
      %cst_20 = arith.constant 0.000000e+00 : f32
      %22 = vector.broadcast %cst_20 : f32 to vector<16x32xf32>
      %23 = arith.maximumf %21, %22 : vector<16x32xf32>
      %24 = arith.truncf %23 : vector<16x32xf32> to vector<16x32xbf16>
      %c0_21 = arith.constant 0 : index
      %c0_22 = arith.constant 0 : index
      %c0_23 = arith.constant 0 : index
      %c0_24 = arith.constant 0 : index
      %25 = vector.load %arg7[%c0_21, %c0_22, %c0_23, %c0_24] : memref<1x1x16x32xbf16, #tpu.memory_space<vmem>>, vector<1x1x16x32xbf16>
      %26 = vector.shape_cast %25 : vector<1x1x16x32xbf16> to vector<16x32xbf16>
      %27 = vector.shape_cast %24 : vector<16x32xbf16> to vector<1x1x16x32xbf16>
      tpu.vector_store %arg7[%c0_21, %c0_22, %c0_23, %c0_24], %27 {strides = array<i32>} : memref<1x1x16x32xbf16, #tpu.memory_space<vmem>>, vector<1x1x16x32xbf16>,
    } else {
    }
    return
  }
  func.func @transform_0(%arg0: i32, %arg1: i32, %arg2: i32) -> (i32, i32, i32, i32) {
    %c1_i32 = arith.constant 1 : i32
    %0 = arith.muli %arg1, %c1_i32 : i32
    %1 = arith.addi %0, %arg2 : i32
    %c0_i32 = arith.constant 0 : i32
    %c0_i32_0 = arith.constant 0 : i32
    %c0_i32_1 = arith.constant 0 : i32
    return %arg0, %1, %c0_i32, %c0_i32_0 : i32, i32, i32, i32
  }
  func.func @transform_1(%arg0: i32, %arg1: i32, %arg2: i32) -> (i32, i32, i32) {
    %c0_i32 = arith.constant 0 : i32
    %c0_i32_0 = arith.constant 0 : i32
    %c0_i32_1 = arith.constant 0 : i32
    return %arg2, %c0_i32, %c0_i32_0 : i32, i32, i32
  }
  func.func @transform_2(%arg0: i32, %arg1: i32, %arg2: i32) -> (i32, i32) {
    %c0_i32 = arith.constant 0 : i32
    %c0_i32_0 = arith.constant 0 : i32
    %c0_i32_1 = arith.constant 0 : i32
    return %c0_i32, %c0_i32_0 : i32, i32
  }
  func.func @transform_3(%arg0: i32, %arg1: i32, %arg2: i32) -> (i32, i32, i32, i32) {
    %c0_i32 = arith.constant 0 : i32
    %c0_i32_0 = arith.constant 0 : i32
    %c0_i32_1 = arith.constant 0 : i32
    return %arg0, %arg1, %c0_i32, %c0_i32_0 : i32, i32, i32, i32
  }
  func.func @transform_4(%arg0: i32, %arg1: i32, %arg2: i32) -> (i32, i32, i32, i32) {
    %c0_i32 = arith.constant 0 : i32
    %c0_i32_0 = arith.constant 0 : i32
    %c0_i32_1 = arith.constant 0 : i32
    return %arg0, %arg1, %c0_i32, %c0_i32_0 : i32, i32, i32, i32
  }
}

module attributes {stable_mosaic.version = 11 : i64} {
  func.func @_conv_acc_kernel(%arg0: i32, %arg1: i32, %arg2: i32, %arg3: memref<1x1x64x64xbf16, #tpu.memory_space<vmem>>, %arg4: memref<1x64x1xbf16, #tpu.memory_space<vmem>>, %arg5: memref<1x1xf32, #tpu.memory_space<vmem>>, %arg6: memref<1x1x64x1xf32, #tpu.memory_space<vmem>>, %arg7: memref<64x1xf32, #tpu.memory_space<vmem>>) attributes {dimension_semantics = [#tpu.dimension_semantics<parallel>, #tpu.dimension_semantics<parallel>, #tpu.dimension_semantics<arbitrary>], iteration_bounds = array<i64: 2, 8, 1>, scalar_prefetch = 0 : i64, scratch_operands = 1 : i64, tpu.core_type = #tpu.core_type<tc>, window_params = [{transform_indices = @transform_0, window_bounds = array<i64: 1, 1, 64, 64>}, {transform_indices = @transform_1, window_bounds = array<i64: 1, 64, 1>}, {pipeline_mode = #tpu.pipeline_mode<synchronous>, transform_indices = @transform_2, window_bounds = array<i64: 1, 1>}, {transform_indices = @transform_3, window_bounds = array<i64: 1, 1, 64, 1>}]} {
    %c0_i32 = arith.constant 0 : i32
    %0 = arith.cmpi eq, %arg2, %c0_i32 : i32
    %1 = arith.extui %0 : i1 to i32
    %c0_i32_0 = arith.constant 0 : i32
    %2 = arith.cmpi ne, %1, %c0_i32_0 : i32
    scf.if %2 {
      %cst_13 = arith.constant 0.000000e+00 : f32
      %14 = vector.broadcast %cst_13 : f32 to vector<64x1xf32>
      %c0_14 = arith.constant 0 : index
      %c0_15 = arith.constant 0 : index
      %15 = vector.load %arg7[%c0_14, %c0_15] : memref<64x1xf32, #tpu.memory_space<vmem>>, vector<64x1xf32>
      tpu.vector_store %arg7[%c0_14, %c0_15], %14 {strides = array<i32>} : memref<64x1xf32, #tpu.memory_space<vmem>>, vector<64x1xf32>,
    } else {
    }
    %c0 = arith.constant 0 : index
    %c0_1 = arith.constant 0 : index
    %3 = vector.load %arg7[%c0, %c0_1] : memref<64x1xf32, #tpu.memory_space<vmem>>, vector<64x1xf32>
    %c0_2 = arith.constant 0 : index
    %c0_3 = arith.constant 0 : index
    %c0_4 = arith.constant 0 : index
    %c0_5 = arith.constant 0 : index
    %4 = vector.load %arg3[%c0_2, %c0_3, %c0_4, %c0_5] : memref<1x1x64x64xbf16, #tpu.memory_space<vmem>>, vector<1x1x64x64xbf16>
    %5 = vector.shape_cast %4 : vector<1x1x64x64xbf16> to vector<64x64xbf16>
    %c0_6 = arith.constant 0 : index
    %c0_7 = arith.constant 0 : index
    %c0_8 = arith.constant 0 : index
    %6 = vector.load %arg4[%c0_6, %c0_7, %c0_8] : memref<1x64x1xbf16, #tpu.memory_space<vmem>>, vector<1x64x1xbf16>
    %7 = vector.shape_cast %6 : vector<1x64x1xbf16> to vector<64x1xbf16>
    %cst = arith.constant dense<0.000000e+00> : vector<64x1xf32>
    %8 = tpu.matmul %5, %7, %cst {dimension_numbers = #tpu.dot_dimension_numbers<[1], [0], [0], [1], [0, 0, 1, 1], [], []>} : vector<64x64xbf16>, vector<64x1xbf16>, vector<64x1xf32> -> vector<64x1xf32>
    %9 = arith.addf %3, %8 : vector<64x1xf32>
    %c0_9 = arith.constant 0 : index
    %c0_10 = arith.constant 0 : index
    %10 = vector.load %arg7[%c0_9, %c0_10] : memref<64x1xf32, #tpu.memory_space<vmem>>, vector<64x1xf32>
    tpu.vector_store %arg7[%c0_9, %c0_10], %9 {strides = array<i32>} : memref<64x1xf32, #tpu.memory_space<vmem>>, vector<64x1xf32>,
    %c0_i32_11 = arith.constant 0 : i32
    %11 = arith.cmpi eq, %arg2, %c0_i32_11 : i32
    %12 = arith.extui %11 : i1 to i32
    %c0_i32_12 = arith.constant 0 : i32
    %13 = arith.cmpi ne, %12, %c0_i32_12 : i32
    scf.if %13 {
      %c0_13 = arith.constant 0 : index
      %c0_14 = arith.constant 0 : index
      %14 = vector.load %arg7[%c0_13, %c0_14] : memref<64x1xf32, #tpu.memory_space<vmem>>, vector<64x1xf32>
      %c0_15 = arith.constant 0 : index
      %c0_16 = arith.constant 0 : index
      %15 = vector.load %arg5[%c0_15, %c0_16] : memref<1x1xf32, #tpu.memory_space<vmem>>, vector<1x1xf32>
      %16 = vector.broadcast %15 : vector<1x1xf32> to vector<64x1xf32>
      %17 = arith.addf %14, %16 : vector<64x1xf32>
      %c0_17 = arith.constant 0 : index
      %c0_18 = arith.constant 0 : index
      %c0_19 = arith.constant 0 : index
      %c0_20 = arith.constant 0 : index
      %18 = vector.load %arg6[%c0_17, %c0_18, %c0_19, %c0_20] : memref<1x1x64x1xf32, #tpu.memory_space<vmem>>, vector<1x1x64x1xf32>
      %19 = vector.shape_cast %18 : vector<1x1x64x1xf32> to vector<64x1xf32>
      %20 = vector.shape_cast %17 : vector<64x1xf32> to vector<1x1x64x1xf32>
      tpu.vector_store %arg6[%c0_17, %c0_18, %c0_19, %c0_20], %20 {strides = array<i32>} : memref<1x1x64x1xf32, #tpu.memory_space<vmem>>, vector<1x1x64x1xf32>,
    } else {
    }
    return
  }
  func.func @transform_0(%arg0: i32, %arg1: i32, %arg2: i32) -> (i32, i32, i32, i32) {
    %c1_i32 = arith.constant 1 : i32
    %0 = arith.muli %arg1, %c1_i32 : i32
    %1 = arith.addi %0, %arg2 : i32
    %c0_i32 = arith.constant 0 : i32
    %c0_i32_0 = arith.constant 0 : i32
    %c0_i32_1 = arith.constant 0 : i32
    return %arg0, %1, %c0_i32, %c0_i32_0 : i32, i32, i32, i32
  }
  func.func @transform_1(%arg0: i32, %arg1: i32, %arg2: i32) -> (i32, i32, i32) {
    %c0_i32 = arith.constant 0 : i32
    %c0_i32_0 = arith.constant 0 : i32
    %c0_i32_1 = arith.constant 0 : i32
    return %arg2, %c0_i32, %c0_i32_0 : i32, i32, i32
  }
  func.func @transform_2(%arg0: i32, %arg1: i32, %arg2: i32) -> (i32, i32) {
    %c0_i32 = arith.constant 0 : i32
    %c0_i32_0 = arith.constant 0 : i32
    %c0_i32_1 = arith.constant 0 : i32
    return %c0_i32, %c0_i32_0 : i32, i32
  }
  func.func @transform_3(%arg0: i32, %arg1: i32, %arg2: i32) -> (i32, i32, i32, i32) {
    %c0_i32 = arith.constant 0 : i32
    %c0_i32_0 = arith.constant 0 : i32
    %c0_i32_1 = arith.constant 0 : i32
    return %arg0, %arg1, %c0_i32, %c0_i32_0 : i32, i32, i32, i32
  }
}

module attributes {stable_mosaic.version = 11 : i64} {
  func.func @_conv_acc_kernel(%arg0: i32, %arg1: i32, %arg2: i32, %arg3: memref<1x1x64x32xbf16, #tpu.memory_space<vmem>>, %arg4: memref<1x32x1xbf16, #tpu.memory_space<vmem>>, %arg5: memref<1x1xf32, #tpu.memory_space<vmem>>, %arg6: memref<1x1x64x1xf32, #tpu.memory_space<vmem>>, %arg7: memref<64x1xf32, #tpu.memory_space<vmem>>) attributes {dimension_semantics = [#tpu.dimension_semantics<parallel>, #tpu.dimension_semantics<parallel>, #tpu.dimension_semantics<arbitrary>], iteration_bounds = array<i64: 2, 8, 1>, scalar_prefetch = 0 : i64, scratch_operands = 1 : i64, tpu.core_type = #tpu.core_type<tc>, window_params = [{transform_indices = @transform_0, window_bounds = array<i64: 1, 1, 64, 32>}, {transform_indices = @transform_1, window_bounds = array<i64: 1, 32, 1>}, {pipeline_mode = #tpu.pipeline_mode<synchronous>, transform_indices = @transform_2, window_bounds = array<i64: 1, 1>}, {transform_indices = @transform_3, window_bounds = array<i64: 1, 1, 64, 1>}]} {
    %c0_i32 = arith.constant 0 : i32
    %0 = arith.cmpi eq, %arg2, %c0_i32 : i32
    %1 = arith.extui %0 : i1 to i32
    %c0_i32_0 = arith.constant 0 : i32
    %2 = arith.cmpi ne, %1, %c0_i32_0 : i32
    scf.if %2 {
      %cst_13 = arith.constant 0.000000e+00 : f32
      %14 = vector.broadcast %cst_13 : f32 to vector<64x1xf32>
      %c0_14 = arith.constant 0 : index
      %c0_15 = arith.constant 0 : index
      %15 = vector.load %arg7[%c0_14, %c0_15] : memref<64x1xf32, #tpu.memory_space<vmem>>, vector<64x1xf32>
      tpu.vector_store %arg7[%c0_14, %c0_15], %14 {strides = array<i32>} : memref<64x1xf32, #tpu.memory_space<vmem>>, vector<64x1xf32>,
    } else {
    }
    %c0 = arith.constant 0 : index
    %c0_1 = arith.constant 0 : index
    %3 = vector.load %arg7[%c0, %c0_1] : memref<64x1xf32, #tpu.memory_space<vmem>>, vector<64x1xf32>
    %c0_2 = arith.constant 0 : index
    %c0_3 = arith.constant 0 : index
    %c0_4 = arith.constant 0 : index
    %c0_5 = arith.constant 0 : index
    %4 = vector.load %arg3[%c0_2, %c0_3, %c0_4, %c0_5] : memref<1x1x64x32xbf16, #tpu.memory_space<vmem>>, vector<1x1x64x32xbf16>
    %5 = vector.shape_cast %4 : vector<1x1x64x32xbf16> to vector<64x32xbf16>
    %c0_6 = arith.constant 0 : index
    %c0_7 = arith.constant 0 : index
    %c0_8 = arith.constant 0 : index
    %6 = vector.load %arg4[%c0_6, %c0_7, %c0_8] : memref<1x32x1xbf16, #tpu.memory_space<vmem>>, vector<1x32x1xbf16>
    %7 = vector.shape_cast %6 : vector<1x32x1xbf16> to vector<32x1xbf16>
    %cst = arith.constant dense<0.000000e+00> : vector<64x1xf32>
    %8 = tpu.matmul %5, %7, %cst {dimension_numbers = #tpu.dot_dimension_numbers<[1], [0], [0], [1], [0, 0, 1, 1], [], []>} : vector<64x32xbf16>, vector<32x1xbf16>, vector<64x1xf32> -> vector<64x1xf32>
    %9 = arith.addf %3, %8 : vector<64x1xf32>
    %c0_9 = arith.constant 0 : index
    %c0_10 = arith.constant 0 : index
    %10 = vector.load %arg7[%c0_9, %c0_10] : memref<64x1xf32, #tpu.memory_space<vmem>>, vector<64x1xf32>
    tpu.vector_store %arg7[%c0_9, %c0_10], %9 {strides = array<i32>} : memref<64x1xf32, #tpu.memory_space<vmem>>, vector<64x1xf32>,
    %c0_i32_11 = arith.constant 0 : i32
    %11 = arith.cmpi eq, %arg2, %c0_i32_11 : i32
    %12 = arith.extui %11 : i1 to i32
    %c0_i32_12 = arith.constant 0 : i32
    %13 = arith.cmpi ne, %12, %c0_i32_12 : i32
    scf.if %13 {
      %c0_13 = arith.constant 0 : index
      %c0_14 = arith.constant 0 : index
      %14 = vector.load %arg7[%c0_13, %c0_14] : memref<64x1xf32, #tpu.memory_space<vmem>>, vector<64x1xf32>
      %c0_15 = arith.constant 0 : index
      %c0_16 = arith.constant 0 : index
      %15 = vector.load %arg5[%c0_15, %c0_16] : memref<1x1xf32, #tpu.memory_space<vmem>>, vector<1x1xf32>
      %16 = vector.broadcast %15 : vector<1x1xf32> to vector<64x1xf32>
      %17 = arith.addf %14, %16 : vector<64x1xf32>
      %c0_17 = arith.constant 0 : index
      %c0_18 = arith.constant 0 : index
      %c0_19 = arith.constant 0 : index
      %c0_20 = arith.constant 0 : index
      %18 = vector.load %arg6[%c0_17, %c0_18, %c0_19, %c0_20] : memref<1x1x64x1xf32, #tpu.memory_space<vmem>>, vector<1x1x64x1xf32>
      %19 = vector.shape_cast %18 : vector<1x1x64x1xf32> to vector<64x1xf32>
      %20 = vector.shape_cast %17 : vector<64x1xf32> to vector<1x1x64x1xf32>
      tpu.vector_store %arg6[%c0_17, %c0_18, %c0_19, %c0_20], %20 {strides = array<i32>} : memref<1x1x64x1xf32, #tpu.memory_space<vmem>>, vector<1x1x64x1xf32>,
    } else {
    }
    return
  }
  func.func @transform_0(%arg0: i32, %arg1: i32, %arg2: i32) -> (i32, i32, i32, i32) {
    %c1_i32 = arith.constant 1 : i32
    %0 = arith.muli %arg1, %c1_i32 : i32
    %1 = arith.addi %0, %arg2 : i32
    %c0_i32 = arith.constant 0 : i32
    %c0_i32_0 = arith.constant 0 : i32
    %c0_i32_1 = arith.constant 0 : i32
    return %arg0, %1, %c0_i32, %c0_i32_0 : i32, i32, i32, i32
  }
  func.func @transform_1(%arg0: i32, %arg1: i32, %arg2: i32) -> (i32, i32, i32) {
    %c0_i32 = arith.constant 0 : i32
    %c0_i32_0 = arith.constant 0 : i32
    %c0_i32_1 = arith.constant 0 : i32
    return %arg2, %c0_i32, %c0_i32_0 : i32, i32, i32
  }
  func.func @transform_2(%arg0: i32, %arg1: i32, %arg2: i32) -> (i32, i32) {
    %c0_i32 = arith.constant 0 : i32
    %c0_i32_0 = arith.constant 0 : i32
    %c0_i32_1 = arith.constant 0 : i32
    return %c0_i32, %c0_i32_0 : i32, i32
  }
  func.func @transform_3(%arg0: i32, %arg1: i32, %arg2: i32) -> (i32, i32, i32, i32) {
    %c0_i32 = arith.constant 0 : i32
    %c0_i32_0 = arith.constant 0 : i32
    %c0_i32_1 = arith.constant 0 : i32
    return %arg0, %arg1, %c0_i32, %c0_i32_0 : i32, i32, i32, i32
  }
}

module attributes {stable_mosaic.version = 11 : i64} {
  func.func @_conv_acc_kernel(%arg0: i32, %arg1: i32, %arg2: i32, %arg3: memref<1x1x64x128xbf16, #tpu.memory_space<vmem>>, %arg4: memref<1x128x1xbf16, #tpu.memory_space<vmem>>, %arg5: memref<1x1xf32, #tpu.memory_space<vmem>>, %arg6: memref<1x1x64x1xf32, #tpu.memory_space<vmem>>, %arg7: memref<64x1xf32, #tpu.memory_space<vmem>>) attributes {dimension_semantics = [#tpu.dimension_semantics<parallel>, #tpu.dimension_semantics<parallel>, #tpu.dimension_semantics<arbitrary>], iteration_bounds = array<i64: 2, 8, 1>, scalar_prefetch = 0 : i64, scratch_operands = 1 : i64, tpu.core_type = #tpu.core_type<tc>, window_params = [{transform_indices = @transform_0, window_bounds = array<i64: 1, 1, 64, 128>}, {transform_indices = @transform_1, window_bounds = array<i64: 1, 128, 1>}, {pipeline_mode = #tpu.pipeline_mode<synchronous>, transform_indices = @transform_2, window_bounds = array<i64: 1, 1>}, {transform_indices = @transform_3, window_bounds = array<i64: 1, 1, 64, 1>}]} {
    %c0_i32 = arith.constant 0 : i32
    %0 = arith.cmpi eq, %arg2, %c0_i32 : i32
    %1 = arith.extui %0 : i1 to i32
    %c0_i32_0 = arith.constant 0 : i32
    %2 = arith.cmpi ne, %1, %c0_i32_0 : i32
    scf.if %2 {
      %cst_13 = arith.constant 0.000000e+00 : f32
      %14 = vector.broadcast %cst_13 : f32 to vector<64x1xf32>
      %c0_14 = arith.constant 0 : index
      %c0_15 = arith.constant 0 : index
      %15 = vector.load %arg7[%c0_14, %c0_15] : memref<64x1xf32, #tpu.memory_space<vmem>>, vector<64x1xf32>
      tpu.vector_store %arg7[%c0_14, %c0_15], %14 {strides = array<i32>} : memref<64x1xf32, #tpu.memory_space<vmem>>, vector<64x1xf32>,
    } else {
    }
    %c0 = arith.constant 0 : index
    %c0_1 = arith.constant 0 : index
    %3 = vector.load %arg7[%c0, %c0_1] : memref<64x1xf32, #tpu.memory_space<vmem>>, vector<64x1xf32>
    %c0_2 = arith.constant 0 : index
    %c0_3 = arith.constant 0 : index
    %c0_4 = arith.constant 0 : index
    %c0_5 = arith.constant 0 : index
    %4 = vector.load %arg3[%c0_2, %c0_3, %c0_4, %c0_5] : memref<1x1x64x128xbf16, #tpu.memory_space<vmem>>, vector<1x1x64x128xbf16>
    %5 = vector.shape_cast %4 : vector<1x1x64x128xbf16> to vector<64x128xbf16>
    %c0_6 = arith.constant 0 : index
    %c0_7 = arith.constant 0 : index
    %c0_8 = arith.constant 0 : index
    %6 = vector.load %arg4[%c0_6, %c0_7, %c0_8] : memref<1x128x1xbf16, #tpu.memory_space<vmem>>, vector<1x128x1xbf16>
    %7 = vector.shape_cast %6 : vector<1x128x1xbf16> to vector<128x1xbf16>
    %cst = arith.constant dense<0.000000e+00> : vector<64x1xf32>
    %8 = tpu.matmul %5, %7, %cst {dimension_numbers = #tpu.dot_dimension_numbers<[1], [0], [0], [1], [0, 0, 1, 1], [], []>} : vector<64x128xbf16>, vector<128x1xbf16>, vector<64x1xf32> -> vector<64x1xf32>
    %9 = arith.addf %3, %8 : vector<64x1xf32>
    %c0_9 = arith.constant 0 : index
    %c0_10 = arith.constant 0 : index
    %10 = vector.load %arg7[%c0_9, %c0_10] : memref<64x1xf32, #tpu.memory_space<vmem>>, vector<64x1xf32>
    tpu.vector_store %arg7[%c0_9, %c0_10], %9 {strides = array<i32>} : memref<64x1xf32, #tpu.memory_space<vmem>>, vector<64x1xf32>,
    %c0_i32_11 = arith.constant 0 : i32
    %11 = arith.cmpi eq, %arg2, %c0_i32_11 : i32
    %12 = arith.extui %11 : i1 to i32
    %c0_i32_12 = arith.constant 0 : i32
    %13 = arith.cmpi ne, %12, %c0_i32_12 : i32
    scf.if %13 {
      %c0_13 = arith.constant 0 : index
      %c0_14 = arith.constant 0 : index
      %14 = vector.load %arg7[%c0_13, %c0_14] : memref<64x1xf32, #tpu.memory_space<vmem>>, vector<64x1xf32>
      %c0_15 = arith.constant 0 : index
      %c0_16 = arith.constant 0 : index
      %15 = vector.load %arg5[%c0_15, %c0_16] : memref<1x1xf32, #tpu.memory_space<vmem>>, vector<1x1xf32>
      %16 = vector.broadcast %15 : vector<1x1xf32> to vector<64x1xf32>
      %17 = arith.addf %14, %16 : vector<64x1xf32>
      %c0_17 = arith.constant 0 : index
      %c0_18 = arith.constant 0 : index
      %c0_19 = arith.constant 0 : index
      %c0_20 = arith.constant 0 : index
      %18 = vector.load %arg6[%c0_17, %c0_18, %c0_19, %c0_20] : memref<1x1x64x1xf32, #tpu.memory_space<vmem>>, vector<1x1x64x1xf32>
      %19 = vector.shape_cast %18 : vector<1x1x64x1xf32> to vector<64x1xf32>
      %20 = vector.shape_cast %17 : vector<64x1xf32> to vector<1x1x64x1xf32>
      tpu.vector_store %arg6[%c0_17, %c0_18, %c0_19, %c0_20], %20 {strides = array<i32>} : memref<1x1x64x1xf32, #tpu.memory_space<vmem>>, vector<1x1x64x1xf32>,
    } else {
    }
    return
  }
  func.func @transform_0(%arg0: i32, %arg1: i32, %arg2: i32) -> (i32, i32, i32, i32) {
    %c1_i32 = arith.constant 1 : i32
    %0 = arith.muli %arg1, %c1_i32 : i32
    %1 = arith.addi %0, %arg2 : i32
    %c0_i32 = arith.constant 0 : i32
    %c0_i32_0 = arith.constant 0 : i32
    %c0_i32_1 = arith.constant 0 : i32
    return %arg0, %1, %c0_i32, %c0_i32_0 : i32, i32, i32, i32
  }
  func.func @transform_1(%arg0: i32, %arg1: i32, %arg2: i32) -> (i32, i32, i32) {
    %c0_i32 = arith.constant 0 : i32
    %c0_i32_0 = arith.constant 0 : i32
    %c0_i32_1 = arith.constant 0 : i32
    return %arg2, %c0_i32, %c0_i32_0 : i32, i32, i32
  }
  func.func @transform_2(%arg0: i32, %arg1: i32, %arg2: i32) -> (i32, i32) {
    %c0_i32 = arith.constant 0 : i32
    %c0_i32_0 = arith.constant 0 : i32
    %c0_i32_1 = arith.constant 0 : i32
    return %c0_i32, %c0_i32_0 : i32, i32
  }
  func.func @transform_3(%arg0: i32, %arg1: i32, %arg2: i32) -> (i32, i32, i32, i32) {
    %c0_i32 = arith.constant 0 : i32
    %c0_i32_0 = arith.constant 0 : i32
    %c0_i32_1 = arith.constant 0 : i32
    return %arg0, %arg1, %c0_i32, %c0_i32_0 : i32, i32, i32, i32
  }
}

module attributes {stable_mosaic.version = 11 : i64} {
  func.func @_conv_acc_kernel(%arg0: i32, %arg1: i32, %arg2: i32, %arg3: memref<1x1x64x64xbf16, #tpu.memory_space<vmem>>, %arg4: memref<1x64x1xbf16, #tpu.memory_space<vmem>>, %arg5: memref<1x1xf32, #tpu.memory_space<vmem>>, %arg6: memref<1x1x64x1xf32, #tpu.memory_space<vmem>>, %arg7: memref<64x1xf32, #tpu.memory_space<vmem>>) attributes {dimension_semantics = [#tpu.dimension_semantics<parallel>, #tpu.dimension_semantics<parallel>, #tpu.dimension_semantics<arbitrary>], iteration_bounds = array<i64: 2, 8, 2>, scalar_prefetch = 0 : i64, scratch_operands = 1 : i64, tpu.core_type = #tpu.core_type<tc>, window_params = [{transform_indices = @transform_0, window_bounds = array<i64: 1, 1, 64, 64>}, {transform_indices = @transform_1, window_bounds = array<i64: 1, 64, 1>}, {pipeline_mode = #tpu.pipeline_mode<synchronous>, transform_indices = @transform_2, window_bounds = array<i64: 1, 1>}, {transform_indices = @transform_3, window_bounds = array<i64: 1, 1, 64, 1>}]} {
    %c0_i32 = arith.constant 0 : i32
    %0 = arith.cmpi eq, %arg2, %c0_i32 : i32
    %1 = arith.extui %0 : i1 to i32
    %c0_i32_0 = arith.constant 0 : i32
    %2 = arith.cmpi ne, %1, %c0_i32_0 : i32
    scf.if %2 {
      %cst_12 = arith.constant 0.000000e+00 : f32
      %14 = vector.broadcast %cst_12 : f32 to vector<64x1xf32>
      %c0_13 = arith.constant 0 : index
      %c0_14 = arith.constant 0 : index
      %15 = vector.load %arg7[%c0_13, %c0_14] : memref<64x1xf32, #tpu.memory_space<vmem>>, vector<64x1xf32>
      tpu.vector_store %arg7[%c0_13, %c0_14], %14 {strides = array<i32>} : memref<64x1xf32, #tpu.memory_space<vmem>>, vector<64x1xf32>,
    } else {
    }
    %c0 = arith.constant 0 : index
    %c0_1 = arith.constant 0 : index
    %3 = vector.load %arg7[%c0, %c0_1] : memref<64x1xf32, #tpu.memory_space<vmem>>, vector<64x1xf32>
    %c0_2 = arith.constant 0 : index
    %c0_3 = arith.constant 0 : index
    %c0_4 = arith.constant 0 : index
    %c0_5 = arith.constant 0 : index
    %4 = vector.load %arg3[%c0_2, %c0_3, %c0_4, %c0_5] : memref<1x1x64x64xbf16, #tpu.memory_space<vmem>>, vector<1x1x64x64xbf16>
    %5 = vector.shape_cast %4 : vector<1x1x64x64xbf16> to vector<64x64xbf16>
    %c0_6 = arith.constant 0 : index
    %c0_7 = arith.constant 0 : index
    %c0_8 = arith.constant 0 : index
    %6 = vector.load %arg4[%c0_6, %c0_7, %c0_8] : memref<1x64x1xbf16, #tpu.memory_space<vmem>>, vector<1x64x1xbf16>
    %7 = vector.shape_cast %6 : vector<1x64x1xbf16> to vector<64x1xbf16>
    %cst = arith.constant dense<0.000000e+00> : vector<64x1xf32>
    %8 = tpu.matmul %5, %7, %cst {dimension_numbers = #tpu.dot_dimension_numbers<[1], [0], [0], [1], [0, 0, 1, 1], [], []>} : vector<64x64xbf16>, vector<64x1xbf16>, vector<64x1xf32> -> vector<64x1xf32>
    %9 = arith.addf %3, %8 : vector<64x1xf32>
    %c0_9 = arith.constant 0 : index
    %c0_10 = arith.constant 0 : index
    %10 = vector.load %arg7[%c0_9, %c0_10] : memref<64x1xf32, #tpu.memory_space<vmem>>, vector<64x1xf32>
    tpu.vector_store %arg7[%c0_9, %c0_10], %9 {strides = array<i32>} : memref<64x1xf32, #tpu.memory_space<vmem>>, vector<64x1xf32>,
    %c1_i32 = arith.constant 1 : i32
    %11 = arith.cmpi eq, %arg2, %c1_i32 : i32
    %12 = arith.extui %11 : i1 to i32
    %c0_i32_11 = arith.constant 0 : i32
    %13 = arith.cmpi ne, %12, %c0_i32_11 : i32
    scf.if %13 {
      %c0_12 = arith.constant 0 : index
      %c0_13 = arith.constant 0 : index
      %14 = vector.load %arg7[%c0_12, %c0_13] : memref<64x1xf32, #tpu.memory_space<vmem>>, vector<64x1xf32>
      %c0_14 = arith.constant 0 : index
      %c0_15 = arith.constant 0 : index
      %15 = vector.load %arg5[%c0_14, %c0_15] : memref<1x1xf32, #tpu.memory_space<vmem>>, vector<1x1xf32>
      %16 = vector.broadcast %15 : vector<1x1xf32> to vector<64x1xf32>
      %17 = arith.addf %14, %16 : vector<64x1xf32>
      %c0_16 = arith.constant 0 : index
      %c0_17 = arith.constant 0 : index
      %c0_18 = arith.constant 0 : index
      %c0_19 = arith.constant 0 : index
      %18 = vector.load %arg6[%c0_16, %c0_17, %c0_18, %c0_19] : memref<1x1x64x1xf32, #tpu.memory_space<vmem>>, vector<1x1x64x1xf32>
      %19 = vector.shape_cast %18 : vector<1x1x64x1xf32> to vector<64x1xf32>
      %20 = vector.shape_cast %17 : vector<64x1xf32> to vector<1x1x64x1xf32>
      tpu.vector_store %arg6[%c0_16, %c0_17, %c0_18, %c0_19], %20 {strides = array<i32>} : memref<1x1x64x1xf32, #tpu.memory_space<vmem>>, vector<1x1x64x1xf32>,
    } else {
    }
    return
  }
  func.func @transform_0(%arg0: i32, %arg1: i32, %arg2: i32) -> (i32, i32, i32, i32) {
    %c1_i32 = arith.constant 1 : i32
    %0 = arith.muli %arg1, %c1_i32 : i32
    %1 = arith.addi %0, %arg2 : i32
    %c0_i32 = arith.constant 0 : i32
    %c0_i32_0 = arith.constant 0 : i32
    %c0_i32_1 = arith.constant 0 : i32
    return %arg0, %1, %c0_i32, %c0_i32_0 : i32, i32, i32, i32
  }
  func.func @transform_1(%arg0: i32, %arg1: i32, %arg2: i32) -> (i32, i32, i32) {
    %c0_i32 = arith.constant 0 : i32
    %c0_i32_0 = arith.constant 0 : i32
    %c0_i32_1 = arith.constant 0 : i32
    return %arg2, %c0_i32, %c0_i32_0 : i32, i32, i32
  }
  func.func @transform_2(%arg0: i32, %arg1: i32, %arg2: i32) -> (i32, i32) {
    %c0_i32 = arith.constant 0 : i32
    %c0_i32_0 = arith.constant 0 : i32
    %c0_i32_1 = arith.constant 0 : i32
    return %c0_i32, %c0_i32_0 : i32, i32
  }
  func.func @transform_3(%arg0: i32, %arg1: i32, %arg2: i32) -> (i32, i32, i32, i32) {
    %c0_i32 = arith.constant 0 : i32
    %c0_i32_0 = arith.constant 0 : i32
    %c0_i32_1 = arith.constant 0 : i32
    return %arg0, %arg1, %c0_i32, %c0_i32_0 : i32, i32, i32, i32
  }
}

module attributes {stable_mosaic.version = 11 : i64} {
  func.func @_conv_acc_kernel(%arg0: i32, %arg1: i32, %arg2: i32, %arg3: memref<1x1x64x32xbf16, #tpu.memory_space<vmem>>, %arg4: memref<1x32x1xbf16, #tpu.memory_space<vmem>>, %arg5: memref<1x1xf32, #tpu.memory_space<vmem>>, %arg6: memref<1x1x64x1xf32, #tpu.memory_space<vmem>>, %arg7: memref<64x1xf32, #tpu.memory_space<vmem>>) attributes {dimension_semantics = [#tpu.dimension_semantics<parallel>, #tpu.dimension_semantics<parallel>, #tpu.dimension_semantics<arbitrary>], iteration_bounds = array<i64: 2, 8, 2>, scalar_prefetch = 0 : i64, scratch_operands = 1 : i64, tpu.core_type = #tpu.core_type<tc>, window_params = [{transform_indices = @transform_0, window_bounds = array<i64: 1, 1, 64, 32>}, {transform_indices = @transform_1, window_bounds = array<i64: 1, 32, 1>}, {pipeline_mode = #tpu.pipeline_mode<synchronous>, transform_indices = @transform_2, window_bounds = array<i64: 1, 1>}, {transform_indices = @transform_3, window_bounds = array<i64: 1, 1, 64, 1>}]} {
    %c0_i32 = arith.constant 0 : i32
    %0 = arith.cmpi eq, %arg2, %c0_i32 : i32
    %1 = arith.extui %0 : i1 to i32
    %c0_i32_0 = arith.constant 0 : i32
    %2 = arith.cmpi ne, %1, %c0_i32_0 : i32
    scf.if %2 {
      %cst_12 = arith.constant 0.000000e+00 : f32
      %14 = vector.broadcast %cst_12 : f32 to vector<64x1xf32>
      %c0_13 = arith.constant 0 : index
      %c0_14 = arith.constant 0 : index
      %15 = vector.load %arg7[%c0_13, %c0_14] : memref<64x1xf32, #tpu.memory_space<vmem>>, vector<64x1xf32>
      tpu.vector_store %arg7[%c0_13, %c0_14], %14 {strides = array<i32>} : memref<64x1xf32, #tpu.memory_space<vmem>>, vector<64x1xf32>,
    } else {
    }
    %c0 = arith.constant 0 : index
    %c0_1 = arith.constant 0 : index
    %3 = vector.load %arg7[%c0, %c0_1] : memref<64x1xf32, #tpu.memory_space<vmem>>, vector<64x1xf32>
    %c0_2 = arith.constant 0 : index
    %c0_3 = arith.constant 0 : index
    %c0_4 = arith.constant 0 : index
    %c0_5 = arith.constant 0 : index
    %4 = vector.load %arg3[%c0_2, %c0_3, %c0_4, %c0_5] : memref<1x1x64x32xbf16, #tpu.memory_space<vmem>>, vector<1x1x64x32xbf16>
    %5 = vector.shape_cast %4 : vector<1x1x64x32xbf16> to vector<64x32xbf16>
    %c0_6 = arith.constant 0 : index
    %c0_7 = arith.constant 0 : index
    %c0_8 = arith.constant 0 : index
    %6 = vector.load %arg4[%c0_6, %c0_7, %c0_8] : memref<1x32x1xbf16, #tpu.memory_space<vmem>>, vector<1x32x1xbf16>
    %7 = vector.shape_cast %6 : vector<1x32x1xbf16> to vector<32x1xbf16>
    %cst = arith.constant dense<0.000000e+00> : vector<64x1xf32>
    %8 = tpu.matmul %5, %7, %cst {dimension_numbers = #tpu.dot_dimension_numbers<[1], [0], [0], [1], [0, 0, 1, 1], [], []>} : vector<64x32xbf16>, vector<32x1xbf16>, vector<64x1xf32> -> vector<64x1xf32>
    %9 = arith.addf %3, %8 : vector<64x1xf32>
    %c0_9 = arith.constant 0 : index
    %c0_10 = arith.constant 0 : index
    %10 = vector.load %arg7[%c0_9, %c0_10] : memref<64x1xf32, #tpu.memory_space<vmem>>, vector<64x1xf32>
    tpu.vector_store %arg7[%c0_9, %c0_10], %9 {strides = array<i32>} : memref<64x1xf32, #tpu.memory_space<vmem>>, vector<64x1xf32>,
    %c1_i32 = arith.constant 1 : i32
    %11 = arith.cmpi eq, %arg2, %c1_i32 : i32
    %12 = arith.extui %11 : i1 to i32
    %c0_i32_11 = arith.constant 0 : i32
    %13 = arith.cmpi ne, %12, %c0_i32_11 : i32
    scf.if %13 {
      %c0_12 = arith.constant 0 : index
      %c0_13 = arith.constant 0 : index
      %14 = vector.load %arg7[%c0_12, %c0_13] : memref<64x1xf32, #tpu.memory_space<vmem>>, vector<64x1xf32>
      %c0_14 = arith.constant 0 : index
      %c0_15 = arith.constant 0 : index
      %15 = vector.load %arg5[%c0_14, %c0_15] : memref<1x1xf32, #tpu.memory_space<vmem>>, vector<1x1xf32>
      %16 = vector.broadcast %15 : vector<1x1xf32> to vector<64x1xf32>
      %17 = arith.addf %14, %16 : vector<64x1xf32>
      %c0_16 = arith.constant 0 : index
      %c0_17 = arith.constant 0 : index
      %c0_18 = arith.constant 0 : index
      %c0_19 = arith.constant 0 : index
      %18 = vector.load %arg6[%c0_16, %c0_17, %c0_18, %c0_19] : memref<1x1x64x1xf32, #tpu.memory_space<vmem>>, vector<1x1x64x1xf32>
      %19 = vector.shape_cast %18 : vector<1x1x64x1xf32> to vector<64x1xf32>
      %20 = vector.shape_cast %17 : vector<64x1xf32> to vector<1x1x64x1xf32>
      tpu.vector_store %arg6[%c0_16, %c0_17, %c0_18, %c0_19], %20 {strides = array<i32>} : memref<1x1x64x1xf32, #tpu.memory_space<vmem>>, vector<1x1x64x1xf32>,
    } else {
    }
    return
  }
  func.func @transform_0(%arg0: i32, %arg1: i32, %arg2: i32) -> (i32, i32, i32, i32) {
    %c1_i32 = arith.constant 1 : i32
    %0 = arith.muli %arg1, %c1_i32 : i32
    %1 = arith.addi %0, %arg2 : i32
    %c0_i32 = arith.constant 0 : i32
    %c0_i32_0 = arith.constant 0 : i32
    %c0_i32_1 = arith.constant 0 : i32
    return %arg0, %1, %c0_i32, %c0_i32_0 : i32, i32, i32, i32
  }
  func.func @transform_1(%arg0: i32, %arg1: i32, %arg2: i32) -> (i32, i32, i32) {
    %c0_i32 = arith.constant 0 : i32
    %c0_i32_0 = arith.constant 0 : i32
    %c0_i32_1 = arith.constant 0 : i32
    return %arg2, %c0_i32, %c0_i32_0 : i32, i32, i32
  }
  func.func @transform_2(%arg0: i32, %arg1: i32, %arg2: i32) -> (i32, i32) {
    %c0_i32 = arith.constant 0 : i32
    %c0_i32_0 = arith.constant 0 : i32
    %c0_i32_1 = arith.constant 0 : i32
    return %c0_i32, %c0_i32_0 : i32, i32
  }
  func.func @transform_3(%arg0: i32, %arg1: i32, %arg2: i32) -> (i32, i32, i32, i32) {
    %c0_i32 = arith.constant 0 : i32
    %c0_i32_0 = arith.constant 0 : i32
    %c0_i32_1 = arith.constant 0 : i32
    return %arg0, %arg1, %c0_i32, %c0_i32_0 : i32, i32, i32, i32
  }
}

module attributes {stable_mosaic.version = 11 : i64} {
  func.func @_conv_acc_kernel(%arg0: i32, %arg1: i32, %arg2: i32, %arg3: memref<1x1x64x128xbf16, #tpu.memory_space<vmem>>, %arg4: memref<1x128x1xbf16, #tpu.memory_space<vmem>>, %arg5: memref<1x1xf32, #tpu.memory_space<vmem>>, %arg6: memref<1x1x64x1xf32, #tpu.memory_space<vmem>>, %arg7: memref<64x1xf32, #tpu.memory_space<vmem>>) attributes {dimension_semantics = [#tpu.dimension_semantics<parallel>, #tpu.dimension_semantics<parallel>, #tpu.dimension_semantics<arbitrary>], iteration_bounds = array<i64: 2, 8, 2>, scalar_prefetch = 0 : i64, scratch_operands = 1 : i64, tpu.core_type = #tpu.core_type<tc>, window_params = [{transform_indices = @transform_0, window_bounds = array<i64: 1, 1, 64, 128>}, {transform_indices = @transform_1, window_bounds = array<i64: 1, 128, 1>}, {pipeline_mode = #tpu.pipeline_mode<synchronous>, transform_indices = @transform_2, window_bounds = array<i64: 1, 1>}, {transform_indices = @transform_3, window_bounds = array<i64: 1, 1, 64, 1>}]} {
    %c0_i32 = arith.constant 0 : i32
    %0 = arith.cmpi eq, %arg2, %c0_i32 : i32
    %1 = arith.extui %0 : i1 to i32
    %c0_i32_0 = arith.constant 0 : i32
    %2 = arith.cmpi ne, %1, %c0_i32_0 : i32
    scf.if %2 {
      %cst_12 = arith.constant 0.000000e+00 : f32
      %14 = vector.broadcast %cst_12 : f32 to vector<64x1xf32>
      %c0_13 = arith.constant 0 : index
      %c0_14 = arith.constant 0 : index
      %15 = vector.load %arg7[%c0_13, %c0_14] : memref<64x1xf32, #tpu.memory_space<vmem>>, vector<64x1xf32>
      tpu.vector_store %arg7[%c0_13, %c0_14], %14 {strides = array<i32>} : memref<64x1xf32, #tpu.memory_space<vmem>>, vector<64x1xf32>,
    } else {
    }
    %c0 = arith.constant 0 : index
    %c0_1 = arith.constant 0 : index
    %3 = vector.load %arg7[%c0, %c0_1] : memref<64x1xf32, #tpu.memory_space<vmem>>, vector<64x1xf32>
    %c0_2 = arith.constant 0 : index
    %c0_3 = arith.constant 0 : index
    %c0_4 = arith.constant 0 : index
    %c0_5 = arith.constant 0 : index
    %4 = vector.load %arg3[%c0_2, %c0_3, %c0_4, %c0_5] : memref<1x1x64x128xbf16, #tpu.memory_space<vmem>>, vector<1x1x64x128xbf16>
    %5 = vector.shape_cast %4 : vector<1x1x64x128xbf16> to vector<64x128xbf16>
    %c0_6 = arith.constant 0 : index
    %c0_7 = arith.constant 0 : index
    %c0_8 = arith.constant 0 : index
    %6 = vector.load %arg4[%c0_6, %c0_7, %c0_8] : memref<1x128x1xbf16, #tpu.memory_space<vmem>>, vector<1x128x1xbf16>
    %7 = vector.shape_cast %6 : vector<1x128x1xbf16> to vector<128x1xbf16>
    %cst = arith.constant dense<0.000000e+00> : vector<64x1xf32>
    %8 = tpu.matmul %5, %7, %cst {dimension_numbers = #tpu.dot_dimension_numbers<[1], [0], [0], [1], [0, 0, 1, 1], [], []>} : vector<64x128xbf16>, vector<128x1xbf16>, vector<64x1xf32> -> vector<64x1xf32>
    %9 = arith.addf %3, %8 : vector<64x1xf32>
    %c0_9 = arith.constant 0 : index
    %c0_10 = arith.constant 0 : index
    %10 = vector.load %arg7[%c0_9, %c0_10] : memref<64x1xf32, #tpu.memory_space<vmem>>, vector<64x1xf32>
    tpu.vector_store %arg7[%c0_9, %c0_10], %9 {strides = array<i32>} : memref<64x1xf32, #tpu.memory_space<vmem>>, vector<64x1xf32>,
    %c1_i32 = arith.constant 1 : i32
    %11 = arith.cmpi eq, %arg2, %c1_i32 : i32
    %12 = arith.extui %11 : i1 to i32
    %c0_i32_11 = arith.constant 0 : i32
    %13 = arith.cmpi ne, %12, %c0_i32_11 : i32
    scf.if %13 {
      %c0_12 = arith.constant 0 : index
      %c0_13 = arith.constant 0 : index
      %14 = vector.load %arg7[%c0_12, %c0_13] : memref<64x1xf32, #tpu.memory_space<vmem>>, vector<64x1xf32>
      %c0_14 = arith.constant 0 : index
      %c0_15 = arith.constant 0 : index
      %15 = vector.load %arg5[%c0_14, %c0_15] : memref<1x1xf32, #tpu.memory_space<vmem>>, vector<1x1xf32>
      %16 = vector.broadcast %15 : vector<1x1xf32> to vector<64x1xf32>
      %17 = arith.addf %14, %16 : vector<64x1xf32>
      %c0_16 = arith.constant 0 : index
      %c0_17 = arith.constant 0 : index
      %c0_18 = arith.constant 0 : index
      %c0_19 = arith.constant 0 : index
      %18 = vector.load %arg6[%c0_16, %c0_17, %c0_18, %c0_19] : memref<1x1x64x1xf32, #tpu.memory_space<vmem>>, vector<1x1x64x1xf32>
      %19 = vector.shape_cast %18 : vector<1x1x64x1xf32> to vector<64x1xf32>
      %20 = vector.shape_cast %17 : vector<64x1xf32> to vector<1x1x64x1xf32>
      tpu.vector_store %arg6[%c0_16, %c0_17, %c0_18, %c0_19], %20 {strides = array<i32>} : memref<1x1x64x1xf32, #tpu.memory_space<vmem>>, vector<1x1x64x1xf32>,
    } else {
    }
    return
  }
  func.func @transform_0(%arg0: i32, %arg1: i32, %arg2: i32) -> (i32, i32, i32, i32) {
    %c1_i32 = arith.constant 1 : i32
    %0 = arith.muli %arg1, %c1_i32 : i32
    %1 = arith.addi %0, %arg2 : i32
    %c0_i32 = arith.constant 0 : i32
    %c0_i32_0 = arith.constant 0 : i32
    %c0_i32_1 = arith.constant 0 : i32
    return %arg0, %1, %c0_i32, %c0_i32_0 : i32, i32, i32, i32
  }
  func.func @transform_1(%arg0: i32, %arg1: i32, %arg2: i32) -> (i32, i32, i32) {
    %c0_i32 = arith.constant 0 : i32
    %c0_i32_0 = arith.constant 0 : i32
    %c0_i32_1 = arith.constant 0 : i32
    return %arg2, %c0_i32, %c0_i32_0 : i32, i32, i32
  }
  func.func @transform_2(%arg0: i32, %arg1: i32, %arg2: i32) -> (i32, i32) {
    %c0_i32 = arith.constant 0 : i32
    %c0_i32_0 = arith.constant 0 : i32
    %c0_i32_1 = arith.constant 0 : i32
    return %c0_i32, %c0_i32_0 : i32, i32
  }
  func.func @transform_3(%arg0: i32, %arg1: i32, %arg2: i32) -> (i32, i32, i32, i32) {
    %c0_i32 = arith.constant 0 : i32
    %c0_i32_0 = arith.constant 0 : i32
    %c0_i32_1 = arith.constant 0 : i32
    return %arg0, %arg1, %c0_i32, %c0_i32_0 : i32, i32, i32, i32
  }
}

</mosaic_0001>

<bundles_post_ra>
// kernel: scmnet_forward.33
= control target key start
LH: loop header
LB: loop body
LE: loop exit
PB: predicated region body
PF: predicated region fallthrough
CT: control target
= control target key end

     0   :  { %s787_s12 = smov 0   ;;  %s789_s13 = smov 0   ;;  %s880_s0 = inlined_call_operand.vmem [shape: bf16[2,1,64,75], index: 0, kind: input, shape index: {}]   ;;  %s881_s1 = inlined_call_operand.vmem [shape: bf16[1,75,32], index: 1, kind: input, shape index: {}]   ;;  %s882_s2 = inlined_call_operand.vmem [shape: f32[1,32], index: 2, kind: input, shape index: {}]   ;;  %s883_s3 = inlined_call_operand.vmem [shape: bf16[2,1,64,32], index: 3, kind: output, shape index: {}]  }
   0x1   :  { %s791_s14 = smov 0  }
   0x2 LB: > { %s32_s15 = sadd.s32 1, %s759_s13  ;;  %p630_p0 = scmp.ge.s32.totalorder %s763_s14, 1  ;;  %s763_s14 = sphi %s791_s14, %s13_s14   ;;  %s759_s13 = sphi %s789_s13, %s885_s13   ;;  %s755_s12 = sphi %s787_s12, %s884_s12  }
   0x3   : > { %p34_p1 = scmp.ge.s32.totalorder %s32_s15, 2  ;;  %p182_p2 = scmp.lt.s32.totalorder %s763_s14, 3 }
   0x5   : > { %s887_s15 = smov (%p34_p1, %s32_s15), 0  ;;  %p183_p3 = pnand %p630_p0, %p182_p2 }
   0x6   : > { %v732_v0 = vld [vmem:[%s881_s1] sm:$0xff] (!%p183_p3)   ;;  %v733_v1 = vld [vmem:[%s881_s1 + $0x8] sm:$0xff] (!%p183_p3)   ;;  %vm350_vm0 = vcmask (!%p183_p3), 1044480   ;;  %v734_v2 = vld [vmem:[%s881_s1 + $0x10] sm:$0xff] (!%p183_p3)   ;;  %p223_p4 = scmp.lt.s32.totalorder (!%p183_p3), %s755_s12, 1  ;;  %vm253_vm1 = vcmask (!%p183_p3), 261120  }
   0x7   : > { %186 = sbr.rel (%p183_p3) target bundleno = 260 (0x104), region = 32  ;;  %678 = vmatprep.subr.bf16.mxu0 (!%p183_p3), %v732_v0  ;;  %696 = vmatprep.subr.bf16.mxu1 (!%p183_p3), %v732_v0  ;;  %vm351_vm2 = vcmask (!%p183_p3), 1045504   ;;  %v765_v3 = vmov (!%p183_p3), 65535   ;;  %v766_v5 = vmov (!%p183_p3), 0.0   ;;  %v735_v6 = vld [vmem:[%s881_s1 + $0x18] sm:$0xff] (!%p183_p3)   ;;  %vm337_vm3 = vcmask (!%p183_p3), 613376  }
   0x8   : > { %679 = vmatpush3.bf16.msra.mxu0 (!%p183_p3), %v732_v0  ;;  %701 = vmatpush3.bf16.msra.mxu1 (!%p183_p3), %v732_v0  ;;  %v352_v4 = vsel (!%p183_p3), %vm350_vm0, 4294967295, %v765_v3  ;;  %256 = vst.msk [vmem:[#allocation2 + $0x10] sm:$0xff] (!%p183_p3), %vm253_vm1, %v766_v5  ;;  %254 = vst.msk [vmem:[#allocation2] sm:$0xff] (!%p183_p3), %vm253_vm1, %v766_v5  ;;  %v736_v7 = vld [vmem:[%s881_s1 + $0x20] sm:$0x3f] (!%p183_p3)   ;;  %vm505_vm4 = vcmask (!%p183_p3), 257024  }
   0x9   : > { %680 = vmatprep.subr.bf16.mxu0 (!%p183_p3), %v733_v1  ;;  %697 = vmatprep.subr.bf16.mxu1 (!%p183_p3), %v733_v1  ;;  %255 = vst.msk [vmem:[#allocation2 + $0x8] sm:$0xff] (!%p183_p3), %vm253_vm1, %v766_v5  ;;  %257 = vst.msk [vmem:[#allocation2 + $0x18] sm:$0xff] (!%p183_p3), %vm253_vm1, %v766_v5  ;;  %v353_v8 = vsel (!%p183_p3), %vm351_vm2, %v352_v4, 0  ;;  %v648_v38 = vld [vmem:[%s882_s2] ss:$0 sm:$0xff] (!%p183_p3) }
   0xa   : > { %258 = vst.msk [vmem:[#allocation2 + $0x20] sm:$0xff] (!%p183_p3), %vm253_vm1, %v766_v5  ;;  %259 = vst.msk [vmem:[#allocation2 + $0x28] sm:$0xff] (!%p183_p3), %vm253_vm1, %v766_v5  ;;  %v355_v10 = vand.u32 (!%p183_p3), %v736_v7, %v353_v8 }
   0xb   : > { %260 = vst.msk [vmem:[#allocation2 + $0x30] sm:$0xff] (!%p183_p3), %vm253_vm1, %v766_v5  ;;  %261 = vst.msk [vmem:[#allocation2 + $0x38] sm:$0xff] (!%p183_p3), %vm253_vm1, %v766_v5 }
   0xc   : > { %681 = vmatpush3.bf16.msra.mxu0 (!%p183_p3), %v733_v1  ;;  %702 = vmatpush3.bf16.msra.mxu1 (!%p183_p3), %v733_v1 }
   0xd   : > { %682 = vmatprep.subr.bf16.mxu0 (!%p183_p3), %v734_v2  ;;  %698 = vmatprep.subr.bf16.mxu1 (!%p183_p3), %v734_v2 }
   0xe   : > { %s889_s12 = smov (!%p223_p4, %s755_s12), 1 }
   0xf   : > { %s659_s26 = sshll.u32 %s889_s12, 5  ;;  %v264_v14 = vld [vmem:[#allocation2 + $0x10] sm:$0xff]  ;;  %v262_v16 = vld [vmem:[#allocation2] sm:$0xff] }
  0x10   : > { %s231_s29 = scalar_lea.vmem %s880_s0, %s659_s26  ;;  %683 = vmatpush3.bf16.msra.mxu0 %v734_v2  ;;  %703 = vmatpush3.bf16.msra.mxu1 %v734_v2  ;;  %v265_v20 = vld [vmem:[#allocation2 + $0x18] sm:$0xff]  ;;  %v263_v26 = vld [vmem:[#allocation2 + $0x8] sm:$0xff]  ;;  %s247_s7 = scalar_lea.vmem %s883_s3, %s659_s26 }
  0x11   : > { %v737_v9 = vld [vmem:[%s231_s29] sm:$0xff]   ;;  %684 = vmatprep.subr.bf16.mxu0 %v735_v6  ;;  %699 = vmatprep.subr.bf16.mxu1 %v735_v6  ;;  %v738_v11 = vld [vmem:[%s231_s29 + $0x10] sm:$0xff]   ;;  %v739_v12 = vld [vmem:[%s231_s29 + $0x8] sm:$0xff]  }
  0x12   : > { %688 = vmatprep.mubr.msk.bf16.mxu0 %vm337_vm3, %v737_v9  ;;  %692 = vmatprep.mubr.msk.bf16.mxu1 %vm337_vm3, %v738_v11  ;;  %v740_v13 = vld [vmem:[%s231_s29 + $0x18] sm:$0xff]   ;;  %v268_v15 = vld [vmem:[#allocation2 + $0x30] sm:$0xff]  ;;  %v266_v17 = vld [vmem:[#allocation2 + $0x20] sm:$0xff] }
  0x13   : > { %v269_v21 = vld [vmem:[#allocation2 + $0x38] sm:$0xff]  ;;  %v267_v27 = vld [vmem:[#allocation2 + $0x28] sm:$0xff] }
  0x14   : > { %685 = vmatpush3.bf16.msra.mxu0 %v735_v6  ;;  %704 = vmatpush3.bf16.msra.mxu1 %v735_v6 }
  0x15   : > { %686 = vmatprep.subr.bf16.mxu0 %v355_v10  ;;  %700 = vmatprep.subr.bf16.mxu1 %v355_v10 }
  0x18   : > { %687 = vmatpush3.bf16.msra.mxu0 %v355_v10  ;;  %705 = vmatpush3.bf16.msra.mxu1 %v355_v10 }
  0x1b   : > { %689 = vmatmul.mubr.msk.bf16.vlgmr.msra.gmra.mrb[0].mxu0 %vm337_vm3, %v739_v12  ;;  %693 = vmatmul.mubr.msk.bf16.vlgmr.msra.gmra.mrb[0].mxu1 %vm337_vm3, %v740_v13 }
  0xee   : > { %v690_v18 = vpop.f32.mrb[0].mxu0  ;;  %v694_v19 = vpop.f32.mrb[0].mxu1 }
  0xef   : > { %v424_v22 = vadd.f32 %v690_v18, %v264_v14  ;;  %v428_v23 = vadd.f32 %v694_v19, %v268_v15  ;;  %v391_v24 = vpop.f32.mrb[1].mxu0  ;;  %v407_v25 = vpop.f32.mrb[1].mxu1 }
  0xf0   : > { %v422_v28 = vadd.f32 %v391_v24, %v262_v16  ;;  %v426_v29 = vadd.f32 %v407_v25, %v266_v17  ;;  %v691_v30 = vpop.f32.mrb[2].mxu0  ;;  %v695_v31 = vpop.f32.mrb[2].mxu1 }
  0xf1   : > { %433 = vst.msk [vmem:[#allocation2 + $0x10] sm:$0xff] %vm253_vm1, %v424_v22  ;;  %437 = vst.msk [vmem:[#allocation2 + $0x30] sm:$0xff] %vm253_vm1, %v428_v23  ;;  %v425_v32 = vadd.f32 %v691_v30, %v265_v20  ;;  %v429_v33 = vadd.f32 %v695_v31, %v269_v21  ;;  %v394_v34 = vpop.f32.mrb[3].mxu0  ;;  %v410_v35 = vpop.f32.mrb[3].mxu1 }
  0xf2   : > { %431 = vst.msk [vmem:[#allocation2] sm:$0xff] %vm253_vm1, %v422_v28  ;;  %435 = vst.msk [vmem:[#allocation2 + $0x20] sm:$0xff] %vm253_vm1, %v426_v29  ;;  %v423_v36 = vadd.f32 %v394_v34, %v263_v26  ;;  %v427_v37 = vadd.f32 %v410_v35, %v267_v27 }
  0xf3   : > { %434 = vst.msk [vmem:[#allocation2 + $0x18] sm:$0xff] %vm253_vm1, %v425_v32  ;;  %438 = vst.msk [vmem:[#allocation2 + $0x38] sm:$0xff] %vm253_vm1, %v429_v33 }
  0xf4   : > { %432 = vst.msk [vmem:[#allocation2 + $0x8] sm:$0xff] %vm253_vm1, %v423_v36  ;;  %436 = vst.msk [vmem:[#allocation2 + $0x28] sm:$0xff] %vm253_vm1, %v427_v37 }
  0xf8   : > { %v444_v39 = vld [vmem:[#allocation2 + $0x10] sm:$0xff] }
  0xf9   : > { %v448_v40 = vld [vmem:[#allocation2 + $0x30] sm:$0xff]  ;;  %v459_v41 = vadd.f32 %v648_v38, %v444_v39  ;;  %v442_v43 = vld [vmem:[#allocation2] sm:$0xff] }
  0xfa   : > { %v463_v42 = vadd.f32 %v648_v38, %v448_v40  ;;  %v446_v44 = vld [vmem:[#allocation2 + $0x20] sm:$0xff]  ;;  %v457_v45 = vadd.f32 %v648_v38, %v442_v43  ;;  %v445_v47 = vld [vmem:[#allocation2 + $0x18] sm:$0xff] }
  0xfb   : > { %v461_v46 = vadd.f32 %v648_v38, %v446_v44  ;;  %v449_v48 = vld [vmem:[#allocation2 + $0x38] sm:$0xff]  ;;  %v467_v49 = vmax.f32 %v459_v41, 0.0  ;;  %v460_v51 = vadd.f32 %v648_v38, %v445_v47  ;;  %v443_v53 = vld [vmem:[#allocation2 + $0x8] sm:$0xff] }
  0xfc   : > { %v471_v50 = vmax.f32 %v463_v42, 0.0  ;;  %v464_v52 = vadd.f32 %v648_v38, %v449_v48  ;;  %v447_v54 = vld [vmem:[#allocation2 + $0x28] sm:$0xff]  ;;  %v465_v55 = vmax.f32 %v457_v45, 0.0  ;;  %v458_v57 = vadd.f32 %v648_v38, %v443_v53 }
  0xfd   : > { %v469_v56 = vmax.f32 %v461_v46, 0.0  ;;  %v462_v58 = vadd.f32 %v648_v38, %v447_v54  ;;  %v663_v59 = vpack.c.bf16 %v467_v49, %v467_v49  ;;  %v468_v61 = vmax.f32 %v460_v51, 0.0 }
  0xfe   : > { %v667_v60 = vpack.c.bf16 %v471_v50, %v471_v50  ;;  %v472_v62 = vmax.f32 %v464_v52, 0.0  ;;  %v661_v63 = vpack.c.bf16 %v465_v55, %v465_v55  ;;  %v466_v1 = vmax.f32 %v458_v57, 0.0 }
  0xff   : > { %v665_v0 = vpack.c.bf16 %v469_v56, %v469_v56  ;;  %v470_v2 = vmax.f32 %v462_v58, 0.0  ;;  %508 = vst.msk [vmem:[%s247_s7 + $0x8] sm:$0xf] %vm505_vm4, %v663_v59  ;;  %v664_v3 = vpack.c.bf16 %v468_v61, %v468_v61 }
 0x100   : > { %512 = vst.msk [vmem:[%s247_s7 + $0x18] sm:$0xf] %vm505_vm4, %v667_v60  ;;  %v668_v4 = vpack.c.bf16 %v472_v62, %v472_v62  ;;  %506 = vst.msk [vmem:[%s247_s7] sm:$0xf] %vm505_vm4, %v661_v63  ;;  %v662_v5 = vpack.c.bf16 %v466_v1, %v466_v1 }
 0x101   : > { %510 = vst.msk [vmem:[%s247_s7 + $0x10] sm:$0xf] %vm505_vm4, %v665_v0  ;;  %v666_v6 = vpack.c.bf16 %v470_v2, %v470_v2  ;;  %509 = vst.msk [vmem:[%s247_s7 + $0xc] sm:$0xf] %vm505_vm4, %v664_v3 }
 0x102   : > { %513 = vst.msk [vmem:[%s247_s7 + $0x1c] sm:$0xf] %vm505_vm4, %v668_v4  ;;  %507 = vst.msk [vmem:[%s247_s7 + $0x4] sm:$0xf] %vm505_vm4, %v662_v5 }
 0x103   : > { %511 = vst.msk [vmem:[%s247_s7 + $0x14] sm:$0xf] %vm505_vm4, %v666_v6 }
 0x104 PF: > { %s13_s14 = sadd.s32 1, %s763_s14   ;;  %s884_s12 = smov %s759_s13 }
 0x105   : > { %p10_p5 = scmp.ge.s32.totalorder %s13_s14, 4   ;;  %s885_s13 = smov %s887_s15 }
 0x107   :  { %12 = sbr.rel (!%p10_p5) target bundleno = 2 (0x2), region = 73 }

// kernel: scmnet_forward.34
= control target key start
LH: loop header
LB: loop body
LE: loop exit
PB: predicated region body
PF: predicated region fallthrough
CT: control target
= control target key end

     0   :  { %s1493_s12 = smov 0   ;;  %s1495_s13 = smov 0   ;;  %s1669_s0 = inlined_call_operand.vmem [shape: bf16[2,10,64,576], index: 0, kind: input, shape index: {}]   ;;  %s1670_s1 = inlined_call_operand.vmem [shape: bf16[3,576,32], index: 1, kind: input, shape index: {}]   ;;  %s1671_s2 = inlined_call_operand.vmem [shape: f32[1,32], index: 2, kind: input, shape index: {}]   ;;  %s1672_s3 = inlined_call_operand.vmem [shape: bf16[2,8,64,32], index: 3, kind: output, shape index: {}]  }
   0x1   :  { %s1497_s14 = smov 0   ;;  %s1499_s15 = smov 0  }
   0x2   :  { %s1501_s16 = smov 0   ;;  %s1503_s17 = smov 0  }
   0x3   :  { %s1505_s18 = smov 0  }
   0x4 LB: > { %s25_s19 = sadd.s32 1, %s1458_s15  ;;  %s28_s20 = sadd.s32 1, %s1462_s16  ;;  %s1470_s18 = sphi %s1505_s18, %s13_s18   ;;  %s1466_s17 = sphi %s1503_s17, %s1678_s17   ;;  %s1462_s16 = sphi %s1501_s16, %s1677_s16   ;;  %s1458_s15 = sphi %s1499_s15, %s1676_s15   ;;  %s1454_s14 = sphi %s1497_s14, %s1675_s14   ;;  %s1450_s13 = sphi %s1495_s13, %s1674_s13   ;;  %s1446_s12 = sphi %s1493_s12, %s1673_s12  }
   0x5   : > { %p26_p0 = scmp.ge.s32.totalorder %s25_s19, 3  ;;  %p1093_p1 = scmp.ge.s32.totalorder %s1470_s18, 1 }
   0x6   : > { %p178_p2 = scmp.lt.s32.totalorder %s1470_s18, 49  ;;  %s32_s21 = sadd.s32 1, %s1466_s17 }
   0x7   : > { %s1680_s19 = smov (%p26_p0, %s25_s19), 0  ;;  %s1682_s20 = smov (!%p26_p0, %s28_s20), %s1462_s16 }
   0x8   : > { %p179_p3 = pnand %p1093_p1, %p178_p2  ;;  %p30_p4 = scmp.ge.s32.totalorder %s1682_s20, 8 }
   0x9   : > { %s216_s22 = sadd.s32 (!%p179_p3), %s1446_s12, %s1450_s13  ;;  %p217_p6 = scmp.lt.s32.totalorder (!%p179_p3), %s1454_s14, 1 }
   0xa   : > { %s1684_s20 = smov (%p30_p4, %s1682_s20), 0  ;;  %s1686_s21 = smov (!%p30_p4, %s32_s21), %s1466_s17 }
   0xb   : > { %p34_p5 = scmp.ge.s32.totalorder %s1686_s21, 2  ;;  %182 = sbr.rel (%p179_p3) target bundleno = 334 (0x14e), region = 32 }
   0xc   : > { %p219_p7 = scmp.lt.s32.totalorder (!%p179_p3), %s216_s22, 9  ;;  %p227_p8 = scmp.lt.s32.totalorder (!%p179_p3), %s1446_s12, 2 }
   0xd   : > { %s1688_s21 = smov (%p34_p5, %s1686_s21), 0  ;;  %p234_p9 = scmp.lt.s32.totalorder (!%p179_p3), %s1450_s13, 7 }
   0xe   : > { %p1099_p10 = scmp.ne.s32.totalorder (!%p179_p3), %s1446_s12, 0 }
  0x12   : > { %s1690_s14 = smov (!%p217_p6, %s1454_s14), 1  ;;  %s1692_s22 = smov (!%p219_p7, %s216_s22), 9 }
  0x13   : > { %s1293_s23 = smul.u32 400, %s1690_s14  ;;  %s1097_s8 = sshll.u32 %s1690_s14, 6  ;;  %vm246_vm0 = vcmask (!%p1099_p10), 261120   ;;  %v1472_v0 = vmov (!%p1099_p10), 0.0  }
  0x14   : > { %s1292_s24 = smul.u32 40, %s1692_s22  ;;  %s1694_s13 = smov (!%p234_p9, %s1450_s13), 7  ;;  %247 = vst.msk [vmem:[#allocation2] sm:$0xff] (!%p1099_p10), %vm246_vm0, %v1472_v0  ;;  %248 = vst.msk [vmem:[#allocation2 + $0x8] sm:$0xff] (!%p1099_p10), %vm246_vm0, %v1472_v0 }
  0x15   : > { %s228_s25 = scalar_select %p227_p8, %s1446_s12, 2 }
  0x16   : > { %s223_s26 = sadd.s32 %s1293_s23, %s1292_s24  ;;  %s1096_s9 = sshll.u32 %s1694_s13, 3  ;;  %249 = vst.msk [vmem:[#allocation2 + $0x10] sm:$0xff] (!%p1099_p10), %vm246_vm0, %v1472_v0  ;;  %250 = vst.msk [vmem:[#allocation2 + $0x18] sm:$0xff] (!%p1099_p10), %vm246_vm0, %v1472_v0 }
  0x17   : > { %s1094_s27 = sshll.u32 %s223_s26, 2  ;;  %s1294_s28 = smul.u32 288, %s228_s25  ;;  %251 = vst.msk [vmem:[#allocation2 + $0x20] sm:$0xff] (!%p1099_p10), %vm246_vm0, %v1472_v0  ;;  %252 = vst.msk [vmem:[#allocation2 + $0x28] sm:$0xff] (!%p1099_p10), %vm246_vm0, %v1472_v0 }
  0x18   : > { %s1547_s4 = scalar_lea.vmem %s1669_s0, %s1094_s27  ;;  %s238_s10 = sadd.s32 %s1097_s8, %s1096_s9  ;;  %253 = vst.msk [vmem:[#allocation2 + $0x30] sm:$0xff] (!%p1099_p10), %vm246_vm0, %v1472_v0  ;;  %254 = vst.msk [vmem:[#allocation2 + $0x38] sm:$0xff] (!%p1099_p10), %vm246_vm0, %v1472_v0 }
  0x19   : > { %s1552_s7 = scalar_lea.vmem %s1670_s1, %s1294_s28  ;;  %s1098_s11 = sshll.u32 %s238_s10, 2 }
  0x1a   : > { %s1558_s24 = scalar_lea.vmem %s1672_s3, %s1098_s11  ;;  %245 = sbr.rel (%p1099_p10) target bundleno = 33 (0x21), region = 36 }
  0x21 PF: > { %v1352_v1 = vld [vmem:[%s1552_s7 + $0x40] sm:$0xff]   ;;  %v1356_v5 = vld [vmem:[%s1552_s7 + $0x48] sm:$0xff]   ;;  %v1360_v9 = vld [vmem:[%s1552_s7 + $0x50] sm:$0xff]   ;;  %vm675_vm1 = vcmask 523264   ;;  %vm891_vm2 = vcmask 261120   ;;  %p1160_p11 = scmp.ne.s32.totalorder %s1446_s12, 2 }
  0x22   : > { %v1353_v2 = vld [vmem:[%s1552_s7 + $0xc0] sm:$0xff]   ;;  %1180 = vmatprep.subr.bf16.mxu0 %v1352_v1  ;;  %v1357_v6 = vld [vmem:[%s1552_s7 + $0xc8] sm:$0xff]   ;;  %v1361_v10 = vld [vmem:[%s1552_s7 + $0xd0] sm:$0xff]   ;;  %vm967_vm3 = vcmask (!%p1160_p11), 257024  }
  0x23   : > { %v1354_v3 = vld [vmem:[%s1552_s7] sm:$0xff]   ;;  %1220 = vmatprep.subr.bf16.mxu1 %v1353_v2  ;;  %v1358_v7 = vld [vmem:[%s1552_s7 + $0x8] sm:$0xff]   ;;  %v1362_v11 = vld [vmem:[%s1552_s7 + $0x10] sm:$0xff]  }
  0x24   : > { %v1355_v4 = vld [vmem:[%s1552_s7 + $0x80] sm:$0xff]   ;;  %1181 = vmatpush3.bf16.msra.mxu0 %v1354_v3  ;;  %v1359_v8 = vld [vmem:[%s1552_s7 + $0x88] sm:$0xff]   ;;  %v1363_v12 = vld [vmem:[%s1552_s7 + $0x90] sm:$0xff]  }
  0x25   : > { %1221 = vmatpush3.bf16.msra.mxu1 %v1355_v4  ;;  %1182 = vmatprep.subr.bf16.mxu0 %v1356_v5  ;;  %v1364_v13 = vld [vmem:[%s1552_s7 + $0x58] sm:$0xff]   ;;  %v1368_v17 = vld [vmem:[%s1552_s7 + $0x60] sm:$0xff]   ;;  %v1372_v21 = vld [vmem:[%s1552_s7 + $0x68] sm:$0xff]  }
  0x26   : > { %1222 = vmatprep.subr.bf16.mxu1 %v1357_v6  ;;  %v1365_v14 = vld [vmem:[%s1552_s7 + $0xd8] sm:$0xff]   ;;  %v1369_v18 = vld [vmem:[%s1552_s7 + $0xe0] sm:$0xff]   ;;  %v1373_v22 = vld [vmem:[%s1552_s7 + $0xe8] sm:$0xff]  }
  0x27   : > { %v1366_v15 = vld [vmem:[%s1552_s7 + $0x18] sm:$0xff]   ;;  %v1370_v19 = vld [vmem:[%s1552_s7 + $0x20] sm:$0xff]   ;;  %v1374_v23 = vld [vmem:[%s1552_s7 + $0x28] sm:$0xff]  }
  0x28   : > { %1183 = vmatpush3.bf16.msra.mxu0 %v1358_v7  ;;  %v1367_v16 = vld [vmem:[%s1552_s7 + $0x98] sm:$0xff]   ;;  %v1371_v20 = vld [vmem:[%s1552_s7 + $0xa0] sm:$0xff]   ;;  %v1375_v24 = vld [vmem:[%s1552_s7 + $0xa8] sm:$0xff]  }
  0x29   : > { %1223 = vmatpush3.bf16.msra.mxu1 %v1359_v8  ;;  %1184 = vmatprep.subr.bf16.mxu0 %v1360_v9  ;;  %v1376_v25 = vld [vmem:[%s1552_s7 + $0x70] sm:$0xff]   ;;  %v1380_v29 = vld [vmem:[%s1552_s7 + $0x78] sm:$0xff]   ;;  %v1389_v36 = vld [vmem:[%s1547_s4 + $0xc] ss:$20 sps:$4 sm:$0xff]  }
  0x2a   : > { %1224 = vmatprep.subr.bf16.mxu1 %v1361_v10  ;;  %v1377_v26 = vld [vmem:[%s1552_s7 + $0xf0] sm:$0xff]   ;;  %v1381_v30 = vld [vmem:[%s1552_s7 + $0xf8] sm:$0xff]   ;;  %v1390_v37 = vld [vmem:[%s1552_s7 + $0x100] sm:$0xff]   ;;  %785 = vmatprep.mubr.bf16.mxu1 %v1389_v36 }
  0x2b   : > { %v1378_v27 = vld [vmem:[%s1552_s7 + $0x30] sm:$0xff]   ;;  %v1382_v31 = vld [vmem:[%s1552_s7 + $0x38] sm:$0xff]   ;;  %v1391_v38 = vld [vmem:[%s1547_s4 + $0x2c] ss:$20 sps:$4 sm:$0xff]  }
  0x2c   : > { %1185 = vmatpush3.bf16.msra.mxu0 %v1362_v11  ;;  %v1379_v28 = vld [vmem:[%s1552_s7 + $0xb0] sm:$0xff]   ;;  %v1383_v32 = vld [vmem:[%s1552_s7 + $0xb8] sm:$0xff]   ;;  %v1397_v40 = vld [vmem:[%s1552_s7 + $0x108] sm:$0xff]  }
  0x2d   : > { %1225 = vmatpush3.bf16.msra.mxu1 %v1363_v12  ;;  %1186 = vmatprep.subr.bf16.mxu0 %v1364_v13  ;;  %v1384_v33 = vld [vmem:[%s1547_s4] ss:$20 sps:$4 sm:$0xff]   ;;  %v1386_v34 = vld [vmem:[%s1547_s4 + $0x4] ss:$20 sps:$4 sm:$0xff]   ;;  %v1387_v35 = vld [vmem:[%s1547_s4 + $0x8] ss:$20 sps:$4 sm:$0xff]  }
  0x2e   : > { %1226 = vmatprep.subr.bf16.mxu1 %v1365_v14  ;;  %720 = vmatprep.mubr.bf16.mxu0 %v1386_v34  ;;  %v1393_v39 = vld [vmem:[%s1547_s4 + $0x34] ss:$20 sps:$4 sm:$0xff]   ;;  %v1396_v42 = vld [vmem:[%s1547_s4 + $0x30] ss:$20 sps:$4 sm:$0xff]   ;;  %v1411_v46 = vld [vmem:[%s1552_s7 + $0x118] sm:$0xff]  }
  0x2f   : > { %v1395_v41 = vld [vmem:[%s1547_s4 + $0x28] ss:$20 sps:$4 sm:$0xff]   ;;  %v1404_v45 = vld [vmem:[%s1552_s7 + $0x110] sm:$0xff]   ;;  %v1403_v48 = vld [vmem:[%s1547_s4 + $0x58] ss:$20 sps:$4 sm:$0xff]  }
  0x30   : > { %1187 = vmatpush3.bf16.msra.mxu0 %v1366_v15  ;;  %v1398_v43 = vld [vmem:[%s1547_s4 + $0x54] ss:$20 sps:$4 sm:$0xff]   ;;  %v1400_v44 = vld [vmem:[%s1547_s4 + $0x5c] ss:$20 sps:$4 sm:$0xff]   ;;  %v1407_v50 = vld [vmem:[%s1547_s4 + $0x84] ss:$20 sps:$4 sm:$0xff]  }
  0x31   : > { %1227 = vmatpush3.bf16.msra.mxu1 %v1367_v16  ;;  %1188 = vmatprep.subr.bf16.mxu0 %v1368_v17  ;;  %v1402_v47 = vld [vmem:[%s1547_s4 + $0x50] ss:$20 sps:$4 sm:$0xff]   ;;  %v1409_v51 = vld [vmem:[%s1547_s4 + $0x78] ss:$20 sps:$4 sm:$0xff]   ;;  %v1410_v52 = vld [vmem:[%s1547_s4 + $0x80] ss:$20 sps:$4 sm:$0xff]  }
  0x32   : > { %1228 = vmatprep.subr.bf16.mxu1 %v1369_v18  ;;  %v1405_v49 = vld [vmem:[%s1547_s4 + $0x7c] ss:$20 sps:$4 sm:$0xff]   ;;  %v1413_v54 = vld [vmem:[%s1547_s4 + $0x60] ss:$20 sps:$4 sm:$0xff]   ;;  %v1414_v55 = vld [vmem:[%s1547_s4 + $0x38] ss:$20 sps:$4 sm:$0xff]  }
  0x33   : > { %v1412_v53 = vld [vmem:[%s1547_s4 + $0x10] ss:$20 sps:$4 sm:$0xff]   ;;  %v1415_v56 = vld [vmem:[%s1547_s4 + $0x88] ss:$20 sps:$4 sm:$0xff]  }
  0x34   : > { %1189 = vmatpush3.bf16.msra.mxu0 %v1370_v19 }
  0x35   : > { %1229 = vmatpush3.bf16.msra.mxu1 %v1371_v20  ;;  %1190 = vmatprep.subr.bf16.mxu0 %v1372_v21 }
  0x36   : > { %1230 = vmatprep.subr.bf16.mxu1 %v1373_v22 }
  0x38   : > { %1191 = vmatpush3.bf16.msra.mxu0 %v1374_v23 }
  0x39   : > { %1231 = vmatpush3.bf16.msra.mxu1 %v1375_v24  ;;  %1192 = vmatprep.subr.bf16.mxu0 %v1376_v25 }
  0x3a   : > { %1232 = vmatprep.subr.bf16.mxu1 %v1377_v26 }
  0x3c   : > { %1193 = vmatpush3.bf16.msra.mxu0 %v1378_v27 }
  0x3d   : > { %1233 = vmatpush3.bf16.msra.mxu1 %v1379_v28  ;;  %1194 = vmatprep.subr.bf16.mxu0 %v1380_v29 }
  0x3e   : > { %1234 = vmatprep.subr.bf16.mxu1 %v1381_v30 }
  0x40   : > { %1195 = vmatpush3.bf16.msra.mxu0 %v1382_v31 }
  0x41   : > { %1235 = vmatpush3.bf16.msra.mxu1 %v1383_v32  ;;  %1268 = vmatprep.subr.bf16.mxu0 %v1390_v37 }
  0x42   : > { %1284 = vmatprep.subr.bf16.mxu1 %v1390_v37 }
  0x43   : > { %721 = vmatmul.mubr.bf16.vlgmr.msra.gmra.mrb[0].mxu0 %v1384_v33 }
  0x44   : > { %786 = vmatmul.mubr.bf16.vlgmr.msra.gmra.mrb[0].mxu1 %v1387_v35  ;;  %1269 = vmatpush3.bf16.msra.mxu0 %v1390_v37 }
  0x45   : > { %1288 = vmatpush3.bf16.msra.mxu1 %v1390_v37  ;;  %728 = vmatprep.mubr.bf16.mxu0 %v1391_v38 }
  0x46   : > { %793 = vmatprep.mubr.bf16.mxu1 %v1393_v39  ;;  %1270 = vmatprep.subr.bf16.mxu0 %v1397_v40 }
  0x47   : > { %1285 = vmatprep.subr.bf16.mxu1 %v1397_v40 }
  0x48   : > { %1271 = vmatpush3.bf16.msra.mxu0 %v1397_v40 }
  0x49   : > { %1289 = vmatpush3.bf16.msra.mxu1 %v1397_v40  ;;  %1272 = vmatprep.subr.bf16.mxu0 %v1404_v45 }
  0x4a   : > { %1286 = vmatprep.subr.bf16.mxu1 %v1404_v45 }
  0x4b   : > { %729 = vmatmul.mubr.bf16.gmra.mrb[4].mxu0 %v1395_v41 }
  0x4c   : > { %794 = vmatmul.mubr.bf16.gmra.mrb[4].mxu1 %v1396_v42  ;;  %736 = vmatprep.mubr.bf16.mxu0 %v1398_v43 }
  0x4d   : > { %801 = vmatprep.mubr.bf16.mxu1 %v1400_v44  ;;  %1273 = vmatpush3.bf16.msra.mxu0 %v1404_v45 }
  0x4e   : > { %1290 = vmatpush3.bf16.msra.mxu1 %v1404_v45  ;;  %1274 = vmatprep.subr.bf16.mxu0 %v1411_v46 }
  0x4f   : > { %1287 = vmatprep.subr.bf16.mxu1 %v1411_v46 }
  0x51   : > { %1275 = vmatpush3.bf16.msra.mxu0 %v1411_v46 }
  0x52   : > { %1291 = vmatpush3.bf16.msra.mxu1 %v1411_v46 }
  0x53   : > { %737 = vmatmul.mubr.bf16.gmra.mrb[8].mxu0 %v1402_v47 }
  0x54   : > { %802 = vmatmul.mubr.bf16.gmra.mrb[8].mxu1 %v1403_v48  ;;  %744 = vmatprep.mubr.bf16.mxu0 %v1405_v49  ;;  %v257_v49 = vld [vmem:[#allocation2 + $0x10] sm:$0xff] }
  0x55   : > { %809 = vmatprep.mubr.bf16.mxu1 %v1407_v50 }
  0x5b   : > { %745 = vmatmul.mubr.bf16.gmra.mrb[12].mxu0 %v1409_v51 }
  0x5c   : > { %810 = vmatmul.mubr.bf16.gmra.mrb[12].mxu1 %v1410_v52  ;;  %1276 = vmatprep.mubr.msk.bf16.mxu0 %vm675_vm1, %v1412_v53  ;;  %v261_v52 = vld [vmem:[#allocation2 + $0x30] sm:$0xff] }
  0x5d   : > { %1280 = vmatprep.mubr.msk.bf16.mxu1 %vm675_vm1, %v1413_v54  ;;  %v255_v54 = vld [vmem:[#allocation2] sm:$0xff] }
  0x63   : > { %1277 = vmatmul.mubr.msk.bf16.vlgmr.msra.gmra.mrb[16].mxu0 %vm675_vm1, %v1414_v55 }
  0x64   : > { %1281 = vmatmul.mubr.msk.bf16.vlgmr.msra.gmra.mrb[16].mxu1 %vm675_vm1, %v1415_v56 }
 0x116   : > { %v1196_v57 = vpop.f32.mrb[0].mxu0 }
 0x117   : > { %v1236_v58 = vpop.f32.mrb[0].mxu1  ;;  %v1197_v59 = vpop.f32.mrb[1].mxu0 }
 0x118   : > { %v1198_v60 = vadd.f32 %v1197_v59, %v1196_v57  ;;  %v1237_v61 = vpop.f32.mrb[1].mxu1  ;;  %v1199_v62 = vpop.f32.mrb[2].mxu0 }
 0x119   : > { %v1238_v63 = vadd.f32 %v1237_v61, %v1236_v58  ;;  %v1239_v0 = vpop.f32.mrb[2].mxu1  ;;  %v1200_v1 = vpop.f32.mrb[3].mxu0  ;;  %v259_v58 = vld [vmem:[#allocation2 + $0x20] sm:$0xff] }
 0x11a   : > { %v1201_v2 = vadd.f32 %v1200_v1, %v1199_v62  ;;  %v1240_v3 = vpop.f32.mrb[3].mxu1  ;;  %v262_v1 = vld [vmem:[#allocation2 + $0x38] sm:$0xff] }
 0x11b   : > { %v1241_v4 = vadd.f32 %v1240_v3, %v1239_v0  ;;  %v788_v5 = vadd.f32 %v1238_v63, %v1198_v60  ;;  %v258_v60 = vld [vmem:[#allocation2 + $0x18] sm:$0xff]  ;;  %v256_v3 = vld [vmem:[#allocation2 + $0x8] sm:$0xff] }
 0x11d   : > { %v1617_v6 = vadd.f32 %v1241_v4, %v1201_v2 }
 0x11e   : > { %v1202_v7 = vpop.f32.mrb[4].mxu0 }
 0x11f   : > { %v1242_v8 = vpop.f32.mrb[4].mxu1  ;;  %v1203_v9 = vpop.f32.mrb[5].mxu0 }
 0x120   : > { %v1204_v10 = vadd.f32 %v1203_v9, %v1202_v7  ;;  %v1243_v11 = vpop.f32.mrb[5].mxu1  ;;  %v1205_v12 = vpop.f32.mrb[6].mxu0 }
 0x121   : > { %v1244_v13 = vadd.f32 %v1243_v11, %v1242_v8  ;;  %v1245_v14 = vpop.f32.mrb[6].mxu1  ;;  %v1206_v15 = vpop.f32.mrb[7].mxu0  ;;  %v260_v11 = vld [vmem:[#allocation2 + $0x28] sm:$0xff] }
 0x122   : > { %v1207_v16 = vadd.f32 %v1206_v15, %v1205_v12  ;;  %v1246_v17 = vpop.f32.mrb[7].mxu1 }
 0x123   : > { %v1247_v18 = vadd.f32 %v1246_v17, %v1245_v14  ;;  %v796_v19 = vadd.f32 %v1244_v13, %v1204_v10 }
 0x125   : > { %v799_v20 = vadd.f32 %v1247_v18, %v1207_v16  ;;  %v1161_v18 = vld [vmem:[%s1671_s2] ss:$0 sm:$0xff] (!%p1160_p11) }
 0x126   : > { %v1208_v21 = vpop.f32.mrb[8].mxu0 }
 0x127   : > { %v1248_v22 = vpop.f32.mrb[8].mxu1  ;;  %v1209_v23 = vpop.f32.mrb[9].mxu0 }
 0x128   : > { %v1210_v24 = vadd.f32 %v1209_v23, %v1208_v21  ;;  %v1249_v25 = vpop.f32.mrb[9].mxu1  ;;  %v1211_v26 = vpop.f32.mrb[10].mxu0 }
 0x129   : > { %v1250_v27 = vadd.f32 %v1249_v25, %v1248_v22  ;;  %v1251_v28 = vpop.f32.mrb[10].mxu1  ;;  %v1212_v29 = vpop.f32.mrb[11].mxu0 }
 0x12a   : > { %v1213_v30 = vadd.f32 %v1212_v29, %v1211_v26  ;;  %v1252_v31 = vpop.f32.mrb[11].mxu1 }
 0x12b   : > { %v1253_v32 = vadd.f32 %v1252_v31, %v1251_v28  ;;  %v804_v33 = vadd.f32 %v1250_v27, %v1210_v24 }
 0x12d   : > { %v807_v34 = vadd.f32 %v1253_v32, %v1213_v30 }
 0x12e   : > { %v1214_v35 = vpop.f32.mrb[12].mxu0 }
 0x12f   : > { %v1254_v36 = vpop.f32.mrb[12].mxu1  ;;  %v1215_v37 = vpop.f32.mrb[13].mxu0 }
 0x130   : > { %v1216_v38 = vadd.f32 %v1215_v37, %v1214_v35  ;;  %v1255_v39 = vpop.f32.mrb[13].mxu1  ;;  %v1217_v40 = vpop.f32.mrb[14].mxu0 }
 0x131   : > { %v1256_v41 = vadd.f32 %v1255_v39, %v1254_v36  ;;  %v1257_v42 = vpop.f32.mrb[14].mxu1  ;;  %v1218_v43 = vpop.f32.mrb[15].mxu0 }
 0x132   : > { %v1219_v44 = vadd.f32 %v1218_v43, %v1217_v40  ;;  %v1258_v45 = vpop.f32.mrb[15].mxu1 }
 0x133   : > { %v1259_v46 = vadd.f32 %v1258_v45, %v1257_v42  ;;  %v812_v47 = vadd.f32 %v1256_v41, %v1216_v38 }
 0x135   : > { %v815_v48 = vadd.f32 %v1259_v46, %v1219_v44 }
 0x136   : > { %v1278_v50 = vpop.f32.mrb[16].mxu0 }
 0x137   : > { %v861_v51 = vadd.f32 %v1278_v50, %v796_v19  ;;  %v1282_v53 = vpop.f32.mrb[16].mxu1  ;;  %v852_v55 = vpop.f32.mrb[17].mxu0 }
 0x138   : > { %v877_v56 = vadd.f32 %v1282_v53, %v812_v47  ;;  %v853_v57 = vadd.f32 %v852_v55, %v788_v5  ;;  %v868_v59 = vpop.f32.mrb[17].mxu1  ;;  %v1279_v61 = vpop.f32.mrb[18].mxu0 }
 0x139   : > { %v885_v62 = vadd.f32 %v861_v51, %v257_v49  ;;  %v869_v63 = vadd.f32 %v868_v59, %v804_v33  ;;  %v864_v0 = vadd.f32 %v1279_v61, %v799_v20  ;;  %v1283_v2 = vpop.f32.mrb[18].mxu1  ;;  %v855_v4 = vpop.f32.mrb[19].mxu0  ;;  %903 = sbr.rel (%p1160_p11) target bundleno = 334 (0x14e), region = 40 }
 0x13a   : > { %v889_v7 = vadd.f32 %v877_v56, %v261_v52  ;;  %v883_v8 = vadd.f32 %v853_v57, %v255_v54  ;;  %v880_v9 = vadd.f32 %v1283_v2, %v815_v48  ;;  %v856_v10 = vadd.f32 %v855_v4, %v1617_v6  ;;  %v871_v12 = vpop.f32.mrb[19].mxu1 }
 0x13b   : > { %894 = vst.msk [vmem:[#allocation2 + $0x10] sm:$0xff] %vm891_vm2, %v885_v62  ;;  %v887_v5 = vadd.f32 %v869_v63, %v259_v58  ;;  %v886_v13 = vadd.f32 %v864_v0, %v258_v60  ;;  %v872_v14 = vadd.f32 %v871_v12, %v807_v34 }
 0x13c   : > { %898 = vst.msk [vmem:[#allocation2 + $0x30] sm:$0xff] %vm891_vm2, %v889_v7  ;;  %892 = vst.msk [vmem:[#allocation2] sm:$0xff] %vm891_vm2, %v883_v8  ;;  %v890_v15 = vadd.f32 %v880_v9, %v262_v1  ;;  %v884_v16 = vadd.f32 %v856_v10, %v256_v3 }
 0x13d   : > { %896 = vst.msk [vmem:[#allocation2 + $0x20] sm:$0xff] %vm891_vm2, %v887_v5  ;;  %895 = vst.msk [vmem:[#allocation2 + $0x18] sm:$0xff] %vm891_vm2, %v886_v13  ;;  %v888_v17 = vadd.f32 %v872_v14, %v260_v11 }
 0x13e   : > { %899 = vst.msk [vmem:[#allocation2 + $0x38] sm:$0xff] %vm891_vm2, %v890_v15  ;;  %893 = vst.msk [vmem:[#allocation2 + $0x8] sm:$0xff] %vm891_vm2, %v884_v16 }
 0x13f   : > { %897 = vst.msk [vmem:[#allocation2 + $0x28] sm:$0xff] %vm891_vm2, %v888_v17 }
 0x142   : > { %v906_v22 = vld [vmem:[#allocation2 + $0x10] sm:$0xff] }
 0x143   : > { %v904_v6 = vld [vmem:[#allocation2] sm:$0xff]  ;;  %v921_v25 = vadd.f32 %v1161_v18, %v906_v22  ;;  %v910_v29 = vld [vmem:[#allocation2 + $0x30] sm:$0xff] }
 0x144   : > { %v919_v20 = vadd.f32 %v1161_v18, %v904_v6  ;;  %v907_v23 = vld [vmem:[#allocation2 + $0x18] sm:$0xff]  ;;  %v908_v24 = vld [vmem:[#allocation2 + $0x20] sm:$0xff]  ;;  %v925_v34 = vadd.f32 %v1161_v18, %v910_v29 }
 0x145   : > { %v905_v19 = vld [vmem:[#allocation2 + $0x8] sm:$0xff]  ;;  %v922_v26 = vadd.f32 %v1161_v18, %v907_v23  ;;  %v923_v27 = vadd.f32 %v1161_v18, %v908_v24  ;;  %v911_v30 = vld [vmem:[#allocation2 + $0x38] sm:$0xff]  ;;  %v929_v35 = vmax.f32 %v921_v25, 0.0 }
 0x146   : > { %v920_v21 = vadd.f32 %v1161_v18, %v905_v19  ;;  %v909_v28 = vld [vmem:[#allocation2 + $0x28] sm:$0xff]  ;;  %v927_v31 = vmax.f32 %v919_v20, 0.0  ;;  %v926_v38 = vadd.f32 %v1161_v18, %v911_v30  ;;  %v933_v42 = vmax.f32 %v925_v34, 0.0 }
 0x147   : > { %v924_v33 = vadd.f32 %v1161_v18, %v909_v28  ;;  %v930_v36 = vmax.f32 %v922_v26, 0.0  ;;  %v931_v37 = vmax.f32 %v923_v27, 0.0  ;;  %v1174_v43 = vpack.c.bf16 %v929_v35, %v929_v35 }
 0x148   : > { %v928_v32 = vmax.f32 %v920_v21, 0.0  ;;  %v1172_v39 = vpack.c.bf16 %v927_v31, %v927_v31  ;;  %v934_v46 = vmax.f32 %v926_v38, 0.0  ;;  %v1178_v48 = vpack.c.bf16 %v933_v42, %v933_v42 }
 0x149   : > { %v932_v41 = vmax.f32 %v924_v33, 0.0  ;;  %v1175_v44 = vpack.c.bf16 %v930_v36, %v930_v36  ;;  %v1176_v45 = vpack.c.bf16 %v931_v37, %v931_v37  ;;  %970 = vst.msk [vmem:[%s1558_s24 + $0x8] sm:$0xf] %vm967_vm3, %v1174_v43 }
 0x14a   : > { %v1173_v40 = vpack.c.bf16 %v928_v32, %v928_v32  ;;  %968 = vst.msk [vmem:[%s1558_s24] sm:$0xf] %vm967_vm3, %v1172_v39  ;;  %v1179_v49 = vpack.c.bf16 %v934_v46, %v934_v46  ;;  %974 = vst.msk [vmem:[%s1558_s24 + $0x18] sm:$0xf] %vm967_vm3, %v1178_v48 }
 0x14b   : > { %v1177_v47 = vpack.c.bf16 %v932_v41, %v932_v41  ;;  %971 = vst.msk [vmem:[%s1558_s24 + $0xc] sm:$0xf] %vm967_vm3, %v1175_v44  ;;  %972 = vst.msk [vmem:[%s1558_s24 + $0x10] sm:$0xf] %vm967_vm3, %v1176_v45 }
 0x14c   : > { %969 = vst.msk [vmem:[%s1558_s24 + $0x4] sm:$0xf] %vm967_vm3, %v1173_v40  ;;  %975 = vst.msk [vmem:[%s1558_s24 + $0x1c] sm:$0xf] %vm967_vm3, %v1179_v49 }
 0x14d   : > { %973 = vst.msk [vmem:[%s1558_s24 + $0x14] sm:$0xf] %vm967_vm3, %v1177_v47 }
 0x14e PF: > { %s13_s18 = sadd.s32 1, %s1470_s18   ;;  %s1673_s12 = smov %s1458_s15 }
 0x14f   : > { %p10_p12 = scmp.ge.s32.totalorder %s13_s18, 50   ;;  %s1674_s13 = smov %s1462_s16 }
 0x150   : > { %s1675_s14 = smov %s1466_s17  ;;  %s1676_s15 = smov %s1680_s19 }
 0x151   : > { %s1677_s16 = smov %s1684_s20  ;;  %s1678_s17 = smov %s1688_s21 }
 0x152   :  { %12 = sbr.rel (!%p10_p12) target bundleno = 4 (0x4), region = 73 }

// kernel: scmnet_forward.35
= control target key start
LH: loop header
LB: loop body
LE: loop exit
PB: predicated region body
PF: predicated region fallthrough
CT: control target
= control target key end

     0   :  { %s1141_s12 = smov 0   ;;  %s1143_s13 = smov 0   ;;  %s1292_s0 = inlined_call_operand.vmem [shape: bf16[2,10,64,288], index: 0, kind: input, shape index: {}]   ;;  %s1293_s1 = inlined_call_operand.vmem [shape: bf16[3,288,32], index: 1, kind: input, shape index: {}]   ;;  %s1294_s2 = inlined_call_operand.vmem [shape: f32[1,32], index: 2, kind: input, shape index: {}]   ;;  %s1295_s3 = inlined_call_operand.vmem [shape: bf16[2,8,64,32], index: 3, kind: output, shape index: {}]  }
   0x1   :  { %s1145_s14 = smov 0   ;;  %s1147_s15 = smov 0  }
   0x2   :  { %s1149_s16 = smov 0   ;;  %s1151_s17 = smov 0  }
   0x3   :  { %s1153_s18 = smov 0  }
   0x4 LB: > { %s25_s19 = sadd.s32 1, %s1106_s15  ;;  %s28_s20 = sadd.s32 1, %s1110_s16  ;;  %s1118_s18 = sphi %s1153_s18, %s13_s18   ;;  %s1114_s17 = sphi %s1151_s17, %s1301_s17   ;;  %s1110_s16 = sphi %s1149_s16, %s1300_s16   ;;  %s1106_s15 = sphi %s1147_s15, %s1299_s15   ;;  %s1102_s14 = sphi %s1145_s14, %s1298_s14   ;;  %s1098_s13 = sphi %s1143_s13, %s1297_s13   ;;  %s1094_s12 = sphi %s1141_s12, %s1296_s12  }
   0x5   : > { %p26_p0 = scmp.ge.s32.totalorder %s25_s19, 3  ;;  %p835_p1 = scmp.ge.s32.totalorder %s1118_s18, 1 }
   0x6   : > { %p178_p2 = scmp.lt.s32.totalorder %s1118_s18, 49  ;;  %s32_s21 = sadd.s32 1, %s1114_s17 }
   0x7   : > { %s1303_s19 = smov (%p26_p0, %s25_s19), 0  ;;  %s1305_s20 = smov (!%p26_p0, %s28_s20), %s1110_s16 }
   0x8   : > { %p179_p3 = pnand %p835_p1, %p178_p2  ;;  %p30_p4 = scmp.ge.s32.totalorder %s1305_s20, 8 }
   0x9   : > { %s216_s22 = sadd.s32 (!%p179_p3), %s1094_s12, %s1098_s13  ;;  %p217_p6 = scmp.lt.s32.totalorder (!%p179_p3), %s1102_s14, 1 }
   0xa   : > { %s1307_s20 = smov (%p30_p4, %s1305_s20), 0  ;;  %s1309_s21 = smov (!%p30_p4, %s32_s21), %s1114_s17 }
   0xb   : > { %p34_p5 = scmp.ge.s32.totalorder %s1309_s21, 2  ;;  %182 = sbr.rel (%p179_p3) target bundleno = 318 (0x13e), region = 32 }
   0xc   : > { %p219_p7 = scmp.lt.s32.totalorder (!%p179_p3), %s216_s22, 9  ;;  %p227_p8 = scmp.lt.s32.totalorder (!%p179_p3), %s1094_s12, 2 }
   0xd   : > { %s1311_s21 = smov (%p34_p5, %s1309_s21), 0  ;;  %p234_p9 = scmp.lt.s32.totalorder (!%p179_p3), %s1098_s13, 7 }
   0xe   : > { %p841_p10 = scmp.ne.s32.totalorder (!%p179_p3), %s1094_s12, 0 }
  0x12   : > { %s1313_s14 = smov (!%p217_p6, %s1102_s14), 1  ;;  %s1315_s22 = smov (!%p219_p7, %s216_s22), 9 }
  0x13   : > { %s971_s23 = smul.u32 240, %s1313_s14  ;;  %s839_s8 = sshll.u32 %s1313_s14, 6  ;;  %vm246_vm0 = vcmask (!%p841_p10), 261120   ;;  %v1120_v0 = vmov (!%p841_p10), 0.0  }
  0x14   : > { %s970_s24 = smul.u32 24, %s1315_s22  ;;  %s1317_s13 = smov (!%p234_p9, %s1098_s13), 7  ;;  %247 = vst.msk [vmem:[#allocation2] sm:$0xff] (!%p841_p10), %vm246_vm0, %v1120_v0  ;;  %248 = vst.msk [vmem:[#allocation2 + $0x8] sm:$0xff] (!%p841_p10), %vm246_vm0, %v1120_v0 }
  0x15   : > { %s228_s25 = scalar_select %p227_p8, %s1094_s12, 2 }
  0x16   : > { %s223_s26 = sadd.s32 %s971_s23, %s970_s24  ;;  %s838_s9 = sshll.u32 %s1317_s13, 3  ;;  %249 = vst.msk [vmem:[#allocation2 + $0x10] sm:$0xff] (!%p841_p10), %vm246_vm0, %v1120_v0  ;;  %250 = vst.msk [vmem:[#allocation2 + $0x18] sm:$0xff] (!%p841_p10), %vm246_vm0, %v1120_v0 }
  0x17   : > { %s836_s27 = sshll.u32 %s223_s26, 2  ;;  %s972_s28 = smul.u32 144, %s228_s25  ;;  %251 = vst.msk [vmem:[#allocation2 + $0x20] sm:$0xff] (!%p841_p10), %vm246_vm0, %v1120_v0  ;;  %252 = vst.msk [vmem:[#allocation2 + $0x28] sm:$0xff] (!%p841_p10), %vm246_vm0, %v1120_v0 }
  0x18   : > { %s1195_s4 = scalar_lea.vmem %s1292_s0, %s836_s27  ;;  %s238_s10 = sadd.s32 %s839_s8, %s838_s9  ;;  %253 = vst.msk [vmem:[#allocation2 + $0x30] sm:$0xff] (!%p841_p10), %vm246_vm0, %v1120_v0  ;;  %254 = vst.msk [vmem:[#allocation2 + $0x38] sm:$0xff] (!%p841_p10), %vm246_vm0, %v1120_v0 }
  0x19   : > { %s1200_s7 = scalar_lea.vmem %s1293_s1, %s972_s28  ;;  %s840_s11 = sshll.u32 %s238_s10, 2 }
  0x1a   : > { %s1206_s24 = scalar_lea.vmem %s1295_s3, %s840_s11  ;;  %245 = sbr.rel (%p841_p10) target bundleno = 33 (0x21), region = 36 }
  0x21 PF: > { %v1030_v1 = vld [vmem:[%s1200_s7 + $0x40] sm:$0xff]   ;;  %v1032_v3 = vld [vmem:[%s1200_s7 + $0x48] sm:$0xff]   ;;  %v1034_v5 = vld [vmem:[%s1200_s7 + $0x50] sm:$0xff]   ;;  %vm483_vm1 = vcmask 261120   ;;  %p876_p11 = scmp.ne.s32.totalorder %s1094_s12, 2 }
  0x22   : > { %v1031_v2 = vld [vmem:[%s1200_s7] sm:$0xff]   ;;  %896 = vmatprep.subr.bf16.mxu0 %v1030_v1  ;;  %954 = vmatprep.subr.bf16.mxu1 %v1030_v1  ;;  %v1033_v4 = vld [vmem:[%s1200_s7 + $0x8] sm:$0xff]   ;;  %v1035_v6 = vld [vmem:[%s1200_s7 + $0x10] sm:$0xff]   ;;  %vm709_vm2 = vcmask (!%p876_p11), 257024  }
  0x23   : > { %897 = vmatpush3.bf16.msra.mxu0 %v1031_v2  ;;  %962 = vmatpush3.bf16.msra.mxu1 %v1031_v2  ;;  %v1036_v7 = vld [vmem:[%s1200_s7 + $0x58] sm:$0xff]   ;;  %v1038_v9 = vld [vmem:[%s1200_s7 + $0x60] sm:$0xff]   ;;  %v1040_v11 = vld [vmem:[%s1200_s7 + $0x68] sm:$0xff]  }
  0x24   : > { %898 = vmatprep.subr.bf16.mxu0 %v1032_v3  ;;  %955 = vmatprep.subr.bf16.mxu1 %v1032_v3  ;;  %v1037_v8 = vld [vmem:[%s1200_s7 + $0x18] sm:$0xff]   ;;  %v1039_v10 = vld [vmem:[%s1200_s7 + $0x20] sm:$0xff]   ;;  %v1041_v14 = vld [vmem:[%s1200_s7 + $0x28] sm:$0xff]  }
  0x25   : > { %v1048_v12 = vld [vmem:[%s1195_s4 + $0x4] ss:$12 sps:$4 sm:$0xff]   ;;  %v1051_v13 = vld [vmem:[%s1195_s4 + $0x4c] ss:$12 sps:$4 sm:$0xff]   ;;  %v1049_v21 = vld [vmem:[%s1195_s4 + $0x48] ss:$12 sps:$4 sm:$0xff]  }
  0x26   : > { %v1042_v15 = vld [vmem:[%s1200_s7 + $0x70] sm:$0xff]   ;;  %528 = vmatprep.mubr.bf16.mxu0 %v1048_v12  ;;  %552 = vmatprep.mubr.bf16.mxu1 %v1051_v13  ;;  %v1044_v17 = vld [vmem:[%s1200_s7 + $0x78] sm:$0xff]   ;;  %v1052_v19 = vld [vmem:[%s1200_s7 + $0x80] sm:$0xff]  }
  0x27   : > { %899 = vmatpush3.bf16.msra.mxu0 %v1033_v4  ;;  %963 = vmatpush3.bf16.msra.mxu1 %v1033_v4  ;;  %v1043_v16 = vld [vmem:[%s1200_s7 + $0x30] sm:$0xff]   ;;  %v1045_v18 = vld [vmem:[%s1200_s7 + $0x38] sm:$0xff]   ;;  %v1046_v20 = vld [vmem:[%s1195_s4] ss:$12 sps:$4 sm:$0xff]  }
  0x28   : > { %900 = vmatprep.subr.bf16.mxu0 %v1034_v5  ;;  %956 = vmatprep.subr.bf16.mxu1 %v1034_v5  ;;  %v1054_v22 = vld [vmem:[%s1195_s4 + $0x1c] ss:$12 sps:$4 sm:$0xff]   ;;  %v1057_v25 = vld [vmem:[%s1195_s4 + $0x18] ss:$12 sps:$4 sm:$0xff]   ;;  %v1058_v26 = vld [vmem:[%s1195_s4 + $0x20] ss:$12 sps:$4 sm:$0xff]  }
  0x29   : > { %v1053_v23 = vld [vmem:[%s1200_s7 + $0x88] sm:$0xff]   ;;  %v1059_v27 = vld [vmem:[%s1195_s4 + $0x34] ss:$12 sps:$4 sm:$0xff]   ;;  %v1061_v28 = vld [vmem:[%s1195_s4 + $0x38] ss:$12 sps:$4 sm:$0xff]  }
  0x2a   : > { %v1056_v24 = vld [vmem:[%s1195_s4 + $0x8] ss:$12 sps:$4 sm:$0xff]   ;;  %v1062_v29 = vld [vmem:[%s1195_s4 + $0x30] ss:$12 sps:$4 sm:$0xff]   ;;  %v255_v46 = vld [vmem:[#allocation2] sm:$0xff] }
  0x2b   : > { %901 = vmatpush3.bf16.msra.mxu0 %v1035_v6  ;;  %964 = vmatpush3.bf16.msra.mxu1 %v1035_v6  ;;  %v1063_v30 = vld [vmem:[%s1195_s4 + $0x50] ss:$12 sps:$4 sm:$0xff]   ;;  %v256_v54 = vld [vmem:[#allocation2 + $0x8] sm:$0xff]  ;;  %v259_v12 = vld [vmem:[#allocation2 + $0x20] sm:$0xff] }
  0x2c   : > { %902 = vmatprep.subr.bf16.mxu0 %v1036_v7  ;;  %957 = vmatprep.subr.bf16.mxu1 %v1036_v7  ;;  %v257_v52 = vld [vmem:[#allocation2 + $0x10] sm:$0xff]  ;;  %v258_v60 = vld [vmem:[#allocation2 + $0x18] sm:$0xff] }
  0x2d   : > { %v261_v2 = vld [vmem:[#allocation2 + $0x30] sm:$0xff] }
  0x2f   : > { %903 = vmatpush3.bf16.msra.mxu0 %v1037_v8  ;;  %965 = vmatpush3.bf16.msra.mxu1 %v1037_v8 }
  0x30   : > { %904 = vmatprep.subr.bf16.mxu0 %v1038_v9  ;;  %958 = vmatprep.subr.bf16.mxu1 %v1038_v9  ;;  %v262_v9 = vld [vmem:[#allocation2 + $0x38] sm:$0xff] }
  0x33   : > { %905 = vmatpush3.bf16.msra.mxu0 %v1039_v10  ;;  %966 = vmatpush3.bf16.msra.mxu1 %v1039_v10 }
  0x34   : > { %906 = vmatprep.subr.bf16.mxu0 %v1040_v11  ;;  %959 = vmatprep.subr.bf16.mxu1 %v1040_v11 }
  0x37   : > { %907 = vmatpush3.bf16.msra.mxu0 %v1041_v14  ;;  %967 = vmatpush3.bf16.msra.mxu1 %v1041_v14 }
  0x38   : > { %908 = vmatprep.subr.bf16.mxu0 %v1042_v15  ;;  %960 = vmatprep.subr.bf16.mxu1 %v1042_v15 }
  0x3b   : > { %909 = vmatpush3.bf16.msra.mxu0 %v1043_v16  ;;  %968 = vmatpush3.bf16.msra.mxu1 %v1043_v16 }
  0x3c   : > { %910 = vmatprep.subr.bf16.mxu0 %v1044_v17  ;;  %961 = vmatprep.subr.bf16.mxu1 %v1044_v17 }
  0x3f   : > { %911 = vmatpush3.bf16.msra.mxu0 %v1045_v18  ;;  %969 = vmatpush3.bf16.msra.mxu1 %v1045_v18 }
  0x40   : > { %942 = vmatprep.subr.bf16.mxu1 %v1052_v19 }
  0x42   : > { %529 = vmatmul.mubr.bf16.vlgmr.msra.gmra.mrb[0].mxu0 %v1046_v20  ;;  %553 = vmatmul.mubr.bf16.vlgmr.msra.gmra.mrb[0].mxu1 %v1049_v21 }
  0x43   : > { %943 = vmatpush3.bf16.msra.mxu1 %v1052_v19  ;;  %536 = vmatprep.mubr.bf16.mxu0 %v1054_v22  ;;  %v260_v19 = vld [vmem:[#allocation2 + $0x28] sm:$0xff] }
  0x44   : > { %944 = vmatprep.subr.bf16.mxu1 %v1053_v23  ;;  %946 = vmatprep.mubr.msk.bf16.mxu1 %vm483_vm1, %v1056_v24  ;;  %v877_v24 = vld [vmem:[%s1294_s2] ss:$0 sm:$0xff] (!%p876_p11) }
  0x47   : > { %945 = vmatpush3.bf16.msra.mxu1 %v1053_v23 }
  0x4a   : > { %537 = vmatmul.mubr.bf16.gmra.mrb[4].mxu0 %v1057_v25  ;;  %947 = vmatmul.mubr.msk.bf16.vlgmr.msra.gmra.mrb[4].mxu1 %vm483_vm1, %v1058_v26 }
  0x4b   : > { %544 = vmatprep.mubr.bf16.mxu0 %v1059_v27  ;;  %950 = vmatprep.mubr.msk.bf16.mxu1 %vm483_vm1, %v1061_v28 }
  0x52   : > { %545 = vmatmul.mubr.bf16.gmra.mrb[8].mxu0 %v1062_v29  ;;  %951 = vmatmul.mubr.msk.bf16.gmra.mrb[8].mxu1 %vm483_vm1, %v1063_v30 }
 0x115   : > { %v912_v31 = vpop.f32.mrb[0].mxu0  ;;  %v930_v32 = vpop.f32.mrb[0].mxu1 }
 0x116   : > { %v913_v33 = vpop.f32.mrb[1].mxu0  ;;  %v931_v34 = vpop.f32.mrb[1].mxu1 }
 0x117   : > { %v914_v35 = vadd.f32 %v913_v33, %v912_v31  ;;  %v932_v36 = vadd.f32 %v931_v34, %v930_v32  ;;  %v915_v37 = vpop.f32.mrb[2].mxu0  ;;  %v933_v38 = vpop.f32.mrb[2].mxu1 }
 0x118   : > { %v916_v39 = vpop.f32.mrb[3].mxu0  ;;  %v934_v40 = vpop.f32.mrb[3].mxu1 }
 0x119   : > { %v917_v41 = vadd.f32 %v916_v39, %v915_v37  ;;  %v935_v42 = vadd.f32 %v934_v40, %v933_v38 }
 0x11d   : > { %v918_v43 = vpop.f32.mrb[4].mxu0  ;;  %v948_v44 = vpop.f32.mrb[4].mxu1 }
 0x11e   : > { %v919_v45 = vpop.f32.mrb[5].mxu0  ;;  %v595_v47 = vpop.f32.mrb[5].mxu1 }
 0x11f   : > { %v920_v48 = vadd.f32 %v919_v45, %v918_v43  ;;  %v596_v49 = vadd.f32 %v914_v35, %v595_v47  ;;  %v921_v50 = vpop.f32.mrb[6].mxu0  ;;  %v949_v51 = vpop.f32.mrb[6].mxu1 }
 0x120   : > { %v922_v53 = vpop.f32.mrb[7].mxu0  ;;  %v598_v55 = vpop.f32.mrb[7].mxu1 }
 0x121   : > { %v604_v56 = vadd.f32 %v948_v44, %v920_v48  ;;  %v626_v57 = vadd.f32 %v596_v49, %v255_v46  ;;  %v923_v58 = vadd.f32 %v922_v53, %v921_v50  ;;  %v599_v59 = vadd.f32 %v917_v41, %v598_v55 }
 0x123   : > { %v628_v61 = vadd.f32 %v604_v56, %v257_v52  ;;  %634 = vst.msk [vmem:[#allocation2] sm:$0xff] %vm483_vm1, %v626_v57  ;;  %v607_v62 = vadd.f32 %v949_v51, %v923_v58  ;;  %v627_v63 = vadd.f32 %v599_v59, %v256_v54 }
 0x125   : > { %636 = vst.msk [vmem:[#allocation2 + $0x10] sm:$0xff] %vm483_vm1, %v628_v61  ;;  %v629_v0 = vadd.f32 %v607_v62, %v258_v60  ;;  %635 = vst.msk [vmem:[#allocation2 + $0x8] sm:$0xff] %vm483_vm1, %v627_v63  ;;  %v924_v1 = vpop.f32.mrb[8].mxu0  ;;  %v952_v3 = vpop.f32.mrb[8].mxu1 }
 0x126   : > { %v620_v4 = vadd.f32 %v952_v3, %v932_v36  ;;  %v925_v5 = vpop.f32.mrb[9].mxu0  ;;  %v611_v6 = vpop.f32.mrb[9].mxu1 }
 0x127   : > { %637 = vst.msk [vmem:[#allocation2 + $0x18] sm:$0xff] %vm483_vm1, %v629_v0  ;;  %v926_v7 = vadd.f32 %v925_v5, %v924_v1  ;;  %v927_v8 = vpop.f32.mrb[10].mxu0  ;;  %v953_v10 = vpop.f32.mrb[10].mxu1 }
 0x128   : > { %v632_v11 = vadd.f32 %v620_v4, %v261_v2  ;;  %v623_v13 = vadd.f32 %v953_v10, %v935_v42  ;;  %v928_v14 = vpop.f32.mrb[11].mxu0  ;;  %v614_v15 = vpop.f32.mrb[11].mxu1 }
 0x129   : > { %v612_v16 = vadd.f32 %v926_v7, %v611_v6  ;;  %v929_v17 = vadd.f32 %v928_v14, %v927_v8  ;;  %645 = sbr.rel (%p876_p11) target bundleno = 318 (0x13e), region = 40 }
 0x12a   : > { %640 = vst.msk [vmem:[#allocation2 + $0x30] sm:$0xff] %vm483_vm1, %v632_v11  ;;  %v633_v18 = vadd.f32 %v623_v13, %v262_v9  ;;  %v646_v23 = vld [vmem:[#allocation2] sm:$0xff] (!%p876_p11) }
 0x12b   : > { %v630_v20 = vadd.f32 %v612_v16, %v259_v12  ;;  %v615_v21 = vadd.f32 %v929_v17, %v614_v15  ;;  %v661_v26 = vadd.f32 (!%p876_p11), %v877_v24, %v646_v23 }
 0x12c   : > { %641 = vst.msk [vmem:[#allocation2 + $0x38] sm:$0xff] %vm483_vm1, %v633_v18  ;;  %v647_v25 = vld [vmem:[#allocation2 + $0x8] sm:$0xff] (!%p876_p11)  ;;  %v648_v28 = vld [vmem:[#allocation2 + $0x10] sm:$0xff] (!%p876_p11) }
 0x12d   : > { %638 = vst.msk [vmem:[#allocation2 + $0x20] sm:$0xff] %vm483_vm1, %v630_v20  ;;  %v631_v22 = vadd.f32 %v615_v21, %v260_v19  ;;  %v662_v27 = vadd.f32 (!%p876_p11), %v877_v24, %v647_v25  ;;  %v663_v31 = vadd.f32 (!%p876_p11), %v877_v24, %v648_v28  ;;  %v669_v37 = vmax.f32 (!%p876_p11), %v661_v26, 0.0 }
 0x12e   : > { %v649_v29 = vld [vmem:[#allocation2 + $0x18] sm:$0xff] (!%p876_p11) }
 0x12f   : > { %639 = vst.msk [vmem:[#allocation2 + $0x28] sm:$0xff] %vm483_vm1, %v631_v22  ;;  %v664_v32 = vadd.f32 (!%p876_p11), %v877_v24, %v649_v29  ;;  %v670_v38 = vmax.f32 (!%p876_p11), %v662_v27, 0.0  ;;  %v671_v41 = vmax.f32 (!%p876_p11), %v663_v31, 0.0  ;;  %v888_v45 = vpack.c.bf16 (!%p876_p11), %v669_v37, %v669_v37 }
 0x131   : > { %v652_v35 = vld [vmem:[#allocation2 + $0x30] sm:$0xff]  ;;  %v672_v42 = vmax.f32 %v664_v32, 0.0  ;;  %v889_v46 = vpack.c.bf16 %v670_v38, %v670_v38  ;;  %v890_v49 = vpack.c.bf16 %v671_v41, %v671_v41  ;;  %710 = vst.msk [vmem:[%s1206_s24] sm:$0xf] %vm709_vm2, %v888_v45 }
 0x132   : > { %v667_v40 = vadd.f32 %v877_v24, %v652_v35 }
 0x133   : > { %v653_v36 = vld [vmem:[#allocation2 + $0x38] sm:$0xff]  ;;  %v891_v50 = vpack.c.bf16 %v672_v42, %v672_v42  ;;  %711 = vst.msk [vmem:[%s1206_s24 + $0x4] sm:$0xf] %vm709_vm2, %v889_v46  ;;  %712 = vst.msk [vmem:[%s1206_s24 + $0x8] sm:$0xf] %vm709_vm2, %v890_v49 }
 0x134   : > { %v650_v30 = vld [vmem:[#allocation2 + $0x20] sm:$0xff]  ;;  %v668_v44 = vadd.f32 %v877_v24, %v653_v36  ;;  %v675_v48 = vmax.f32 %v667_v40, 0.0 }
 0x135   : > { %v665_v33 = vadd.f32 %v877_v24, %v650_v30  ;;  %713 = vst.msk [vmem:[%s1206_s24 + $0xc] sm:$0xf] %vm709_vm2, %v891_v50 }
 0x136   : > { %v651_v34 = vld [vmem:[#allocation2 + $0x28] sm:$0xff]  ;;  %v676_v52 = vmax.f32 %v668_v44, 0.0  ;;  %v894_v54 = vpack.c.bf16 %v675_v48, %v675_v48 }
 0x137   : > { %v666_v39 = vadd.f32 %v877_v24, %v651_v34  ;;  %v673_v43 = vmax.f32 %v665_v33, 0.0 }
 0x138   : > { %v895_v55 = vpack.c.bf16 %v676_v52, %v676_v52  ;;  %716 = vst.msk [vmem:[%s1206_s24 + $0x18] sm:$0xf] %vm709_vm2, %v894_v54 }
 0x139   : > { %v674_v47 = vmax.f32 %v666_v39, 0.0  ;;  %v892_v51 = vpack.c.bf16 %v673_v43, %v673_v43 }
 0x13a   : > { %717 = vst.msk [vmem:[%s1206_s24 + $0x1c] sm:$0xf] %vm709_vm2, %v895_v55 }
 0x13b   : > { %v893_v53 = vpack.c.bf16 %v674_v47, %v674_v47  ;;  %714 = vst.msk [vmem:[%s1206_s24 + $0x10] sm:$0xf] %vm709_vm2, %v892_v51 }
 0x13d   : > { %715 = vst.msk [vmem:[%s1206_s24 + $0x14] sm:$0xf] %vm709_vm2, %v893_v53 }
 0x13e PF: > { %s13_s18 = sadd.s32 1, %s1118_s18   ;;  %s1296_s12 = smov %s1106_s15 }
 0x13f   : > { %p10_p12 = scmp.ge.s32.totalorder %s13_s18, 50   ;;  %s1297_s13 = smov %s1110_s16 }
 0x140   : > { %s1298_s14 = smov %s1114_s17  ;;  %s1299_s15 = smov %s1303_s19 }
 0x141   : > { %s1300_s16 = smov %s1307_s20  ;;  %s1301_s17 = smov %s1311_s21 }
 0x142   :  { %12 = sbr.rel (!%p10_p12) target bundleno = 4 (0x4), region = 73 }

// kernel: scmnet_forward.36
= control target key start
LH: loop header
LB: loop body
LE: loop exit
PB: predicated region body
PF: predicated region fallthrough
CT: control target
= control target key end

     0   :  { %s1158_s12 = smov 0   ;;  %s1160_s13 = smov 0   ;;  %s1297_s0 = inlined_call_operand.vmem [shape: bf16[2,10,16,576], index: 0, kind: input, shape index: {}]   ;;  %s1298_s1 = inlined_call_operand.vmem [shape: bf16[3,576,64], index: 1, kind: input, shape index: {}]   ;;  %s1299_s2 = inlined_call_operand.vmem [shape: f32[1,64], index: 2, kind: input, shape index: {}]   ;;  %s1300_s3 = inlined_call_operand.vmem [shape: bf16[2,4,16,64], index: 3, kind: output, shape index: {}]  }
   0x1   :  { %s1162_s14 = smov 0   ;;  %s1164_s15 = smov 0  }
   0x2   :  { %s1166_s16 = smov 0   ;;  %s1168_s17 = smov 0  }
   0x3   :  { %s1170_s18 = smov 0  }
   0x4 LB: > { %s25_s19 = sadd.s32 1, %s1121_s15  ;;  %s28_s20 = sadd.s32 1, %s1125_s16  ;;  %s1133_s18 = sphi %s1170_s18, %s13_s18   ;;  %s1129_s17 = sphi %s1168_s17, %s1306_s17   ;;  %s1125_s16 = sphi %s1166_s16, %s1305_s16   ;;  %s1121_s15 = sphi %s1164_s15, %s1304_s15   ;;  %s1117_s14 = sphi %s1162_s14, %s1303_s14   ;;  %s1113_s13 = sphi %s1160_s13, %s1302_s13   ;;  %s1109_s12 = sphi %s1158_s12, %s1301_s12  }
   0x5   : > { %p26_p0 = scmp.ge.s32.totalorder %s25_s19, 3  ;;  %p855_p1 = scmp.ge.s32.totalorder %s1133_s18, 1 }
   0x6   : > { %p182_p2 = scmp.lt.s32.totalorder %s1133_s18, 25  ;;  %s32_s21 = sadd.s32 1, %s1129_s17 }
   0x7   : > { %s1308_s19 = smov (%p26_p0, %s25_s19), 0  ;;  %s1310_s20 = smov (!%p26_p0, %s28_s20), %s1125_s16 }
   0x8   : > { %p183_p3 = pnand %p855_p1, %p182_p2  ;;  %p30_p4 = scmp.ge.s32.totalorder %s1310_s20, 4 }
   0x9   : > { %s856_s22 = sshll.u32 (!%p183_p3), %s1113_s13, 1  ;;  %p223_p6 = scmp.lt.s32.totalorder (!%p183_p3), %s1117_s14, 1 }
   0xa   : > { %s1312_s20 = smov (%p30_p4, %s1310_s20), 0  ;;  %s1314_s21 = smov (!%p30_p4, %s32_s21), %s1129_s17 }
   0xb   : > { %p34_p5 = scmp.ge.s32.totalorder %s1314_s21, 2  ;;  %186 = sbr.rel (%p183_p3) target bundleno = 316 (0x13c), region = 32 }
   0xc   : > { %s222_s23 = sadd.s32 (!%p183_p3), %s1109_s12, %s856_s22  ;;  %p234_p7 = scmp.lt.s32.totalorder (!%p183_p3), %s1109_s12, 2 }
   0xd   : > { %s1316_s21 = smov (%p34_p5, %s1314_s21), 0  ;;  %p225_p8 = scmp.lt.s32.totalorder (!%p183_p3), %s222_s23, 9 }
   0xe   : > { %p241_p9 = scmp.lt.s32.totalorder (!%p183_p3), %s1113_s13, 3  ;;  %p862_p10 = scmp.ne.s32.totalorder (!%p183_p3), %s1109_s12, 0 }
  0x12   : > { %s1318_s14 = smov (!%p223_p6, %s1117_s14), 1  ;;  %s1320_s23 = smov (!%p225_p8, %s222_s23), 9 }
  0x13   : > { %s975_s24 = smul.u32 100, %s1318_s14  ;;  %s860_s9 = sshll.u32 %s1318_s14, 3  ;;  %vm253_vm0 = vcmask (!%p862_p10), 523264   ;;  %v1135_v0 = vmov (!%p862_p10), 0.0  }
  0x14   : > { %s235_s25 = scalar_select %p234_p7, %s1109_s12, 2 }
  0x15   : > { %s974_s26 = smul.u32 10, %s1320_s23  ;;  %s1322_s13 = smov (!%p241_p9, %s1113_s13), 3  ;;  %254 = vst.msk [vmem:[#allocation2] sm:$0xff] (!%p862_p10), %vm253_vm0, %v1135_v0  ;;  %255 = vst.msk [vmem:[#allocation2 + $0x8] sm:$0xff] (!%p862_p10), %vm253_vm0, %v1135_v0 }
  0x16   : > { %s976_s27 = smul.u32 288, %s235_s25  ;;  %s859_s10 = sshll.u32 %s1322_s13, 1 }
  0x17   : > { %s229_s28 = sadd.s32 %s975_s24, %s974_s26  ;;  %s245_s11 = sadd.s32 %s860_s9, %s859_s10 }
  0x18   : > { %s857_s29 = sshll.u32 %s229_s28, 2  ;;  %s1212_s5 = scalar_lea.vmem %s1298_s1, %s976_s27 }
  0x19   : > { %s1217_s8 = scalar_lea.vmem %s1297_s0, %s857_s29  ;;  %s861_s22 = sshll.u32 %s245_s11, 2 }
  0x1a   : > { %s1223_s24 = scalar_lea.vmem %s1300_s3, %s861_s22  ;;  %252 = sbr.rel (%p862_p10) target bundleno = 33 (0x21), region = 36 }
  0x21 PF: > { %v1036_v1 = vld [vmem:[%s1212_s5 + $0x40] sm:$0xff]   ;;  %v1040_v5 = vld [vmem:[%s1212_s5 + $0x48] sm:$0xff]   ;;  %v1044_v9 = vld [vmem:[%s1212_s5 + $0x50] sm:$0xff]   ;;  %v1136_v35 = vmov 0.0   ;;  %vm1137_vm1 = vmmov 0   ;;  %vm577_vm2 = vcmask 523264  }
  0x22   : > { %v1037_v2 = vld [vmem:[%s1212_s5 + $0xc0] sm:$0xff]   ;;  %913 = vmatprep.subr.bf16.mxu0 %v1036_v1  ;;  %v1041_v6 = vld [vmem:[%s1212_s5 + $0xc8] sm:$0xff]   ;;  %v1045_v10 = vld [vmem:[%s1212_s5 + $0xd0] sm:$0xff]   ;;  %p905_p11 = scmp.ne.s32.totalorder %s1109_s12, 2 }
  0x23   : > { %v1038_v3 = vld [vmem:[%s1212_s5] sm:$0xff]   ;;  %935 = vmatprep.subr.bf16.mxu1 %v1037_v2  ;;  %v1042_v7 = vld [vmem:[%s1212_s5 + $0x8] sm:$0xff]   ;;  %v1046_v11 = vld [vmem:[%s1212_s5 + $0x10] sm:$0xff]   ;;  %vm733_vm3 = vcmask (!%p905_p11), 519168  }
  0x24   : > { %v1039_v4 = vld [vmem:[%s1212_s5 + $0x80] sm:$0xff]   ;;  %914 = vmatpush3.bf16.msra.mxu0 %v1038_v3  ;;  %v1043_v8 = vld [vmem:[%s1212_s5 + $0x88] sm:$0xff]   ;;  %v1047_v12 = vld [vmem:[%s1212_s5 + $0x90] sm:$0xff]  }
  0x25   : > { %936 = vmatpush3.bf16.msra.mxu1 %v1039_v4  ;;  %915 = vmatprep.subr.bf16.mxu0 %v1040_v5  ;;  %v1048_v13 = vld [vmem:[%s1212_s5 + $0x58] sm:$0xff]   ;;  %v1052_v17 = vld [vmem:[%s1212_s5 + $0x60] sm:$0xff]   ;;  %v1056_v21 = vld [vmem:[%s1212_s5 + $0x68] sm:$0xff]  }
  0x26   : > { %937 = vmatprep.subr.bf16.mxu1 %v1041_v6  ;;  %v1049_v14 = vld [vmem:[%s1212_s5 + $0xd8] sm:$0xff]   ;;  %v1053_v18 = vld [vmem:[%s1212_s5 + $0xe0] sm:$0xff]   ;;  %v1057_v22 = vld [vmem:[%s1212_s5 + $0xe8] sm:$0xff]  }
  0x27   : > { %v1050_v15 = vld [vmem:[%s1212_s5 + $0x18] sm:$0xff]   ;;  %v1054_v19 = vld [vmem:[%s1212_s5 + $0x20] sm:$0xff]   ;;  %v1058_v23 = vld [vmem:[%s1212_s5 + $0x28] sm:$0xff]  }
  0x28   : > { %916 = vmatpush3.bf16.msra.mxu0 %v1042_v7  ;;  %v1051_v16 = vld [vmem:[%s1212_s5 + $0x98] sm:$0xff]   ;;  %v1055_v20 = vld [vmem:[%s1212_s5 + $0xa0] sm:$0xff]   ;;  %v1059_v24 = vld [vmem:[%s1212_s5 + $0xa8] sm:$0xff]  }
  0x29   : > { %938 = vmatpush3.bf16.msra.mxu1 %v1043_v8  ;;  %917 = vmatprep.subr.bf16.mxu0 %v1044_v9  ;;  %v1060_v25 = vld [vmem:[%s1212_s5 + $0x70] sm:$0xff]   ;;  %v1064_v29 = vld [vmem:[%s1212_s5 + $0x78] sm:$0xff]   ;;  %v1073_v37 = vld [vmem:[%s1217_s8 + $0xc] ss:$20 sps:$4 sm:$0xff]  }
  0x2a   : > { %939 = vmatprep.subr.bf16.mxu1 %v1045_v10  ;;  %v1061_v26 = vld [vmem:[%s1212_s5 + $0xf0] sm:$0xff]   ;;  %v1065_v30 = vld [vmem:[%s1212_s5 + $0xf8] sm:$0xff]   ;;  %v1074_v38 = vld [vmem:[%s1212_s5 + $0x100] sm:$0xff]   ;;  %654 = vmatprep.mubr.bf16.mxu1 %v1073_v37 }
  0x2b   : > { %v1062_v27 = vld [vmem:[%s1212_s5 + $0x30] sm:$0xff]   ;;  %v1066_v31 = vld [vmem:[%s1212_s5 + $0x38] sm:$0xff]   ;;  %v1075_v39 = vld [vmem:[%s1212_s5 + $0x108] sm:$0xff]  }
  0x2c   : > { %918 = vmatpush3.bf16.msra.mxu0 %v1046_v11  ;;  %v1063_v28 = vld [vmem:[%s1212_s5 + $0xb0] sm:$0xff]   ;;  %v1067_v32 = vld [vmem:[%s1212_s5 + $0xb8] sm:$0xff]   ;;  %v256_v57 = vld [vmem:[#allocation2] sm:$0xff] }
  0x2d   : > { %940 = vmatpush3.bf16.msra.mxu1 %v1047_v12  ;;  %919 = vmatprep.subr.bf16.mxu0 %v1048_v13  ;;  %v1068_v33 = vld [vmem:[%s1217_s8] ss:$20 sps:$4 sm:$0xff]   ;;  %v1070_v34 = vld [vmem:[%s1217_s8 + $0x4] ss:$20 sps:$4 sm:$0xff]   ;;  %v1071_v36 = vld [vmem:[%s1217_s8 + $0x8] ss:$20 sps:$4 sm:$0xff]  }
  0x2e   : > { %941 = vmatprep.subr.bf16.mxu1 %v1049_v14  ;;  %613 = vmatprep.mubr.bf16.mxu0 %v1070_v34  ;;  %v1076_v40 = vld [vmem:[%s1212_s5 + $0x110] sm:$0xff]   ;;  %v1077_v41 = vld [vmem:[%s1212_s5 + $0x118] sm:$0xff]   ;;  %v257_v61 = vld [vmem:[#allocation2 + $0x8] sm:$0xff] }
  0x2f   : > { %v1078_v42 = vld [vmem:[%s1217_s8 + $0x10] ss:$20 sps:$4 sm:$0xff]   ;;  %v906_v4 = vld [vmem:[%s1299_s2] ss:$0 sm:$0xff] (!%p905_p11) }
  0x30   : > { %920 = vmatpush3.bf16.msra.mxu0 %v1050_v15 }
  0x31   : > { %942 = vmatpush3.bf16.msra.mxu1 %v1051_v16  ;;  %921 = vmatprep.subr.bf16.mxu0 %v1052_v17 }
  0x32   : > { %943 = vmatprep.subr.bf16.mxu1 %v1053_v18 }
  0x34   : > { %922 = vmatpush3.bf16.msra.mxu0 %v1054_v19 }
  0x35   : > { %944 = vmatpush3.bf16.msra.mxu1 %v1055_v20  ;;  %923 = vmatprep.subr.bf16.mxu0 %v1056_v21 }
  0x36   : > { %945 = vmatprep.subr.bf16.mxu1 %v1057_v22 }
  0x38   : > { %924 = vmatpush3.bf16.msra.mxu0 %v1058_v23 }
  0x39   : > { %946 = vmatpush3.bf16.msra.mxu1 %v1059_v24  ;;  %925 = vmatprep.subr.bf16.mxu0 %v1060_v25 }
  0x3a   : > { %947 = vmatprep.subr.bf16.mxu1 %v1061_v26 }
  0x3c   : > { %926 = vmatpush3.bf16.msra.mxu0 %v1062_v27 }
  0x3d   : > { %948 = vmatpush3.bf16.msra.mxu1 %v1063_v28  ;;  %927 = vmatprep.subr.bf16.mxu0 %v1064_v29 }
  0x3e   : > { %949 = vmatprep.subr.bf16.mxu1 %v1065_v30 }
  0x40   : > { %928 = vmatpush3.bf16.msra.mxu0 %v1066_v31 }
  0x41   : > { %950 = vmatpush3.bf16.msra.mxu1 %v1067_v32  ;;  %962 = vmatprep.subr.bf16.mxu0 %v1136_v35 }
  0x43   : > { %614 = vmatmul.mubr.bf16.vlgmr.msra.gmra.mrb[0].mxu0 %v1068_v33 }
  0x44   : > { %655 = vmatmul.mubr.bf16.vlgmr.msra.gmra.mrb[0].mxu1 %v1071_v36  ;;  %963 = vmatpush3.bf16.msra.mxu0 %v1074_v38 }
  0x45   : > { %964 = vmatprep.subr.bf16.mxu0 %v1136_v35  ;;  %970 = vmatprep.mubr.msk.bf16.mxu0 %vm1137_vm1, %v1136_v35 }
  0x48   : > { %965 = vmatpush3.bf16.msra.mxu0 %v1075_v39 }
  0x49   : > { %966 = vmatprep.subr.bf16.mxu0 %v1136_v35 }
  0x4c   : > { %967 = vmatpush3.bf16.msra.mxu0 %v1076_v40 }
  0x4d   : > { %968 = vmatprep.subr.bf16.mxu0 %v1136_v35 }
  0x50   : > { %969 = vmatpush3.bf16.msra.mxu0 %v1077_v41 }
  0x53   : > { %971 = vmatmul.mubr.msk.bf16.vlgmr.msra.gmra.mrb[4].mxu0 %vm577_vm2, %v1078_v42 }
 0x116   : > { %v929_v43 = vpop.f32.mrb[0].mxu0 }
 0x117   : > { %v951_v44 = vpop.f32.mrb[0].mxu1  ;;  %v930_v45 = vpop.f32.mrb[1].mxu0 }
 0x118   : > { %v931_v46 = vadd.f32 %v930_v45, %v929_v43  ;;  %v952_v47 = vpop.f32.mrb[1].mxu1  ;;  %v932_v48 = vpop.f32.mrb[2].mxu0 }
 0x119   : > { %v953_v49 = vadd.f32 %v952_v47, %v951_v44  ;;  %v954_v50 = vpop.f32.mrb[2].mxu1  ;;  %v933_v51 = vpop.f32.mrb[3].mxu0 }
 0x11a   : > { %v934_v52 = vadd.f32 %v933_v51, %v932_v48  ;;  %v955_v53 = vpop.f32.mrb[3].mxu1 }
 0x11b   : > { %v956_v54 = vadd.f32 %v955_v53, %v954_v50  ;;  %v657_v55 = vadd.f32 %v953_v49, %v931_v46 }
 0x11d   : > { %v660_v56 = vadd.f32 %v956_v54, %v934_v52 }
 0x126   : > { %v697_v58 = vpop.f32.mrb[4].mxu0 }
 0x127   : > { %v698_v59 = vadd.f32 %v697_v58, %v657_v55  ;;  %v972_v60 = vpop.f32.mrb[5].mxu0  ;;  %711 = sbr.rel (%p905_p11) target bundleno = 316 (0x13c), region = 40 }
 0x128   : > { %v700_v62 = vpop.f32.mrb[6].mxu0 }
 0x129   : > { %v704_v63 = vadd.f32 %v698_v59, %v256_v57  ;;  %v701_v0 = vadd.f32 %v700_v62, %v660_v56  ;;  %v973_v1 = vpop.f32.mrb[7].mxu0 }
 0x12b   : > { %706 = vst.msk [vmem:[#allocation2] sm:$0xff] %vm577_vm2, %v704_v63  ;;  %v705_v2 = vadd.f32 %v701_v0, %v257_v61 }
 0x12d   : > { %707 = vst.msk [vmem:[#allocation2 + $0x8] sm:$0xff] %vm577_vm2, %v705_v2 }
 0x132   : > { %v712_v3 = vld [vmem:[#allocation2] sm:$0xff] }
 0x133   : > { %v721_v6 = vadd.f32 %v906_v4, %v712_v3 }
 0x134   : > { %v713_v5 = vld [vmem:[#allocation2 + $0x8] sm:$0xff] }
 0x135   : > { %v722_v7 = vadd.f32 %v906_v4, %v713_v5  ;;  %v723_v8 = vmax.f32 %v721_v6, 0.0 }
 0x137   : > { %v724_v9 = vmax.f32 %v722_v7, 0.0  ;;  %v911_v10 = vpack.c.bf16 %v723_v8, %v723_v8 }
 0x139   : > { %v912_v11 = vpack.c.bf16 %v724_v9, %v724_v9  ;;  %734 = vst.msk [vmem:[%s1223_s24] sm:$0xf] %vm733_vm3, %v911_v10 }
 0x13b   : > { %735 = vst.msk [vmem:[%s1223_s24 + $0x4] sm:$0xf] %vm733_vm3, %v912_v11 }
 0x13c PF: > { %s13_s18 = sadd.s32 1, %s1133_s18   ;;  %s1301_s12 = smov %s1121_s15 }
 0x13d   : > { %p10_p12 = scmp.ge.s32.totalorder %s13_s18, 26   ;;  %s1302_s13 = smov %s1125_s16 }
 0x13e   : > { %s1303_s14 = smov %s1129_s17  ;;  %s1304_s15 = smov %s1308_s19 }
 0x13f   : > { %s1305_s16 = smov %s1312_s20  ;;  %s1306_s17 = smov %s1316_s21 }
 0x140   :  { %12 = sbr.rel (!%p10_p12) target bundleno = 4 (0x4), region = 73 }

// kernel: scmnet_forward.37
= control target key start
LH: loop header
LB: loop body
LE: loop exit
PB: predicated region body
PF: predicated region fallthrough
CT: control target
= control target key end

     0   :  { %s1148_s12 = smov 0   ;;  %s1150_s13 = smov 0   ;;  %s1287_s0 = inlined_call_operand.vmem [shape: bf16[2,6,16,576], index: 0, kind: input, shape index: {}]   ;;  %s1288_s1 = inlined_call_operand.vmem [shape: bf16[3,576,64], index: 1, kind: input, shape index: {}]   ;;  %s1289_s2 = inlined_call_operand.vmem [shape: f32[1,64], index: 2, kind: input, shape index: {}]   ;;  %s1290_s3 = inlined_call_operand.vmem [shape: bf16[2,4,16,64], index: 3, kind: output, shape index: {}]  }
   0x1   :  { %s1152_s14 = smov 0   ;;  %s1154_s15 = smov 0  }
   0x2   :  { %s1156_s16 = smov 0   ;;  %s1158_s17 = smov 0  }
   0x3   :  { %s1160_s18 = smov 0  }
   0x4 LB: > { %s25_s19 = sadd.s32 1, %s1111_s15  ;;  %s28_s20 = sadd.s32 1, %s1115_s16  ;;  %s1123_s18 = sphi %s1160_s18, %s13_s18   ;;  %s1119_s17 = sphi %s1158_s17, %s1296_s17   ;;  %s1115_s16 = sphi %s1156_s16, %s1295_s16   ;;  %s1111_s15 = sphi %s1154_s15, %s1294_s15   ;;  %s1107_s14 = sphi %s1152_s14, %s1293_s14   ;;  %s1103_s13 = sphi %s1150_s13, %s1292_s13   ;;  %s1099_s12 = sphi %s1148_s12, %s1291_s12  }
   0x5   : > { %p26_p0 = scmp.ge.s32.totalorder %s25_s19, 3  ;;  %p846_p1 = scmp.ge.s32.totalorder %s1123_s18, 1 }
   0x6   : > { %p178_p2 = scmp.lt.s32.totalorder %s1123_s18, 25  ;;  %s32_s21 = sadd.s32 1, %s1119_s17 }
   0x7   : > { %s1298_s19 = smov (%p26_p0, %s25_s19), 0  ;;  %s1300_s20 = smov (!%p26_p0, %s28_s20), %s1115_s16 }
   0x8   : > { %p179_p3 = pnand %p846_p1, %p178_p2  ;;  %p30_p4 = scmp.ge.s32.totalorder %s1300_s20, 4 }
   0x9   : > { %s216_s22 = sadd.s32 (!%p179_p3), %s1099_s12, %s1103_s13  ;;  %p217_p6 = scmp.lt.s32.totalorder (!%p179_p3), %s1107_s14, 1 }
   0xa   : > { %s1302_s20 = smov (%p30_p4, %s1300_s20), 0  ;;  %s1304_s21 = smov (!%p30_p4, %s32_s21), %s1119_s17 }
   0xb   : > { %p34_p5 = scmp.ge.s32.totalorder %s1304_s21, 2  ;;  %182 = sbr.rel (%p179_p3) target bundleno = 316 (0x13c), region = 32 }
   0xc   : > { %p219_p7 = scmp.lt.s32.totalorder (!%p179_p3), %s216_s22, 5  ;;  %p227_p8 = scmp.lt.s32.totalorder (!%p179_p3), %s1099_s12, 2 }
   0xd   : > { %s1306_s21 = smov (%p34_p5, %s1304_s21), 0  ;;  %p234_p9 = scmp.lt.s32.totalorder (!%p179_p3), %s1103_s13, 3 }
   0xe   : > { %p852_p10 = scmp.ne.s32.totalorder (!%p179_p3), %s1099_s12, 0 }
  0x12   : > { %s1308_s14 = smov (!%p217_p6, %s1107_s14), 1  ;;  %s1310_s22 = smov (!%p219_p7, %s216_s22), 5 }
  0x13   : > { %s965_s23 = smul.u32 60, %s1308_s14  ;;  %s850_s8 = sshll.u32 %s1308_s14, 3  ;;  %vm246_vm0 = vcmask (!%p852_p10), 523264   ;;  %v1125_v0 = vmov (!%p852_p10), 0.0  }
  0x14   : > { %s964_s24 = smul.u32 10, %s1310_s22  ;;  %s1312_s13 = smov (!%p234_p9, %s1103_s13), 3  ;;  %247 = vst.msk [vmem:[#allocation2] sm:$0xff] (!%p852_p10), %vm246_vm0, %v1125_v0  ;;  %248 = vst.msk [vmem:[#allocation2 + $0x8] sm:$0xff] (!%p852_p10), %vm246_vm0, %v1125_v0 }
  0x15   : > { %s228_s25 = scalar_select %p227_p8, %s1099_s12, 2 }
  0x16   : > { %s223_s26 = sadd.s32 %s965_s23, %s964_s24  ;;  %s849_s9 = sshll.u32 %s1312_s13, 1 }
  0x17   : > { %s847_s27 = sshll.u32 %s223_s26, 2  ;;  %s966_s28 = smul.u32 288, %s228_s25 }
  0x18   : > { %s1202_s4 = scalar_lea.vmem %s1287_s0, %s847_s27  ;;  %s238_s10 = sadd.s32 %s850_s8, %s849_s9 }
  0x19   : > { %s1207_s7 = scalar_lea.vmem %s1288_s1, %s966_s28  ;;  %s851_s11 = sshll.u32 %s238_s10, 2 }
  0x1a   : > { %s1213_s24 = scalar_lea.vmem %s1290_s3, %s851_s11  ;;  %245 = sbr.rel (%p852_p10) target bundleno = 33 (0x21), region = 36 }
  0x21 PF: > { %v1026_v1 = vld [vmem:[%s1207_s7 + $0x40] sm:$0xff]   ;;  %v1030_v5 = vld [vmem:[%s1207_s7 + $0x48] sm:$0xff]   ;;  %v1034_v9 = vld [vmem:[%s1207_s7 + $0x50] sm:$0xff]   ;;  %v1126_v35 = vmov 0.0   ;;  %vm1127_vm1 = vmmov 0   ;;  %vm570_vm2 = vcmask 523264  }
  0x22   : > { %v1027_v2 = vld [vmem:[%s1207_s7 + $0xc0] sm:$0xff]   ;;  %903 = vmatprep.subr.bf16.mxu0 %v1026_v1  ;;  %v1031_v6 = vld [vmem:[%s1207_s7 + $0xc8] sm:$0xff]   ;;  %v1035_v10 = vld [vmem:[%s1207_s7 + $0xd0] sm:$0xff]   ;;  %p895_p11 = scmp.ne.s32.totalorder %s1099_s12, 2 }
  0x23   : > { %v1028_v3 = vld [vmem:[%s1207_s7] sm:$0xff]   ;;  %925 = vmatprep.subr.bf16.mxu1 %v1027_v2  ;;  %v1032_v7 = vld [vmem:[%s1207_s7 + $0x8] sm:$0xff]   ;;  %v1036_v11 = vld [vmem:[%s1207_s7 + $0x10] sm:$0xff]   ;;  %vm726_vm3 = vcmask (!%p895_p11), 519168  }
  0x24   : > { %v1029_v4 = vld [vmem:[%s1207_s7 + $0x80] sm:$0xff]   ;;  %904 = vmatpush3.bf16.msra.mxu0 %v1028_v3  ;;  %v1033_v8 = vld [vmem:[%s1207_s7 + $0x88] sm:$0xff]   ;;  %v1037_v12 = vld [vmem:[%s1207_s7 + $0x90] sm:$0xff]  }
  0x25   : > { %926 = vmatpush3.bf16.msra.mxu1 %v1029_v4  ;;  %905 = vmatprep.subr.bf16.mxu0 %v1030_v5  ;;  %v1038_v13 = vld [vmem:[%s1207_s7 + $0x58] sm:$0xff]   ;;  %v1042_v17 = vld [vmem:[%s1207_s7 + $0x60] sm:$0xff]   ;;  %v1046_v21 = vld [vmem:[%s1207_s7 + $0x68] sm:$0xff]  }
  0x26   : > { %927 = vmatprep.subr.bf16.mxu1 %v1031_v6  ;;  %v1039_v14 = vld [vmem:[%s1207_s7 + $0xd8] sm:$0xff]   ;;  %v1043_v18 = vld [vmem:[%s1207_s7 + $0xe0] sm:$0xff]   ;;  %v1047_v22 = vld [vmem:[%s1207_s7 + $0xe8] sm:$0xff]  }
  0x27   : > { %v1040_v15 = vld [vmem:[%s1207_s7 + $0x18] sm:$0xff]   ;;  %v1044_v19 = vld [vmem:[%s1207_s7 + $0x20] sm:$0xff]   ;;  %v1048_v23 = vld [vmem:[%s1207_s7 + $0x28] sm:$0xff]  }
  0x28   : > { %906 = vmatpush3.bf16.msra.mxu0 %v1032_v7  ;;  %v1041_v16 = vld [vmem:[%s1207_s7 + $0x98] sm:$0xff]   ;;  %v1045_v20 = vld [vmem:[%s1207_s7 + $0xa0] sm:$0xff]   ;;  %v1049_v24 = vld [vmem:[%s1207_s7 + $0xa8] sm:$0xff]  }
  0x29   : > { %928 = vmatpush3.bf16.msra.mxu1 %v1033_v8  ;;  %907 = vmatprep.subr.bf16.mxu0 %v1034_v9  ;;  %v1050_v25 = vld [vmem:[%s1207_s7 + $0x70] sm:$0xff]   ;;  %v1054_v29 = vld [vmem:[%s1207_s7 + $0x78] sm:$0xff]   ;;  %v1063_v37 = vld [vmem:[%s1202_s4 + $0xc] ss:$20 sps:$4 sm:$0xff]  }
  0x2a   : > { %929 = vmatprep.subr.bf16.mxu1 %v1035_v10  ;;  %v1051_v26 = vld [vmem:[%s1207_s7 + $0xf0] sm:$0xff]   ;;  %v1055_v30 = vld [vmem:[%s1207_s7 + $0xf8] sm:$0xff]   ;;  %v1064_v38 = vld [vmem:[%s1207_s7 + $0x100] sm:$0xff]   ;;  %647 = vmatprep.mubr.bf16.mxu1 %v1063_v37 }
  0x2b   : > { %v1052_v27 = vld [vmem:[%s1207_s7 + $0x30] sm:$0xff]   ;;  %v1056_v31 = vld [vmem:[%s1207_s7 + $0x38] sm:$0xff]   ;;  %v1065_v39 = vld [vmem:[%s1207_s7 + $0x108] sm:$0xff]  }
  0x2c   : > { %908 = vmatpush3.bf16.msra.mxu0 %v1036_v11  ;;  %v1053_v28 = vld [vmem:[%s1207_s7 + $0xb0] sm:$0xff]   ;;  %v1057_v32 = vld [vmem:[%s1207_s7 + $0xb8] sm:$0xff]   ;;  %v249_v57 = vld [vmem:[#allocation2] sm:$0xff] }
  0x2d   : > { %930 = vmatpush3.bf16.msra.mxu1 %v1037_v12  ;;  %909 = vmatprep.subr.bf16.mxu0 %v1038_v13  ;;  %v1058_v33 = vld [vmem:[%s1202_s4] ss:$20 sps:$4 sm:$0xff]   ;;  %v1060_v34 = vld [vmem:[%s1202_s4 + $0x4] ss:$20 sps:$4 sm:$0xff]   ;;  %v1061_v36 = vld [vmem:[%s1202_s4 + $0x8] ss:$20 sps:$4 sm:$0xff]  }
  0x2e   : > { %931 = vmatprep.subr.bf16.mxu1 %v1039_v14  ;;  %606 = vmatprep.mubr.bf16.mxu0 %v1060_v34  ;;  %v1066_v40 = vld [vmem:[%s1207_s7 + $0x110] sm:$0xff]   ;;  %v1067_v41 = vld [vmem:[%s1207_s7 + $0x118] sm:$0xff]   ;;  %v250_v61 = vld [vmem:[#allocation2 + $0x8] sm:$0xff] }
  0x2f   : > { %v1068_v42 = vld [vmem:[%s1202_s4 + $0x10] ss:$20 sps:$4 sm:$0xff]   ;;  %v896_v4 = vld [vmem:[%s1289_s2] ss:$0 sm:$0xff] (!%p895_p11) }
  0x30   : > { %910 = vmatpush3.bf16.msra.mxu0 %v1040_v15 }
  0x31   : > { %932 = vmatpush3.bf16.msra.mxu1 %v1041_v16  ;;  %911 = vmatprep.subr.bf16.mxu0 %v1042_v17 }
  0x32   : > { %933 = vmatprep.subr.bf16.mxu1 %v1043_v18 }
  0x34   : > { %912 = vmatpush3.bf16.msra.mxu0 %v1044_v19 }
  0x35   : > { %934 = vmatpush3.bf16.msra.mxu1 %v1045_v20  ;;  %913 = vmatprep.subr.bf16.mxu0 %v1046_v21 }
  0x36   : > { %935 = vmatprep.subr.bf16.mxu1 %v1047_v22 }
  0x38   : > { %914 = vmatpush3.bf16.msra.mxu0 %v1048_v23 }
  0x39   : > { %936 = vmatpush3.bf16.msra.mxu1 %v1049_v24  ;;  %915 = vmatprep.subr.bf16.mxu0 %v1050_v25 }
  0x3a   : > { %937 = vmatprep.subr.bf16.mxu1 %v1051_v26 }
  0x3c   : > { %916 = vmatpush3.bf16.msra.mxu0 %v1052_v27 }
  0x3d   : > { %938 = vmatpush3.bf16.msra.mxu1 %v1053_v28  ;;  %917 = vmatprep.subr.bf16.mxu0 %v1054_v29 }
  0x3e   : > { %939 = vmatprep.subr.bf16.mxu1 %v1055_v30 }
  0x40   : > { %918 = vmatpush3.bf16.msra.mxu0 %v1056_v31 }
  0x41   : > { %940 = vmatpush3.bf16.msra.mxu1 %v1057_v32  ;;  %952 = vmatprep.subr.bf16.mxu0 %v1126_v35 }
  0x43   : > { %607 = vmatmul.mubr.bf16.vlgmr.msra.gmra.mrb[0].mxu0 %v1058_v33 }
  0x44   : > { %648 = vmatmul.mubr.bf16.vlgmr.msra.gmra.mrb[0].mxu1 %v1061_v36  ;;  %953 = vmatpush3.bf16.msra.mxu0 %v1064_v38 }
  0x45   : > { %954 = vmatprep.subr.bf16.mxu0 %v1126_v35  ;;  %960 = vmatprep.mubr.msk.bf16.mxu0 %vm1127_vm1, %v1126_v35 }
  0x48   : > { %955 = vmatpush3.bf16.msra.mxu0 %v1065_v39 }
  0x49   : > { %956 = vmatprep.subr.bf16.mxu0 %v1126_v35 }
  0x4c   : > { %957 = vmatpush3.bf16.msra.mxu0 %v1066_v40 }
  0x4d   : > { %958 = vmatprep.subr.bf16.mxu0 %v1126_v35 }
  0x50   : > { %959 = vmatpush3.bf16.msra.mxu0 %v1067_v41 }
  0x53   : > { %961 = vmatmul.mubr.msk.bf16.vlgmr.msra.gmra.mrb[4].mxu0 %vm570_vm2, %v1068_v42 }
 0x116   : > { %v919_v43 = vpop.f32.mrb[0].mxu0 }
 0x117   : > { %v941_v44 = vpop.f32.mrb[0].mxu1  ;;  %v920_v45 = vpop.f32.mrb[1].mxu0 }
 0x118   : > { %v921_v46 = vadd.f32 %v920_v45, %v919_v43  ;;  %v942_v47 = vpop.f32.mrb[1].mxu1  ;;  %v922_v48 = vpop.f32.mrb[2].mxu0 }
 0x119   : > { %v943_v49 = vadd.f32 %v942_v47, %v941_v44  ;;  %v944_v50 = vpop.f32.mrb[2].mxu1  ;;  %v923_v51 = vpop.f32.mrb[3].mxu0 }
 0x11a   : > { %v924_v52 = vadd.f32 %v923_v51, %v922_v48  ;;  %v945_v53 = vpop.f32.mrb[3].mxu1 }
 0x11b   : > { %v946_v54 = vadd.f32 %v945_v53, %v944_v50  ;;  %v650_v55 = vadd.f32 %v943_v49, %v921_v46 }
 0x11d   : > { %v653_v56 = vadd.f32 %v946_v54, %v924_v52 }
 0x126   : > { %v690_v58 = vpop.f32.mrb[4].mxu0 }
 0x127   : > { %v691_v59 = vadd.f32 %v690_v58, %v650_v55  ;;  %v962_v60 = vpop.f32.mrb[5].mxu0  ;;  %704 = sbr.rel (%p895_p11) target bundleno = 316 (0x13c), region = 40 }
 0x128   : > { %v693_v62 = vpop.f32.mrb[6].mxu0 }
 0x129   : > { %v697_v63 = vadd.f32 %v691_v59, %v249_v57  ;;  %v694_v0 = vadd.f32 %v693_v62, %v653_v56  ;;  %v963_v1 = vpop.f32.mrb[7].mxu0 }
 0x12b   : > { %699 = vst.msk [vmem:[#allocation2] sm:$0xff] %vm570_vm2, %v697_v63  ;;  %v698_v2 = vadd.f32 %v694_v0, %v250_v61 }
 0x12d   : > { %700 = vst.msk [vmem:[#allocation2 + $0x8] sm:$0xff] %vm570_vm2, %v698_v2 }
 0x132   : > { %v705_v3 = vld [vmem:[#allocation2] sm:$0xff] }
 0x133   : > { %v714_v6 = vadd.f32 %v896_v4, %v705_v3 }
 0x134   : > { %v706_v5 = vld [vmem:[#allocation2 + $0x8] sm:$0xff] }
 0x135   : > { %v715_v7 = vadd.f32 %v896_v4, %v706_v5  ;;  %v716_v8 = vmax.f32 %v714_v6, 0.0 }
 0x137   : > { %v717_v9 = vmax.f32 %v715_v7, 0.0  ;;  %v901_v10 = vpack.c.bf16 %v716_v8, %v716_v8 }
 0x139   : > { %v902_v11 = vpack.c.bf16 %v717_v9, %v717_v9  ;;  %727 = vst.msk [vmem:[%s1213_s24] sm:$0xf] %vm726_vm3, %v901_v10 }
 0x13b   : > { %728 = vst.msk [vmem:[%s1213_s24 + $0x4] sm:$0xf] %vm726_vm3, %v902_v11 }
 0x13c PF: > { %s13_s18 = sadd.s32 1, %s1123_s18   ;;  %s1291_s12 = smov %s1111_s15 }
 0x13d   : > { %p10_p12 = scmp.ge.s32.totalorder %s13_s18, 26   ;;  %s1292_s13 = smov %s1115_s16 }
 0x13e   : > { %s1293_s14 = smov %s1119_s17  ;;  %s1294_s15 = smov %s1298_s19 }
 0x13f   : > { %s1295_s16 = smov %s1302_s20  ;;  %s1296_s17 = smov %s1306_s21 }
 0x140   :  { %12 = sbr.rel (!%p10_p12) target bundleno = 4 (0x4), region = 73 }

// kernel: scmnet_forward.38
= control target key start
LH: loop header
LB: loop body
LE: loop exit
PB: predicated region body
PF: predicated region fallthrough
CT: control target
= control target key end

     0   :  { %s1121_s12 = smov 0   ;;  %s1123_s13 = smov 0   ;;  %s1253_s0 = inlined_call_operand.vmem [shape: bf16[2,6,4,576], index: 0, kind: input, shape index: {}]   ;;  %s1254_s1 = inlined_call_operand.vmem [shape: bf16[3,576,64], index: 1, kind: input, shape index: {}]   ;;  %s1255_s2 = inlined_call_operand.vmem [shape: f32[1,64], index: 2, kind: input, shape index: {}]   ;;  %s1256_s3 = inlined_call_operand.vmem [shape: bf16[2,2,4,64], index: 3, kind: output, shape index: {}]  }
   0x1   :  { %s1125_s14 = smov 0   ;;  %s1127_s15 = smov 0  }
   0x2   :  { %s1129_s16 = smov 0   ;;  %s1131_s17 = smov 0  }
   0x3   :  { %s1133_s18 = smov 0  }
   0x4 LB: > { %s25_s19 = sadd.s32 1, %s1083_s15  ;;  %s28_s20 = sadd.s32 1, %s1087_s16  ;;  %s1095_s18 = sphi %s1133_s18, %s13_s18   ;;  %s1091_s17 = sphi %s1131_s17, %s1262_s17   ;;  %s1087_s16 = sphi %s1129_s16, %s1261_s16   ;;  %s1083_s15 = sphi %s1127_s15, %s1260_s15   ;;  %s1079_s14 = sphi %s1125_s14, %s1259_s14   ;;  %s1075_s13 = sphi %s1123_s13, %s1258_s13   ;;  %s1071_s12 = sphi %s1121_s12, %s1257_s12  }
   0x5   : > { %p26_p0 = scmp.ge.s32.totalorder %s25_s19, 3  ;;  %p831_p1 = scmp.ge.s32.totalorder %s1095_s18, 1 }
   0x6   : > { %p182_p2 = scmp.lt.s32.totalorder %s1095_s18, 13  ;;  %s32_s21 = sadd.s32 1, %s1091_s17 }
   0x7   : > { %s1264_s19 = smov (%p26_p0, %s25_s19), 0  ;;  %s1266_s20 = smov (!%p26_p0, %s28_s20), %s1087_s16 }
   0x8   : > { %p183_p3 = pnand %p831_p1, %p182_p2  ;;  %p30_p4 = scmp.ge.s32.totalorder %s1266_s20, 2 }
   0x9   : > { %s832_s22 = sshll.u32 (!%p183_p3), %s1075_s13, 1  ;;  %p222_p6 = scmp.lt.s32.totalorder (!%p183_p3), %s1079_s14, 1 }
   0xa   : > { %s1268_s20 = smov (%p30_p4, %s1266_s20), 0  ;;  %s1270_s21 = smov (!%p30_p4, %s32_s21), %s1091_s17 }
   0xb   : > { %p34_p5 = scmp.ge.s32.totalorder %s1270_s21, 2  ;;  %186 = sbr.rel (%p183_p3) target bundleno = 314 (0x13a), region = 32 }
   0xc   : > { %s221_s23 = sadd.s32 (!%p183_p3), %s1071_s12, %s832_s22  ;;  %p233_p7 = scmp.lt.s32.totalorder (!%p183_p3), %s1071_s12, 2 }
   0xd   : > { %s1272_s21 = smov (%p34_p5, %s1270_s21), 0  ;;  %p224_p8 = scmp.lt.s32.totalorder (!%p183_p3), %s221_s23, 5 }
   0xe   : > { %p240_p9 = scmp.lt.s32.totalorder (!%p183_p3), %s1075_s13, 1  ;;  %p837_p10 = scmp.ne.s32.totalorder (!%p183_p3), %s1071_s12, 0 }
  0x12   : > { %s1274_s14 = smov (!%p222_p6, %s1079_s14), 1  ;;  %s1276_s23 = smov (!%p224_p8, %s221_s23), 5 }
  0x13   : > { %s942_s24 = smul.u32 30, %s1274_s14  ;;  %s835_s9 = sshll.u32 %s1274_s14, 1  ;;  %vm251_vm0 = vcmask (!%p837_p10), 519168   ;;  %v1097_v0 = vmov (!%p837_p10), 0.0  }
  0x14   : > { %s234_s25 = scalar_select %p233_p7, %s1071_s12, 2 }
  0x15   : > { %s941_s26 = smul.u32 5, %s1276_s23  ;;  %s1278_s13 = smov (!%p240_p9, %s1075_s13), 1  ;;  %252 = vst.msk [vmem:[#allocation2] sm:$0xf] (!%p837_p10), %vm251_vm0, %v1097_v0 }
  0x16   : > { %s943_s27 = smul.u32 288, %s234_s25  ;;  %s243_s10 = sadd.s32 %s835_s9, %s1278_s13 }
  0x17   : > { %s228_s28 = sadd.s32 %s942_s24, %s941_s26  ;;  %s836_s11 = sshll.u32 %s243_s10, 1 }
  0x18   : > { %s833_s29 = sshll.u32 %s228_s28, 1  ;;  %s1175_s5 = scalar_lea.vmem %s1254_s1, %s943_s27 }
  0x19   : > { %s1180_s8 = scalar_lea.vmem %s1253_s0, %s833_s29  ;;  %s1186_s25 = scalar_lea.vmem %s1256_s3, %s836_s11 }
  0x1a   : > { %250 = sbr.rel (%p837_p10) target bundleno = 33 (0x21), region = 36 }
  0x21 PF: > { %v1004_v1 = vld [vmem:[%s1175_s5 + $0x40] sm:$0xff]   ;;  %v1008_v5 = vld [vmem:[%s1175_s5 + $0x48] sm:$0xff]   ;;  %v1012_v9 = vld [vmem:[%s1175_s5 + $0x50] sm:$0xff]   ;;  %v334_v30 = vlaneseq  ;;  %v1098_v36 = vmov 1983009808   ;;  %v1099_v38 = vmov 0.0  }
  0x22   : > { %v1005_v2 = vld [vmem:[%s1175_s5 + $0xc0] sm:$0xff]   ;;  %880 = vmatprep.subr.bf16.mxu0 %v1004_v1  ;;  %v1009_v6 = vld [vmem:[%s1175_s5 + $0xc8] sm:$0xff]   ;;  %v1013_v10 = vld [vmem:[%s1175_s5 + $0xd0] sm:$0xff]   ;;  %v332_v37 = vunpack.c.l.s4 %v1098_v36  ;;  %vm1100_vm1 = vmmov 0   ;;  %vm574_vm2 = vcmask 523264   ;;  %vm699_vm3 = vcmask 519168  }
  0x23   : > { %v1006_v3 = vld [vmem:[%s1175_s5] sm:$0xff]   ;;  %902 = vmatprep.subr.bf16.mxu1 %v1005_v2  ;;  %v1010_v7 = vld [vmem:[%s1175_s5 + $0x8] sm:$0xff]   ;;  %v1014_v11 = vld [vmem:[%s1175_s5 + $0x10] sm:$0xff]   ;;  %v335_v35 = vshrl.u32 %v334_v30, 7  ;;  %p876_p11 = scmp.ne.s32.totalorder %s1071_s12, 2 }
  0x24   : > { %v1007_v4 = vld [vmem:[%s1175_s5 + $0x80] sm:$0xff]   ;;  %881 = vmatpush3.bf16.msra.mxu0 %v1006_v3  ;;  %v1011_v8 = vld [vmem:[%s1175_s5 + $0x88] sm:$0xff]   ;;  %v1015_v12 = vld [vmem:[%s1175_s5 + $0x90] sm:$0xff]   ;;  %v333_v39 = vunpack.c.0.s8 %v332_v37  ;;  %vm716_vm4 = vcmask (!%p876_p11), 517120  }
  0x25   : > { %903 = vmatpush3.bf16.msra.mxu1 %v1007_v4  ;;  %882 = vmatprep.subr.bf16.mxu0 %v1008_v5  ;;  %v1016_v13 = vld [vmem:[%s1175_s5 + $0x58] sm:$0xff]   ;;  %v1020_v17 = vld [vmem:[%s1175_s5 + $0x60] sm:$0xff]   ;;  %v1024_v21 = vld [vmem:[%s1175_s5 + $0x68] sm:$0xff]  }
  0x26   : > { %904 = vmatprep.subr.bf16.mxu1 %v1009_v6  ;;  %v1017_v14 = vld [vmem:[%s1175_s5 + $0xd8] sm:$0xff]   ;;  %v1021_v18 = vld [vmem:[%s1175_s5 + $0xe0] sm:$0xff]   ;;  %v1025_v22 = vld [vmem:[%s1175_s5 + $0xe8] sm:$0xff]   ;;  %v336_v41 = vsub.s32 %v333_v39, %v335_v35 }
  0x27   : > { %v1018_v15 = vld [vmem:[%s1175_s5 + $0x18] sm:$0xff]   ;;  %v1022_v19 = vld [vmem:[%s1175_s5 + $0x20] sm:$0xff]   ;;  %v1026_v23 = vld [vmem:[%s1175_s5 + $0x28] sm:$0xff]  }
  0x28   : > { %883 = vmatpush3.bf16.msra.mxu0 %v1010_v7  ;;  %v1019_v16 = vld [vmem:[%s1175_s5 + $0x98] sm:$0xff]   ;;  %v1023_v20 = vld [vmem:[%s1175_s5 + $0xa0] sm:$0xff]   ;;  %v1027_v24 = vld [vmem:[%s1175_s5 + $0xa8] sm:$0xff]  }
  0x29   : > { %905 = vmatpush3.bf16.msra.mxu1 %v1011_v8  ;;  %884 = vmatprep.subr.bf16.mxu0 %v1012_v9  ;;  %v1028_v25 = vld [vmem:[%s1175_s5 + $0x70] sm:$0xff]   ;;  %v1032_v29 = vld [vmem:[%s1175_s5 + $0x78] sm:$0xff]   ;;  %v254_v34 = vld [vmem:[%s1180_s8] sm:$0xff] }
  0x2a   : > { %906 = vmatprep.subr.bf16.mxu1 %v1013_v10  ;;  %v1029_v26 = vld [vmem:[%s1175_s5 + $0xf0] sm:$0xff]   ;;  %v1033_v31 = vld [vmem:[%s1175_s5 + $0xf8] sm:$0xff]   ;;  %v330_v40 = vcombine.high %v254_v34, %v254_v34  ;;  %v337_v42 = vrot.slane %v254_v34, %v336_v41  ;;  %v1037_v46 = vld [vmem:[%s1175_s5 + $0x100] sm:$0xff]  }
  0x2b   : > { %v1030_v27 = vld [vmem:[%s1175_s5 + $0x30] sm:$0xff]   ;;  %v1034_v32 = vld [vmem:[%s1175_s5 + $0x38] sm:$0xff]   ;;  %v1038_v47 = vld [vmem:[%s1175_s5 + $0x108] sm:$0xff]  }
  0x2c   : > { %885 = vmatpush3.bf16.msra.mxu0 %v1014_v11  ;;  %v1031_v28 = vld [vmem:[%s1175_s5 + $0xb0] sm:$0xff]   ;;  %v1035_v33 = vld [vmem:[%s1175_s5 + $0xb8] sm:$0xff]   ;;  %v344_v43 = vrot.slane %v330_v40, %v336_v41  ;;  %v345_v44 = vcombine.high %v337_v42, %v337_v42  ;;  %v838_v50 = vld.sshfl [vmem:[%s1180_s8 + $0x8] sm:$0x3 pattern:$0x76325410] }
  0x2d   : > { %907 = vmatpush3.bf16.msra.mxu1 %v1015_v12  ;;  %886 = vmatprep.subr.bf16.mxu0 %v1016_v13  ;;  %v1039_v48 = vld [vmem:[%s1175_s5 + $0x110] sm:$0xff]   ;;  %v1040_v49 = vld [vmem:[%s1175_s5 + $0x118] sm:$0xff]   ;;  %v253_v62 = vld [vmem:[#allocation2] sm:$0xf] }
  0x2e   : > { %908 = vmatprep.subr.bf16.mxu1 %v1017_v14  ;;  %v346_v45 = vcombine.high %v344_v43, %v344_v43  ;;  %610 = vmatprep.mubr.bf16.mxu0 %v345_v44  ;;  %v877_v6 = vld [vmem:[%s1255_s2] ss:$0 sm:$0xff] (!%p876_p11) }
  0x30   : > { %887 = vmatpush3.bf16.msra.mxu0 %v1018_v15  ;;  %650 = vmatprep.mubr.bf16.mxu1 %v346_v45 }
  0x31   : > { %909 = vmatpush3.bf16.msra.mxu1 %v1019_v16  ;;  %888 = vmatprep.subr.bf16.mxu0 %v1020_v17 }
  0x32   : > { %910 = vmatprep.subr.bf16.mxu1 %v1021_v18 }
  0x34   : > { %889 = vmatpush3.bf16.msra.mxu0 %v1022_v19 }
  0x35   : > { %911 = vmatpush3.bf16.msra.mxu1 %v1023_v20  ;;  %890 = vmatprep.subr.bf16.mxu0 %v1024_v21 }
  0x36   : > { %912 = vmatprep.subr.bf16.mxu1 %v1025_v22 }
  0x38   : > { %891 = vmatpush3.bf16.msra.mxu0 %v1026_v23 }
  0x39   : > { %913 = vmatpush3.bf16.msra.mxu1 %v1027_v24  ;;  %892 = vmatprep.subr.bf16.mxu0 %v1028_v25 }
  0x3a   : > { %914 = vmatprep.subr.bf16.mxu1 %v1029_v26 }
  0x3c   : > { %893 = vmatpush3.bf16.msra.mxu0 %v1030_v27 }
  0x3d   : > { %915 = vmatpush3.bf16.msra.mxu1 %v1031_v28  ;;  %894 = vmatprep.subr.bf16.mxu0 %v1032_v29 }
  0x3e   : > { %916 = vmatprep.subr.bf16.mxu1 %v1033_v31 }
  0x40   : > { %895 = vmatpush3.bf16.msra.mxu0 %v1034_v32 }
  0x41   : > { %917 = vmatpush3.bf16.msra.mxu1 %v1035_v33  ;;  %929 = vmatprep.subr.bf16.mxu0 %v1099_v38 }
  0x43   : > { %611 = vmatmul.mubr.bf16.vlgmr.msra.gmra.mrb[0].mxu0 %v337_v42 }
  0x44   : > { %651 = vmatmul.mubr.bf16.vlgmr.msra.gmra.mrb[0].mxu1 %v344_v43  ;;  %930 = vmatpush3.bf16.msra.mxu0 %v1037_v46 }
  0x45   : > { %937 = vmatprep.mubr.msk.bf16.mxu0 %vm1100_vm1, %v1099_v38  ;;  %931 = vmatprep.subr.bf16.mxu0 %v1099_v38 }
  0x48   : > { %932 = vmatpush3.bf16.msra.mxu0 %v1038_v47 }
  0x49   : > { %933 = vmatprep.subr.bf16.mxu0 %v1099_v38 }
  0x4c   : > { %934 = vmatpush3.bf16.msra.mxu0 %v1039_v48 }
  0x4d   : > { %935 = vmatprep.subr.bf16.mxu0 %v1099_v38 }
  0x50   : > { %936 = vmatpush3.bf16.msra.mxu0 %v1040_v49 }
  0x53   : > { %938 = vmatmul.mubr.msk.bf16.vlgmr.msra.gmra.mrb[4].mxu0 %vm574_vm2, %v838_v50 }
 0x116   : > { %v896_v51 = vpop.f32.mrb[0].mxu0 }
 0x117   : > { %v918_v52 = vpop.f32.mrb[0].mxu1  ;;  %v897_v53 = vpop.f32.mrb[1].mxu0 }
 0x118   : > { %v919_v54 = vpop.f32.mrb[1].mxu1  ;;  %v898_v55 = vadd.f32 %v897_v53, %v896_v51  ;;  %v899_v57 = vpop.f32.mrb[2].mxu0 }
 0x119   : > { %v920_v56 = vadd.f32 %v919_v54, %v918_v52  ;;  %v921_v58 = vpop.f32.mrb[2].mxu1  ;;  %v900_v59 = vpop.f32.mrb[3].mxu0 }
 0x11a   : > { %v922_v60 = vpop.f32.mrb[3].mxu1 }
 0x11b   : > { %v653_v61 = vadd.f32 %v920_v56, %v898_v55 }
 0x125   : > { %704 = sbr.rel (%p876_p11) target bundleno = 314 (0x13a), region = 40 }
 0x126   : > { %v692_v63 = vpop.f32.mrb[4].mxu0 }
 0x127   : > { %v693_v0 = vadd.f32 %v692_v63, %v653_v61  ;;  %v939_v1 = vpop.f32.mrb[5].mxu0 }
 0x128   : > { %v695_v2 = vpop.f32.mrb[6].mxu0 }
 0x129   : > { %v698_v3 = vadd.f32 %v693_v0, %v253_v62  ;;  %v940_v4 = vpop.f32.mrb[7].mxu0 }
 0x12b   : > { %700 = vst.msk [vmem:[#allocation2] sm:$0xf] %vm699_vm3, %v698_v3 }
 0x132   : > { %v705_v5 = vld [vmem:[#allocation2] sm:$0xf] }
 0x133   : > { %v713_v7 = vadd.f32 %v877_v6, %v705_v5 }
 0x135   : > { %v714_v8 = vmax.f32 %v713_v7, 0.0 }
 0x137   : > { %v715_v9 = vpack.c.bf16 %v714_v8, %v714_v8 }
 0x139   : > { %717 = vst.msk [vmem:[%s1186_s25] sm:$0x3] %vm716_vm4, %v715_v9 }
 0x13a PF: > { %s13_s18 = sadd.s32 1, %s1095_s18   ;;  %s1257_s12 = smov %s1083_s15 }
 0x13b   : > { %p10_p12 = scmp.ge.s32.totalorder %s13_s18, 14   ;;  %s1258_s13 = smov %s1087_s16 }
 0x13c   : > { %s1259_s14 = smov %s1091_s17  ;;  %s1260_s15 = smov %s1264_s19 }
 0x13d   : > { %s1261_s16 = smov %s1268_s20  ;;  %s1262_s17 = smov %s1272_s21 }
 0x13e   :  { %12 = sbr.rel (!%p10_p12) target bundleno = 4 (0x4), region = 73 }

// kernel: scmnet_forward.39
= control target key start
LH: loop header
LB: loop body
LE: loop exit
PB: predicated region body
PF: predicated region fallthrough
CT: control target
= control target key end

     0   :  { %s1111_s12 = smov 0   ;;  %s1113_s13 = smov 0   ;;  %s1243_s0 = inlined_call_operand.vmem [shape: bf16[2,4,4,576], index: 0, kind: input, shape index: {}]   ;;  %s1244_s1 = inlined_call_operand.vmem [shape: bf16[3,576,64], index: 1, kind: input, shape index: {}]   ;;  %s1245_s2 = inlined_call_operand.vmem [shape: f32[1,64], index: 2, kind: input, shape index: {}]   ;;  %s1246_s3 = inlined_call_operand.vmem [shape: bf16[2,2,4,64], index: 3, kind: output, shape index: {}]  }
   0x1   :  { %s1115_s14 = smov 0   ;;  %s1117_s15 = smov 0  }
   0x2   :  { %s1119_s16 = smov 0   ;;  %s1121_s17 = smov 0  }
   0x3   :  { %s1123_s18 = smov 0  }
   0x4 LB: > { %s25_s19 = sadd.s32 1, %s1073_s15  ;;  %s28_s20 = sadd.s32 1, %s1077_s16  ;;  %s1085_s18 = sphi %s1123_s18, %s13_s18   ;;  %s1081_s17 = sphi %s1121_s17, %s1252_s17   ;;  %s1077_s16 = sphi %s1119_s16, %s1251_s16   ;;  %s1073_s15 = sphi %s1117_s15, %s1250_s15   ;;  %s1069_s14 = sphi %s1115_s14, %s1249_s14   ;;  %s1065_s13 = sphi %s1113_s13, %s1248_s13   ;;  %s1061_s12 = sphi %s1111_s12, %s1247_s12  }
   0x5   : > { %p26_p0 = scmp.ge.s32.totalorder %s25_s19, 3  ;;  %p822_p1 = scmp.ge.s32.totalorder %s1085_s18, 1 }
   0x6   : > { %p178_p2 = scmp.lt.s32.totalorder %s1085_s18, 13  ;;  %s32_s21 = sadd.s32 1, %s1081_s17 }
   0x7   : > { %s1254_s19 = smov (%p26_p0, %s25_s19), 0  ;;  %s1256_s20 = smov (!%p26_p0, %s28_s20), %s1077_s16 }
   0x8   : > { %p179_p3 = pnand %p822_p1, %p178_p2  ;;  %p30_p4 = scmp.ge.s32.totalorder %s1256_s20, 2 }
   0x9   : > { %s215_s22 = sadd.s32 (!%p179_p3), %s1061_s12, %s1065_s13  ;;  %p216_p6 = scmp.lt.s32.totalorder (!%p179_p3), %s1069_s14, 1 }
   0xa   : > { %s1258_s20 = smov (%p30_p4, %s1256_s20), 0  ;;  %s1260_s21 = smov (!%p30_p4, %s32_s21), %s1081_s17 }
   0xb   : > { %p34_p5 = scmp.ge.s32.totalorder %s1260_s21, 2  ;;  %182 = sbr.rel (%p179_p3) target bundleno = 314 (0x13a), region = 32 }
   0xc   : > { %p218_p7 = scmp.lt.s32.totalorder (!%p179_p3), %s215_s22, 3  ;;  %p226_p8 = scmp.lt.s32.totalorder (!%p179_p3), %s1061_s12, 2 }
   0xd   : > { %s1262_s21 = smov (%p34_p5, %s1260_s21), 0  ;;  %p233_p9 = scmp.lt.s32.totalorder (!%p179_p3), %s1065_s13, 1 }
   0xe   : > { %p827_p10 = scmp.ne.s32.totalorder (!%p179_p3), %s1061_s12, 0 }
  0x12   : > { %s1264_s14 = smov (!%p216_p6, %s1069_s14), 1  ;;  %s1266_s22 = smov (!%p218_p7, %s215_s22), 3 }
  0x13   : > { %s932_s23 = smul.u32 20, %s1264_s14  ;;  %s825_s8 = sshll.u32 %s1264_s14, 1  ;;  %vm244_vm0 = vcmask (!%p827_p10), 519168   ;;  %v1087_v0 = vmov (!%p827_p10), 0.0  }
  0x14   : > { %s931_s24 = smul.u32 5, %s1266_s22  ;;  %s1268_s13 = smov (!%p233_p9, %s1065_s13), 1  ;;  %245 = vst.msk [vmem:[#allocation2] sm:$0xf] (!%p827_p10), %vm244_vm0, %v1087_v0 }
  0x15   : > { %s227_s25 = scalar_select %p226_p8, %s1061_s12, 2 }
  0x16   : > { %s222_s26 = sadd.s32 %s932_s23, %s931_s24  ;;  %s236_s9 = sadd.s32 %s825_s8, %s1268_s13 }
  0x17   : > { %s823_s27 = sshll.u32 %s222_s26, 1  ;;  %s933_s28 = smul.u32 288, %s227_s25 }
  0x18   : > { %s1165_s4 = scalar_lea.vmem %s1243_s0, %s823_s27  ;;  %s826_s10 = sshll.u32 %s236_s9, 1 }
  0x19   : > { %s1170_s7 = scalar_lea.vmem %s1244_s1, %s933_s28  ;;  %s1176_s23 = scalar_lea.vmem %s1246_s3, %s826_s10 }
  0x1a   : > { %243 = sbr.rel (%p827_p10) target bundleno = 33 (0x21), region = 36 }
  0x21 PF: > { %v994_v1 = vld [vmem:[%s1170_s7 + $0x40] sm:$0xff]   ;;  %v998_v5 = vld [vmem:[%s1170_s7 + $0x48] sm:$0xff]   ;;  %v1002_v9 = vld [vmem:[%s1170_s7 + $0x50] sm:$0xff]   ;;  %v327_v30 = vlaneseq  ;;  %v1088_v36 = vmov 1983009808   ;;  %v1089_v38 = vmov 0.0  }
  0x22   : > { %v995_v2 = vld [vmem:[%s1170_s7 + $0xc0] sm:$0xff]   ;;  %870 = vmatprep.subr.bf16.mxu0 %v994_v1  ;;  %v999_v6 = vld [vmem:[%s1170_s7 + $0xc8] sm:$0xff]   ;;  %v1003_v10 = vld [vmem:[%s1170_s7 + $0xd0] sm:$0xff]   ;;  %v325_v37 = vunpack.c.l.s4 %v1088_v36  ;;  %vm1090_vm1 = vmmov 0   ;;  %vm567_vm2 = vcmask 523264   ;;  %vm692_vm3 = vcmask 519168  }
  0x23   : > { %v996_v3 = vld [vmem:[%s1170_s7] sm:$0xff]   ;;  %892 = vmatprep.subr.bf16.mxu1 %v995_v2  ;;  %v1000_v7 = vld [vmem:[%s1170_s7 + $0x8] sm:$0xff]   ;;  %v1004_v11 = vld [vmem:[%s1170_s7 + $0x10] sm:$0xff]   ;;  %v328_v35 = vshrl.u32 %v327_v30, 7  ;;  %p866_p11 = scmp.ne.s32.totalorder %s1061_s12, 2 }
  0x24   : > { %v997_v4 = vld [vmem:[%s1170_s7 + $0x80] sm:$0xff]   ;;  %871 = vmatpush3.bf16.msra.mxu0 %v996_v3  ;;  %v1001_v8 = vld [vmem:[%s1170_s7 + $0x88] sm:$0xff]   ;;  %v1005_v12 = vld [vmem:[%s1170_s7 + $0x90] sm:$0xff]   ;;  %v326_v39 = vunpack.c.0.s8 %v325_v37  ;;  %vm709_vm4 = vcmask (!%p866_p11), 517120  }
  0x25   : > { %893 = vmatpush3.bf16.msra.mxu1 %v997_v4  ;;  %872 = vmatprep.subr.bf16.mxu0 %v998_v5  ;;  %v1006_v13 = vld [vmem:[%s1170_s7 + $0x58] sm:$0xff]   ;;  %v1010_v17 = vld [vmem:[%s1170_s7 + $0x60] sm:$0xff]   ;;  %v1014_v21 = vld [vmem:[%s1170_s7 + $0x68] sm:$0xff]  }
  0x26   : > { %894 = vmatprep.subr.bf16.mxu1 %v999_v6  ;;  %v1007_v14 = vld [vmem:[%s1170_s7 + $0xd8] sm:$0xff]   ;;  %v1011_v18 = vld [vmem:[%s1170_s7 + $0xe0] sm:$0xff]   ;;  %v1015_v22 = vld [vmem:[%s1170_s7 + $0xe8] sm:$0xff]   ;;  %v329_v41 = vsub.s32 %v326_v39, %v328_v35 }
  0x27   : > { %v1008_v15 = vld [vmem:[%s1170_s7 + $0x18] sm:$0xff]   ;;  %v1012_v19 = vld [vmem:[%s1170_s7 + $0x20] sm:$0xff]   ;;  %v1016_v23 = vld [vmem:[%s1170_s7 + $0x28] sm:$0xff]  }
  0x28   : > { %873 = vmatpush3.bf16.msra.mxu0 %v1000_v7  ;;  %v1009_v16 = vld [vmem:[%s1170_s7 + $0x98] sm:$0xff]   ;;  %v1013_v20 = vld [vmem:[%s1170_s7 + $0xa0] sm:$0xff]   ;;  %v1017_v24 = vld [vmem:[%s1170_s7 + $0xa8] sm:$0xff]  }
  0x29   : > { %895 = vmatpush3.bf16.msra.mxu1 %v1001_v8  ;;  %874 = vmatprep.subr.bf16.mxu0 %v1002_v9  ;;  %v1018_v25 = vld [vmem:[%s1170_s7 + $0x70] sm:$0xff]   ;;  %v1022_v29 = vld [vmem:[%s1170_s7 + $0x78] sm:$0xff]   ;;  %v247_v34 = vld [vmem:[%s1165_s4] sm:$0xff] }
  0x2a   : > { %896 = vmatprep.subr.bf16.mxu1 %v1003_v10  ;;  %v1019_v26 = vld [vmem:[%s1170_s7 + $0xf0] sm:$0xff]   ;;  %v1023_v31 = vld [vmem:[%s1170_s7 + $0xf8] sm:$0xff]   ;;  %v323_v40 = vcombine.high %v247_v34, %v247_v34  ;;  %v330_v42 = vrot.slane %v247_v34, %v329_v41  ;;  %v1027_v46 = vld [vmem:[%s1170_s7 + $0x100] sm:$0xff]  }
  0x2b   : > { %v1020_v27 = vld [vmem:[%s1170_s7 + $0x30] sm:$0xff]   ;;  %v1024_v32 = vld [vmem:[%s1170_s7 + $0x38] sm:$0xff]   ;;  %v1028_v47 = vld [vmem:[%s1170_s7 + $0x108] sm:$0xff]  }
  0x2c   : > { %875 = vmatpush3.bf16.msra.mxu0 %v1004_v11  ;;  %v1021_v28 = vld [vmem:[%s1170_s7 + $0xb0] sm:$0xff]   ;;  %v1025_v33 = vld [vmem:[%s1170_s7 + $0xb8] sm:$0xff]   ;;  %v337_v43 = vrot.slane %v323_v40, %v329_v41  ;;  %v338_v44 = vcombine.high %v330_v42, %v330_v42  ;;  %v828_v50 = vld.sshfl [vmem:[%s1165_s4 + $0x8] sm:$0x3 pattern:$0x76325410] }
  0x2d   : > { %897 = vmatpush3.bf16.msra.mxu1 %v1005_v12  ;;  %876 = vmatprep.subr.bf16.mxu0 %v1006_v13  ;;  %v1029_v48 = vld [vmem:[%s1170_s7 + $0x110] sm:$0xff]   ;;  %v1030_v49 = vld [vmem:[%s1170_s7 + $0x118] sm:$0xff]   ;;  %v246_v62 = vld [vmem:[#allocation2] sm:$0xf] }
  0x2e   : > { %898 = vmatprep.subr.bf16.mxu1 %v1007_v14  ;;  %v339_v45 = vcombine.high %v337_v43, %v337_v43  ;;  %603 = vmatprep.mubr.bf16.mxu0 %v338_v44  ;;  %v867_v6 = vld [vmem:[%s1245_s2] ss:$0 sm:$0xff] (!%p866_p11) }
  0x30   : > { %877 = vmatpush3.bf16.msra.mxu0 %v1008_v15  ;;  %643 = vmatprep.mubr.bf16.mxu1 %v339_v45 }
  0x31   : > { %899 = vmatpush3.bf16.msra.mxu1 %v1009_v16  ;;  %878 = vmatprep.subr.bf16.mxu0 %v1010_v17 }
  0x32   : > { %900 = vmatprep.subr.bf16.mxu1 %v1011_v18 }
  0x34   : > { %879 = vmatpush3.bf16.msra.mxu0 %v1012_v19 }
  0x35   : > { %901 = vmatpush3.bf16.msra.mxu1 %v1013_v20  ;;  %880 = vmatprep.subr.bf16.mxu0 %v1014_v21 }
  0x36   : > { %902 = vmatprep.subr.bf16.mxu1 %v1015_v22 }
  0x38   : > { %881 = vmatpush3.bf16.msra.mxu0 %v1016_v23 }
  0x39   : > { %903 = vmatpush3.bf16.msra.mxu1 %v1017_v24  ;;  %882 = vmatprep.subr.bf16.mxu0 %v1018_v25 }
  0x3a   : > { %904 = vmatprep.subr.bf16.mxu1 %v1019_v26 }
  0x3c   : > { %883 = vmatpush3.bf16.msra.mxu0 %v1020_v27 }
  0x3d   : > { %905 = vmatpush3.bf16.msra.mxu1 %v1021_v28  ;;  %884 = vmatprep.subr.bf16.mxu0 %v1022_v29 }
  0x3e   : > { %906 = vmatprep.subr.bf16.mxu1 %v1023_v31 }
  0x40   : > { %885 = vmatpush3.bf16.msra.mxu0 %v1024_v32 }
  0x41   : > { %907 = vmatpush3.bf16.msra.mxu1 %v1025_v33  ;;  %919 = vmatprep.subr.bf16.mxu0 %v1089_v38 }
  0x43   : > { %604 = vmatmul.mubr.bf16.vlgmr.msra.gmra.mrb[0].mxu0 %v330_v42 }
  0x44   : > { %644 = vmatmul.mubr.bf16.vlgmr.msra.gmra.mrb[0].mxu1 %v337_v43  ;;  %920 = vmatpush3.bf16.msra.mxu0 %v1027_v46 }
  0x45   : > { %927 = vmatprep.mubr.msk.bf16.mxu0 %vm1090_vm1, %v1089_v38  ;;  %921 = vmatprep.subr.bf16.mxu0 %v1089_v38 }
  0x48   : > { %922 = vmatpush3.bf16.msra.mxu0 %v1028_v47 }
  0x49   : > { %923 = vmatprep.subr.bf16.mxu0 %v1089_v38 }
  0x4c   : > { %924 = vmatpush3.bf16.msra.mxu0 %v1029_v48 }
  0x4d   : > { %925 = vmatprep.subr.bf16.mxu0 %v1089_v38 }
  0x50   : > { %926 = vmatpush3.bf16.msra.mxu0 %v1030_v49 }
  0x53   : > { %928 = vmatmul.mubr.msk.bf16.vlgmr.msra.gmra.mrb[4].mxu0 %vm567_vm2, %v828_v50 }
 0x116   : > { %v886_v51 = vpop.f32.mrb[0].mxu0 }
 0x117   : > { %v908_v52 = vpop.f32.mrb[0].mxu1  ;;  %v887_v53 = vpop.f32.mrb[1].mxu0 }
 0x118   : > { %v909_v54 = vpop.f32.mrb[1].mxu1  ;;  %v888_v55 = vadd.f32 %v887_v53, %v886_v51  ;;  %v889_v57 = vpop.f32.mrb[2].mxu0 }
 0x119   : > { %v910_v56 = vadd.f32 %v909_v54, %v908_v52  ;;  %v911_v58 = vpop.f32.mrb[2].mxu1  ;;  %v890_v59 = vpop.f32.mrb[3].mxu0 }
 0x11a   : > { %v912_v60 = vpop.f32.mrb[3].mxu1 }
 0x11b   : > { %v646_v61 = vadd.f32 %v910_v56, %v888_v55 }
 0x125   : > { %697 = sbr.rel (%p866_p11) target bundleno = 314 (0x13a), region = 40 }
 0x126   : > { %v685_v63 = vpop.f32.mrb[4].mxu0 }
 0x127   : > { %v686_v0 = vadd.f32 %v685_v63, %v646_v61  ;;  %v929_v1 = vpop.f32.mrb[5].mxu0 }
 0x128   : > { %v688_v2 = vpop.f32.mrb[6].mxu0 }
 0x129   : > { %v691_v3 = vadd.f32 %v686_v0, %v246_v62  ;;  %v930_v4 = vpop.f32.mrb[7].mxu0 }
 0x12b   : > { %693 = vst.msk [vmem:[#allocation2] sm:$0xf] %vm692_vm3, %v691_v3 }
 0x132   : > { %v698_v5 = vld [vmem:[#allocation2] sm:$0xf] }
 0x133   : > { %v706_v7 = vadd.f32 %v867_v6, %v698_v5 }
 0x135   : > { %v707_v8 = vmax.f32 %v706_v7, 0.0 }
 0x137   : > { %v708_v9 = vpack.c.bf16 %v707_v8, %v707_v8 }
 0x139   : > { %710 = vst.msk [vmem:[%s1176_s23] sm:$0x3] %vm709_vm4, %v708_v9 }
 0x13a PF: > { %s13_s18 = sadd.s32 1, %s1085_s18   ;;  %s1247_s12 = smov %s1073_s15 }
 0x13b   : > { %p10_p12 = scmp.ge.s32.totalorder %s13_s18, 14   ;;  %s1248_s13 = smov %s1077_s16 }
 0x13c   : > { %s1249_s14 = smov %s1081_s17  ;;  %s1250_s15 = smov %s1254_s19 }
 0x13d   : > { %s1251_s16 = smov %s1258_s20  ;;  %s1252_s17 = smov %s1262_s21 }
 0x13e   :  { %12 = sbr.rel (!%p10_p12) target bundleno = 4 (0x4), region = 73 }

// kernel: scmnet_forward.42
= control target key start
LH: loop header
LB: loop body
LE: loop exit
PB: predicated region body
PF: predicated region fallthrough
CT: control target
= control target key end

     0   :  { %s721_s15 = smov 0   ;;  %s723_s16 = smov 0   ;;  %s812_s0 = inlined_call_operand.vmem [shape: bf16[2,2,4,128], index: 0, kind: input, shape index: {}]   ;;  %s813_s1 = inlined_call_operand.vmem [shape: bf16[1,128,64], index: 1, kind: input, shape index: {}]   ;;  %s814_s2 = inlined_call_operand.vmem [shape: f32[1,64], index: 2, kind: input, shape index: {}]   ;;  %s815_s3 = inlined_call_operand.vmem [shape: bf16[2,2,4,64], index: 3, kind: input, shape index: {}]   ;;  %s816_s4 = inlined_call_operand.vmem [shape: bf16[2,2,4,64], index: 4, kind: output, shape index: {}]  }
   0x1   :  { %s725_s17 = smov 0   ;;  %s727_s18 = smov 0  }
   0x2   :  { %s729_s19 = smov 0  }
   0x3 LB: > { %s29_s20 = sadd.s32 1, %s684_s17  ;;  %s33_s21 = sadd.s32 1, %s688_s18  ;;  %s692_s19 = sphi %s729_s19, %s14_s19   ;;  %s688_s18 = sphi %s727_s18, %s820_s18   ;;  %s684_s17 = sphi %s725_s17, %s819_s17   ;;  %s680_s16 = sphi %s723_s16, %s818_s16   ;;  %s676_s15 = sphi %s721_s15, %s817_s15  }
   0x4   : > { %p31_p0 = scmp.ge.s32.totalorder %s29_s20, 2  ;;  %p557_p1 = scmp.ge.s32.totalorder %s692_s19, 1 }
   0x5   : > { %p217_p2 = scmp.lt.s32.totalorder %s692_s19, 5 }
   0x6   : > { %s822_s20 = smov (%p31_p0, %s29_s20), 0  ;;  %s824_s21 = smov (!%p31_p0, %s33_s21), %s688_s18 }
   0x7   : > { %p218_p3 = pnand %p557_p1, %p217_p2  ;;  %p35_p4 = scmp.ge.s32.totalorder %s824_s21, 2 }
   0x8   : > { %v646_v0 = vld [vmem:[%s813_s1] sm:$0xff] (!%p218_p3)   ;;  %v694_v1 = vmov (!%p218_p3), 0.0   ;;  %v647_v2 = vld [vmem:[%s813_s1 + $0x8] sm:$0xff] (!%p218_p3)   ;;  %vm695_vm0 = vmmov (!%p218_p3), 0   ;;  %v648_v3 = vld [vmem:[%s813_s1 + $0x10] sm:$0xff] (!%p218_p3)   ;;  %vm299_vm1 = vcmask (!%p218_p3), 519168  }
   0x9   : > { %s826_s21 = smov (%p35_p4, %s824_s21), 0  ;;  %221 = sbr.rel (%p218_p3) target bundleno = 273 (0x111), region = 36 }
   0xa   : > { %584 = vmatprep.subr.bf16.mxu0 (!%p218_p3), %v694_v1  ;;  %600 = vmatprep.mubr.msk.bf16.mxu0 (!%p218_p3), %vm695_vm0, %v694_v1  ;;  %300 = vst.msk [vmem:[#allocation2] sm:$0xf] (!%p218_p3), %vm299_vm1, %v694_v1  ;;  %v649_v4 = vld [vmem:[%s813_s1 + $0x18] sm:$0xff] (!%p218_p3)   ;;  %p264_p5 = scmp.lt.s32.totalorder (!%p218_p3), %s680_s16, 1  ;;  %p266_p6 = scmp.lt.s32.totalorder (!%p218_p3), %s676_s15, 1  ;;  %v650_v5 = vld [vmem:[%s813_s1 + $0x20] sm:$0xff] (!%p218_p3)  }
   0xb   : > { %585 = vmatpush3.bf16.msra.mxu0 (!%p218_p3), %v646_v0  ;;  %v651_v6 = vld [vmem:[%s813_s1 + $0x28] sm:$0xff] (!%p218_p3)   ;;  %v652_v7 = vld [vmem:[%s813_s1 + $0x30] sm:$0xff] (!%p218_p3)   ;;  %v653_v8 = vld [vmem:[%s813_s1 + $0x38] sm:$0xff] (!%p218_p3)   ;;  %vm427_vm2 = vcmask (!%p218_p3), 517120  }
   0xc   : > { %586 = vmatprep.subr.bf16.mxu0 (!%p218_p3), %v694_v1  ;;  %v572_v17 = vld [vmem:[%s814_s2] ss:$0 sm:$0xff] (!%p218_p3) }
   0xf   : > { %587 = vmatpush3.bf16.msra.mxu0 (!%p218_p3), %v647_v2 }
  0x10   : > { %588 = vmatprep.subr.bf16.mxu0 %v694_v1  ;;  %s828_s16 = smov (!%p264_p5, %s680_s16), 1  ;;  %s830_s15 = smov (!%p266_p6, %s676_s15), 1 }
  0x11   : > { %s558_s8 = sshll.u32 %s828_s16, 1  ;;  %v301_v10 = vld [vmem:[#allocation2] sm:$0xf] }
  0x12   : > { %s269_s9 = sadd.s32 %s558_s8, %s830_s15 }
  0x13   : > { %589 = vmatpush3.bf16.msra.mxu0 %v648_v3  ;;  %s559_s12 = sshll.u32 %s269_s9, 1 }
  0x14   : > { %590 = vmatprep.subr.bf16.mxu0 %v694_v1  ;;  %s271_s24 = scalar_lea.vmem %s812_s0, %s559_s12  ;;  %s285_s25 = scalar_lea.vmem %s815_s3, %s559_s12 }
  0x15   : > { %v302_v9 = vld [vmem:[%s271_s24] sm:$0x3]  ;;  %s293_s30 = scalar_lea.vmem %s816_s4, %s559_s12 }
  0x16   : > { %v422_v16 = vld [vmem:[%s285_s25] sm:$0x3] }
  0x17   : > { %591 = vmatpush3.bf16.msra.mxu0 %v649_v4  ;;  %v423_v18 = vunpack.c.l.bf16 %v422_v16 }
  0x18   : > { %592 = vmatprep.subr.bf16.mxu0 %v694_v1 }
  0x1b   : > { %593 = vmatpush3.bf16.msra.mxu0 %v650_v5 }
  0x1c   : > { %594 = vmatprep.subr.bf16.mxu0 %v694_v1 }
  0x1f   : > { %595 = vmatpush3.bf16.msra.mxu0 %v651_v6 }
  0x20   : > { %596 = vmatprep.subr.bf16.mxu0 %v694_v1 }
  0x23   : > { %597 = vmatpush3.bf16.msra.mxu0 %v652_v7 }
  0x24   : > { %598 = vmatprep.subr.bf16.mxu0 %v694_v1 }
  0x27   : > { %599 = vmatpush3.bf16.msra.mxu0 %v653_v8 }
  0x2a   : > { %601 = vmatmul.mubr.bf16.vlgmr.msra.gmra.mrb[0].mxu0 %v302_v9 }
  0xfd   : > { %v401_v11 = vpop.f32.mrb[0].mxu0 }
  0xfe   : > { %v407_v12 = vadd.f32 %v401_v11, %v301_v10  ;;  %v602_v13 = vpop.f32.mrb[1].mxu0 }
  0xff   : > { %v404_v14 = vpop.f32.mrb[2].mxu0 }
 0x100   : > { %409 = vst.msk [vmem:[#allocation2] sm:$0xf] %vm299_vm1, %v407_v12  ;;  %v603_v15 = vpop.f32.mrb[3].mxu0 }
 0x107   : > { %v413_v19 = vld [vmem:[#allocation2] sm:$0xf] }
 0x108   : > { %v421_v20 = vadd.f32 %v572_v17, %v413_v19 }
 0x10a   : > { %v424_v21 = vadd.f32 %v423_v18, %v421_v20 }
 0x10c   : > { %v425_v22 = vmax.f32 %v424_v21, 0.0 }
 0x10e   : > { %v426_v23 = vpack.c.bf16 %v425_v22, %v425_v22 }
 0x110   : > { %428 = vst.msk [vmem:[%s293_s30] sm:$0x3] %vm427_vm2, %v426_v23 }
 0x111 PF: > { %s14_s19 = sadd.s32 1, %s692_s19   ;;  %s817_s15 = smov %s684_s17 }
 0x112   : > { %p11_p7 = scmp.ge.s32.totalorder %s14_s19, 6   ;;  %s818_s16 = smov %s688_s18 }
 0x113   : > { %s819_s17 = smov %s822_s20  ;;  %s820_s18 = smov %s826_s21 }
 0x114   :  { %13 = sbr.rel (!%p11_p7) target bundleno = 3 (0x3), region = 80 }

// kernel: scmnet_forward.40
= control target key start
LH: loop header
LB: loop body
LE: loop exit
PB: predicated region body
PF: predicated region fallthrough
CT: control target
= control target key end

     0   :  { %s674_s15 = smov 0   ;;  %s676_s16 = smov 0   ;;  %s745_s0 = inlined_call_operand.vmem [shape: bf16[2,2,4,64], index: 0, kind: input, shape index: {}]   ;;  %s746_s1 = inlined_call_operand.vmem [shape: bf16[1,64,64], index: 1, kind: input, shape index: {}]   ;;  %s747_s2 = inlined_call_operand.vmem [shape: f32[1,64], index: 2, kind: input, shape index: {}]   ;;  %s748_s3 = inlined_call_operand.vmem [shape: bf16[2,2,4,64], index: 3, kind: input, shape index: {}]   ;;  %s749_s4 = inlined_call_operand.vmem [shape: bf16[2,2,4,64], index: 4, kind: output, shape index: {}]  }
   0x1   :  { %s678_s17 = smov 0   ;;  %s680_s18 = smov 0  }
   0x2   :  { %s682_s19 = smov 0  }
   0x3 LB: > { %s29_s20 = sadd.s32 1, %s637_s17  ;;  %s33_s21 = sadd.s32 1, %s641_s18  ;;  %s645_s19 = sphi %s682_s19, %s14_s19   ;;  %s641_s18 = sphi %s680_s18, %s753_s18   ;;  %s637_s17 = sphi %s678_s17, %s752_s17   ;;  %s633_s16 = sphi %s676_s16, %s751_s16   ;;  %s629_s15 = sphi %s674_s15, %s750_s15  }
   0x4   : > { %p31_p0 = scmp.ge.s32.totalorder %s29_s20, 2  ;;  %p529_p1 = scmp.ge.s32.totalorder %s645_s19, 1 }
   0x5   : > { %p217_p2 = scmp.lt.s32.totalorder %s645_s19, 5 }
   0x6   : > { %s755_s20 = smov (%p31_p0, %s29_s20), 0  ;;  %s757_s21 = smov (!%p31_p0, %s33_s21), %s641_s18 }
   0x7   : > { %p218_p3 = pnand %p529_p1, %p217_p2  ;;  %p35_p4 = scmp.ge.s32.totalorder %s757_s21, 2 }
   0x8   : > { %v603_v0 = vld [vmem:[%s746_s1] sm:$0xff] (!%p218_p3)   ;;  %v647_v1 = vmov (!%p218_p3), 0.0   ;;  %v604_v2 = vld [vmem:[%s746_s1 + $0x8] sm:$0xff] (!%p218_p3)   ;;  %vm648_vm0 = vmmov (!%p218_p3), 0   ;;  %p264_p5 = scmp.lt.s32.totalorder (!%p218_p3), %s633_s16, 1  ;;  %p266_p6 = scmp.lt.s32.totalorder (!%p218_p3), %s629_s15, 1 }
   0x9   : > { %s759_s21 = smov (%p35_p4, %s757_s21), 0  ;;  %221 = sbr.rel (%p218_p3) target bundleno = 257 (0x101), region = 36 }
   0xa   : > { %549 = vmatprep.subr.bf16.mxu0 (!%p218_p3), %v647_v1  ;;  %557 = vmatprep.mubr.msk.bf16.mxu0 (!%p218_p3), %vm648_vm0, %v647_v1  ;;  %vm299_vm1 = vcmask (!%p218_p3), 519168   ;;  %v605_v3 = vld [vmem:[%s746_s1 + $0x10] sm:$0xff] (!%p218_p3)   ;;  %v606_v4 = vld [vmem:[%s746_s1 + $0x18] sm:$0xff] (!%p218_p3)   ;;  %vm335_vm2 = vcmask (!%p218_p3), 523264   ;;  %v541_v13 = vld [vmem:[%s747_s2] ss:$0 sm:$0xff] (!%p218_p3) }
   0xb   : > { %550 = vmatpush3.bf16.msra.mxu0 (!%p218_p3), %v603_v0  ;;  %300 = vst.msk [vmem:[#allocation2] sm:$0xf] (!%p218_p3), %vm299_vm1, %v647_v1  ;;  %vm399_vm3 = vcmask (!%p218_p3), 517120  }
   0xc   : > { %551 = vmatprep.subr.bf16.mxu0 (!%p218_p3), %v647_v1 }
   0xf   : > { %552 = vmatpush3.bf16.msra.mxu0 (!%p218_p3), %v604_v2 }
  0x10   : > { %s761_s16 = smov (!%p264_p5, %s633_s16), 1  ;;  %s763_s15 = smov (!%p266_p6, %s629_s15), 1  ;;  %553 = vmatprep.subr.bf16.mxu0 %v647_v1 }
  0x11   : > { %s530_s28 = sshll.u32 %s761_s16, 1 }
  0x12   : > { %s269_s29 = sadd.s32 %s530_s28, %s763_s15  ;;  %v301_v6 = vld [vmem:[#allocation2] sm:$0xf] }
  0x13   : > { %s531_s30 = sshll.u32 %s269_s29, 1  ;;  %554 = vmatpush3.bf16.msra.mxu0 %v605_v3 }
  0x14   : > { %555 = vmatprep.subr.bf16.mxu0 %v647_v1  ;;  %s271_s9 = scalar_lea.vmem %s745_s0, %s531_s30  ;;  %s285_s12 = scalar_lea.vmem %s748_s3, %s531_s30 }
  0x15   : > { %v302_v5 = vld [vmem:[%s271_s9] sm:$0x3]  ;;  %s293_s22 = scalar_lea.vmem %s749_s4, %s531_s30 }
  0x16   : > { %v394_v12 = vld [vmem:[%s285_s12] sm:$0x3] }
  0x17   : > { %556 = vmatpush3.bf16.msra.mxu0 %v606_v4  ;;  %v395_v14 = vunpack.c.l.bf16 %v394_v12 }
  0x1a   : > { %558 = vmatmul.mubr.msk.bf16.vlgmr.msra.gmra.mrb[0].mxu0 %vm335_vm2, %v302_v5 }
  0xed   : > { %v373_v7 = vpop.f32.mrb[0].mxu0 }
  0xee   : > { %v379_v8 = vadd.f32 %v373_v7, %v301_v6  ;;  %v559_v9 = vpop.f32.mrb[1].mxu0 }
  0xef   : > { %v376_v10 = vpop.f32.mrb[2].mxu0 }
  0xf0   : > { %381 = vst.msk [vmem:[#allocation2] sm:$0xf] %vm299_vm1, %v379_v8  ;;  %v560_v11 = vpop.f32.mrb[3].mxu0 }
  0xf7   : > { %v385_v15 = vld [vmem:[#allocation2] sm:$0xf] }
  0xf8   : > { %v393_v16 = vadd.f32 %v541_v13, %v385_v15 }
  0xfa   : > { %v396_v17 = vadd.f32 %v395_v14, %v393_v16 }
  0xfc   : > { %v397_v18 = vmax.f32 %v396_v17, 0.0 }
  0xfe   : > { %v398_v19 = vpack.c.bf16 %v397_v18, %v397_v18 }
 0x100   : > { %400 = vst.msk [vmem:[%s293_s22] sm:$0x3] %vm399_vm3, %v398_v19 }
 0x101 PF: > { %s14_s19 = sadd.s32 1, %s645_s19   ;;  %s750_s15 = smov %s637_s17 }
 0x102   : > { %p11_p7 = scmp.ge.s32.totalorder %s14_s19, 6   ;;  %s751_s16 = smov %s641_s18 }
 0x103   : > { %s752_s17 = smov %s755_s20  ;;  %s753_s18 = smov %s759_s21 }
 0x104   :  { %13 = sbr.rel (!%p11_p7) target bundleno = 3 (0x3), region = 80 }

// kernel: scmnet_forward.43
= control target key start
LH: loop header
LB: loop body
LE: loop exit
PB: predicated region body
PF: predicated region fallthrough
CT: control target
= control target key end

     0   :  { %s811_s15 = smov 0   ;;  %s813_s16 = smov 0   ;;  %s919_s0 = inlined_call_operand.vmem [shape: bf16[2,2,4,256], index: 0, kind: input, shape index: {}]   ;;  %s920_s1 = inlined_call_operand.vmem [shape: bf16[1,256,64], index: 1, kind: input, shape index: {}]   ;;  %s921_s2 = inlined_call_operand.vmem [shape: f32[1,64], index: 2, kind: input, shape index: {}]   ;;  %s922_s3 = inlined_call_operand.vmem [shape: bf16[2,2,4,64], index: 3, kind: input, shape index: {}]   ;;  %s923_s4 = inlined_call_operand.vmem [shape: bf16[2,2,4,64], index: 4, kind: output, shape index: {}]  }
   0x1   :  { %s815_s17 = smov 0   ;;  %s817_s18 = smov 0  }
   0x2   :  { %s819_s19 = smov 0  }
   0x3 LB: > { %s29_s20 = sadd.s32 1, %s775_s17  ;;  %s33_s21 = sadd.s32 1, %s779_s18  ;;  %s783_s19 = sphi %s819_s19, %s14_s19   ;;  %s779_s18 = sphi %s817_s18, %s927_s18   ;;  %s775_s17 = sphi %s815_s17, %s926_s17   ;;  %s771_s16 = sphi %s813_s16, %s925_s16   ;;  %s767_s15 = sphi %s811_s15, %s924_s15  }
   0x4   : > { %p31_p0 = scmp.ge.s32.totalorder %s29_s20, 2  ;;  %p638_p1 = scmp.ge.s32.totalorder %s783_s19, 1 }
   0x5   : > { %p218_p2 = scmp.lt.s32.totalorder %s783_s19, 5 }
   0x6   : > { %s929_s20 = smov (%p31_p0, %s29_s20), 0  ;;  %s931_s21 = smov (!%p31_p0, %s33_s21), %s779_s18 }
   0x7   : > { %p219_p3 = pnand %p638_p1, %p218_p2  ;;  %p35_p4 = scmp.ge.s32.totalorder %s931_s21, 2 }
   0x8   : > { %v729_v0 = vld [vmem:[%s920_s1 + $0x40] sm:$0xff] (!%p219_p3)   ;;  %p266_p5 = scmp.lt.s32.totalorder (!%p219_p3), %s771_s16, 1  ;;  %p268_p6 = scmp.lt.s32.totalorder (!%p219_p3), %s767_s15, 1  ;;  %v731_v2 = vld [vmem:[%s920_s1 + $0x48] sm:$0xff] (!%p219_p3)   ;;  %v733_v4 = vld [vmem:[%s920_s1 + $0x50] sm:$0xff] (!%p219_p3)   ;;  %vm302_vm0 = vcmask (!%p219_p3), 519168  }
   0x9   : > { %s933_s21 = smov (%p35_p4, %s931_s21), 0  ;;  %222 = sbr.rel (%p219_p3) target bundleno = 276 (0x114), region = 36 }
   0xa   : > { %v730_v1 = vld [vmem:[%s920_s1] sm:$0xff] (!%p219_p3)   ;;  %666 = vmatprep.subr.bf16.mxu0 (!%p219_p3), %v729_v0  ;;  %v732_v3 = vld [vmem:[%s920_s1 + $0x8] sm:$0xff] (!%p219_p3)   ;;  %v734_v5 = vld [vmem:[%s920_s1 + $0x10] sm:$0xff] (!%p219_p3)   ;;  %v785_v18 = vmov (!%p219_p3), 0.0   ;;  %vm505_vm1 = vcmask (!%p219_p3), 517120  }
   0xb   : > { %667 = vmatpush3.bf16.msra.mxu0 (!%p219_p3), %v730_v1  ;;  %v735_v6 = vld [vmem:[%s920_s1 + $0x58] sm:$0xff] (!%p219_p3)   ;;  %v737_v8 = vld [vmem:[%s920_s1 + $0x60] sm:$0xff] (!%p219_p3)   ;;  %v739_v10 = vld [vmem:[%s920_s1 + $0x68] sm:$0xff] (!%p219_p3)   ;;  %303 = vst.msk [vmem:[#allocation2] sm:$0xf] (!%p219_p3), %vm302_vm0, %v785_v18 }
   0xc   : > { %668 = vmatprep.subr.bf16.mxu0 (!%p219_p3), %v731_v2  ;;  %v736_v7 = vld [vmem:[%s920_s1 + $0x18] sm:$0xff] (!%p219_p3)   ;;  %v738_v9 = vld [vmem:[%s920_s1 + $0x20] sm:$0xff] (!%p219_p3)   ;;  %v740_v13 = vld [vmem:[%s920_s1 + $0x28] sm:$0xff] (!%p219_p3)  }
   0xd   : > { %v741_v14 = vld [vmem:[%s920_s1 + $0x70] sm:$0xff] (!%p219_p3)   ;;  %v743_v16 = vld [vmem:[%s920_s1 + $0x78] sm:$0xff] (!%p219_p3)   ;;  %v663_v27 = vld [vmem:[%s921_s2] ss:$0 sm:$0xff] (!%p219_p3) }
   0xe   : > { %v742_v15 = vld [vmem:[%s920_s1 + $0x30] sm:$0xff] (!%p219_p3)   ;;  %v744_v17 = vld [vmem:[%s920_s1 + $0x38] sm:$0xff] (!%p219_p3)  }
   0xf   : > { %669 = vmatpush3.bf16.msra.mxu0 (!%p219_p3), %v732_v3 }
  0x10   : > { %s935_s16 = smov (!%p266_p5, %s771_s16), 1  ;;  %s937_s15 = smov (!%p268_p6, %s767_s15), 1  ;;  %670 = vmatprep.subr.bf16.mxu0 %v733_v4 }
  0x11   : > { %s640_s6 = sshll.u32 %s935_s16, 2  ;;  %s639_s7 = sshll.u32 %s937_s15, 1 }
  0x12   : > { %s642_s8 = sshll.u32 %s935_s16, 1  ;;  %s272_s11 = sadd.s32 %s640_s6, %s639_s7  ;;  %v304_v20 = vld [vmem:[#allocation2] sm:$0xf] }
  0x13   : > { %s859_s12 = sadd.s32 %s642_s8, %s937_s15  ;;  %s641_s22 = sshll.u32 %s272_s11, 1  ;;  %671 = vmatpush3.bf16.msra.mxu0 %v734_v5 }
  0x14   : > { %672 = vmatprep.subr.bf16.mxu0 %v735_v6  ;;  %s274_s15 = scalar_lea.vmem %s919_s0, %s641_s22  ;;  %s643_s24 = sshll.u32 %s859_s12, 1 }
  0x15   : > { %v646_v11 = vld.sshfl [vmem:[%s274_s15] sm:$0x33 pattern:$0x76325410]  ;;  %s288_s26 = scalar_lea.vmem %s922_s3, %s643_s24  ;;  %s296_s12 = scalar_lea.vmem %s923_s4, %s643_s24 }
  0x16   : > { %v346_v12 = vcombine.high %v646_v11, %v646_v11  ;;  %v500_v26 = vld [vmem:[%s288_s26] sm:$0x3] }
  0x17   : > { %673 = vmatpush3.bf16.msra.mxu0 %v736_v7  ;;  %v501_v28 = vunpack.c.l.bf16 %v500_v26 }
  0x18   : > { %674 = vmatprep.subr.bf16.mxu0 %v737_v8  ;;  %477 = vmatprep.mubr.bf16.mxu0 %v346_v12 }
  0x1b   : > { %675 = vmatpush3.bf16.msra.mxu0 %v738_v9 }
  0x1c   : > { %676 = vmatprep.subr.bf16.mxu0 %v739_v10 }
  0x1f   : > { %677 = vmatpush3.bf16.msra.mxu0 %v740_v13 }
  0x20   : > { %678 = vmatprep.subr.bf16.mxu0 %v741_v14 }
  0x23   : > { %679 = vmatpush3.bf16.msra.mxu0 %v742_v15 }
  0x24   : > { %680 = vmatprep.subr.bf16.mxu0 %v743_v16 }
  0x27   : > { %681 = vmatpush3.bf16.msra.mxu0 %v744_v17 }
  0x2a   : > { %478 = vmatmul.mubr.bf16.vlgmr.msra.gmra.mrb[0].mxu0 %v646_v11 }
  0xfd   : > { %v682_v19 = vpop.f32.mrb[0].mxu0 }
  0xfe   : > { %v683_v21 = vpop.f32.mrb[1].mxu0 }
  0xff   : > { %v684_v22 = vadd.f32 %v683_v21, %v682_v19  ;;  %v685_v23 = vpop.f32.mrb[2].mxu0 }
 0x100   : > { %v686_v24 = vpop.f32.mrb[3].mxu0 }
 0x101   : > { %v485_v25 = vadd.f32 %v684_v22, %v304_v20 }
 0x103   : > { %487 = vst.msk [vmem:[#allocation2] sm:$0xf] %vm302_vm0, %v485_v25 }
 0x10a   : > { %v491_v29 = vld [vmem:[#allocation2] sm:$0xf] }
 0x10b   : > { %v499_v30 = vadd.f32 %v663_v27, %v491_v29 }
 0x10d   : > { %v502_v31 = vadd.f32 %v501_v28, %v499_v30 }
 0x10f   : > { %v503_v32 = vmax.f32 %v502_v31, 0.0 }
 0x111   : > { %v504_v33 = vpack.c.bf16 %v503_v32, %v503_v32 }
 0x113   : > { %506 = vst.msk [vmem:[%s296_s12] sm:$0x3] %vm505_vm1, %v504_v33 }
 0x114 PF: > { %s14_s19 = sadd.s32 1, %s783_s19   ;;  %s924_s15 = smov %s775_s17 }
 0x115   : > { %p11_p7 = scmp.ge.s32.totalorder %s14_s19, 6   ;;  %s925_s16 = smov %s779_s18 }
 0x116   : > { %s926_s17 = smov %s929_s20  ;;  %s927_s18 = smov %s933_s21 }
 0x117   :  { %13 = sbr.rel (!%p11_p7) target bundleno = 3 (0x3), region = 80 }

// kernel: scmnet_forward.44
= control target key start
LH: loop header
LB: loop body
LE: loop exit
PB: predicated region body
PF: predicated region fallthrough
CT: control target
= control target key end

     0   :  { %s712_s15 = smov 0   ;;  %s714_s16 = smov 0   ;;  %s808_s0 = inlined_call_operand.vmem [shape: bf16[2,3,4,64], index: 0, kind: input, shape index: {}]   ;;  %s809_s1 = inlined_call_operand.vmem [shape: bf16[2,64,64], index: 1, kind: input, shape index: {}]   ;;  %s810_s2 = inlined_call_operand.vmem [shape: f32[1,64], index: 2, kind: input, shape index: {}]   ;;  %s811_s3 = inlined_call_operand.vmem [shape: bf16[2,2,4,64], index: 3, kind: input, shape index: {}]   ;;  %s812_s4 = inlined_call_operand.vmem [shape: bf16[2,2,4,64], index: 4, kind: output, shape index: {}]  }
   0x1   :  { %s716_s17 = smov 0   ;;  %s718_s18 = smov 0  }
   0x2   :  { %s720_s19 = smov 0   ;;  %s722_s20 = smov 0  }
   0x3   :  { %s724_s21 = smov 0  }
   0x4 LB: > { %s26_s22 = sadd.s32 1, %s670_s18  ;;  %s29_s23 = sadd.s32 1, %s674_s19  ;;  %s682_s21 = sphi %s724_s21, %s14_s21   ;;  %s678_s20 = sphi %s722_s20, %s822_s20   ;;  %s674_s19 = sphi %s720_s19, %s821_s19   ;;  %s670_s18 = sphi %s718_s18, %s820_s18   ;;  %s666_s17 = sphi %s716_s17, %s819_s17   ;;  %s662_s16 = sphi %s714_s16, %s818_s16   ;;  %s658_s15 = sphi %s712_s15, %s817_s15  }
   0x5   : > { %p27_p0 = scmp.ge.s32.totalorder %s26_s22, 2  ;;  %p528_p1 = scmp.ge.s32.totalorder %s682_s21, 1 }
   0x6   : > { %p217_p2 = scmp.lt.s32.totalorder %s682_s21, 9  ;;  %s33_s24 = sadd.s32 1, %s678_s20 }
   0x7   : > { %s824_s22 = smov (%p27_p0, %s26_s22), 0  ;;  %s826_s23 = smov (!%p27_p0, %s29_s23), %s674_s19 }
   0x8   : > { %p218_p3 = pnand %p528_p1, %p217_p2  ;;  %p31_p4 = scmp.ge.s32.totalorder %s826_s23, 2 }
   0x9   : > { %s263_s25 = sadd.s32 (!%p218_p3), %s658_s15, %s662_s16  ;;  %p264_p6 = scmp.lt.s32.totalorder (!%p218_p3), %s666_s17, 1 }
   0xa   : > { %s828_s23 = smov (%p31_p4, %s826_s23), 0  ;;  %s830_s24 = smov (!%p31_p4, %s33_s24), %s678_s20 }
   0xb   : > { %813 = sst [smem:[#allocation3_spill]] %s828_s23  ;;  %p35_p5 = scmp.ge.s32.totalorder %s830_s24, 2 }
   0xc   : > { %221 = sbr.rel (%p218_p3) target bundleno = 280 (0x118), region = 36  ;;  %p266_p7 = scmp.lt.s32.totalorder (!%p218_p3), %s263_s25, 2 }
   0xd   : > { %s832_s24 = smov (%p35_p5, %s830_s24), 0  ;;  %p273_p8 = scmp.lt.s32.totalorder (!%p218_p3), %s658_s15, 1 }
   0xe   : > { %814 = sst [smem:[#allocation4_spill]] %s832_s24  ;;  %p280_p9 = scmp.lt.s32.totalorder (!%p218_p3), %s662_s16, 1 }
   0xf   : > { %p536_p10 = scmp.ne.s32.totalorder (!%p218_p3), %s658_s15, 0 }
  0x13   : > { %s834_s17 = smov (!%p264_p6, %s666_s17), 1  ;;  %s836_s25 = smov (!%p266_p7, %s263_s25), 2 }
  0x14   : > { %s564_s26 = smul.u32 3, %s834_s17  ;;  %s532_s29 = sshll.u32 %s834_s17, 1  ;;  %vm299_vm0 = vcmask (!%p536_p10), 519168   ;;  %v684_v0 = vmov (!%p536_p10), 0.0  }
  0x15   : > { %s274_s27 = scalar_select %p273_p8, %s658_s15, 1 }
  0x16   : > { %s269_s28 = sadd.s32 %s564_s26, %s836_s25  ;;  %s838_s16 = smov (!%p280_p9, %s662_s16), 1  ;;  %300 = vst.msk [vmem:[#allocation2] sm:$0xf] (!%p536_p10), %vm299_vm0, %v684_v0 }
  0x17   : > { %s529_s30 = sshll.u32 %s269_s28, 1  ;;  %s546_s5 = sshll.u32 %s274_s27, 5 }
  0x18   : > { %s271_s8 = scalar_lea.vmem %s808_s0, %s529_s30  ;;  %s277_s11 = scalar_lea.vmem %s809_s1, %s546_s5 }
  0x19   : > { %s283_s12 = sadd.s32 %s532_s29, %s838_s16  ;;  %298 = sbr.rel (%p536_p10) target bundleno = 32 (0x20), region = 40 }
  0x1a   : > { %s533_s13 = sshll.u32 %s283_s12, 1 }
  0x1b   : > { %s773_s23 = scalar_lea.vmem %s811_s3, %s533_s13  ;;  %s778_s26 = scalar_lea.vmem %s812_s4, %s533_s13 }
  0x20 PF: > { %v624_v1 = vld [vmem:[%s277_s11] sm:$0xff]   ;;  %v685_v2 = vmov 0.0   ;;  %v625_v3 = vld [vmem:[%s277_s11 + $0x8] sm:$0xff]   ;;  %vm686_vm1 = vmmov 0   ;;  %v626_v4 = vld [vmem:[%s277_s11 + $0x10] sm:$0xff]   ;;  %vm335_vm2 = vcmask 523264  }
  0x21   : > { %552 = vmatprep.subr.bf16.mxu0 %v685_v2  ;;  %560 = vmatprep.mubr.msk.bf16.mxu0 %vm686_vm1, %v685_v2  ;;  %v627_v5 = vld [vmem:[%s277_s11 + $0x18] sm:$0xff]   ;;  %v302_v6 = vld [vmem:[%s271_s8] sm:$0x3]  ;;  %vm380_vm3 = vcmask 519168   ;;  %p542_p11 = scmp.ne.s32.totalorder %s658_s15, 1 }
  0x22   : > { %553 = vmatpush3.bf16.msra.mxu0 %v624_v1  ;;  %v301_v7 = vld [vmem:[#allocation2] sm:$0xf]  ;;  %vm400_vm4 = vcmask (!%p542_p11), 517120  }
  0x23   : > { %554 = vmatprep.subr.bf16.mxu0 %v685_v2  ;;  %v543_v14 = vld [vmem:[%s810_s2] ss:$0 sm:$0xff] (!%p542_p11) }
  0x24   : > { %v395_v15 = vld [vmem:[%s773_s23] sm:$0x3] (!%p542_p11) }
  0x25   : > { %v396_v17 = vunpack.c.l.bf16 (!%p542_p11), %v395_v15 }
  0x26   : > { %555 = vmatpush3.bf16.msra.mxu0 %v625_v3 }
  0x27   : > { %556 = vmatprep.subr.bf16.mxu0 %v685_v2 }
  0x2a   : > { %557 = vmatpush3.bf16.msra.mxu0 %v626_v4 }
  0x2b   : > { %558 = vmatprep.subr.bf16.mxu0 %v685_v2 }
  0x2e   : > { %559 = vmatpush3.bf16.msra.mxu0 %v627_v5 }
  0x31   : > { %561 = vmatmul.mubr.msk.bf16.vlgmr.msra.gmra.mrb[0].mxu0 %vm335_vm2, %v302_v6 }
 0x101   : > { %385 = sbr.rel (%p542_p11) target bundleno = 280 (0x118), region = 44 }
 0x104   : > { %v373_v8 = vpop.f32.mrb[0].mxu0 }
 0x105   : > { %v379_v9 = vadd.f32 %v373_v8, %v301_v7  ;;  %v562_v10 = vpop.f32.mrb[1].mxu0 }
 0x106   : > { %v376_v11 = vpop.f32.mrb[2].mxu0 }
 0x107   : > { %381 = vst.msk [vmem:[#allocation2] sm:$0xf] %vm380_vm3, %v379_v9  ;;  %v563_v12 = vpop.f32.mrb[3].mxu0 }
 0x10e   : > { %v386_v13 = vld [vmem:[#allocation2] sm:$0xf] }
 0x10f   : > { %v394_v16 = vadd.f32 %v543_v14, %v386_v13 }
 0x111   : > { %v397_v18 = vadd.f32 %v396_v17, %v394_v16 }
 0x113   : > { %v398_v19 = vmax.f32 %v397_v18, 0.0 }
 0x115   : > { %v399_v20 = vpack.c.bf16 %v398_v19, %v398_v19 }
 0x117   : > { %401 = vst.msk [vmem:[%s778_s26] sm:$0x3] %vm400_vm4, %v399_v20 }
 0x118 PF: > { %s14_s21 = sadd.s32 1, %s682_s21   ;;  %s815_s27 = sld [smem:[#allocation3_spill]] }
 0x119   : > { %p11_p12 = scmp.ge.s32.totalorder %s14_s21, 10   ;;  %s816_s28 = sld [smem:[#allocation4_spill]] }
 0x11a   : > { %s817_s15 = smov %s670_s18  ;;  %s818_s16 = smov %s674_s19 }
 0x11b   : > { %s819_s17 = smov %s678_s20  ;;  %s820_s18 = smov %s824_s22 }
 0x11c   :  { %13 = sbr.rel (!%p11_p12) target bundleno = 4 (0x4), region = 80 }
 0x11e   : > { %s821_s19 = smov %s815_s27 }
 0x11f   : > { %s822_s20 = smov %s816_s28 }

// kernel: scmnet_forward.45
= control target key start
LH: loop header
LB: loop body
LE: loop exit
PB: predicated region body
PF: predicated region fallthrough
CT: control target
= control target key end

     0   :  { %s759_s15 = smov 0   ;;  %s761_s16 = smov 0   ;;  %s868_s0 = inlined_call_operand.vmem [shape: bf16[2,3,4,128], index: 0, kind: input, shape index: {}]   ;;  %s869_s1 = inlined_call_operand.vmem [shape: bf16[2,128,64], index: 1, kind: input, shape index: {}]   ;;  %s870_s2 = inlined_call_operand.vmem [shape: f32[1,64], index: 2, kind: input, shape index: {}]   ;;  %s871_s3 = inlined_call_operand.vmem [shape: bf16[2,2,4,64], index: 3, kind: input, shape index: {}]   ;;  %s872_s4 = inlined_call_operand.vmem [shape: bf16[2,2,4,64], index: 4, kind: output, shape index: {}]  }
   0x1   :  { %s763_s17 = smov 0   ;;  %s765_s18 = smov 0  }
   0x2   :  { %s767_s19 = smov 0   ;;  %s769_s20 = smov 0  }
   0x3   :  { %s771_s21 = smov 0  }
   0x4 LB: > { %s26_s22 = sadd.s32 1, %s717_s18  ;;  %s29_s23 = sadd.s32 1, %s721_s19  ;;  %s729_s21 = sphi %s771_s21, %s14_s21   ;;  %s725_s20 = sphi %s769_s20, %s880_s20   ;;  %s721_s19 = sphi %s767_s19, %s879_s19   ;;  %s717_s18 = sphi %s765_s18, %s878_s18   ;;  %s713_s17 = sphi %s763_s17, %s877_s17   ;;  %s709_s16 = sphi %s761_s16, %s876_s16   ;;  %s705_s15 = sphi %s759_s15, %s875_s15  }
   0x5   : > { %p27_p0 = scmp.ge.s32.totalorder %s26_s22, 2  ;;  %p556_p1 = scmp.ge.s32.totalorder %s729_s21, 1 }
   0x6   : > { %p217_p2 = scmp.lt.s32.totalorder %s729_s21, 9  ;;  %s33_s24 = sadd.s32 1, %s725_s20 }
   0x7   : > { %s882_s22 = smov (%p27_p0, %s26_s22), 0  ;;  %s884_s23 = smov (!%p27_p0, %s29_s23), %s721_s19 }
   0x8   : > { %p218_p3 = pnand %p556_p1, %p217_p2  ;;  %p31_p4 = scmp.ge.s32.totalorder %s884_s23, 2 }
   0x9   : > { %s263_s25 = sadd.s32 (!%p218_p3), %s705_s15, %s709_s16  ;;  %p264_p6 = scmp.lt.s32.totalorder (!%p218_p3), %s713_s17, 1 }
   0xa   : > { %s886_s23 = smov (%p31_p4, %s884_s23), 0  ;;  %s888_s24 = smov (!%p31_p4, %s33_s24), %s725_s20 }
   0xb   : > { %p35_p5 = scmp.ge.s32.totalorder %s888_s24, 2  ;;  %221 = sbr.rel (%p218_p3) target bundleno = 295 (0x127), region = 36 }
   0xc   : > { %p266_p7 = scmp.lt.s32.totalorder (!%p218_p3), %s263_s25, 2  ;;  %p273_p8 = scmp.lt.s32.totalorder (!%p218_p3), %s705_s15, 1 }
   0xd   : > { %s890_s24 = smov (%p35_p5, %s888_s24), 0  ;;  %p280_p9 = scmp.lt.s32.totalorder (!%p218_p3), %s709_s16, 1 }
   0xe   : > { %873 = sst [smem:[#allocation3_spill]] %s890_s24  ;;  %p564_p10 = scmp.ne.s32.totalorder (!%p218_p3), %s705_s15, 0 }
  0x12   : > { %s892_s17 = smov (!%p264_p6, %s713_s17), 1  ;;  %s894_s25 = smov (!%p266_p7, %s263_s25), 2 }
  0x13   : > { %s607_s26 = smul.u32 3, %s892_s17  ;;  %s560_s29 = sshll.u32 %s892_s17, 1  ;;  %vm299_vm0 = vcmask (!%p564_p10), 519168   ;;  %v731_v0 = vmov (!%p564_p10), 0.0  }
  0x14   : > { %s274_s27 = scalar_select %p273_p8, %s705_s15, 1 }
  0x15   : > { %s269_s28 = sadd.s32 %s607_s26, %s894_s25  ;;  %s896_s16 = smov (!%p280_p9, %s709_s16), 1  ;;  %300 = vst.msk [vmem:[#allocation2] sm:$0xf] (!%p564_p10), %vm299_vm0, %v731_v0 }
  0x16   : > { %s557_s30 = sshll.u32 %s269_s28, 1  ;;  %s577_s5 = sshll.u32 %s274_s27, 6 }
  0x17   : > { %s813_s8 = scalar_lea.vmem %s868_s0, %s557_s30  ;;  %s818_s11 = scalar_lea.vmem %s869_s1, %s577_s5 }
  0x18   : > { %s283_s12 = sadd.s32 %s560_s29, %s896_s16  ;;  %298 = sbr.rel (%p564_p10) target bundleno = 31 (0x1f), region = 40 }
  0x19   : > { %s561_s13 = sshll.u32 %s283_s12, 1 }
  0x1a   : > { %s824_s25 = scalar_lea.vmem %s871_s3, %s561_s13  ;;  %s829_s27 = scalar_lea.vmem %s872_s4, %s561_s13 }
  0x1f PF: > { %v667_v1 = vld [vmem:[%s818_s11] sm:$0xff]   ;;  %v732_v2 = vmov 0.0   ;;  %v668_v3 = vld [vmem:[%s818_s11 + $0x8] sm:$0xff]   ;;  %vm733_vm1 = vmmov 0   ;;  %v669_v4 = vld [vmem:[%s818_s11 + $0x10] sm:$0xff]   ;;  %vm408_vm2 = vcmask 519168  }
  0x20   : > { %587 = vmatprep.subr.bf16.mxu0 %v732_v2  ;;  %603 = vmatprep.mubr.msk.bf16.mxu0 %vm733_vm1, %v732_v2  ;;  %v670_v5 = vld [vmem:[%s818_s11 + $0x18] sm:$0xff]   ;;  %v671_v6 = vld [vmem:[%s818_s11 + $0x20] sm:$0xff]   ;;  %v672_v7 = vld [vmem:[%s818_s11 + $0x28] sm:$0xff]   ;;  %p573_p11 = scmp.ne.s32.totalorder %s705_s15, 1 }
  0x21   : > { %588 = vmatpush3.bf16.msra.mxu0 %v667_v1  ;;  %v673_v8 = vld [vmem:[%s818_s11 + $0x30] sm:$0xff]   ;;  %v674_v9 = vld [vmem:[%s818_s11 + $0x38] sm:$0xff]   ;;  %v302_v10 = vld [vmem:[%s813_s8] sm:$0x3]  ;;  %vm428_vm3 = vcmask (!%p573_p11), 517120  }
  0x22   : > { %589 = vmatprep.subr.bf16.mxu0 %v732_v2  ;;  %v301_v11 = vld [vmem:[#allocation2] sm:$0xf] }
  0x23   : > { %v574_v18 = vld [vmem:[%s870_s2] ss:$0 sm:$0xff] (!%p573_p11) }
  0x24   : > { %v423_v19 = vld [vmem:[%s824_s25] sm:$0x3] (!%p573_p11) }
  0x25   : > { %590 = vmatpush3.bf16.msra.mxu0 %v668_v3  ;;  %v424_v21 = vunpack.c.l.bf16 (!%p573_p11), %v423_v19 }
  0x26   : > { %591 = vmatprep.subr.bf16.mxu0 %v732_v2 }
  0x29   : > { %592 = vmatpush3.bf16.msra.mxu0 %v669_v4 }
  0x2a   : > { %593 = vmatprep.subr.bf16.mxu0 %v732_v2 }
  0x2d   : > { %594 = vmatpush3.bf16.msra.mxu0 %v670_v5 }
  0x2e   : > { %595 = vmatprep.subr.bf16.mxu0 %v732_v2 }
  0x31   : > { %596 = vmatpush3.bf16.msra.mxu0 %v671_v6 }
  0x32   : > { %597 = vmatprep.subr.bf16.mxu0 %v732_v2 }
  0x35   : > { %598 = vmatpush3.bf16.msra.mxu0 %v672_v7 }
  0x36   : > { %599 = vmatprep.subr.bf16.mxu0 %v732_v2 }
  0x39   : > { %600 = vmatpush3.bf16.msra.mxu0 %v673_v8 }
  0x3a   : > { %601 = vmatprep.subr.bf16.mxu0 %v732_v2 }
  0x3d   : > { %602 = vmatpush3.bf16.msra.mxu0 %v674_v9 }
  0x40   : > { %604 = vmatmul.mubr.bf16.vlgmr.msra.gmra.mrb[0].mxu0 %v302_v10 }
 0x110   : > { %413 = sbr.rel (%p573_p11) target bundleno = 295 (0x127), region = 44 }
 0x113   : > { %v401_v12 = vpop.f32.mrb[0].mxu0 }
 0x114   : > { %v407_v13 = vadd.f32 %v401_v12, %v301_v11  ;;  %v605_v14 = vpop.f32.mrb[1].mxu0 }
 0x115   : > { %v404_v15 = vpop.f32.mrb[2].mxu0 }
 0x116   : > { %409 = vst.msk [vmem:[#allocation2] sm:$0xf] %vm408_vm2, %v407_v13  ;;  %v606_v16 = vpop.f32.mrb[3].mxu0 }
 0x11d   : > { %v414_v17 = vld [vmem:[#allocation2] sm:$0xf] }
 0x11e   : > { %v422_v20 = vadd.f32 %v574_v18, %v414_v17 }
 0x120   : > { %v425_v22 = vadd.f32 %v424_v21, %v422_v20 }
 0x122   : > { %v426_v23 = vmax.f32 %v425_v22, 0.0 }
 0x124   : > { %v427_v24 = vpack.c.bf16 %v426_v23, %v426_v23 }
 0x126   : > { %429 = vst.msk [vmem:[%s829_s27] sm:$0x3] %vm428_vm3, %v427_v24 }
 0x127 PF: > { %s14_s21 = sadd.s32 1, %s729_s21   ;;  %s874_s28 = sld [smem:[#allocation3_spill]] }
 0x128   : > { %p11_p12 = scmp.ge.s32.totalorder %s14_s21, 10   ;;  %s875_s15 = smov %s717_s18 }
 0x129   : > { %s876_s16 = smov %s721_s19  ;;  %s877_s17 = smov %s725_s20 }
 0x12a   : > { %s878_s18 = smov %s882_s22  ;;  %s879_s19 = smov %s886_s23 }
 0x12b   :  { %13 = sbr.rel (!%p11_p12) target bundleno = 4 (0x4), region = 80 }
 0x12d   : > { %s880_s20 = smov %s874_s28 }

// kernel: scmnet_forward.48
= control target key start
LH: loop header
LB: loop body
LE: loop exit
PB: predicated region body
PF: predicated region fallthrough
CT: control target
= control target key end

     0   :  { %s732_s15 = smov 0   ;;  %s734_s16 = smov 0   ;;  %s810_s0 = inlined_call_operand.vmem [shape: bf16[2,4,16,64], index: 0, kind: input, shape index: {}]   ;;  %s811_s1 = inlined_call_operand.vmem [shape: bf16[1,64,32], index: 1, kind: input, shape index: {}]   ;;  %s812_s2 = inlined_call_operand.vmem [shape: f32[1,32], index: 2, kind: input, shape index: {}]   ;;  %s813_s3 = inlined_call_operand.vmem [shape: bf16[2,4,16,32], index: 3, kind: input, shape index: {}]   ;;  %s814_s4 = inlined_call_operand.vmem [shape: bf16[2,4,16,32], index: 4, kind: output, shape index: {}]  }
   0x1   :  { %s736_s17 = smov 0   ;;  %s738_s18 = smov 0  }
   0x2   :  { %s740_s19 = smov 0  }
   0x3 LB: > { %s29_s20 = sadd.s32 1, %s695_s17  ;;  %s33_s21 = sadd.s32 1, %s699_s18  ;;  %s703_s19 = sphi %s740_s19, %s14_s19   ;;  %s699_s18 = sphi %s738_s18, %s818_s18   ;;  %s695_s17 = sphi %s736_s17, %s817_s17   ;;  %s691_s16 = sphi %s734_s16, %s816_s16   ;;  %s687_s15 = sphi %s732_s15, %s815_s15  }
   0x4   : > { %p31_p0 = scmp.ge.s32.totalorder %s29_s20, 4  ;;  %p574_p1 = scmp.ge.s32.totalorder %s703_s19, 1 }
   0x5   : > { %p219_p2 = scmp.lt.s32.totalorder %s703_s19, 9 }
   0x6   : > { %s820_s20 = smov (%p31_p0, %s29_s20), 0  ;;  %s822_s21 = smov (!%p31_p0, %s33_s21), %s699_s18 }
   0x7   : > { %p220_p3 = pnand %p574_p1, %p219_p2  ;;  %p35_p4 = scmp.ge.s32.totalorder %s822_s21, 2 }
   0x8   : > { %v660_v0 = vld [vmem:[%s811_s1] sm:$0xff] (!%p220_p3)   ;;  %v705_v1 = vmov (!%p220_p3), 0.0   ;;  %v661_v2 = vld [vmem:[%s811_s1 + $0x8] sm:$0xff] (!%p220_p3)   ;;  %vm706_vm0 = vmmov (!%p220_p3), 0   ;;  %p269_p5 = scmp.lt.s32.totalorder (!%p220_p3), %s691_s16, 1  ;;  %p271_p6 = scmp.lt.s32.totalorder (!%p220_p3), %s687_s15, 3 }
   0x9   : > { %s824_s21 = smov (%p35_p4, %s822_s21), 0  ;;  %223 = sbr.rel (%p220_p3) target bundleno = 259 (0x103), region = 36 }
   0xa   : > { %606 = vmatprep.subr.bf16.mxu0 (!%p220_p3), %v705_v1  ;;  %614 = vmatprep.mubr.msk.bf16.mxu0 (!%p220_p3), %vm706_vm0, %v705_v1  ;;  %vm307_vm1 = vcmask (!%p220_p3), 261120   ;;  %v662_v3 = vld [vmem:[%s811_s1 + $0x10] sm:$0xff] (!%p220_p3)   ;;  %v663_v4 = vld [vmem:[%s811_s1 + $0x18] sm:$0xff] (!%p220_p3)   ;;  %vm351_vm2 = vcmask (!%p220_p3), 523264   ;;  %v590_v15 = vld [vmem:[%s812_s2] ss:$0 sm:$0xff] (!%p220_p3) }
   0xb   : > { %607 = vmatpush3.bf16.msra.mxu0 (!%p220_p3), %v660_v0  ;;  %308 = vst.msk [vmem:[#allocation2] sm:$0xff] (!%p220_p3), %vm307_vm1, %v705_v1  ;;  %309 = vst.msk [vmem:[#allocation2 + $0x8] sm:$0xff] (!%p220_p3), %vm307_vm1, %v705_v1  ;;  %vm431_vm3 = vcmask (!%p220_p3), 257024  }
   0xc   : > { %608 = vmatprep.subr.bf16.mxu0 (!%p220_p3), %v705_v1 }
   0xf   : > { %609 = vmatpush3.bf16.msra.mxu0 (!%p220_p3), %v661_v2 }
  0x10   : > { %s826_s16 = smov (!%p269_p5, %s691_s16), 1  ;;  %s828_s15 = smov (!%p271_p6, %s687_s15), 3  ;;  %610 = vmatprep.subr.bf16.mxu0 %v705_v1 }
  0x11   : > { %s576_s28 = sshll.u32 %s826_s16, 3  ;;  %s575_s29 = sshll.u32 %s828_s15, 1 }
  0x12   : > { %s275_s30 = sadd.s32 %s576_s28, %s575_s29  ;;  %v310_v6 = vld [vmem:[#allocation2] sm:$0xff]  ;;  %v311_v8 = vld [vmem:[#allocation2 + $0x8] sm:$0xff] }
  0x13   : > { %s773_s5 = sshll.u32 %s275_s30, 2  ;;  %611 = vmatpush3.bf16.msra.mxu0 %v662_v3 }
  0x14   : > { %s277_s10 = scalar_lea.vmem %s810_s0, %s773_s5  ;;  %612 = vmatprep.subr.bf16.mxu0 %v705_v1  ;;  %s292_s13 = scalar_lea.vmem %s813_s3, %s773_s5 }
  0x15   : > { %v664_v5 = vld [vmem:[%s277_s10] sm:$0xff]   ;;  %s301_s23 = scalar_lea.vmem %s814_s4, %s773_s5 }
  0x16   : > { %v598_v14 = vld [vmem:[%s292_s13] sm:$0xff]  }
  0x17   : > { %613 = vmatpush3.bf16.msra.mxu0 %v663_v4  ;;  %v599_v16 = vunpack.c.l.bf16 %v598_v14  ;;  %v600_v18 = vunpack.c.h.bf16 %v598_v14 }
  0x1a   : > { %615 = vmatmul.mubr.msk.bf16.vlgmr.msra.gmra.mrb[0].mxu0 %vm351_vm2, %v664_v5 }
  0xed   : > { %v389_v7 = vpop.f32.mrb[0].mxu0 }
  0xee   : > { %v396_v9 = vadd.f32 %v389_v7, %v310_v6  ;;  %v616_v10 = vpop.f32.mrb[1].mxu0 }
  0xef   : > { %v392_v11 = vpop.f32.mrb[2].mxu0 }
  0xf0   : > { %399 = vst.msk [vmem:[#allocation2] sm:$0xff] %vm307_vm1, %v396_v9  ;;  %v397_v12 = vadd.f32 %v392_v11, %v311_v8  ;;  %v617_v13 = vpop.f32.mrb[3].mxu0 }
  0xf2   : > { %400 = vst.msk [vmem:[#allocation2 + $0x8] sm:$0xff] %vm307_vm1, %v397_v12 }
  0xf7   : > { %v404_v17 = vld [vmem:[#allocation2] sm:$0xff] }
  0xf8   : > { %v413_v19 = vadd.f32 %v590_v15, %v404_v17 }
  0xf9   : > { %v405_v20 = vld [vmem:[#allocation2 + $0x8] sm:$0xff] }
  0xfa   : > { %v419_v21 = vadd.f32 %v599_v16, %v413_v19  ;;  %v414_v22 = vadd.f32 %v590_v15, %v405_v20 }
  0xfc   : > { %v421_v23 = vmax.f32 %v419_v21, 0.0  ;;  %v420_v24 = vadd.f32 %v600_v18, %v414_v22 }
  0xfe   : > { %v595_v25 = vpack.c.bf16 %v421_v23, %v421_v23  ;;  %v422_v26 = vmax.f32 %v420_v24, 0.0 }
 0x100   : > { %432 = vst.msk [vmem:[%s301_s23] sm:$0xf] %vm431_vm3, %v595_v25  ;;  %v596_v27 = vpack.c.bf16 %v422_v26, %v422_v26 }
 0x102   : > { %433 = vst.msk [vmem:[%s301_s23 + $0x4] sm:$0xf] %vm431_vm3, %v596_v27 }
 0x103 PF: > { %s14_s19 = sadd.s32 1, %s703_s19   ;;  %s815_s15 = smov %s695_s17 }
 0x104   : > { %p11_p7 = scmp.ge.s32.totalorder %s14_s19, 10   ;;  %s816_s16 = smov %s699_s18 }
 0x105   : > { %s817_s17 = smov %s820_s20  ;;  %s818_s18 = smov %s824_s21 }
 0x106   :  { %13 = sbr.rel (!%p11_p7) target bundleno = 3 (0x3), region = 80 }

// kernel: scmnet_forward.47
= control target key start
LH: loop header
LB: loop body
LE: loop exit
PB: predicated region body
PF: predicated region fallthrough
CT: control target
= control target key end

     0   :  { %s847_s15 = smov 0   ;;  %s849_s16 = smov 0   ;;  %s964_s0 = inlined_call_operand.vmem [shape: bf16[2,3,4,256], index: 0, kind: input, shape index: {}]   ;;  %s965_s1 = inlined_call_operand.vmem [shape: bf16[2,256,64], index: 1, kind: input, shape index: {}]   ;;  %s966_s2 = inlined_call_operand.vmem [shape: f32[1,64], index: 2, kind: input, shape index: {}]   ;;  %s967_s3 = inlined_call_operand.vmem [shape: bf16[2,2,4,64], index: 3, kind: input, shape index: {}]   ;;  %s968_s4 = inlined_call_operand.vmem [shape: bf16[2,2,4,64], index: 4, kind: output, shape index: {}]  }
   0x1   :  { %s851_s17 = smov 0   ;;  %s853_s18 = smov 0  }
   0x2   :  { %s855_s19 = smov 0   ;;  %s857_s20 = smov 0  }
   0x3   :  { %s859_s21 = smov 0  }
   0x4 LB: > { %s26_s22 = sadd.s32 1, %s807_s18  ;;  %s29_s23 = sadd.s32 1, %s811_s19  ;;  %s819_s21 = sphi %s859_s21, %s14_s21   ;;  %s815_s20 = sphi %s857_s20, %s974_s20   ;;  %s811_s19 = sphi %s855_s19, %s973_s19   ;;  %s807_s18 = sphi %s853_s18, %s972_s18   ;;  %s803_s17 = sphi %s851_s17, %s971_s17   ;;  %s799_s16 = sphi %s849_s16, %s970_s16   ;;  %s795_s15 = sphi %s847_s15, %s969_s15  }
   0x5   : > { %p27_p0 = scmp.ge.s32.totalorder %s26_s22, 2  ;;  %p637_p1 = scmp.ge.s32.totalorder %s819_s21, 1 }
   0x6   : > { %p218_p2 = scmp.lt.s32.totalorder %s819_s21, 9  ;;  %s33_s24 = sadd.s32 1, %s815_s20 }
   0x7   : > { %s976_s22 = smov (%p27_p0, %s26_s22), 0  ;;  %s978_s23 = smov (!%p27_p0, %s29_s23), %s811_s19 }
   0x8   : > { %p219_p3 = pnand %p637_p1, %p218_p2  ;;  %p31_p4 = scmp.ge.s32.totalorder %s978_s23, 2 }
   0x9   : > { %s265_s25 = sadd.s32 (!%p219_p3), %s795_s15, %s799_s16  ;;  %p266_p6 = scmp.lt.s32.totalorder (!%p219_p3), %s803_s17, 1 }
   0xa   : > { %s980_s23 = smov (%p31_p4, %s978_s23), 0  ;;  %s982_s24 = smov (!%p31_p4, %s33_s24), %s815_s20 }
   0xb   : > { %p35_p5 = scmp.ge.s32.totalorder %s982_s24, 2  ;;  %222 = sbr.rel (%p219_p3) target bundleno = 299 (0x12b), region = 36 }
   0xc   : > { %p268_p7 = scmp.lt.s32.totalorder (!%p219_p3), %s265_s25, 2  ;;  %p276_p8 = scmp.lt.s32.totalorder (!%p219_p3), %s795_s15, 1 }
   0xd   : > { %s984_s24 = smov (%p35_p5, %s982_s24), 0  ;;  %p283_p9 = scmp.lt.s32.totalorder (!%p219_p3), %s799_s16, 1 }
   0xe   : > { %p646_p10 = scmp.ne.s32.totalorder (!%p219_p3), %s795_s15, 0 }
  0x12   : > { %s986_s17 = smov (!%p266_p6, %s803_s17), 1  ;;  %s988_s25 = smov (!%p268_p7, %s265_s25), 2 }
  0x13   : > { %s691_s26 = smul.u32 6, %s986_s17  ;;  %s638_s27 = sshll.u32 %s988_s25, 1  ;;  %vm302_vm0 = vcmask (!%p646_p10), 519168   ;;  %v821_v0 = vmov (!%p646_p10), 0.0  }
  0x14   : > { %s642_s7 = sshll.u32 %s986_s17, 1  ;;  %s990_s16 = smov (!%p283_p9, %s799_s16), 1  ;;  %303 = vst.msk [vmem:[#allocation2] sm:$0xf] (!%p646_p10), %vm302_vm0, %v821_v0 }
  0x15   : > { %s272_s28 = sadd.s32 %s691_s26, %s638_s27  ;;  %s286_s13 = sadd.s32 %s642_s7, %s990_s16 }
  0x16   : > { %s639_s29 = sshll.u32 %s272_s28, 1  ;;  %s643_s14 = sshll.u32 %s286_s13, 1 }
  0x17   : > { %s900_s6 = scalar_lea.vmem %s964_s0, %s639_s29  ;;  %s912_s27 = scalar_lea.vmem %s967_s3, %s643_s14 }
  0x18   : > { %s277_s8 = scalar_select %p276_p8, %s795_s15, 1 }
  0x19   : > { %s917_s29 = scalar_lea.vmem %s968_s4, %s643_s14  ;;  %301 = sbr.rel (%p646_p10) target bundleno = 32 (0x20), region = 40 }
  0x1a   : > { %s668_s9 = sshll.u32 %s277_s8, 7 }
  0x1b   : > { %s907_s12 = scalar_lea.vmem %s965_s1, %s668_s9 }
  0x20 PF: > { %v749_v1 = vld [vmem:[%s907_s12 + $0x40] sm:$0xff]   ;;  %v751_v3 = vld [vmem:[%s907_s12 + $0x48] sm:$0xff]   ;;  %v753_v5 = vld [vmem:[%s907_s12 + $0x50] sm:$0xff]   ;;  %vm486_vm1 = vcmask 519168   ;;  %p664_p11 = scmp.ne.s32.totalorder %s795_s15, 1 }
  0x21   : > { %v750_v2 = vld [vmem:[%s907_s12] sm:$0xff]   ;;  %669 = vmatprep.subr.bf16.mxu0 %v749_v1  ;;  %v752_v4 = vld [vmem:[%s907_s12 + $0x8] sm:$0xff]   ;;  %v754_v6 = vld [vmem:[%s907_s12 + $0x10] sm:$0xff]   ;;  %vm506_vm2 = vcmask (!%p664_p11), 517120  }
  0x22   : > { %670 = vmatpush3.bf16.msra.mxu0 %v750_v2  ;;  %v755_v7 = vld [vmem:[%s907_s12 + $0x58] sm:$0xff]   ;;  %v757_v9 = vld [vmem:[%s907_s12 + $0x60] sm:$0xff]   ;;  %v759_v11 = vld [vmem:[%s907_s12 + $0x68] sm:$0xff]  }
  0x23   : > { %671 = vmatprep.subr.bf16.mxu0 %v751_v3  ;;  %v756_v8 = vld [vmem:[%s907_s12 + $0x18] sm:$0xff]   ;;  %v758_v10 = vld [vmem:[%s907_s12 + $0x20] sm:$0xff]   ;;  %v760_v14 = vld [vmem:[%s907_s12 + $0x28] sm:$0xff]  }
  0x24   : > { %v647_v12 = vld.sshfl [vmem:[%s900_s6] sm:$0x33 pattern:$0x76325410]  ;;  %v761_v15 = vld [vmem:[%s907_s12 + $0x70] sm:$0xff]   ;;  %v763_v17 = vld [vmem:[%s907_s12 + $0x78] sm:$0xff]  }
  0x25   : > { %v346_v13 = vcombine.high %v647_v12, %v647_v12  ;;  %v762_v16 = vld [vmem:[%s907_s12 + $0x30] sm:$0xff]   ;;  %v764_v18 = vld [vmem:[%s907_s12 + $0x38] sm:$0xff]   ;;  %v304_v20 = vld [vmem:[#allocation2] sm:$0xf] }
  0x26   : > { %672 = vmatpush3.bf16.msra.mxu0 %v752_v4  ;;  %v665_v27 = vld [vmem:[%s966_s2] ss:$0 sm:$0xff] (!%p664_p11) }
  0x27   : > { %673 = vmatprep.subr.bf16.mxu0 %v753_v5  ;;  %477 = vmatprep.mubr.bf16.mxu0 %v346_v13  ;;  %v501_v28 = vld [vmem:[%s912_s27] sm:$0x3] (!%p664_p11) }
  0x28   : > { %v502_v30 = vunpack.c.l.bf16 (!%p664_p11), %v501_v28 }
  0x2a   : > { %674 = vmatpush3.bf16.msra.mxu0 %v754_v6 }
  0x2b   : > { %675 = vmatprep.subr.bf16.mxu0 %v755_v7 }
  0x2e   : > { %676 = vmatpush3.bf16.msra.mxu0 %v756_v8 }
  0x2f   : > { %677 = vmatprep.subr.bf16.mxu0 %v757_v9 }
  0x32   : > { %678 = vmatpush3.bf16.msra.mxu0 %v758_v10 }
  0x33   : > { %679 = vmatprep.subr.bf16.mxu0 %v759_v11 }
  0x36   : > { %680 = vmatpush3.bf16.msra.mxu0 %v760_v14 }
  0x37   : > { %681 = vmatprep.subr.bf16.mxu0 %v761_v15 }
  0x3a   : > { %682 = vmatpush3.bf16.msra.mxu0 %v762_v16 }
  0x3b   : > { %683 = vmatprep.subr.bf16.mxu0 %v763_v17 }
  0x3e   : > { %684 = vmatpush3.bf16.msra.mxu0 %v764_v18 }
  0x41   : > { %478 = vmatmul.mubr.bf16.vlgmr.msra.gmra.mrb[0].mxu0 %v647_v12 }
 0x114   : > { %v685_v19 = vpop.f32.mrb[0].mxu0  ;;  %491 = sbr.rel (%p664_p11) target bundleno = 299 (0x12b), region = 44 }
 0x115   : > { %v686_v21 = vpop.f32.mrb[1].mxu0 }
 0x116   : > { %v687_v22 = vadd.f32 %v686_v21, %v685_v19  ;;  %v688_v23 = vpop.f32.mrb[2].mxu0 }
 0x117   : > { %v689_v24 = vpop.f32.mrb[3].mxu0 }
 0x118   : > { %v485_v25 = vadd.f32 %v687_v22, %v304_v20 }
 0x11a   : > { %487 = vst.msk [vmem:[#allocation2] sm:$0xf] %vm486_vm1, %v485_v25 }
 0x121   : > { %v492_v26 = vld [vmem:[#allocation2] sm:$0xf] }
 0x122   : > { %v500_v29 = vadd.f32 %v665_v27, %v492_v26 }
 0x124   : > { %v503_v31 = vadd.f32 %v502_v30, %v500_v29 }
 0x126   : > { %v504_v32 = vmax.f32 %v503_v31, 0.0 }
 0x128   : > { %v505_v33 = vpack.c.bf16 %v504_v32, %v504_v32 }
 0x12a   : > { %507 = vst.msk [vmem:[%s917_s29] sm:$0x3] %vm506_vm2, %v505_v33 }
 0x12b PF: > { %s14_s21 = sadd.s32 1, %s819_s21   ;;  %s969_s15 = smov %s807_s18 }
 0x12c   : > { %p11_p12 = scmp.ge.s32.totalorder %s14_s21, 10   ;;  %s970_s16 = smov %s811_s19 }
 0x12d   : > { %s971_s17 = smov %s815_s20  ;;  %s972_s18 = smov %s976_s22 }
 0x12e   : > { %s973_s19 = smov %s980_s23  ;;  %s974_s20 = smov %s984_s24 }
 0x12f   :  { %13 = sbr.rel (!%p11_p12) target bundleno = 4 (0x4), region = 80 }

// kernel: scmnet_forward.49
= control target key start
LH: loop header
LB: loop body
LE: loop exit
PB: predicated region body
PF: predicated region fallthrough
CT: control target
= control target key end

     0   :  { %s780_s15 = smov 0   ;;  %s782_s16 = smov 0   ;;  %s870_s0 = inlined_call_operand.vmem [shape: bf16[2,4,16,128], index: 0, kind: input, shape index: {}]   ;;  %s871_s1 = inlined_call_operand.vmem [shape: bf16[1,128,32], index: 1, kind: input, shape index: {}]   ;;  %s872_s2 = inlined_call_operand.vmem [shape: f32[1,32], index: 2, kind: input, shape index: {}]   ;;  %s873_s3 = inlined_call_operand.vmem [shape: bf16[2,4,16,32], index: 3, kind: input, shape index: {}]   ;;  %s874_s4 = inlined_call_operand.vmem [shape: bf16[2,4,16,32], index: 4, kind: output, shape index: {}]  }
   0x1   :  { %s784_s17 = smov 0   ;;  %s786_s18 = smov 0  }
   0x2   :  { %s788_s19 = smov 0  }
   0x3 LB: > { %s29_s20 = sadd.s32 1, %s743_s17  ;;  %s33_s21 = sadd.s32 1, %s747_s18  ;;  %s751_s19 = sphi %s788_s19, %s14_s19   ;;  %s747_s18 = sphi %s786_s18, %s878_s18   ;;  %s743_s17 = sphi %s784_s17, %s877_s17   ;;  %s739_s16 = sphi %s782_s16, %s876_s16   ;;  %s735_s15 = sphi %s780_s15, %s875_s15  }
   0x4   : > { %p31_p0 = scmp.ge.s32.totalorder %s29_s20, 4  ;;  %p603_p1 = scmp.ge.s32.totalorder %s751_s19, 1 }
   0x5   : > { %p219_p2 = scmp.lt.s32.totalorder %s751_s19, 9 }
   0x6   : > { %s880_s20 = smov (%p31_p0, %s29_s20), 0  ;;  %s882_s21 = smov (!%p31_p0, %s33_s21), %s747_s18 }
   0x7   : > { %p220_p3 = pnand %p603_p1, %p219_p2  ;;  %p35_p4 = scmp.ge.s32.totalorder %s882_s21, 2 }
   0x8   : > { %v704_v0 = vld [vmem:[%s871_s1] sm:$0xff] (!%p220_p3)   ;;  %v753_v1 = vmov (!%p220_p3), 0.0   ;;  %v705_v2 = vld [vmem:[%s871_s1 + $0x8] sm:$0xff] (!%p220_p3)   ;;  %vm754_vm0 = vmmov (!%p220_p3), 0   ;;  %p269_p5 = scmp.lt.s32.totalorder (!%p220_p3), %s739_s16, 1  ;;  %p271_p6 = scmp.lt.s32.totalorder (!%p220_p3), %s735_s15, 3 }
   0x9   : > { %s884_s21 = smov (%p35_p4, %s882_s21), 0  ;;  %223 = sbr.rel (%p220_p3) target bundleno = 275 (0x113), region = 36 }
   0xa   : > { %642 = vmatprep.subr.bf16.mxu0 (!%p220_p3), %v753_v1  ;;  %658 = vmatprep.mubr.msk.bf16.mxu0 (!%p220_p3), %vm754_vm0, %v753_v1  ;;  %v706_v3 = vld [vmem:[%s871_s1 + $0x10] sm:$0xff] (!%p220_p3)   ;;  %vm307_vm1 = vcmask (!%p220_p3), 261120   ;;  %v707_v4 = vld [vmem:[%s871_s1 + $0x18] sm:$0xff] (!%p220_p3)   ;;  %v708_v5 = vld [vmem:[%s871_s1 + $0x20] sm:$0xff] (!%p220_p3)   ;;  %vm460_vm2 = vcmask (!%p220_p3), 257024  }
   0xb   : > { %643 = vmatpush3.bf16.msra.mxu0 (!%p220_p3), %v704_v0  ;;  %308 = vst.msk [vmem:[#allocation2] sm:$0xff] (!%p220_p3), %vm307_vm1, %v753_v1  ;;  %309 = vst.msk [vmem:[#allocation2 + $0x8] sm:$0xff] (!%p220_p3), %vm307_vm1, %v753_v1  ;;  %v709_v6 = vld [vmem:[%s871_s1 + $0x28] sm:$0xff] (!%p220_p3)   ;;  %v710_v7 = vld [vmem:[%s871_s1 + $0x30] sm:$0xff] (!%p220_p3)  }
   0xc   : > { %644 = vmatprep.subr.bf16.mxu0 (!%p220_p3), %v753_v1  ;;  %v711_v8 = vld [vmem:[%s871_s1 + $0x38] sm:$0xff] (!%p220_p3)   ;;  %v622_v19 = vld [vmem:[%s872_s2] ss:$0 sm:$0xff] (!%p220_p3) }
   0xf   : > { %645 = vmatpush3.bf16.msra.mxu0 (!%p220_p3), %v705_v2 }
  0x10   : > { %s886_s16 = smov (!%p269_p5, %s739_s16), 1  ;;  %s888_s15 = smov (!%p271_p6, %s735_s15), 3  ;;  %646 = vmatprep.subr.bf16.mxu0 %v753_v1 }
  0x11   : > { %s605_s28 = sshll.u32 %s886_s16, 3  ;;  %s604_s29 = sshll.u32 %s888_s15, 1 }
  0x12   : > { %s275_s30 = sadd.s32 %s605_s28, %s604_s29  ;;  %v310_v10 = vld [vmem:[#allocation2] sm:$0xff]  ;;  %v311_v12 = vld [vmem:[#allocation2 + $0x8] sm:$0xff] }
  0x13   : > { %s819_s5 = sshll.u32 %s275_s30, 2  ;;  %647 = vmatpush3.bf16.msra.mxu0 %v706_v3 }
  0x14   : > { %s277_s10 = scalar_lea.vmem %s870_s0, %s819_s5  ;;  %648 = vmatprep.subr.bf16.mxu0 %v753_v1  ;;  %s292_s26 = scalar_lea.vmem %s873_s3, %s819_s5 }
  0x15   : > { %v712_v9 = vld [vmem:[%s277_s10] sm:$0xff]   ;;  %s301_s6 = scalar_lea.vmem %s874_s4, %s819_s5 }
  0x16   : > { %v630_v18 = vld [vmem:[%s292_s26] sm:$0xff]  }
  0x17   : > { %649 = vmatpush3.bf16.msra.mxu0 %v707_v4  ;;  %v631_v20 = vunpack.c.l.bf16 %v630_v18  ;;  %v632_v22 = vunpack.c.h.bf16 %v630_v18 }
  0x18   : > { %650 = vmatprep.subr.bf16.mxu0 %v753_v1 }
  0x1b   : > { %651 = vmatpush3.bf16.msra.mxu0 %v708_v5 }
  0x1c   : > { %652 = vmatprep.subr.bf16.mxu0 %v753_v1 }
  0x1f   : > { %653 = vmatpush3.bf16.msra.mxu0 %v709_v6 }
  0x20   : > { %654 = vmatprep.subr.bf16.mxu0 %v753_v1 }
  0x23   : > { %655 = vmatpush3.bf16.msra.mxu0 %v710_v7 }
  0x24   : > { %656 = vmatprep.subr.bf16.mxu0 %v753_v1 }
  0x27   : > { %657 = vmatpush3.bf16.msra.mxu0 %v711_v8 }
  0x2a   : > { %659 = vmatmul.mubr.bf16.vlgmr.msra.gmra.mrb[0].mxu0 %v712_v9 }
  0xfd   : > { %v418_v11 = vpop.f32.mrb[0].mxu0 }
  0xfe   : > { %v425_v13 = vadd.f32 %v418_v11, %v310_v10  ;;  %v660_v14 = vpop.f32.mrb[1].mxu0 }
  0xff   : > { %v421_v15 = vpop.f32.mrb[2].mxu0 }
 0x100   : > { %428 = vst.msk [vmem:[#allocation2] sm:$0xff] %vm307_vm1, %v425_v13  ;;  %v426_v16 = vadd.f32 %v421_v15, %v311_v12  ;;  %v661_v17 = vpop.f32.mrb[3].mxu0 }
 0x102   : > { %429 = vst.msk [vmem:[#allocation2 + $0x8] sm:$0xff] %vm307_vm1, %v426_v16 }
 0x107   : > { %v433_v21 = vld [vmem:[#allocation2] sm:$0xff] }
 0x108   : > { %v442_v23 = vadd.f32 %v622_v19, %v433_v21 }
 0x109   : > { %v434_v24 = vld [vmem:[#allocation2 + $0x8] sm:$0xff] }
 0x10a   : > { %v448_v25 = vadd.f32 %v631_v20, %v442_v23  ;;  %v443_v26 = vadd.f32 %v622_v19, %v434_v24 }
 0x10c   : > { %v450_v27 = vmax.f32 %v448_v25, 0.0  ;;  %v449_v28 = vadd.f32 %v632_v22, %v443_v26 }
 0x10e   : > { %v627_v29 = vpack.c.bf16 %v450_v27, %v450_v27  ;;  %v451_v30 = vmax.f32 %v449_v28, 0.0 }
 0x110   : > { %461 = vst.msk [vmem:[%s301_s6] sm:$0xf] %vm460_vm2, %v627_v29  ;;  %v628_v31 = vpack.c.bf16 %v451_v30, %v451_v30 }
 0x112   : > { %462 = vst.msk [vmem:[%s301_s6 + $0x4] sm:$0xf] %vm460_vm2, %v628_v31 }
 0x113 PF: > { %s14_s19 = sadd.s32 1, %s751_s19   ;;  %s875_s15 = smov %s743_s17 }
 0x114   : > { %p11_p7 = scmp.ge.s32.totalorder %s14_s19, 10   ;;  %s876_s16 = smov %s747_s18 }
 0x115   : > { %s877_s17 = smov %s880_s20  ;;  %s878_s18 = smov %s884_s21 }
 0x116   :  { %13 = sbr.rel (!%p11_p7) target bundleno = 3 (0x3), region = 80 }

// kernel: scmnet_forward.51
= control target key start
LH: loop header
LB: loop body
LE: loop exit
PB: predicated region body
PF: predicated region fallthrough
CT: control target
= control target key end

     0   :  { %s858_s15 = smov 0   ;;  %s860_s16 = smov 0   ;;  %s970_s0 = inlined_call_operand.vmem [shape: bf16[2,4,16,256], index: 0, kind: input, shape index: {}]   ;;  %s971_s1 = inlined_call_operand.vmem [shape: bf16[1,256,32], index: 1, kind: input, shape index: {}]   ;;  %s972_s2 = inlined_call_operand.vmem [shape: f32[1,32], index: 2, kind: input, shape index: {}]   ;;  %s973_s3 = inlined_call_operand.vmem [shape: bf16[2,4,16,32], index: 3, kind: input, shape index: {}]   ;;  %s974_s4 = inlined_call_operand.vmem [shape: bf16[2,4,16,32], index: 4, kind: output, shape index: {}]  }
   0x1   :  { %s862_s17 = smov 0   ;;  %s864_s18 = smov 0  }
   0x2   :  { %s866_s19 = smov 0  }
   0x3 LB: > { %s29_s20 = sadd.s32 1, %s822_s17  ;;  %s33_s21 = sadd.s32 1, %s826_s18  ;;  %s830_s19 = sphi %s866_s19, %s14_s19   ;;  %s826_s18 = sphi %s864_s18, %s978_s18   ;;  %s822_s17 = sphi %s862_s17, %s977_s17   ;;  %s818_s16 = sphi %s860_s16, %s976_s16   ;;  %s814_s15 = sphi %s858_s15, %s975_s15  }
   0x4   : > { %p31_p0 = scmp.ge.s32.totalorder %s29_s20, 4  ;;  %p671_p1 = scmp.ge.s32.totalorder %s830_s19, 1 }
   0x5   : > { %p219_p2 = scmp.lt.s32.totalorder %s830_s19, 9 }
   0x6   : > { %s980_s20 = smov (%p31_p0, %s29_s20), 0  ;;  %s982_s21 = smov (!%p31_p0, %s33_s21), %s826_s18 }
   0x7   : > { %p220_p3 = pnand %p671_p1, %p219_p2  ;;  %p35_p4 = scmp.ge.s32.totalorder %s982_s21, 2 }
   0x8   : > { %v773_v0 = vld [vmem:[%s971_s1 + $0x40] sm:$0xff] (!%p220_p3)   ;;  %p269_p5 = scmp.lt.s32.totalorder (!%p220_p3), %s818_s16, 1  ;;  %p271_p6 = scmp.lt.s32.totalorder (!%p220_p3), %s814_s15, 3  ;;  %v775_v2 = vld [vmem:[%s971_s1 + $0x48] sm:$0xff] (!%p220_p3)   ;;  %v777_v4 = vld [vmem:[%s971_s1 + $0x50] sm:$0xff] (!%p220_p3)   ;;  %vm307_vm0 = vcmask (!%p220_p3), 261120  }
   0x9   : > { %s984_s21 = smov (%p35_p4, %s982_s21), 0  ;;  %223 = sbr.rel (%p220_p3) target bundleno = 278 (0x116), region = 36 }
   0xa   : > { %v774_v1 = vld [vmem:[%s971_s1] sm:$0xff] (!%p220_p3)   ;;  %710 = vmatprep.subr.bf16.mxu0 (!%p220_p3), %v773_v0  ;;  %v776_v3 = vld [vmem:[%s971_s1 + $0x8] sm:$0xff] (!%p220_p3)   ;;  %v778_v5 = vld [vmem:[%s971_s1 + $0x10] sm:$0xff] (!%p220_p3)   ;;  %v832_v18 = vmov (!%p220_p3), 0.0   ;;  %vm528_vm1 = vcmask (!%p220_p3), 257024  }
   0xb   : > { %711 = vmatpush3.bf16.msra.mxu0 (!%p220_p3), %v774_v1  ;;  %v779_v6 = vld [vmem:[%s971_s1 + $0x58] sm:$0xff] (!%p220_p3)   ;;  %v781_v8 = vld [vmem:[%s971_s1 + $0x60] sm:$0xff] (!%p220_p3)   ;;  %v783_v10 = vld [vmem:[%s971_s1 + $0x68] sm:$0xff] (!%p220_p3)   ;;  %308 = vst.msk [vmem:[#allocation2] sm:$0xff] (!%p220_p3), %vm307_vm0, %v832_v18 }
   0xc   : > { %712 = vmatprep.subr.bf16.mxu0 (!%p220_p3), %v775_v2  ;;  %v780_v7 = vld [vmem:[%s971_s1 + $0x18] sm:$0xff] (!%p220_p3)   ;;  %v782_v9 = vld [vmem:[%s971_s1 + $0x20] sm:$0xff] (!%p220_p3)   ;;  %v784_v12 = vld [vmem:[%s971_s1 + $0x28] sm:$0xff] (!%p220_p3)   ;;  %309 = vst.msk [vmem:[#allocation2 + $0x8] sm:$0xff] (!%p220_p3), %vm307_vm0, %v832_v18 }
   0xd   : > { %v785_v13 = vld [vmem:[%s971_s1 + $0x70] sm:$0xff] (!%p220_p3)   ;;  %v787_v15 = vld [vmem:[%s971_s1 + $0x78] sm:$0xff] (!%p220_p3)   ;;  %v699_v30 = vld [vmem:[%s972_s2] ss:$0 sm:$0xff] (!%p220_p3) }
   0xe   : > { %v786_v14 = vld [vmem:[%s971_s1 + $0x30] sm:$0xff] (!%p220_p3)   ;;  %v788_v16 = vld [vmem:[%s971_s1 + $0x38] sm:$0xff] (!%p220_p3)  }
   0xf   : > { %713 = vmatpush3.bf16.msra.mxu0 (!%p220_p3), %v776_v3 }
  0x10   : > { %s986_s16 = smov (!%p269_p5, %s818_s16), 1  ;;  %s988_s15 = smov (!%p271_p6, %s814_s15), 3  ;;  %714 = vmatprep.subr.bf16.mxu0 %v777_v4 }
  0x11   : > { %s672_s6 = sshll.u32 %s988_s15, 2  ;;  %s673_s7 = sshll.u32 %s986_s16, 4 }
  0x12   : > { %s675_s8 = sshll.u32 %s988_s15, 1  ;;  %s275_s13 = sadd.s32 %s673_s7, %s672_s6  ;;  %v310_v20 = vld [vmem:[#allocation2] sm:$0xff] }
  0x13   : > { %s676_s14 = sshll.u32 %s986_s16, 3  ;;  %715 = vmatpush3.bf16.msra.mxu0 %v778_v5  ;;  %s674_s15 = sshll.u32 %s275_s13, 2  ;;  %v311_v24 = vld [vmem:[#allocation2 + $0x8] sm:$0xff] }
  0x14   : > { %s909_s22 = sadd.s32 %s676_s14, %s675_s8  ;;  %716 = vmatprep.subr.bf16.mxu0 %v779_v6  ;;  %s277_s29 = scalar_lea.vmem %s970_s0, %s674_s15 }
  0x15   : > { %v791_v11 = vld [vmem:[%s277_s29 + $0x4] ss:$8 sps:$4 sm:$0xff]   ;;  %v789_v17 = vld [vmem:[%s277_s29] ss:$8 sps:$4 sm:$0xff]   ;;  %s677_s15 = sshll.u32 %s909_s22, 2 }
  0x16   : > { %484 = vmatprep.mubr.bf16.mxu0 %v791_v11  ;;  %s292_s27 = scalar_lea.vmem %s973_s3, %s677_s15  ;;  %s301_s16 = scalar_lea.vmem %s974_s4, %s677_s15 }
  0x17   : > { %717 = vmatpush3.bf16.msra.mxu0 %v780_v7  ;;  %v707_v29 = vld [vmem:[%s292_s27] sm:$0xff]  }
  0x18   : > { %718 = vmatprep.subr.bf16.mxu0 %v781_v8  ;;  %v708_v31 = vunpack.c.l.bf16 %v707_v29  ;;  %v709_v33 = vunpack.c.h.bf16 %v707_v29 }
  0x1b   : > { %719 = vmatpush3.bf16.msra.mxu0 %v782_v9 }
  0x1c   : > { %720 = vmatprep.subr.bf16.mxu0 %v783_v10 }
  0x1f   : > { %721 = vmatpush3.bf16.msra.mxu0 %v784_v12 }
  0x20   : > { %722 = vmatprep.subr.bf16.mxu0 %v785_v13 }
  0x23   : > { %723 = vmatpush3.bf16.msra.mxu0 %v786_v14 }
  0x24   : > { %724 = vmatprep.subr.bf16.mxu0 %v787_v15 }
  0x27   : > { %725 = vmatpush3.bf16.msra.mxu0 %v788_v16 }
  0x2a   : > { %485 = vmatmul.mubr.bf16.vlgmr.msra.gmra.mrb[0].mxu0 %v789_v17 }
  0xfd   : > { %v726_v19 = vpop.f32.mrb[0].mxu0 }
  0xfe   : > { %v727_v21 = vpop.f32.mrb[1].mxu0 }
  0xff   : > { %v728_v22 = vadd.f32 %v727_v21, %v726_v19  ;;  %v729_v23 = vpop.f32.mrb[2].mxu0 }
 0x100   : > { %v730_v25 = vpop.f32.mrb[3].mxu0 }
 0x101   : > { %v493_v26 = vadd.f32 %v728_v22, %v310_v20  ;;  %v731_v27 = vadd.f32 %v730_v25, %v729_v23 }
 0x103   : > { %496 = vst.msk [vmem:[#allocation2] sm:$0xff] %vm307_vm0, %v493_v26  ;;  %v494_v28 = vadd.f32 %v731_v27, %v311_v24 }
 0x105   : > { %497 = vst.msk [vmem:[#allocation2 + $0x8] sm:$0xff] %vm307_vm0, %v494_v28 }
 0x10a   : > { %v501_v32 = vld [vmem:[#allocation2] sm:$0xff] }
 0x10b   : > { %v510_v34 = vadd.f32 %v699_v30, %v501_v32 }
 0x10c   : > { %v502_v35 = vld [vmem:[#allocation2 + $0x8] sm:$0xff] }
 0x10d   : > { %v516_v36 = vadd.f32 %v708_v31, %v510_v34  ;;  %v511_v37 = vadd.f32 %v699_v30, %v502_v35 }
 0x10f   : > { %v518_v38 = vmax.f32 %v516_v36, 0.0  ;;  %v517_v39 = vadd.f32 %v709_v33, %v511_v37 }
 0x111   : > { %v704_v40 = vpack.c.bf16 %v518_v38, %v518_v38  ;;  %v519_v41 = vmax.f32 %v517_v39, 0.0 }
 0x113   : > { %529 = vst.msk [vmem:[%s301_s16] sm:$0xf] %vm528_vm1, %v704_v40  ;;  %v705_v42 = vpack.c.bf16 %v519_v41, %v519_v41 }
 0x115   : > { %530 = vst.msk [vmem:[%s301_s16 + $0x4] sm:$0xf] %vm528_vm1, %v705_v42 }
 0x116 PF: > { %s14_s19 = sadd.s32 1, %s830_s19   ;;  %s975_s15 = smov %s822_s17 }
 0x117   : > { %p11_p7 = scmp.ge.s32.totalorder %s14_s19, 10   ;;  %s976_s16 = smov %s826_s18 }
 0x118   : > { %s977_s17 = smov %s980_s20  ;;  %s978_s18 = smov %s984_s21 }
 0x119   :  { %13 = sbr.rel (!%p11_p7) target bundleno = 3 (0x3), region = 80 }

// kernel: scmnet_forward.52
= control target key start
LH: loop header
LB: loop body
LE: loop exit
PB: predicated region body
PF: predicated region fallthrough
CT: control target
= control target key end

     0   :  { %s770_s15 = smov 0   ;;  %s772_s16 = smov 0   ;;  %s870_s0 = inlined_call_operand.vmem [shape: bf16[2,5,16,64], index: 0, kind: input, shape index: {}]   ;;  %s871_s1 = inlined_call_operand.vmem [shape: bf16[2,64,32], index: 1, kind: input, shape index: {}]   ;;  %s872_s2 = inlined_call_operand.vmem [shape: f32[1,32], index: 2, kind: input, shape index: {}]   ;;  %s873_s3 = inlined_call_operand.vmem [shape: bf16[2,4,16,32], index: 3, kind: input, shape index: {}]   ;;  %s874_s4 = inlined_call_operand.vmem [shape: bf16[2,4,16,32], index: 4, kind: output, shape index: {}]  }
   0x1   :  { %s774_s17 = smov 0   ;;  %s776_s18 = smov 0  }
   0x2   :  { %s778_s19 = smov 0   ;;  %s780_s20 = smov 0  }
   0x3   :  { %s782_s21 = smov 0  }
   0x4 LB: > { %s26_s22 = sadd.s32 1, %s728_s18  ;;  %s29_s23 = sadd.s32 1, %s732_s19  ;;  %s740_s21 = sphi %s782_s21, %s14_s21   ;;  %s736_s20 = sphi %s780_s20, %s882_s20   ;;  %s732_s19 = sphi %s778_s19, %s881_s19   ;;  %s728_s18 = sphi %s776_s18, %s880_s18   ;;  %s724_s17 = sphi %s774_s17, %s879_s17   ;;  %s720_s16 = sphi %s772_s16, %s878_s16   ;;  %s716_s15 = sphi %s770_s15, %s877_s15  }
   0x5   : > { %p27_p0 = scmp.ge.s32.totalorder %s26_s22, 2  ;;  %p573_p1 = scmp.ge.s32.totalorder %s740_s21, 1 }
   0x6   : > { %p219_p2 = scmp.lt.s32.totalorder %s740_s21, 17  ;;  %s33_s24 = sadd.s32 1, %s736_s20 }
   0x7   : > { %s884_s22 = smov (%p27_p0, %s26_s22), 0  ;;  %s886_s23 = smov (!%p27_p0, %s29_s23), %s732_s19 }
   0x8   : > { %p220_p3 = pnand %p573_p1, %p219_p2  ;;  %p31_p4 = scmp.ge.s32.totalorder %s886_s23, 4 }
   0x9   : > { %s268_s25 = sadd.s32 (!%p220_p3), %s716_s15, %s720_s16  ;;  %p269_p6 = scmp.lt.s32.totalorder (!%p220_p3), %s724_s17, 1 }
   0xa   : > { %s888_s23 = smov (%p31_p4, %s886_s23), 0  ;;  %s890_s24 = smov (!%p31_p4, %s33_s24), %s736_s20 }
   0xb   : > { %p35_p5 = scmp.ge.s32.totalorder %s890_s24, 2  ;;  %223 = sbr.rel (%p220_p3) target bundleno = 283 (0x11b), region = 36 }
   0xc   : > { %p271_p7 = scmp.lt.s32.totalorder (!%p220_p3), %s268_s25, 4  ;;  %p279_p8 = scmp.lt.s32.totalorder (!%p220_p3), %s716_s15, 1 }
   0xd   : > { %s892_s24 = smov (%p35_p5, %s890_s24), 0  ;;  %p286_p9 = scmp.lt.s32.totalorder (!%p220_p3), %s720_s16, 3 }
   0xe   : > { %875 = sst [smem:[#allocation3_spill]] %s892_s24  ;;  %p584_p10 = scmp.ne.s32.totalorder (!%p220_p3), %s716_s15, 0 }
  0x12   : > { %s894_s17 = smov (!%p269_p6, %s724_s17), 1  ;;  %s896_s25 = smov (!%p271_p7, %s268_s25), 4 }
  0x13   : > { %s621_s26 = smul.u32 10, %s894_s17  ;;  %s574_s27 = sshll.u32 %s896_s25, 1  ;;  %vm307_vm0 = vcmask (!%p584_p10), 261120   ;;  %v742_v0 = vmov (!%p584_p10), 0.0  }
  0x14   : > { %s579_s7 = sshll.u32 %s894_s17, 3  ;;  %s898_s16 = smov (!%p286_p9, %s720_s16), 3  ;;  %308 = vst.msk [vmem:[#allocation2] sm:$0xff] (!%p584_p10), %vm307_vm0, %v742_v0  ;;  %309 = vst.msk [vmem:[#allocation2 + $0x8] sm:$0xff] (!%p584_p10), %vm307_vm0, %v742_v0 }
  0x15   : > { %s275_s28 = sadd.s32 %s621_s26, %s574_s27  ;;  %s578_s13 = sshll.u32 %s898_s16, 1 }
  0x16   : > { %s575_s29 = sshll.u32 %s275_s28, 2  ;;  %s290_s14 = sadd.s32 %s579_s7, %s578_s13 }
  0x17   : > { %s823_s6 = scalar_lea.vmem %s870_s0, %s575_s29  ;;  %s580_s25 = sshll.u32 %s290_s14, 2 }
  0x18   : > { %s280_s8 = scalar_select %p279_p8, %s716_s15, 1 }
  0x19   : > { %s833_s27 = scalar_lea.vmem %s873_s3, %s580_s25  ;;  %s838_s29 = scalar_lea.vmem %s874_s4, %s580_s25 }
  0x1a   : > { %s597_s9 = sshll.u32 %s280_s8, 5  ;;  %306 = sbr.rel (%p584_p10) target bundleno = 33 (0x21), region = 40 }
  0x1b   : > { %s283_s12 = scalar_lea.vmem %s871_s1, %s597_s9 }
  0x21 PF: > { %v681_v1 = vld [vmem:[%s283_s12] sm:$0xff]   ;;  %v743_v2 = vmov 0.0   ;;  %v682_v3 = vld [vmem:[%s283_s12 + $0x8] sm:$0xff]   ;;  %vm744_vm1 = vmmov 0   ;;  %v683_v4 = vld [vmem:[%s283_s12 + $0x10] sm:$0xff]   ;;  %vm351_vm2 = vcmask 523264  }
  0x22   : > { %609 = vmatprep.subr.bf16.mxu0 %v743_v2  ;;  %617 = vmatprep.mubr.msk.bf16.mxu0 %vm744_vm1, %v743_v2  ;;  %v684_v5 = vld [vmem:[%s283_s12 + $0x18] sm:$0xff]   ;;  %v685_v6 = vld [vmem:[%s823_s6] sm:$0xff]   ;;  %vm398_vm3 = vcmask 261120   ;;  %v311_v9 = vld [vmem:[#allocation2 + $0x8] sm:$0xff]  ;;  %p591_p11 = scmp.ne.s32.totalorder %s716_s15, 1 }
  0x23   : > { %610 = vmatpush3.bf16.msra.mxu0 %v681_v1  ;;  %v310_v7 = vld [vmem:[#allocation2] sm:$0xff]  ;;  %vm432_vm4 = vcmask (!%p591_p11), 257024  }
  0x24   : > { %611 = vmatprep.subr.bf16.mxu0 %v743_v2  ;;  %v592_v16 = vld [vmem:[%s872_s2] ss:$0 sm:$0xff] (!%p591_p11) }
  0x25   : > { %v601_v17 = vld [vmem:[%s833_s27] sm:$0xff] (!%p591_p11)  }
  0x26   : > { %v602_v19 = vunpack.c.l.bf16 (!%p591_p11), %v601_v17  ;;  %v603_v21 = vunpack.c.h.bf16 (!%p591_p11), %v601_v17 }
  0x27   : > { %612 = vmatpush3.bf16.msra.mxu0 %v682_v3 }
  0x28   : > { %613 = vmatprep.subr.bf16.mxu0 %v743_v2 }
  0x2b   : > { %614 = vmatpush3.bf16.msra.mxu0 %v683_v4 }
  0x2c   : > { %615 = vmatprep.subr.bf16.mxu0 %v743_v2 }
  0x2f   : > { %616 = vmatpush3.bf16.msra.mxu0 %v684_v5 }
  0x32   : > { %618 = vmatmul.mubr.msk.bf16.vlgmr.msra.gmra.mrb[0].mxu0 %vm351_vm2, %v685_v6 }
 0x104   : > { %404 = sbr.rel (%p591_p11) target bundleno = 283 (0x11b), region = 44 }
 0x105   : > { %v389_v8 = vpop.f32.mrb[0].mxu0 }
 0x106   : > { %v396_v10 = vadd.f32 %v389_v8, %v310_v7  ;;  %v619_v11 = vpop.f32.mrb[1].mxu0 }
 0x107   : > { %v392_v12 = vpop.f32.mrb[2].mxu0 }
 0x108   : > { %399 = vst.msk [vmem:[#allocation2] sm:$0xff] %vm398_vm3, %v396_v10  ;;  %v397_v13 = vadd.f32 %v392_v12, %v311_v9  ;;  %v620_v14 = vpop.f32.mrb[3].mxu0 }
 0x10a   : > { %400 = vst.msk [vmem:[#allocation2 + $0x8] sm:$0xff] %vm398_vm3, %v397_v13 }
 0x10f   : > { %v405_v15 = vld [vmem:[#allocation2] sm:$0xff] }
 0x110   : > { %v414_v18 = vadd.f32 %v592_v16, %v405_v15 }
 0x111   : > { %v406_v20 = vld [vmem:[#allocation2 + $0x8] sm:$0xff] }
 0x112   : > { %v415_v22 = vadd.f32 %v592_v16, %v406_v20  ;;  %v420_v23 = vadd.f32 %v602_v19, %v414_v18 }
 0x114   : > { %v421_v24 = vadd.f32 %v603_v21, %v415_v22  ;;  %v422_v25 = vmax.f32 %v420_v23, 0.0 }
 0x116   : > { %v423_v26 = vmax.f32 %v421_v24, 0.0  ;;  %v598_v27 = vpack.c.bf16 %v422_v25, %v422_v25 }
 0x118   : > { %v599_v28 = vpack.c.bf16 %v423_v26, %v423_v26  ;;  %433 = vst.msk [vmem:[%s838_s29] sm:$0xf] %vm432_vm4, %v598_v27 }
 0x11a   : > { %434 = vst.msk [vmem:[%s838_s29 + $0x4] sm:$0xf] %vm432_vm4, %v599_v28 }
 0x11b PF: > { %s14_s21 = sadd.s32 1, %s740_s21   ;;  %s876_s24 = sld [smem:[#allocation3_spill]] }
 0x11c   : > { %p11_p12 = scmp.ge.s32.totalorder %s14_s21, 18   ;;  %s877_s15 = smov %s728_s18 }
 0x11d   : > { %s878_s16 = smov %s732_s19  ;;  %s879_s17 = smov %s736_s20 }
 0x11e   : > { %s880_s18 = smov %s884_s22  ;;  %s881_s19 = smov %s888_s23 }
 0x11f   :  { %13 = sbr.rel (!%p11_p12) target bundleno = 4 (0x4), region = 80 }
 0x121   : > { %s882_s20 = smov %s876_s24 }

// kernel: scmnet_forward.53
= control target key start
LH: loop header
LB: loop body
LE: loop exit
PB: predicated region body
PF: predicated region fallthrough
CT: control target
= control target key end

     0   :  { %s818_s15 = smov 0   ;;  %s820_s16 = smov 0   ;;  %s928_s0 = inlined_call_operand.vmem [shape: bf16[2,5,16,128], index: 0, kind: input, shape index: {}]   ;;  %s929_s1 = inlined_call_operand.vmem [shape: bf16[2,128,32], index: 1, kind: input, shape index: {}]   ;;  %s930_s2 = inlined_call_operand.vmem [shape: f32[1,32], index: 2, kind: input, shape index: {}]   ;;  %s931_s3 = inlined_call_operand.vmem [shape: bf16[2,4,16,32], index: 3, kind: input, shape index: {}]   ;;  %s932_s4 = inlined_call_operand.vmem [shape: bf16[2,4,16,32], index: 4, kind: output, shape index: {}]  }
   0x1   :  { %s822_s17 = smov 0   ;;  %s824_s18 = smov 0  }
   0x2   :  { %s826_s19 = smov 0   ;;  %s828_s20 = smov 0  }
   0x3   :  { %s830_s21 = smov 0  }
   0x4 LB: > { %s26_s22 = sadd.s32 1, %s776_s18  ;;  %s29_s23 = sadd.s32 1, %s780_s19  ;;  %s788_s21 = sphi %s830_s21, %s14_s21   ;;  %s784_s20 = sphi %s828_s20, %s938_s20   ;;  %s780_s19 = sphi %s826_s19, %s937_s19   ;;  %s776_s18 = sphi %s824_s18, %s936_s18   ;;  %s772_s17 = sphi %s822_s17, %s935_s17   ;;  %s768_s16 = sphi %s820_s16, %s934_s16   ;;  %s764_s15 = sphi %s818_s15, %s933_s15  }
   0x5   : > { %p27_p0 = scmp.ge.s32.totalorder %s26_s22, 2  ;;  %p602_p1 = scmp.ge.s32.totalorder %s788_s21, 1 }
   0x6   : > { %p219_p2 = scmp.lt.s32.totalorder %s788_s21, 17  ;;  %s33_s24 = sadd.s32 1, %s784_s20 }
   0x7   : > { %s940_s22 = smov (%p27_p0, %s26_s22), 0  ;;  %s942_s23 = smov (!%p27_p0, %s29_s23), %s780_s19 }
   0x8   : > { %p220_p3 = pnand %p602_p1, %p219_p2  ;;  %p31_p4 = scmp.ge.s32.totalorder %s942_s23, 4 }
   0x9   : > { %s268_s25 = sadd.s32 (!%p220_p3), %s764_s15, %s768_s16  ;;  %p269_p6 = scmp.lt.s32.totalorder (!%p220_p3), %s772_s17, 1 }
   0xa   : > { %s944_s23 = smov (%p31_p4, %s942_s23), 0  ;;  %s946_s24 = smov (!%p31_p4, %s33_s24), %s784_s20 }
   0xb   : > { %p35_p5 = scmp.ge.s32.totalorder %s946_s24, 2  ;;  %223 = sbr.rel (%p220_p3) target bundleno = 299 (0x12b), region = 36 }
   0xc   : > { %p271_p7 = scmp.lt.s32.totalorder (!%p220_p3), %s268_s25, 4  ;;  %p279_p8 = scmp.lt.s32.totalorder (!%p220_p3), %s764_s15, 1 }
   0xd   : > { %s948_s24 = smov (%p35_p5, %s946_s24), 0  ;;  %p286_p9 = scmp.lt.s32.totalorder (!%p220_p3), %s768_s16, 3 }
   0xe   : > { %p613_p10 = scmp.ne.s32.totalorder (!%p220_p3), %s764_s15, 0 }
  0x12   : > { %s950_s17 = smov (!%p269_p6, %s772_s17), 1  ;;  %s952_s25 = smov (!%p271_p7, %s268_s25), 4 }
  0x13   : > { %s665_s26 = smul.u32 10, %s950_s17  ;;  %s603_s27 = sshll.u32 %s952_s25, 1  ;;  %vm307_vm0 = vcmask (!%p613_p10), 261120   ;;  %v790_v0 = vmov (!%p613_p10), 0.0  }
  0x14   : > { %s608_s7 = sshll.u32 %s950_s17, 3  ;;  %s954_s16 = smov (!%p286_p9, %s768_s16), 3  ;;  %308 = vst.msk [vmem:[#allocation2] sm:$0xff] (!%p613_p10), %vm307_vm0, %v790_v0  ;;  %309 = vst.msk [vmem:[#allocation2 + $0x8] sm:$0xff] (!%p613_p10), %vm307_vm0, %v790_v0 }
  0x15   : > { %s275_s28 = sadd.s32 %s665_s26, %s603_s27  ;;  %s607_s13 = sshll.u32 %s954_s16, 1 }
  0x16   : > { %s604_s29 = sshll.u32 %s275_s28, 2  ;;  %s290_s14 = sadd.s32 %s608_s7, %s607_s13 }
  0x17   : > { %s871_s6 = scalar_lea.vmem %s928_s0, %s604_s29  ;;  %s609_s25 = sshll.u32 %s290_s14, 2 }
  0x18   : > { %s280_s8 = scalar_select %p279_p8, %s764_s15, 1 }
  0x19   : > { %s883_s28 = scalar_lea.vmem %s931_s3, %s609_s25  ;;  %s888_s17 = scalar_lea.vmem %s932_s4, %s609_s25 }
  0x1a   : > { %s629_s9 = sshll.u32 %s280_s8, 6  ;;  %306 = sbr.rel (%p613_p10) target bundleno = 33 (0x21), region = 40 }
  0x1b   : > { %s878_s12 = scalar_lea.vmem %s929_s1, %s629_s9 }
  0x21 PF: > { %v725_v1 = vld [vmem:[%s878_s12] sm:$0xff]   ;;  %v791_v2 = vmov 0.0   ;;  %v726_v3 = vld [vmem:[%s878_s12 + $0x8] sm:$0xff]   ;;  %vm792_vm1 = vmmov 0   ;;  %v727_v4 = vld [vmem:[%s878_s12 + $0x10] sm:$0xff]   ;;  %vm427_vm2 = vcmask 261120  }
  0x22   : > { %645 = vmatprep.subr.bf16.mxu0 %v791_v2  ;;  %661 = vmatprep.mubr.msk.bf16.mxu0 %vm792_vm1, %v791_v2  ;;  %v728_v5 = vld [vmem:[%s878_s12 + $0x18] sm:$0xff]   ;;  %v729_v6 = vld [vmem:[%s878_s12 + $0x20] sm:$0xff]   ;;  %v730_v7 = vld [vmem:[%s878_s12 + $0x28] sm:$0xff]   ;;  %p623_p11 = scmp.ne.s32.totalorder %s764_s15, 1 }
  0x23   : > { %646 = vmatpush3.bf16.msra.mxu0 %v725_v1  ;;  %v731_v8 = vld [vmem:[%s878_s12 + $0x30] sm:$0xff]   ;;  %v732_v9 = vld [vmem:[%s878_s12 + $0x38] sm:$0xff]   ;;  %v733_v10 = vld [vmem:[%s871_s6] sm:$0xff]   ;;  %vm461_vm3 = vcmask (!%p623_p11), 257024  }
  0x24   : > { %647 = vmatprep.subr.bf16.mxu0 %v791_v2  ;;  %v310_v11 = vld [vmem:[#allocation2] sm:$0xff]  ;;  %v311_v13 = vld [vmem:[#allocation2 + $0x8] sm:$0xff] }
  0x25   : > { %v624_v20 = vld [vmem:[%s930_s2] ss:$0 sm:$0xff] (!%p623_p11) }
  0x26   : > { %v633_v21 = vld [vmem:[%s883_s28] sm:$0xff] (!%p623_p11)  }
  0x27   : > { %648 = vmatpush3.bf16.msra.mxu0 %v726_v3  ;;  %v634_v23 = vunpack.c.l.bf16 (!%p623_p11), %v633_v21  ;;  %v635_v25 = vunpack.c.h.bf16 (!%p623_p11), %v633_v21 }
  0x28   : > { %649 = vmatprep.subr.bf16.mxu0 %v791_v2 }
  0x2b   : > { %650 = vmatpush3.bf16.msra.mxu0 %v727_v4 }
  0x2c   : > { %651 = vmatprep.subr.bf16.mxu0 %v791_v2 }
  0x2f   : > { %652 = vmatpush3.bf16.msra.mxu0 %v728_v5 }
  0x30   : > { %653 = vmatprep.subr.bf16.mxu0 %v791_v2 }
  0x33   : > { %654 = vmatpush3.bf16.msra.mxu0 %v729_v6 }
  0x34   : > { %655 = vmatprep.subr.bf16.mxu0 %v791_v2 }
  0x37   : > { %656 = vmatpush3.bf16.msra.mxu0 %v730_v7 }
  0x38   : > { %657 = vmatprep.subr.bf16.mxu0 %v791_v2 }
  0x3b   : > { %658 = vmatpush3.bf16.msra.mxu0 %v731_v8 }
  0x3c   : > { %659 = vmatprep.subr.bf16.mxu0 %v791_v2 }
  0x3f   : > { %660 = vmatpush3.bf16.msra.mxu0 %v732_v9 }
  0x42   : > { %662 = vmatmul.mubr.bf16.vlgmr.msra.gmra.mrb[0].mxu0 %v733_v10 }
 0x114   : > { %433 = sbr.rel (%p623_p11) target bundleno = 299 (0x12b), region = 44 }
 0x115   : > { %v418_v12 = vpop.f32.mrb[0].mxu0 }
 0x116   : > { %v425_v14 = vadd.f32 %v418_v12, %v310_v11  ;;  %v663_v15 = vpop.f32.mrb[1].mxu0 }
 0x117   : > { %v421_v16 = vpop.f32.mrb[2].mxu0 }
 0x118   : > { %428 = vst.msk [vmem:[#allocation2] sm:$0xff] %vm427_vm2, %v425_v14  ;;  %v426_v17 = vadd.f32 %v421_v16, %v311_v13  ;;  %v664_v18 = vpop.f32.mrb[3].mxu0 }
 0x11a   : > { %429 = vst.msk [vmem:[#allocation2 + $0x8] sm:$0xff] %vm427_vm2, %v426_v17 }
 0x11f   : > { %v434_v19 = vld [vmem:[#allocation2] sm:$0xff] }
 0x120   : > { %v443_v22 = vadd.f32 %v624_v20, %v434_v19 }
 0x121   : > { %v435_v24 = vld [vmem:[#allocation2 + $0x8] sm:$0xff] }
 0x122   : > { %v444_v26 = vadd.f32 %v624_v20, %v435_v24  ;;  %v449_v27 = vadd.f32 %v634_v23, %v443_v22 }
 0x124   : > { %v450_v28 = vadd.f32 %v635_v25, %v444_v26  ;;  %v451_v29 = vmax.f32 %v449_v27, 0.0 }
 0x126   : > { %v452_v30 = vmax.f32 %v450_v28, 0.0  ;;  %v630_v31 = vpack.c.bf16 %v451_v29, %v451_v29 }
 0x128   : > { %v631_v32 = vpack.c.bf16 %v452_v30, %v452_v30  ;;  %462 = vst.msk [vmem:[%s888_s17] sm:$0xf] %vm461_vm3, %v630_v31 }
 0x12a   : > { %463 = vst.msk [vmem:[%s888_s17 + $0x4] sm:$0xf] %vm461_vm3, %v631_v32 }
 0x12b PF: > { %s14_s21 = sadd.s32 1, %s788_s21   ;;  %s933_s15 = smov %s776_s18 }
 0x12c   : > { %p11_p12 = scmp.ge.s32.totalorder %s14_s21, 18   ;;  %s934_s16 = smov %s780_s19 }
 0x12d   : > { %s935_s17 = smov %s784_s20  ;;  %s936_s18 = smov %s940_s22 }
 0x12e   : > { %s937_s19 = smov %s944_s23  ;;  %s938_s20 = smov %s948_s24 }
 0x12f   :  { %13 = sbr.rel (!%p11_p12) target bundleno = 4 (0x4), region = 80 }

// kernel: scmnet_forward.55
= control target key start
LH: loop header
LB: loop body
LE: loop exit
PB: predicated region body
PF: predicated region fallthrough
CT: control target
= control target key end

     0   :  { %s894_s15 = smov 0   ;;  %s896_s16 = smov 0   ;;  %s1013_s0 = inlined_call_operand.vmem [shape: bf16[2,5,16,256], index: 0, kind: input, shape index: {}]   ;;  %s1014_s1 = inlined_call_operand.vmem [shape: bf16[2,256,32], index: 1, kind: input, shape index: {}]   ;;  %s1015_s2 = inlined_call_operand.vmem [shape: f32[1,32], index: 2, kind: input, shape index: {}]   ;;  %s1016_s3 = inlined_call_operand.vmem [shape: bf16[2,4,16,32], index: 3, kind: input, shape index: {}]   ;;  %s1017_s4 = inlined_call_operand.vmem [shape: bf16[2,4,16,32], index: 4, kind: output, shape index: {}]  }
   0x1   :  { %s898_s17 = smov 0   ;;  %s900_s18 = smov 0  }
   0x2   :  { %s902_s19 = smov 0   ;;  %s904_s20 = smov 0  }
   0x3   :  { %s906_s21 = smov 0  }
   0x4 LB: > { %s26_s22 = sadd.s32 1, %s854_s18  ;;  %s29_s23 = sadd.s32 1, %s858_s19  ;;  %s866_s21 = sphi %s906_s21, %s14_s21   ;;  %s862_s20 = sphi %s904_s20, %s1023_s20   ;;  %s858_s19 = sphi %s902_s19, %s1022_s19   ;;  %s854_s18 = sphi %s900_s18, %s1021_s18   ;;  %s850_s17 = sphi %s898_s17, %s1020_s17   ;;  %s846_s16 = sphi %s896_s16, %s1019_s16   ;;  %s842_s15 = sphi %s894_s15, %s1018_s15  }
   0x5   : > { %p27_p0 = scmp.ge.s32.totalorder %s26_s22, 2  ;;  %p670_p1 = scmp.ge.s32.totalorder %s866_s21, 1 }
   0x6   : > { %p219_p2 = scmp.lt.s32.totalorder %s866_s21, 17  ;;  %s33_s24 = sadd.s32 1, %s862_s20 }
   0x7   : > { %s1025_s22 = smov (%p27_p0, %s26_s22), 0  ;;  %s1027_s23 = smov (!%p27_p0, %s29_s23), %s858_s19 }
   0x8   : > { %p220_p3 = pnand %p670_p1, %p219_p2  ;;  %p31_p4 = scmp.ge.s32.totalorder %s1027_s23, 4 }
   0x9   : > { %s268_s25 = sadd.s32 (!%p220_p3), %s842_s15, %s846_s16  ;;  %p269_p6 = scmp.lt.s32.totalorder (!%p220_p3), %s850_s17, 1 }
   0xa   : > { %s1029_s23 = smov (%p31_p4, %s1027_s23), 0  ;;  %s1031_s24 = smov (!%p31_p4, %s33_s24), %s862_s20 }
   0xb   : > { %p35_p5 = scmp.ge.s32.totalorder %s1031_s24, 2  ;;  %223 = sbr.rel (%p220_p3) target bundleno = 302 (0x12e), region = 36 }
   0xc   : > { %p271_p7 = scmp.lt.s32.totalorder (!%p220_p3), %s268_s25, 4  ;;  %p279_p8 = scmp.lt.s32.totalorder (!%p220_p3), %s842_s15, 1 }
   0xd   : > { %s1033_s24 = smov (%p35_p5, %s1031_s24), 0  ;;  %p286_p9 = scmp.lt.s32.totalorder (!%p220_p3), %s846_s16, 3 }
   0xe   : > { %p681_p10 = scmp.ne.s32.totalorder (!%p220_p3), %s842_s15, 0 }
  0x12   : > { %s1035_s17 = smov (!%p269_p6, %s850_s17), 1  ;;  %s1037_s25 = smov (!%p271_p7, %s268_s25), 4 }
  0x13   : > { %s735_s26 = smul.u32 20, %s1035_s17  ;;  %s671_s27 = sshll.u32 %s1037_s25, 2  ;;  %vm307_vm0 = vcmask (!%p681_p10), 261120   ;;  %v868_v0 = vmov (!%p681_p10), 0.0  }
  0x14   : > { %s676_s7 = sshll.u32 %s1035_s17, 3  ;;  %s1039_s16 = smov (!%p286_p9, %s846_s16), 3  ;;  %308 = vst.msk [vmem:[#allocation2] sm:$0xff] (!%p681_p10), %vm307_vm0, %v868_v0  ;;  %309 = vst.msk [vmem:[#allocation2 + $0x8] sm:$0xff] (!%p681_p10), %vm307_vm0, %v868_v0 }
  0x15   : > { %s275_s28 = sadd.s32 %s735_s26, %s671_s27  ;;  %s675_s13 = sshll.u32 %s1039_s16, 1 }
  0x16   : > { %s672_s29 = sshll.u32 %s275_s28, 2  ;;  %s290_s14 = sadd.s32 %s676_s7, %s675_s13 }
  0x17   : > { %s947_s6 = scalar_lea.vmem %s1013_s0, %s672_s29  ;;  %s677_s25 = sshll.u32 %s290_s14, 2 }
  0x18   : > { %s280_s8 = scalar_select %p279_p8, %s842_s15, 1 }
  0x19   : > { %s959_s28 = scalar_lea.vmem %s1016_s3, %s677_s25  ;;  %s964_s17 = scalar_lea.vmem %s1017_s4, %s677_s25 }
  0x1a   : > { %s706_s9 = sshll.u32 %s280_s8, 7  ;;  %306 = sbr.rel (%p681_p10) target bundleno = 33 (0x21), region = 40 }
  0x1b   : > { %s954_s12 = scalar_lea.vmem %s1014_s1, %s706_s9 }
  0x21 PF: > { %v793_v1 = vld [vmem:[%s954_s12 + $0x40] sm:$0xff]   ;;  %v795_v3 = vld [vmem:[%s954_s12 + $0x48] sm:$0xff]   ;;  %v797_v5 = vld [vmem:[%s954_s12 + $0x50] sm:$0xff]   ;;  %vm495_vm1 = vcmask 261120   ;;  %p700_p11 = scmp.ne.s32.totalorder %s842_s15, 1 }
  0x22   : > { %v794_v2 = vld [vmem:[%s954_s12] sm:$0xff]   ;;  %713 = vmatprep.subr.bf16.mxu0 %v793_v1  ;;  %v796_v4 = vld [vmem:[%s954_s12 + $0x8] sm:$0xff]   ;;  %v798_v6 = vld [vmem:[%s954_s12 + $0x10] sm:$0xff]   ;;  %vm529_vm2 = vcmask (!%p700_p11), 257024  }
  0x23   : > { %714 = vmatpush3.bf16.msra.mxu0 %v794_v2  ;;  %v799_v7 = vld [vmem:[%s954_s12 + $0x58] sm:$0xff]   ;;  %v801_v9 = vld [vmem:[%s954_s12 + $0x60] sm:$0xff]   ;;  %v803_v11 = vld [vmem:[%s954_s12 + $0x68] sm:$0xff]  }
  0x24   : > { %715 = vmatprep.subr.bf16.mxu0 %v795_v3  ;;  %v800_v8 = vld [vmem:[%s954_s12 + $0x18] sm:$0xff]   ;;  %v802_v10 = vld [vmem:[%s954_s12 + $0x20] sm:$0xff]   ;;  %v804_v13 = vld [vmem:[%s954_s12 + $0x28] sm:$0xff]  }
  0x25   : > { %v811_v12 = vld [vmem:[%s947_s6 + $0x4] ss:$8 sps:$4 sm:$0xff]   ;;  %v805_v14 = vld [vmem:[%s954_s12 + $0x70] sm:$0xff]   ;;  %v807_v16 = vld [vmem:[%s954_s12 + $0x78] sm:$0xff]  }
  0x26   : > { %484 = vmatprep.mubr.bf16.mxu0 %v811_v12  ;;  %v806_v15 = vld [vmem:[%s954_s12 + $0x30] sm:$0xff]   ;;  %v808_v17 = vld [vmem:[%s954_s12 + $0x38] sm:$0xff]   ;;  %v809_v18 = vld [vmem:[%s947_s6] ss:$8 sps:$4 sm:$0xff]  }
  0x27   : > { %716 = vmatpush3.bf16.msra.mxu0 %v796_v4  ;;  %v310_v20 = vld [vmem:[#allocation2] sm:$0xff]  ;;  %v311_v24 = vld [vmem:[#allocation2 + $0x8] sm:$0xff] }
  0x28   : > { %717 = vmatprep.subr.bf16.mxu0 %v797_v5  ;;  %v701_v30 = vld [vmem:[%s1015_s2] ss:$0 sm:$0xff] (!%p700_p11) }
  0x29   : > { %v710_v31 = vld [vmem:[%s959_s28] sm:$0xff] (!%p700_p11)  }
  0x2a   : > { %v711_v33 = vunpack.c.l.bf16 (!%p700_p11), %v710_v31  ;;  %v712_v35 = vunpack.c.h.bf16 (!%p700_p11), %v710_v31 }
  0x2b   : > { %718 = vmatpush3.bf16.msra.mxu0 %v798_v6 }
  0x2c   : > { %719 = vmatprep.subr.bf16.mxu0 %v799_v7 }
  0x2f   : > { %720 = vmatpush3.bf16.msra.mxu0 %v800_v8 }
  0x30   : > { %721 = vmatprep.subr.bf16.mxu0 %v801_v9 }
  0x33   : > { %722 = vmatpush3.bf16.msra.mxu0 %v802_v10 }
  0x34   : > { %723 = vmatprep.subr.bf16.mxu0 %v803_v11 }
  0x37   : > { %724 = vmatpush3.bf16.msra.mxu0 %v804_v13 }
  0x38   : > { %725 = vmatprep.subr.bf16.mxu0 %v805_v14 }
  0x3b   : > { %726 = vmatpush3.bf16.msra.mxu0 %v806_v15 }
  0x3c   : > { %727 = vmatprep.subr.bf16.mxu0 %v807_v16 }
  0x3f   : > { %728 = vmatpush3.bf16.msra.mxu0 %v808_v17 }
  0x42   : > { %485 = vmatmul.mubr.bf16.vlgmr.msra.gmra.mrb[0].mxu0 %v809_v18 }
 0x115   : > { %v729_v19 = vpop.f32.mrb[0].mxu0 }
 0x116   : > { %v730_v21 = vpop.f32.mrb[1].mxu0 }
 0x117   : > { %v731_v22 = vadd.f32 %v730_v21, %v729_v19  ;;  %v732_v23 = vpop.f32.mrb[2].mxu0  ;;  %501 = sbr.rel (%p700_p11) target bundleno = 302 (0x12e), region = 44 }
 0x118   : > { %v733_v25 = vpop.f32.mrb[3].mxu0 }
 0x119   : > { %v493_v26 = vadd.f32 %v731_v22, %v310_v20  ;;  %v734_v27 = vadd.f32 %v733_v25, %v732_v23 }
 0x11b   : > { %496 = vst.msk [vmem:[#allocation2] sm:$0xff] %vm495_vm1, %v493_v26  ;;  %v494_v28 = vadd.f32 %v734_v27, %v311_v24 }
 0x11d   : > { %497 = vst.msk [vmem:[#allocation2 + $0x8] sm:$0xff] %vm495_vm1, %v494_v28 }
 0x122   : > { %v502_v29 = vld [vmem:[#allocation2] sm:$0xff] }
 0x123   : > { %v511_v32 = vadd.f32 %v701_v30, %v502_v29 }
 0x124   : > { %v503_v34 = vld [vmem:[#allocation2 + $0x8] sm:$0xff] }
 0x125   : > { %v512_v36 = vadd.f32 %v701_v30, %v503_v34  ;;  %v517_v37 = vadd.f32 %v711_v33, %v511_v32 }
 0x127   : > { %v518_v38 = vadd.f32 %v712_v35, %v512_v36  ;;  %v519_v39 = vmax.f32 %v517_v37, 0.0 }
 0x129   : > { %v520_v40 = vmax.f32 %v518_v38, 0.0  ;;  %v707_v41 = vpack.c.bf16 %v519_v39, %v519_v39 }
 0x12b   : > { %v708_v42 = vpack.c.bf16 %v520_v40, %v520_v40  ;;  %530 = vst.msk [vmem:[%s964_s17] sm:$0xf] %vm529_vm2, %v707_v41 }
 0x12d   : > { %531 = vst.msk [vmem:[%s964_s17 + $0x4] sm:$0xf] %vm529_vm2, %v708_v42 }
 0x12e PF: > { %s14_s21 = sadd.s32 1, %s866_s21   ;;  %s1018_s15 = smov %s854_s18 }
 0x12f   : > { %p11_p12 = scmp.ge.s32.totalorder %s14_s21, 18   ;;  %s1019_s16 = smov %s858_s19 }
 0x130   : > { %s1020_s17 = smov %s862_s20  ;;  %s1021_s18 = smov %s1025_s22 }
 0x131   : > { %s1022_s19 = smov %s1029_s23  ;;  %s1023_s20 = smov %s1033_s24 }
 0x132   :  { %13 = sbr.rel (!%p11_p12) target bundleno = 4 (0x4), region = 80 }

// kernel: scmnet_forward.57
= control target key start
LH: loop header
LB: loop body
LE: loop exit
PB: predicated region body
PF: predicated region fallthrough
CT: control target
= control target key end

     0   :  { %s740_s14 = smov 0   ;;  %s742_s15 = smov 0   ;;  %s831_s0 = inlined_call_operand.vmem [shape: bf16[2,8,64,64], index: 0, kind: input, shape index: {}]   ;;  %s832_s1 = inlined_call_operand.vmem [shape: bf16[1,64,1], index: 1, kind: input, shape index: {}]   ;;  %s833_s2 = inlined_call_operand.<no memory space> [shape: f32[1,1], index: 2, kind: input, shape index: {}]   ;;  %s834_s3 = inlined_call_operand.vmem [shape: f32[2,8,64,1], index: 3, kind: output, shape index: {}]  }
   0x1   :  { %v8_v0 = vstv %s833_s2  ;;  %s744_s16 = smov 0   ;;  %s746_s17 = smov 0  }
   0x2   :  { %9 = vst [vmem:[#allocation3] sm:$0x1] %v8_v0  ;;  %s748_s18 = smov 0  }
   0x3 LB: > { %s30_s2 = sadd.s32 1, %s706_s16  ;;  %s34_s19 = sadd.s32 1, %s710_s17  ;;  %s714_s18 = sphi %s748_s18, %s15_s18   ;;  %s710_s17 = sphi %s746_s17, %s838_s17   ;;  %s706_s16 = sphi %s744_s16, %s837_s16   ;;  %s702_s15 = sphi %s742_s15, %s836_s15   ;;  %s698_s14 = sphi %s740_s14, %s835_s14  }
   0x4   : > { %p32_p0 = scmp.ge.s32.totalorder %s30_s2, 8  ;;  %p573_p1 = scmp.ge.s32.totalorder %s714_s18, 1 }
   0x5   : > { %p180_p2 = scmp.lt.s32.totalorder %s714_s18, 17 }
   0x6   : > { %s840_s2 = smov (%p32_p0, %s30_s2), 0  ;;  %s842_s19 = smov (!%p32_p0, %s34_s19), %s710_s17 }
   0x7   : > { %p181_p3 = pnand %p573_p1, %p180_p2  ;;  %p36_p4 = scmp.ge.s32.totalorder %s842_s19, 2 }
   0x8   : > { %v668_v1 = vld [vmem:[%s832_s1] sm:$0xff] (!%p181_p3)   ;;  %p219_p5 = scmp.lt.s32.totalorder (!%p181_p3), %s702_s15, 1  ;;  %v669_v2 = vld [vmem:[%s832_s1 + $0x8] sm:$0xff] (!%p181_p3)   ;;  %p221_p6 = scmp.lt.s32.totalorder (!%p181_p3), %s698_s14, 7  ;;  %v670_v3 = vld [vmem:[%s832_s1 + $0x10] sm:$0xff] (!%p181_p3)   ;;  %vm248_vm0 = vcmask (!%p181_p3), 7168  }
   0x9   : > { %s844_s19 = smov (%p36_p4, %s842_s19), 0  ;;  %184 = sbr.rel (%p181_p3) target bundleno = 255 (0xff), region = 32 }
   0xa   : > { %603 = vmatprep.subr.bf16.mxu0 (!%p181_p3), %v668_v1  ;;  %619 = vmatprep.subr.bf16.mxu1 (!%p181_p3), %v668_v1  ;;  %v716_v4 = vmov (!%p181_p3), 0.0   ;;  %v671_v5 = vld [vmem:[%s832_s1 + $0x18] sm:$0xff] (!%p181_p3)   ;;  %vm325_vm1 = vcmask (!%p181_p3), 523264   ;;  %v592_v34 = vld [vmem:[#allocation3] ss:$0 sm:$0xff] (!%p181_p3) }
   0xb   : > { %604 = vmatpush3.bf16.msra.mxu0 (!%p181_p3), %v668_v1  ;;  %623 = vmatpush3.bf16.msra.mxu1 (!%p181_p3), %v668_v1  ;;  %251 = vst.msk [vmem:[#allocation2 + $0x10] sm:$0xff] (!%p181_p3), %vm248_vm0, %v716_v4  ;;  %249 = vst.msk [vmem:[#allocation2] sm:$0xff] (!%p181_p3), %vm248_vm0, %v716_v4 }
   0xc   : > { %605 = vmatprep.subr.bf16.mxu0 (!%p181_p3), %v669_v2  ;;  %620 = vmatprep.subr.bf16.mxu1 (!%p181_p3), %v669_v2  ;;  %250 = vst.msk [vmem:[#allocation2 + $0x8] sm:$0xff] (!%p181_p3), %vm248_vm0, %v716_v4  ;;  %252 = vst.msk [vmem:[#allocation2 + $0x18] sm:$0xff] (!%p181_p3), %vm248_vm0, %v716_v4 }
   0xd   : > { %253 = vst.msk [vmem:[#allocation2 + $0x20] sm:$0xff] (!%p181_p3), %vm248_vm0, %v716_v4  ;;  %254 = vst.msk [vmem:[#allocation2 + $0x28] sm:$0xff] (!%p181_p3), %vm248_vm0, %v716_v4 }
   0xe   : > { %255 = vst.msk [vmem:[#allocation2 + $0x30] sm:$0xff] (!%p181_p3), %vm248_vm0, %v716_v4  ;;  %256 = vst.msk [vmem:[#allocation2 + $0x38] sm:$0xff] (!%p181_p3), %vm248_vm0, %v716_v4 }
   0xf   : > { %606 = vmatpush3.bf16.msra.mxu0 (!%p181_p3), %v669_v2  ;;  %624 = vmatpush3.bf16.msra.mxu1 (!%p181_p3), %v669_v2 }
  0x10   : > { %s846_s15 = smov (!%p219_p5, %s702_s15), 1  ;;  %s848_s14 = smov (!%p221_p6, %s698_s14), 7  ;;  %607 = vmatprep.subr.bf16.mxu0 %v670_v3  ;;  %621 = vmatprep.subr.bf16.mxu1 %v670_v3 }
  0x11   : > { %s575_s26 = sshll.u32 %s846_s15, 6  ;;  %s574_s27 = sshll.u32 %s848_s14, 3 }
  0x12   : > { %s787_s28 = sadd.s32 %s575_s26, %s574_s27  ;;  %v259_v10 = vld [vmem:[#allocation2 + $0x10] sm:$0xff]  ;;  %v257_v12 = vld [vmem:[#allocation2] sm:$0xff] }
  0x13   : > { %s576_s29 = sshll.u32 %s787_s28, 2  ;;  %608 = vmatpush3.bf16.msra.mxu0 %v670_v3  ;;  %625 = vmatpush3.bf16.msra.mxu1 %v670_v3  ;;  %v260_v16 = vld [vmem:[#allocation2 + $0x18] sm:$0xff]  ;;  %v258_v22 = vld [vmem:[#allocation2 + $0x8] sm:$0xff]  ;;  %s579_s8 = sshll.u32 %s787_s28, 3 }
  0x14   : > { %s227_s7 = scalar_lea.vmem %s831_s0, %s576_s29  ;;  %609 = vmatprep.subr.bf16.mxu0 %v671_v5  ;;  %622 = vmatprep.subr.bf16.mxu1 %v671_v5  ;;  %v261_v13 = vld [vmem:[#allocation2 + $0x20] sm:$0xff]  ;;  %v262_v23 = vld [vmem:[#allocation2 + $0x28] sm:$0xff]  ;;  %s242_s11 = scalar_lea.vmem %s834_s3, %s579_s8 }
  0x15   : > { %v672_v6 = vld [vmem:[%s227_s7] sm:$0xff]   ;;  %v673_v7 = vld [vmem:[%s227_s7 + $0x10] sm:$0xff]   ;;  %v674_v8 = vld [vmem:[%s227_s7 + $0x8] sm:$0xff]  }
  0x16   : > { %611 = vmatprep.mubr.msk.bf16.mxu0 %vm325_vm1, %v672_v6  ;;  %615 = vmatprep.mubr.msk.bf16.mxu1 %vm325_vm1, %v673_v7  ;;  %v675_v9 = vld [vmem:[%s227_s7 + $0x18] sm:$0xff]   ;;  %v263_v11 = vld [vmem:[#allocation2 + $0x30] sm:$0xff] }
  0x17   : > { %610 = vmatpush3.bf16.msra.mxu0 %v671_v5  ;;  %626 = vmatpush3.bf16.msra.mxu1 %v671_v5  ;;  %v264_v17 = vld [vmem:[#allocation2 + $0x38] sm:$0xff] }
  0x1a   : > { %612 = vmatmul.mubr.msk.bf16.vlgmr.msra.gmra.mrb[0].mxu0 %vm325_vm1, %v674_v8  ;;  %616 = vmatmul.mubr.msk.bf16.vlgmr.msra.gmra.mrb[0].mxu1 %vm325_vm1, %v675_v9 }
  0xed   : > { %v613_v14 = vpop.f32.mrb[0].mxu0  ;;  %v617_v15 = vpop.f32.mrb[0].mxu1 }
  0xee   : > { %v405_v18 = vadd.f32 %v613_v14, %v259_v10  ;;  %v409_v19 = vadd.f32 %v617_v15, %v263_v11  ;;  %v372_v20 = vpop.f32.mrb[1].mxu0  ;;  %v388_v21 = vpop.f32.mrb[1].mxu1 }
  0xef   : > { %v403_v24 = vadd.f32 %v372_v20, %v257_v12  ;;  %v407_v25 = vadd.f32 %v388_v21, %v261_v13  ;;  %v614_v26 = vpop.f32.mrb[2].mxu0  ;;  %v618_v27 = vpop.f32.mrb[2].mxu1 }
  0xf0   : > { %414 = vst.msk [vmem:[#allocation2 + $0x10] sm:$0xff] %vm248_vm0, %v405_v18  ;;  %418 = vst.msk [vmem:[#allocation2 + $0x30] sm:$0xff] %vm248_vm0, %v409_v19  ;;  %v406_v28 = vadd.f32 %v614_v26, %v260_v16  ;;  %v410_v29 = vadd.f32 %v618_v27, %v264_v17  ;;  %v375_v30 = vpop.f32.mrb[3].mxu0  ;;  %v391_v31 = vpop.f32.mrb[3].mxu1 }
  0xf1   : > { %412 = vst.msk [vmem:[#allocation2] sm:$0xff] %vm248_vm0, %v403_v24  ;;  %416 = vst.msk [vmem:[#allocation2 + $0x20] sm:$0xff] %vm248_vm0, %v407_v25  ;;  %v404_v32 = vadd.f32 %v375_v30, %v258_v22  ;;  %v408_v33 = vadd.f32 %v391_v31, %v262_v23 }
  0xf2   : > { %415 = vst.msk [vmem:[#allocation2 + $0x18] sm:$0xff] %vm248_vm0, %v406_v28  ;;  %419 = vst.msk [vmem:[#allocation2 + $0x38] sm:$0xff] %vm248_vm0, %v410_v29 }
  0xf3   : > { %413 = vst.msk [vmem:[#allocation2 + $0x8] sm:$0xff] %vm248_vm0, %v404_v32  ;;  %417 = vst.msk [vmem:[#allocation2 + $0x28] sm:$0xff] %vm248_vm0, %v408_v33 }
  0xf7   : > { %v425_v35 = vld [vmem:[#allocation2 + $0x10] sm:$0xff] }
  0xf8   : > { %v429_v36 = vld [vmem:[#allocation2 + $0x30] sm:$0xff]  ;;  %v440_v37 = vadd.f32 %v592_v34, %v425_v35  ;;  %v423_v39 = vld [vmem:[#allocation2] sm:$0xff] }
  0xf9   : > { %v444_v38 = vadd.f32 %v592_v34, %v429_v36  ;;  %v427_v40 = vld [vmem:[#allocation2 + $0x20] sm:$0xff]  ;;  %v438_v41 = vadd.f32 %v592_v34, %v423_v39  ;;  %v426_v43 = vld [vmem:[#allocation2 + $0x18] sm:$0xff] }
  0xfa   : > { %v442_v42 = vadd.f32 %v592_v34, %v427_v40  ;;  %v430_v44 = vld [vmem:[#allocation2 + $0x38] sm:$0xff]  ;;  %448 = vst.msk [vmem:[%s242_s11 + $0x10] sm:$0xff] %vm248_vm0, %v440_v37  ;;  %v441_v45 = vadd.f32 %v592_v34, %v426_v43  ;;  %v424_v47 = vld [vmem:[#allocation2 + $0x8] sm:$0xff] }
  0xfb   : > { %452 = vst.msk [vmem:[%s242_s11 + $0x30] sm:$0xff] %vm248_vm0, %v444_v38  ;;  %v445_v46 = vadd.f32 %v592_v34, %v430_v44  ;;  %v428_v48 = vld [vmem:[#allocation2 + $0x28] sm:$0xff]  ;;  %446 = vst.msk [vmem:[%s242_s11] sm:$0xff] %vm248_vm0, %v438_v41  ;;  %v439_v49 = vadd.f32 %v592_v34, %v424_v47 }
  0xfc   : > { %450 = vst.msk [vmem:[%s242_s11 + $0x20] sm:$0xff] %vm248_vm0, %v442_v42  ;;  %v443_v50 = vadd.f32 %v592_v34, %v428_v48  ;;  %449 = vst.msk [vmem:[%s242_s11 + $0x18] sm:$0xff] %vm248_vm0, %v441_v45 }
  0xfd   : > { %453 = vst.msk [vmem:[%s242_s11 + $0x38] sm:$0xff] %vm248_vm0, %v445_v46  ;;  %447 = vst.msk [vmem:[%s242_s11 + $0x8] sm:$0xff] %vm248_vm0, %v439_v49 }
  0xfe   : > { %451 = vst.msk [vmem:[%s242_s11 + $0x28] sm:$0xff] %vm248_vm0, %v443_v50 }
  0xff PF: > { %s15_s18 = sadd.s32 1, %s714_s18   ;;  %s835_s14 = smov %s706_s16 }
 0x100   : > { %p12_p7 = scmp.ge.s32.totalorder %s15_s18, 18   ;;  %s836_s15 = smov %s710_s17 }
 0x101   : > { %s837_s16 = smov %s840_s2  ;;  %s838_s17 = smov %s844_s19 }
 0x102   :  { %14 = sbr.rel (!%p12_p7) target bundleno = 3 (0x3), region = 73 }

// kernel: scmnet_forward.56
= control target key start
LH: loop header
LB: loop body
LE: loop exit
PB: predicated region body
PF: predicated region fallthrough
CT: control target
= control target key end

     0   :  { %s710_s14 = smov 0   ;;  %s712_s15 = smov 0   ;;  %s795_s0 = inlined_call_operand.vmem [shape: bf16[2,8,64,32], index: 0, kind: input, shape index: {}]   ;;  %s796_s1 = inlined_call_operand.vmem [shape: bf16[1,32,1], index: 1, kind: input, shape index: {}]   ;;  %s797_s2 = inlined_call_operand.<no memory space> [shape: f32[1,1], index: 2, kind: input, shape index: {}]   ;;  %s798_s3 = inlined_call_operand.vmem [shape: f32[2,8,64,1], index: 3, kind: output, shape index: {}]  }
   0x1   :  { %v8_v0 = vstv %s797_s2  ;;  %s714_s16 = smov 0   ;;  %s716_s17 = smov 0  }
   0x2   :  { %9 = vst [vmem:[#allocation3] sm:$0x1] %v8_v0  ;;  %s718_s18 = smov 0  }
   0x3 LB: > { %s30_s2 = sadd.s32 1, %s676_s16  ;;  %s34_s19 = sadd.s32 1, %s680_s17  ;;  %s684_s18 = sphi %s718_s18, %s15_s18   ;;  %s680_s17 = sphi %s716_s17, %s802_s17   ;;  %s676_s16 = sphi %s714_s16, %s801_s16   ;;  %s672_s15 = sphi %s712_s15, %s800_s15   ;;  %s668_s14 = sphi %s710_s14, %s799_s14  }
   0x4   : > { %p32_p0 = scmp.ge.s32.totalorder %s30_s2, 8  ;;  %p557_p1 = scmp.ge.s32.totalorder %s684_s18, 1 }
   0x5   : > { %p180_p2 = scmp.lt.s32.totalorder %s684_s18, 17 }
   0x6   : > { %s804_s2 = smov (%p32_p0, %s30_s2), 0  ;;  %s806_s19 = smov (!%p32_p0, %s34_s19), %s680_s17 }
   0x7   : > { %p181_p3 = pnand %p557_p1, %p180_p2  ;;  %p36_p4 = scmp.ge.s32.totalorder %s806_s19, 2 }
   0x8   : > { %v640_v1 = vld [vmem:[%s796_s1] sm:$0xff] (!%p181_p3)   ;;  %p219_p5 = scmp.lt.s32.totalorder (!%p181_p3), %s672_s15, 1  ;;  %v641_v2 = vld [vmem:[%s796_s1 + $0x8] sm:$0xff] (!%p181_p3)   ;;  %p221_p6 = scmp.lt.s32.totalorder (!%p181_p3), %s668_s14, 7  ;;  %vm248_vm0 = vcmask (!%p181_p3), 7168   ;;  %v686_v3 = vmov (!%p181_p3), 0.0  }
   0x9   : > { %s808_s19 = smov (%p36_p4, %s806_s19), 0  ;;  %184 = sbr.rel (%p181_p3) target bundleno = 252 (0xfc), region = 32 }
   0xa   : > { %583 = vmatprep.subr.bf16.mxu0 (!%p181_p3), %v640_v1  ;;  %595 = vmatprep.subr.bf16.mxu1 (!%p181_p3), %v640_v1  ;;  %251 = vst.msk [vmem:[#allocation2 + $0x10] sm:$0xff] (!%p181_p3), %vm248_vm0, %v686_v3  ;;  %249 = vst.msk [vmem:[#allocation2] sm:$0xff] (!%p181_p3), %vm248_vm0, %v686_v3  ;;  %vm309_vm1 = vcmask (!%p181_p3), 261120   ;;  %v574_v32 = vld [vmem:[#allocation3] ss:$0 sm:$0xff] (!%p181_p3) }
   0xb   : > { %584 = vmatpush3.bf16.msra.mxu0 (!%p181_p3), %v640_v1  ;;  %597 = vmatpush3.bf16.msra.mxu1 (!%p181_p3), %v640_v1  ;;  %250 = vst.msk [vmem:[#allocation2 + $0x8] sm:$0xff] (!%p181_p3), %vm248_vm0, %v686_v3  ;;  %252 = vst.msk [vmem:[#allocation2 + $0x18] sm:$0xff] (!%p181_p3), %vm248_vm0, %v686_v3 }
   0xc   : > { %253 = vst.msk [vmem:[#allocation2 + $0x20] sm:$0xff] (!%p181_p3), %vm248_vm0, %v686_v3  ;;  %254 = vst.msk [vmem:[#allocation2 + $0x28] sm:$0xff] (!%p181_p3), %vm248_vm0, %v686_v3  ;;  %585 = vmatprep.subr.bf16.mxu0 (!%p181_p3), %v641_v2  ;;  %596 = vmatprep.subr.bf16.mxu1 (!%p181_p3), %v641_v2 }
   0xd   : > { %255 = vst.msk [vmem:[#allocation2 + $0x30] sm:$0xff] (!%p181_p3), %vm248_vm0, %v686_v3  ;;  %256 = vst.msk [vmem:[#allocation2 + $0x38] sm:$0xff] (!%p181_p3), %vm248_vm0, %v686_v3 }
   0xf   : > { %586 = vmatpush3.bf16.msra.mxu0 (!%p181_p3), %v641_v2  ;;  %598 = vmatpush3.bf16.msra.mxu1 (!%p181_p3), %v641_v2 }
  0x10   : > { %s810_s15 = smov (!%p219_p5, %s672_s15), 1  ;;  %s812_s14 = smov (!%p221_p6, %s668_s14), 7 }
  0x11   : > { %s559_s24 = sshll.u32 %s810_s15, 6  ;;  %s558_s25 = sshll.u32 %s812_s14, 3  ;;  %v259_v8 = vld [vmem:[#allocation2 + $0x10] sm:$0xff]  ;;  %v257_v10 = vld [vmem:[#allocation2] sm:$0xff] }
  0x12   : > { %s754_s26 = sadd.s32 %s559_s24, %s558_s25  ;;  %v260_v13 = vld [vmem:[#allocation2 + $0x18] sm:$0xff]  ;;  %v258_v18 = vld [vmem:[#allocation2 + $0x8] sm:$0xff] }
  0x13   : > { %s560_s27 = sshll.u32 %s754_s26, 2  ;;  %v261_v12 = vld [vmem:[#allocation2 + $0x20] sm:$0xff]  ;;  %v262_v23 = vld [vmem:[#allocation2 + $0x28] sm:$0xff]  ;;  %s563_s4 = sshll.u32 %s754_s26, 3 }
  0x14   : > { %s227_s30 = scalar_lea.vmem %s795_s0, %s560_s27  ;;  %v263_v9 = vld [vmem:[#allocation2 + $0x30] sm:$0xff]  ;;  %v264_v17 = vld [vmem:[#allocation2 + $0x38] sm:$0xff]  ;;  %s242_s7 = scalar_lea.vmem %s798_s3, %s563_s4 }
  0x15   : > { %v642_v4 = vld [vmem:[%s227_s30] sm:$0xff]   ;;  %v643_v5 = vld [vmem:[%s227_s30 + $0x10] sm:$0xff]   ;;  %v644_v6 = vld [vmem:[%s227_s30 + $0x8] sm:$0xff]  }
  0x16   : > { %587 = vmatprep.mubr.msk.bf16.mxu0 %vm309_vm1, %v642_v4  ;;  %591 = vmatprep.mubr.msk.bf16.mxu1 %vm309_vm1, %v643_v5  ;;  %v645_v7 = vld [vmem:[%s227_s30 + $0x18] sm:$0xff]  }
  0x17   : > { %588 = vmatmul.mubr.msk.bf16.vlgmr.msra.gmra.mrb[0].mxu0 %vm309_vm1, %v644_v6  ;;  %592 = vmatmul.mubr.msk.bf16.vlgmr.msra.gmra.mrb[0].mxu1 %vm309_vm1, %v645_v7 }
  0xea   : > { %v589_v11 = vpop.f32.mrb[0].mxu0  ;;  %v593_v15 = vpop.f32.mrb[0].mxu1 }
  0xeb   : > { %v389_v14 = vadd.f32 %v589_v11, %v259_v8  ;;  %v356_v16 = vpop.f32.mrb[1].mxu0  ;;  %v393_v19 = vadd.f32 %v593_v15, %v263_v9  ;;  %v372_v21 = vpop.f32.mrb[1].mxu1 }
  0xec   : > { %v387_v20 = vadd.f32 %v356_v16, %v257_v10  ;;  %v590_v22 = vpop.f32.mrb[2].mxu0  ;;  %v391_v24 = vadd.f32 %v372_v21, %v261_v12  ;;  %v594_v26 = vpop.f32.mrb[2].mxu1 }
  0xed   : > { %398 = vst.msk [vmem:[#allocation2 + $0x10] sm:$0xff] %vm248_vm0, %v389_v14  ;;  %v390_v25 = vadd.f32 %v590_v22, %v260_v13  ;;  %v359_v27 = vpop.f32.mrb[3].mxu0  ;;  %402 = vst.msk [vmem:[#allocation2 + $0x30] sm:$0xff] %vm248_vm0, %v393_v19  ;;  %v394_v28 = vadd.f32 %v594_v26, %v264_v17  ;;  %v375_v30 = vpop.f32.mrb[3].mxu1 }
  0xee   : > { %396 = vst.msk [vmem:[#allocation2] sm:$0xff] %vm248_vm0, %v387_v20  ;;  %v388_v29 = vadd.f32 %v359_v27, %v258_v18  ;;  %400 = vst.msk [vmem:[#allocation2 + $0x20] sm:$0xff] %vm248_vm0, %v391_v24  ;;  %v392_v31 = vadd.f32 %v375_v30, %v262_v23 }
  0xef   : > { %399 = vst.msk [vmem:[#allocation2 + $0x18] sm:$0xff] %vm248_vm0, %v390_v25  ;;  %403 = vst.msk [vmem:[#allocation2 + $0x38] sm:$0xff] %vm248_vm0, %v394_v28 }
  0xf0   : > { %397 = vst.msk [vmem:[#allocation2 + $0x8] sm:$0xff] %vm248_vm0, %v388_v29  ;;  %401 = vst.msk [vmem:[#allocation2 + $0x28] sm:$0xff] %vm248_vm0, %v392_v31 }
  0xf4   : > { %v409_v33 = vld [vmem:[#allocation2 + $0x10] sm:$0xff] }
  0xf5   : > { %v424_v34 = vadd.f32 %v574_v32, %v409_v33  ;;  %v413_v35 = vld [vmem:[#allocation2 + $0x30] sm:$0xff]  ;;  %v407_v36 = vld [vmem:[#allocation2] sm:$0xff] }
  0xf6   : > { %v428_v37 = vadd.f32 %v574_v32, %v413_v35  ;;  %v422_v38 = vadd.f32 %v574_v32, %v407_v36  ;;  %v411_v39 = vld [vmem:[#allocation2 + $0x20] sm:$0xff]  ;;  %v410_v40 = vld [vmem:[#allocation2 + $0x18] sm:$0xff] }
  0xf7   : > { %432 = vst.msk [vmem:[%s242_s7 + $0x10] sm:$0xff] %vm248_vm0, %v424_v34  ;;  %v426_v41 = vadd.f32 %v574_v32, %v411_v39  ;;  %v425_v42 = vadd.f32 %v574_v32, %v410_v40  ;;  %v414_v43 = vld [vmem:[#allocation2 + $0x38] sm:$0xff]  ;;  %v408_v44 = vld [vmem:[#allocation2 + $0x8] sm:$0xff] }
  0xf8   : > { %436 = vst.msk [vmem:[%s242_s7 + $0x30] sm:$0xff] %vm248_vm0, %v428_v37  ;;  %430 = vst.msk [vmem:[%s242_s7] sm:$0xff] %vm248_vm0, %v422_v38  ;;  %v429_v45 = vadd.f32 %v574_v32, %v414_v43  ;;  %v423_v46 = vadd.f32 %v574_v32, %v408_v44  ;;  %v412_v47 = vld [vmem:[#allocation2 + $0x28] sm:$0xff] }
  0xf9   : > { %434 = vst.msk [vmem:[%s242_s7 + $0x20] sm:$0xff] %vm248_vm0, %v426_v41  ;;  %433 = vst.msk [vmem:[%s242_s7 + $0x18] sm:$0xff] %vm248_vm0, %v425_v42  ;;  %v427_v48 = vadd.f32 %v574_v32, %v412_v47 }
  0xfa   : > { %437 = vst.msk [vmem:[%s242_s7 + $0x38] sm:$0xff] %vm248_vm0, %v429_v45  ;;  %431 = vst.msk [vmem:[%s242_s7 + $0x8] sm:$0xff] %vm248_vm0, %v423_v46 }
  0xfb   : > { %435 = vst.msk [vmem:[%s242_s7 + $0x28] sm:$0xff] %vm248_vm0, %v427_v48 }
  0xfc PF: > { %s15_s18 = sadd.s32 1, %s684_s18   ;;  %s799_s14 = smov %s676_s16 }
  0xfd   : > { %p12_p7 = scmp.ge.s32.totalorder %s15_s18, 18   ;;  %s800_s15 = smov %s680_s17 }
  0xfe   : > { %s801_s16 = smov %s804_s2  ;;  %s802_s17 = smov %s808_s19 }
  0xff   :  { %14 = sbr.rel (!%p12_p7) target bundleno = 3 (0x3), region = 73 }

// kernel: scmnet_forward.59
= control target key start
LH: loop header
LB: loop body
LE: loop exit
PB: predicated region body
PF: predicated region fallthrough
CT: control target
= control target key end

     0   :  { %s787_s14 = smov 0   ;;  %s789_s15 = smov 0   ;;  %s896_s0 = inlined_call_operand.vmem [shape: bf16[2,8,64,128], index: 0, kind: input, shape index: {}]   ;;  %s897_s1 = inlined_call_operand.vmem [shape: bf16[1,128,1], index: 1, kind: input, shape index: {}]   ;;  %s898_s2 = inlined_call_operand.<no memory space> [shape: f32[1,1], index: 2, kind: input, shape index: {}]   ;;  %s899_s3 = inlined_call_operand.vmem [shape: f32[2,8,64,1], index: 3, kind: output, shape index: {}]  }
   0x1   :  { %v8_v0 = vstv %s898_s2  ;;  %s791_s16 = smov 0   ;;  %s793_s17 = smov 0  }
   0x2   :  { %9 = vst [vmem:[#allocation3] sm:$0x1] %v8_v0  ;;  %s795_s18 = smov 0  }
   0x3 LB: > { %s30_s2 = sadd.s32 1, %s753_s16  ;;  %s34_s19 = sadd.s32 1, %s757_s17  ;;  %s761_s18 = sphi %s795_s18, %s15_s18   ;;  %s757_s17 = sphi %s793_s17, %s903_s17   ;;  %s753_s16 = sphi %s791_s16, %s902_s16   ;;  %s749_s15 = sphi %s789_s15, %s901_s15   ;;  %s745_s14 = sphi %s787_s14, %s900_s14  }
   0x4   : > { %p32_p0 = scmp.ge.s32.totalorder %s30_s2, 8  ;;  %p596_p1 = scmp.ge.s32.totalorder %s761_s18, 1 }
   0x5   : > { %p180_p2 = scmp.lt.s32.totalorder %s761_s18, 17 }
   0x6   : > { %s905_s2 = smov (%p32_p0, %s30_s2), 0  ;;  %s907_s19 = smov (!%p32_p0, %s34_s19), %s757_s17 }
   0x7   : > { %p181_p3 = pnand %p596_p1, %p180_p2  ;;  %p36_p4 = scmp.ge.s32.totalorder %s907_s19, 2 }
   0x8   : > { %v711_v1 = vld [vmem:[%s897_s1] sm:$0xff] (!%p181_p3)   ;;  %p219_p5 = scmp.lt.s32.totalorder (!%p181_p3), %s749_s15, 1  ;;  %v712_v2 = vld [vmem:[%s897_s1 + $0x8] sm:$0xff] (!%p181_p3)   ;;  %p221_p6 = scmp.lt.s32.totalorder (!%p181_p3), %s745_s14, 7  ;;  %v713_v3 = vld [vmem:[%s897_s1 + $0x10] sm:$0xff] (!%p181_p3)   ;;  %vm248_vm0 = vcmask (!%p181_p3), 7168  }
   0x9   : > { %s909_s19 = smov (%p36_p4, %s907_s19), 0  ;;  %184 = sbr.rel (%p181_p3) target bundleno = 271 (0x10f), region = 32 }
   0xa   : > { %630 = vmatprep.subr.bf16.mxu0 (!%p181_p3), %v711_v1  ;;  %654 = vmatprep.subr.bf16.mxu1 (!%p181_p3), %v711_v1  ;;  %v714_v4 = vld [vmem:[%s897_s1 + $0x18] sm:$0xff] (!%p181_p3)   ;;  %v763_v6 = vmov (!%p181_p3), 0.0   ;;  %v715_v8 = vld [vmem:[%s897_s1 + $0x20] sm:$0xff] (!%p181_p3)   ;;  %v716_v9 = vld [vmem:[%s897_s1 + $0x28] sm:$0xff] (!%p181_p3)  }
   0xb   : > { %631 = vmatpush3.bf16.msra.mxu0 (!%p181_p3), %v711_v1  ;;  %662 = vmatpush3.bf16.msra.mxu1 (!%p181_p3), %v711_v1  ;;  %251 = vst.msk [vmem:[#allocation2 + $0x10] sm:$0xff] (!%p181_p3), %vm248_vm0, %v763_v6  ;;  %249 = vst.msk [vmem:[#allocation2] sm:$0xff] (!%p181_p3), %vm248_vm0, %v763_v6  ;;  %v717_v10 = vld [vmem:[%s897_s1 + $0x30] sm:$0xff] (!%p181_p3)   ;;  %v718_v11 = vld [vmem:[%s897_s1 + $0x38] sm:$0xff] (!%p181_p3)  }
   0xc   : > { %632 = vmatprep.subr.bf16.mxu0 (!%p181_p3), %v712_v2  ;;  %655 = vmatprep.subr.bf16.mxu1 (!%p181_p3), %v712_v2  ;;  %250 = vst.msk [vmem:[#allocation2 + $0x8] sm:$0xff] (!%p181_p3), %vm248_vm0, %v763_v6  ;;  %252 = vst.msk [vmem:[#allocation2 + $0x18] sm:$0xff] (!%p181_p3), %vm248_vm0, %v763_v6  ;;  %v615_v38 = vld [vmem:[#allocation3] ss:$0 sm:$0xff] (!%p181_p3) }
   0xd   : > { %253 = vst.msk [vmem:[#allocation2 + $0x20] sm:$0xff] (!%p181_p3), %vm248_vm0, %v763_v6  ;;  %254 = vst.msk [vmem:[#allocation2 + $0x28] sm:$0xff] (!%p181_p3), %vm248_vm0, %v763_v6 }
   0xe   : > { %255 = vst.msk [vmem:[#allocation2 + $0x30] sm:$0xff] (!%p181_p3), %vm248_vm0, %v763_v6  ;;  %256 = vst.msk [vmem:[#allocation2 + $0x38] sm:$0xff] (!%p181_p3), %vm248_vm0, %v763_v6 }
   0xf   : > { %633 = vmatpush3.bf16.msra.mxu0 (!%p181_p3), %v712_v2  ;;  %663 = vmatpush3.bf16.msra.mxu1 (!%p181_p3), %v712_v2 }
  0x10   : > { %s911_s15 = smov (!%p219_p5, %s749_s15), 1  ;;  %s913_s14 = smov (!%p221_p6, %s745_s14), 7  ;;  %634 = vmatprep.subr.bf16.mxu0 %v713_v3  ;;  %656 = vmatprep.subr.bf16.mxu1 %v713_v3 }
  0x11   : > { %s598_s26 = sshll.u32 %s911_s15, 6  ;;  %s597_s27 = sshll.u32 %s913_s14, 3 }
  0x12   : > { %s826_s28 = sadd.s32 %s598_s26, %s597_s27  ;;  %v259_v14 = vld [vmem:[#allocation2 + $0x10] sm:$0xff]  ;;  %v257_v16 = vld [vmem:[#allocation2] sm:$0xff] }
  0x13   : > { %s599_s29 = sshll.u32 %s826_s28, 2  ;;  %635 = vmatpush3.bf16.msra.mxu0 %v713_v3  ;;  %664 = vmatpush3.bf16.msra.mxu1 %v713_v3  ;;  %v260_v20 = vld [vmem:[#allocation2 + $0x18] sm:$0xff]  ;;  %v258_v26 = vld [vmem:[#allocation2 + $0x8] sm:$0xff]  ;;  %s602_s20 = sshll.u32 %s826_s28, 3 }
  0x14   : > { %s835_s7 = scalar_lea.vmem %s896_s0, %s599_s29  ;;  %636 = vmatprep.subr.bf16.mxu0 %v714_v4  ;;  %657 = vmatprep.subr.bf16.mxu1 %v714_v4  ;;  %v261_v17 = vld [vmem:[#allocation2 + $0x20] sm:$0xff]  ;;  %v262_v27 = vld [vmem:[#allocation2 + $0x28] sm:$0xff]  ;;  %s242_s23 = scalar_lea.vmem %s899_s3, %s602_s20 }
  0x15   : > { %v719_v5 = vld [vmem:[%s835_s7] sm:$0xff]   ;;  %v720_v7 = vld [vmem:[%s835_s7 + $0x10] sm:$0xff]   ;;  %v721_v12 = vld [vmem:[%s835_s7 + $0x8] sm:$0xff]  }
  0x16   : > { %646 = vmatprep.mubr.bf16.mxu0 %v719_v5  ;;  %650 = vmatprep.mubr.bf16.mxu1 %v720_v7  ;;  %v722_v13 = vld [vmem:[%s835_s7 + $0x18] sm:$0xff]   ;;  %v263_v15 = vld [vmem:[#allocation2 + $0x30] sm:$0xff] }
  0x17   : > { %637 = vmatpush3.bf16.msra.mxu0 %v714_v4  ;;  %665 = vmatpush3.bf16.msra.mxu1 %v714_v4  ;;  %v264_v21 = vld [vmem:[#allocation2 + $0x38] sm:$0xff] }
  0x18   : > { %638 = vmatprep.subr.bf16.mxu0 %v715_v8  ;;  %658 = vmatprep.subr.bf16.mxu1 %v715_v8 }
  0x1b   : > { %639 = vmatpush3.bf16.msra.mxu0 %v715_v8  ;;  %666 = vmatpush3.bf16.msra.mxu1 %v715_v8 }
  0x1c   : > { %640 = vmatprep.subr.bf16.mxu0 %v716_v9  ;;  %659 = vmatprep.subr.bf16.mxu1 %v716_v9 }
  0x1f   : > { %641 = vmatpush3.bf16.msra.mxu0 %v716_v9  ;;  %667 = vmatpush3.bf16.msra.mxu1 %v716_v9 }
  0x20   : > { %642 = vmatprep.subr.bf16.mxu0 %v717_v10  ;;  %660 = vmatprep.subr.bf16.mxu1 %v717_v10 }
  0x23   : > { %643 = vmatpush3.bf16.msra.mxu0 %v717_v10  ;;  %668 = vmatpush3.bf16.msra.mxu1 %v717_v10 }
  0x24   : > { %644 = vmatprep.subr.bf16.mxu0 %v718_v11  ;;  %661 = vmatprep.subr.bf16.mxu1 %v718_v11 }
  0x27   : > { %645 = vmatpush3.bf16.msra.mxu0 %v718_v11  ;;  %669 = vmatpush3.bf16.msra.mxu1 %v718_v11 }
  0x2a   : > { %647 = vmatmul.mubr.bf16.vlgmr.msra.gmra.mrb[0].mxu0 %v721_v12  ;;  %651 = vmatmul.mubr.bf16.vlgmr.msra.gmra.mrb[0].mxu1 %v722_v13 }
  0xfd   : > { %v648_v18 = vpop.f32.mrb[0].mxu0  ;;  %v652_v19 = vpop.f32.mrb[0].mxu1 }
  0xfe   : > { %v428_v22 = vadd.f32 %v648_v18, %v259_v14  ;;  %v432_v23 = vadd.f32 %v652_v19, %v263_v15  ;;  %v395_v24 = vpop.f32.mrb[1].mxu0  ;;  %v411_v25 = vpop.f32.mrb[1].mxu1 }
  0xff   : > { %v426_v28 = vadd.f32 %v395_v24, %v257_v16  ;;  %v430_v29 = vadd.f32 %v411_v25, %v261_v17  ;;  %v649_v30 = vpop.f32.mrb[2].mxu0  ;;  %v653_v31 = vpop.f32.mrb[2].mxu1 }
 0x100   : > { %437 = vst.msk [vmem:[#allocation2 + $0x10] sm:$0xff] %vm248_vm0, %v428_v22  ;;  %441 = vst.msk [vmem:[#allocation2 + $0x30] sm:$0xff] %vm248_vm0, %v432_v23  ;;  %v429_v32 = vadd.f32 %v649_v30, %v260_v20  ;;  %v433_v33 = vadd.f32 %v653_v31, %v264_v21  ;;  %v398_v34 = vpop.f32.mrb[3].mxu0  ;;  %v414_v35 = vpop.f32.mrb[3].mxu1 }
 0x101   : > { %435 = vst.msk [vmem:[#allocation2] sm:$0xff] %vm248_vm0, %v426_v28  ;;  %439 = vst.msk [vmem:[#allocation2 + $0x20] sm:$0xff] %vm248_vm0, %v430_v29  ;;  %v427_v36 = vadd.f32 %v398_v34, %v258_v26  ;;  %v431_v37 = vadd.f32 %v414_v35, %v262_v27 }
 0x102   : > { %438 = vst.msk [vmem:[#allocation2 + $0x18] sm:$0xff] %vm248_vm0, %v429_v32  ;;  %442 = vst.msk [vmem:[#allocation2 + $0x38] sm:$0xff] %vm248_vm0, %v433_v33 }
 0x103   : > { %436 = vst.msk [vmem:[#allocation2 + $0x8] sm:$0xff] %vm248_vm0, %v427_v36  ;;  %440 = vst.msk [vmem:[#allocation2 + $0x28] sm:$0xff] %vm248_vm0, %v431_v37 }
 0x107   : > { %v448_v39 = vld [vmem:[#allocation2 + $0x10] sm:$0xff] }
 0x108   : > { %v452_v40 = vld [vmem:[#allocation2 + $0x30] sm:$0xff]  ;;  %v463_v41 = vadd.f32 %v615_v38, %v448_v39  ;;  %v446_v43 = vld [vmem:[#allocation2] sm:$0xff] }
 0x109   : > { %v467_v42 = vadd.f32 %v615_v38, %v452_v40  ;;  %v450_v44 = vld [vmem:[#allocation2 + $0x20] sm:$0xff]  ;;  %v461_v45 = vadd.f32 %v615_v38, %v446_v43  ;;  %v449_v47 = vld [vmem:[#allocation2 + $0x18] sm:$0xff] }
 0x10a   : > { %v465_v46 = vadd.f32 %v615_v38, %v450_v44  ;;  %v453_v48 = vld [vmem:[#allocation2 + $0x38] sm:$0xff]  ;;  %471 = vst.msk [vmem:[%s242_s23 + $0x10] sm:$0xff] %vm248_vm0, %v463_v41  ;;  %v464_v49 = vadd.f32 %v615_v38, %v449_v47  ;;  %v447_v51 = vld [vmem:[#allocation2 + $0x8] sm:$0xff] }
 0x10b   : > { %475 = vst.msk [vmem:[%s242_s23 + $0x30] sm:$0xff] %vm248_vm0, %v467_v42  ;;  %v468_v50 = vadd.f32 %v615_v38, %v453_v48  ;;  %v451_v52 = vld [vmem:[#allocation2 + $0x28] sm:$0xff]  ;;  %469 = vst.msk [vmem:[%s242_s23] sm:$0xff] %vm248_vm0, %v461_v45  ;;  %v462_v53 = vadd.f32 %v615_v38, %v447_v51 }
 0x10c   : > { %473 = vst.msk [vmem:[%s242_s23 + $0x20] sm:$0xff] %vm248_vm0, %v465_v46  ;;  %v466_v54 = vadd.f32 %v615_v38, %v451_v52  ;;  %472 = vst.msk [vmem:[%s242_s23 + $0x18] sm:$0xff] %vm248_vm0, %v464_v49 }
 0x10d   : > { %476 = vst.msk [vmem:[%s242_s23 + $0x38] sm:$0xff] %vm248_vm0, %v468_v50  ;;  %470 = vst.msk [vmem:[%s242_s23 + $0x8] sm:$0xff] %vm248_vm0, %v462_v53 }
 0x10e   : > { %474 = vst.msk [vmem:[%s242_s23 + $0x28] sm:$0xff] %vm248_vm0, %v466_v54 }
 0x10f PF: > { %s15_s18 = sadd.s32 1, %s761_s18   ;;  %s900_s14 = smov %s753_s16 }
 0x110   : > { %p12_p7 = scmp.ge.s32.totalorder %s15_s18, 18   ;;  %s901_s15 = smov %s757_s17 }
 0x111   : > { %s902_s16 = smov %s905_s2  ;;  %s903_s17 = smov %s909_s19 }
 0x112   :  { %14 = sbr.rel (!%p12_p7) target bundleno = 3 (0x3), region = 73 }

// kernel: scmnet_forward.61
= control target key start
LH: loop header
LB: loop body
LE: loop exit
PB: predicated region body
PF: predicated region fallthrough
CT: control target
= control target key end

     0   :  { %s776_s14 = smov 0   ;;  %s778_s15 = smov 0   ;;  %s902_s0 = inlined_call_operand.vmem [shape: bf16[2,9,64,64], index: 0, kind: input, shape index: {}]   ;;  %s903_s1 = inlined_call_operand.vmem [shape: bf16[2,64,1], index: 1, kind: input, shape index: {}]   ;;  %s904_s2 = inlined_call_operand.<no memory space> [shape: f32[1,1], index: 2, kind: input, shape index: {}]   ;;  %s905_s3 = inlined_call_operand.vmem [shape: f32[2,8,64,1], index: 3, kind: output, shape index: {}]  }
   0x1   :  { %v8_v0 = vstv %s904_s2  ;;  %s780_s16 = smov 0   ;;  %s782_s17 = smov 0  }
   0x2   :  { %9 = vst [vmem:[#allocation3] sm:$0x1] %v8_v0  ;;  %s784_s18 = smov 0   ;;  %s786_s19 = smov 0  }
   0x3   :  { %s788_s20 = smov 0  }
   0x4 LB: > { %s27_s2 = sadd.s32 1, %s738_s17  ;;  %s30_s21 = sadd.s32 1, %s742_s18  ;;  %s750_s20 = sphi %s788_s20, %s15_s20   ;;  %s746_s19 = sphi %s786_s19, %s911_s19   ;;  %s742_s18 = sphi %s784_s18, %s910_s18   ;;  %s738_s17 = sphi %s782_s17, %s909_s17   ;;  %s734_s16 = sphi %s780_s16, %s908_s16   ;;  %s730_s15 = sphi %s778_s15, %s907_s15   ;;  %s726_s14 = sphi %s776_s14, %s906_s14  }
   0x5   : > { %p28_p0 = scmp.ge.s32.totalorder %s27_s2, 2  ;;  %p572_p1 = scmp.ge.s32.totalorder %s750_s20, 1 }
   0x6   : > { %p180_p2 = scmp.lt.s32.totalorder %s750_s20, 33  ;;  %s34_s22 = sadd.s32 1, %s746_s19 }
   0x7   : > { %s913_s2 = smov (%p28_p0, %s27_s2), 0  ;;  %s915_s21 = smov (!%p28_p0, %s30_s21), %s742_s18 }
   0x8   : > { %p181_p3 = pnand %p572_p1, %p180_p2  ;;  %p32_p4 = scmp.ge.s32.totalorder %s915_s21, 8 }
   0x9   : > { %s218_s23 = sadd.s32 (!%p181_p3), %s726_s14, %s730_s15  ;;  %p219_p6 = scmp.lt.s32.totalorder (!%p181_p3), %s734_s16, 1 }
   0xa   : > { %s917_s21 = smov (%p32_p4, %s915_s21), 0  ;;  %s919_s22 = smov (!%p32_p4, %s34_s22), %s746_s19 }
   0xb   : > { %p36_p5 = scmp.ge.s32.totalorder %s919_s22, 2  ;;  %184 = sbr.rel (%p181_p3) target bundleno = 278 (0x116), region = 32 }
   0xc   : > { %p221_p7 = scmp.lt.s32.totalorder (!%p181_p3), %s218_s23, 8  ;;  %p229_p8 = scmp.lt.s32.totalorder (!%p181_p3), %s726_s14, 1 }
   0xd   : > { %s921_s22 = smov (%p36_p5, %s919_s22), 0  ;;  %p236_p9 = scmp.lt.s32.totalorder (!%p181_p3), %s730_s15, 7 }
   0xe   : > { %p580_p10 = scmp.ne.s32.totalorder (!%p181_p3), %s726_s14, 0 }
  0x12   : > { %s923_s16 = smov (!%p219_p6, %s734_s16), 1  ;;  %s925_s23 = smov (!%p221_p7, %s218_s23), 8 }
  0x13   : > { %s630_s24 = smul.u32 72, %s923_s16  ;;  %s573_s25 = sshll.u32 %s925_s23, 3  ;;  %vm248_vm0 = vcmask (!%p580_p10), 7168   ;;  %v752_v1 = vmov (!%p580_p10), 0.0  }
  0x14   : > { %s578_s4 = sshll.u32 %s923_s16, 6  ;;  %s927_s15 = smov (!%p236_p9, %s730_s15), 7  ;;  %249 = vst.msk [vmem:[#allocation2] sm:$0xff] (!%p580_p10), %vm248_vm0, %v752_v1  ;;  %250 = vst.msk [vmem:[#allocation2 + $0x8] sm:$0xff] (!%p580_p10), %vm248_vm0, %v752_v1 }
  0x15   : > { %s225_s26 = sadd.s32 %s630_s24, %s573_s25  ;;  %s577_s10 = sshll.u32 %s927_s15, 3  ;;  %251 = vst.msk [vmem:[#allocation2 + $0x10] sm:$0xff] (!%p580_p10), %vm248_vm0, %v752_v1  ;;  %252 = vst.msk [vmem:[#allocation2 + $0x18] sm:$0xff] (!%p580_p10), %vm248_vm0, %v752_v1 }
  0x16   : > { %s574_s27 = sshll.u32 %s225_s26, 2  ;;  %s240_s11 = sadd.s32 %s578_s4, %s577_s10  ;;  %253 = vst.msk [vmem:[#allocation2 + $0x20] sm:$0xff] (!%p580_p10), %vm248_vm0, %v752_v1  ;;  %254 = vst.msk [vmem:[#allocation2 + $0x28] sm:$0xff] (!%p580_p10), %vm248_vm0, %v752_v1 }
  0x17   : > { %s829_s30 = scalar_lea.vmem %s902_s0, %s574_s27  ;;  %s579_s12 = sshll.u32 %s240_s11, 3  ;;  %255 = vst.msk [vmem:[#allocation2 + $0x30] sm:$0xff] (!%p580_p10), %vm248_vm0, %v752_v1  ;;  %256 = vst.msk [vmem:[#allocation2 + $0x38] sm:$0xff] (!%p580_p10), %vm248_vm0, %v752_v1 }
  0x18   : > { %s230_s5 = scalar_select %p229_p8, %s726_s14, 1 }
  0x19   : > { %s841_s24 = scalar_lea.vmem %s905_s3, %s579_s12  ;;  %247 = sbr.rel (%p580_p10) target bundleno = 32 (0x20), region = 36 }
  0x1a   : > { %s597_s6 = sshll.u32 %s230_s5, 5 }
  0x1b   : > { %s836_s9 = scalar_lea.vmem %s903_s1, %s597_s6 }
  0x20 PF: > { %v688_v2 = vld [vmem:[%s836_s9] sm:$0xff]   ;;  %v689_v3 = vld [vmem:[%s836_s9 + $0x8] sm:$0xff]   ;;  %v690_v4 = vld [vmem:[%s836_s9 + $0x10] sm:$0xff]   ;;  %vm325_vm1 = vcmask 523264   ;;  %vm411_vm2 = vcmask 7168   ;;  %p593_p11 = scmp.ne.s32.totalorder %s726_s14, 1 }
  0x21   : > { %606 = vmatprep.subr.bf16.mxu0 %v688_v2  ;;  %622 = vmatprep.subr.bf16.mxu1 %v688_v2  ;;  %v692_v5 = vld [vmem:[%s829_s30] sm:$0xff]   ;;  %v693_v6 = vld [vmem:[%s829_s30 + $0x10] sm:$0xff]   ;;  %v691_v7 = vld [vmem:[%s836_s9 + $0x18] sm:$0xff]  }
  0x22   : > { %607 = vmatpush3.bf16.msra.mxu0 %v688_v2  ;;  %626 = vmatpush3.bf16.msra.mxu1 %v688_v2  ;;  %v694_v8 = vld [vmem:[%s829_s30 + $0x8] sm:$0xff]   ;;  %v695_v9 = vld [vmem:[%s829_s30 + $0x18] sm:$0xff]   ;;  %v259_v10 = vld [vmem:[#allocation2 + $0x10] sm:$0xff] }
  0x23   : > { %608 = vmatprep.subr.bf16.mxu0 %v689_v3  ;;  %623 = vmatprep.subr.bf16.mxu1 %v689_v3  ;;  %v263_v11 = vld [vmem:[#allocation2 + $0x30] sm:$0xff]  ;;  %v257_v12 = vld [vmem:[#allocation2] sm:$0xff]  ;;  %v260_v16 = vld [vmem:[#allocation2 + $0x18] sm:$0xff] }
  0x24   : > { %614 = vmatprep.mubr.msk.bf16.mxu0 %vm325_vm1, %v692_v5  ;;  %618 = vmatprep.mubr.msk.bf16.mxu1 %vm325_vm1, %v693_v6  ;;  %v261_v13 = vld [vmem:[#allocation2 + $0x20] sm:$0xff]  ;;  %v264_v17 = vld [vmem:[#allocation2 + $0x38] sm:$0xff]  ;;  %v258_v22 = vld [vmem:[#allocation2 + $0x8] sm:$0xff] }
  0x25   : > { %v262_v23 = vld [vmem:[#allocation2 + $0x28] sm:$0xff]  ;;  %v594_v35 = vld [vmem:[#allocation3] ss:$0 sm:$0xff] (!%p593_p11) }
  0x26   : > { %609 = vmatpush3.bf16.msra.mxu0 %v689_v3  ;;  %627 = vmatpush3.bf16.msra.mxu1 %v689_v3 }
  0x27   : > { %610 = vmatprep.subr.bf16.mxu0 %v690_v4  ;;  %624 = vmatprep.subr.bf16.mxu1 %v690_v4 }
  0x2a   : > { %611 = vmatpush3.bf16.msra.mxu0 %v690_v4  ;;  %628 = vmatpush3.bf16.msra.mxu1 %v690_v4 }
  0x2b   : > { %612 = vmatprep.subr.bf16.mxu0 %v691_v7  ;;  %625 = vmatprep.subr.bf16.mxu1 %v691_v7 }
  0x2e   : > { %613 = vmatpush3.bf16.msra.mxu0 %v691_v7  ;;  %629 = vmatpush3.bf16.msra.mxu1 %v691_v7 }
  0x31   : > { %615 = vmatmul.mubr.msk.bf16.vlgmr.msra.gmra.mrb[0].mxu0 %vm325_vm1, %v694_v8  ;;  %619 = vmatmul.mubr.msk.bf16.vlgmr.msra.gmra.mrb[0].mxu1 %vm325_vm1, %v695_v9 }
 0x104   : > { %v616_v14 = vpop.f32.mrb[0].mxu0  ;;  %v620_v15 = vpop.f32.mrb[0].mxu1  ;;  %423 = sbr.rel (%p593_p11) target bundleno = 278 (0x116), region = 40 }
 0x105   : > { %v405_v18 = vadd.f32 %v616_v14, %v259_v10  ;;  %v409_v19 = vadd.f32 %v620_v15, %v263_v11  ;;  %v372_v20 = vpop.f32.mrb[1].mxu0  ;;  %v388_v21 = vpop.f32.mrb[1].mxu1 }
 0x106   : > { %v403_v24 = vadd.f32 %v372_v20, %v257_v12  ;;  %v407_v25 = vadd.f32 %v388_v21, %v261_v13  ;;  %v617_v26 = vpop.f32.mrb[2].mxu0  ;;  %v621_v27 = vpop.f32.mrb[2].mxu1 }
 0x107   : > { %414 = vst.msk [vmem:[#allocation2 + $0x10] sm:$0xff] %vm411_vm2, %v405_v18  ;;  %418 = vst.msk [vmem:[#allocation2 + $0x30] sm:$0xff] %vm411_vm2, %v409_v19  ;;  %v406_v28 = vadd.f32 %v617_v26, %v260_v16  ;;  %v410_v29 = vadd.f32 %v621_v27, %v264_v17  ;;  %v375_v30 = vpop.f32.mrb[3].mxu0  ;;  %v391_v31 = vpop.f32.mrb[3].mxu1 }
 0x108   : > { %412 = vst.msk [vmem:[#allocation2] sm:$0xff] %vm411_vm2, %v403_v24  ;;  %416 = vst.msk [vmem:[#allocation2 + $0x20] sm:$0xff] %vm411_vm2, %v407_v25  ;;  %v404_v32 = vadd.f32 %v375_v30, %v258_v22  ;;  %v408_v33 = vadd.f32 %v391_v31, %v262_v23 }
 0x109   : > { %415 = vst.msk [vmem:[#allocation2 + $0x18] sm:$0xff] %vm411_vm2, %v406_v28  ;;  %419 = vst.msk [vmem:[#allocation2 + $0x38] sm:$0xff] %vm411_vm2, %v410_v29 }
 0x10a   : > { %413 = vst.msk [vmem:[#allocation2 + $0x8] sm:$0xff] %vm411_vm2, %v404_v32  ;;  %417 = vst.msk [vmem:[#allocation2 + $0x28] sm:$0xff] %vm411_vm2, %v408_v33 }
 0x10e   : > { %v426_v39 = vld [vmem:[#allocation2 + $0x10] sm:$0xff] }
 0x10f   : > { %v424_v34 = vld [vmem:[#allocation2] sm:$0xff]  ;;  %v441_v42 = vadd.f32 %v594_v35, %v426_v39  ;;  %v430_v46 = vld [vmem:[#allocation2 + $0x30] sm:$0xff] }
 0x110   : > { %v439_v37 = vadd.f32 %v594_v35, %v424_v34  ;;  %v427_v40 = vld [vmem:[#allocation2 + $0x18] sm:$0xff]  ;;  %v428_v41 = vld [vmem:[#allocation2 + $0x20] sm:$0xff]  ;;  %v445_v49 = vadd.f32 %v594_v35, %v430_v46 }
 0x111   : > { %v425_v36 = vld [vmem:[#allocation2 + $0x8] sm:$0xff]  ;;  %v442_v43 = vadd.f32 %v594_v35, %v427_v40  ;;  %v443_v44 = vadd.f32 %v594_v35, %v428_v41  ;;  %v431_v47 = vld [vmem:[#allocation2 + $0x38] sm:$0xff]  ;;  %449 = vst.msk [vmem:[%s841_s24 + $0x10] sm:$0xff] %vm411_vm2, %v441_v42 }
 0x112   : > { %v440_v38 = vadd.f32 %v594_v35, %v425_v36  ;;  %v429_v45 = vld [vmem:[#allocation2 + $0x28] sm:$0xff]  ;;  %447 = vst.msk [vmem:[%s841_s24] sm:$0xff] %vm411_vm2, %v439_v37  ;;  %v446_v50 = vadd.f32 %v594_v35, %v431_v47  ;;  %453 = vst.msk [vmem:[%s841_s24 + $0x30] sm:$0xff] %vm411_vm2, %v445_v49 }
 0x113   : > { %v444_v48 = vadd.f32 %v594_v35, %v429_v45  ;;  %450 = vst.msk [vmem:[%s841_s24 + $0x18] sm:$0xff] %vm411_vm2, %v442_v43  ;;  %451 = vst.msk [vmem:[%s841_s24 + $0x20] sm:$0xff] %vm411_vm2, %v443_v44 }
 0x114   : > { %448 = vst.msk [vmem:[%s841_s24 + $0x8] sm:$0xff] %vm411_vm2, %v440_v38  ;;  %454 = vst.msk [vmem:[%s841_s24 + $0x38] sm:$0xff] %vm411_vm2, %v446_v50 }
 0x115   : > { %452 = vst.msk [vmem:[%s841_s24 + $0x28] sm:$0xff] %vm411_vm2, %v444_v48 }
 0x116 PF: > { %s15_s20 = sadd.s32 1, %s750_s20   ;;  %s906_s14 = smov %s738_s17 }
 0x117   : > { %p12_p12 = scmp.ge.s32.totalorder %s15_s20, 34   ;;  %s907_s15 = smov %s742_s18 }
 0x118   : > { %s908_s16 = smov %s746_s19  ;;  %s909_s17 = smov %s913_s2 }
 0x119   : > { %s910_s18 = smov %s917_s21  ;;  %s911_s19 = smov %s921_s22 }
 0x11a   :  { %14 = sbr.rel (!%p12_p12) target bundleno = 4 (0x4), region = 73 }

// kernel: scmnet_forward.60
= control target key start
LH: loop header
LB: loop body
LE: loop exit
PB: predicated region body
PF: predicated region fallthrough
CT: control target
= control target key end

     0   :  { %s746_s14 = smov 0   ;;  %s748_s15 = smov 0   ;;  %s862_s0 = inlined_call_operand.vmem [shape: bf16[2,9,64,32], index: 0, kind: input, shape index: {}]   ;;  %s863_s1 = inlined_call_operand.vmem [shape: bf16[2,32,1], index: 1, kind: input, shape index: {}]   ;;  %s864_s2 = inlined_call_operand.<no memory space> [shape: f32[1,1], index: 2, kind: input, shape index: {}]   ;;  %s865_s3 = inlined_call_operand.vmem [shape: f32[2,8,64,1], index: 3, kind: output, shape index: {}]  }
   0x1   :  { %v8_v0 = vstv %s864_s2  ;;  %s750_s16 = smov 0   ;;  %s752_s17 = smov 0  }
   0x2   :  { %9 = vst [vmem:[#allocation3] sm:$0x1] %v8_v0  ;;  %s754_s18 = smov 0   ;;  %s756_s19 = smov 0  }
   0x3   :  { %s758_s20 = smov 0  }
   0x4 LB: > { %s27_s2 = sadd.s32 1, %s708_s17  ;;  %s30_s21 = sadd.s32 1, %s712_s18  ;;  %s720_s20 = sphi %s758_s20, %s15_s20   ;;  %s716_s19 = sphi %s756_s19, %s871_s19   ;;  %s712_s18 = sphi %s754_s18, %s870_s18   ;;  %s708_s17 = sphi %s752_s17, %s869_s17   ;;  %s704_s16 = sphi %s750_s16, %s868_s16   ;;  %s700_s15 = sphi %s748_s15, %s867_s15   ;;  %s696_s14 = sphi %s746_s14, %s866_s14  }
   0x5   : > { %p28_p0 = scmp.ge.s32.totalorder %s27_s2, 2  ;;  %p556_p1 = scmp.ge.s32.totalorder %s720_s20, 1 }
   0x6   : > { %p180_p2 = scmp.lt.s32.totalorder %s720_s20, 33  ;;  %s34_s22 = sadd.s32 1, %s716_s19 }
   0x7   : > { %s873_s2 = smov (%p28_p0, %s27_s2), 0  ;;  %s875_s21 = smov (!%p28_p0, %s30_s21), %s712_s18 }
   0x8   : > { %p181_p3 = pnand %p556_p1, %p180_p2  ;;  %p32_p4 = scmp.ge.s32.totalorder %s875_s21, 8 }
   0x9   : > { %s218_s23 = sadd.s32 (!%p181_p3), %s696_s14, %s700_s15  ;;  %p219_p6 = scmp.lt.s32.totalorder (!%p181_p3), %s704_s16, 1 }
   0xa   : > { %s877_s21 = smov (%p32_p4, %s875_s21), 0  ;;  %s879_s22 = smov (!%p32_p4, %s34_s22), %s716_s19 }
   0xb   : > { %p36_p5 = scmp.ge.s32.totalorder %s879_s22, 2  ;;  %184 = sbr.rel (%p181_p3) target bundleno = 270 (0x10e), region = 32 }
   0xc   : > { %p221_p7 = scmp.lt.s32.totalorder (!%p181_p3), %s218_s23, 8  ;;  %p229_p8 = scmp.lt.s32.totalorder (!%p181_p3), %s696_s14, 1 }
   0xd   : > { %s881_s22 = smov (%p36_p5, %s879_s22), 0  ;;  %p236_p9 = scmp.lt.s32.totalorder (!%p181_p3), %s700_s15, 7 }
   0xe   : > { %p564_p10 = scmp.ne.s32.totalorder (!%p181_p3), %s696_s14, 0 }
  0x12   : > { %s883_s16 = smov (!%p219_p6, %s704_s16), 1  ;;  %s885_s23 = smov (!%p221_p7, %s218_s23), 8 }
  0x13   : > { %s602_s24 = smul.u32 72, %s883_s16  ;;  %s557_s25 = sshll.u32 %s885_s23, 3  ;;  %vm248_vm0 = vcmask (!%p564_p10), 7168   ;;  %v722_v1 = vmov (!%p564_p10), 0.0  }
  0x14   : > { %s562_s4 = sshll.u32 %s883_s16, 6  ;;  %s887_s15 = smov (!%p236_p9, %s700_s15), 7  ;;  %249 = vst.msk [vmem:[#allocation2] sm:$0xff] (!%p564_p10), %vm248_vm0, %v722_v1  ;;  %250 = vst.msk [vmem:[#allocation2 + $0x8] sm:$0xff] (!%p564_p10), %vm248_vm0, %v722_v1 }
  0x15   : > { %s225_s26 = sadd.s32 %s602_s24, %s557_s25  ;;  %s561_s10 = sshll.u32 %s887_s15, 3  ;;  %251 = vst.msk [vmem:[#allocation2 + $0x10] sm:$0xff] (!%p564_p10), %vm248_vm0, %v722_v1  ;;  %252 = vst.msk [vmem:[#allocation2 + $0x18] sm:$0xff] (!%p564_p10), %vm248_vm0, %v722_v1 }
  0x16   : > { %s558_s27 = sshll.u32 %s225_s26, 2  ;;  %s240_s11 = sadd.s32 %s562_s4, %s561_s10  ;;  %253 = vst.msk [vmem:[#allocation2 + $0x20] sm:$0xff] (!%p564_p10), %vm248_vm0, %v722_v1  ;;  %254 = vst.msk [vmem:[#allocation2 + $0x28] sm:$0xff] (!%p564_p10), %vm248_vm0, %v722_v1 }
  0x17   : > { %s799_s30 = scalar_lea.vmem %s862_s0, %s558_s27  ;;  %s563_s12 = sshll.u32 %s240_s11, 3  ;;  %255 = vst.msk [vmem:[#allocation2 + $0x30] sm:$0xff] (!%p564_p10), %vm248_vm0, %v722_v1  ;;  %256 = vst.msk [vmem:[#allocation2 + $0x38] sm:$0xff] (!%p564_p10), %vm248_vm0, %v722_v1 }
  0x18   : > { %s230_s5 = scalar_select %p229_p8, %s696_s14, 1 }
  0x19   : > { %s809_s24 = scalar_lea.vmem %s865_s3, %s563_s12  ;;  %247 = sbr.rel (%p564_p10) target bundleno = 32 (0x20), region = 36 }
  0x1a   : > { %s579_s6 = sshll.u32 %s230_s5, 4 }
  0x1b   : > { %s233_s9 = scalar_lea.vmem %s863_s1, %s579_s6 }
  0x20 PF: > { %v660_v2 = vld [vmem:[%s233_s9] sm:$0xff]   ;;  %v661_v3 = vld [vmem:[%s233_s9 + $0x8] sm:$0xff]   ;;  %vm309_vm1 = vcmask 261120   ;;  %v663_v5 = vld [vmem:[%s799_s30 + $0x10] sm:$0xff]   ;;  %vm395_vm2 = vcmask 7168   ;;  %p575_p11 = scmp.ne.s32.totalorder %s696_s14, 1 }
  0x21   : > { %586 = vmatprep.subr.bf16.mxu0 %v660_v2  ;;  %598 = vmatprep.subr.bf16.mxu1 %v660_v2  ;;  %v662_v4 = vld [vmem:[%s799_s30] sm:$0xff]   ;;  %v664_v6 = vld [vmem:[%s799_s30 + $0x8] sm:$0xff]   ;;  %v665_v7 = vld [vmem:[%s799_s30 + $0x18] sm:$0xff]  }
  0x22   : > { %587 = vmatpush3.bf16.msra.mxu0 %v660_v2  ;;  %600 = vmatpush3.bf16.msra.mxu1 %v660_v2  ;;  %v259_v8 = vld [vmem:[#allocation2 + $0x10] sm:$0xff]  ;;  %v257_v10 = vld [vmem:[#allocation2] sm:$0xff]  ;;  %v260_v14 = vld [vmem:[#allocation2 + $0x18] sm:$0xff] }
  0x23   : > { %588 = vmatprep.subr.bf16.mxu0 %v661_v3  ;;  %599 = vmatprep.subr.bf16.mxu1 %v661_v3  ;;  %v263_v9 = vld [vmem:[#allocation2 + $0x30] sm:$0xff]  ;;  %v261_v11 = vld [vmem:[#allocation2 + $0x20] sm:$0xff]  ;;  %v264_v15 = vld [vmem:[#allocation2 + $0x38] sm:$0xff] }
  0x24   : > { %590 = vmatprep.mubr.msk.bf16.mxu0 %vm309_vm1, %v662_v4  ;;  %594 = vmatprep.mubr.msk.bf16.mxu1 %vm309_vm1, %v663_v5  ;;  %v258_v20 = vld [vmem:[#allocation2 + $0x8] sm:$0xff]  ;;  %v576_v33 = vld [vmem:[#allocation3] ss:$0 sm:$0xff] (!%p575_p11) }
  0x25   : > { %v262_v21 = vld [vmem:[#allocation2 + $0x28] sm:$0xff] }
  0x26   : > { %589 = vmatpush3.bf16.msra.mxu0 %v661_v3  ;;  %601 = vmatpush3.bf16.msra.mxu1 %v661_v3 }
  0x29   : > { %591 = vmatmul.mubr.msk.bf16.vlgmr.msra.gmra.mrb[0].mxu0 %vm309_vm1, %v664_v6  ;;  %595 = vmatmul.mubr.msk.bf16.vlgmr.msra.gmra.mrb[0].mxu1 %vm309_vm1, %v665_v7 }
  0xfc   : > { %v592_v12 = vpop.f32.mrb[0].mxu0  ;;  %v596_v13 = vpop.f32.mrb[0].mxu1  ;;  %407 = sbr.rel (%p575_p11) target bundleno = 270 (0x10e), region = 40 }
  0xfd   : > { %v389_v16 = vadd.f32 %v592_v12, %v259_v8  ;;  %v393_v17 = vadd.f32 %v596_v13, %v263_v9  ;;  %v356_v18 = vpop.f32.mrb[1].mxu0  ;;  %v372_v19 = vpop.f32.mrb[1].mxu1 }
  0xfe   : > { %v387_v22 = vadd.f32 %v356_v18, %v257_v10  ;;  %v391_v23 = vadd.f32 %v372_v19, %v261_v11  ;;  %v593_v24 = vpop.f32.mrb[2].mxu0  ;;  %v597_v25 = vpop.f32.mrb[2].mxu1 }
  0xff   : > { %398 = vst.msk [vmem:[#allocation2 + $0x10] sm:$0xff] %vm395_vm2, %v389_v16  ;;  %402 = vst.msk [vmem:[#allocation2 + $0x30] sm:$0xff] %vm395_vm2, %v393_v17  ;;  %v390_v26 = vadd.f32 %v593_v24, %v260_v14  ;;  %v394_v27 = vadd.f32 %v597_v25, %v264_v15  ;;  %v359_v28 = vpop.f32.mrb[3].mxu0  ;;  %v375_v29 = vpop.f32.mrb[3].mxu1 }
 0x100   : > { %396 = vst.msk [vmem:[#allocation2] sm:$0xff] %vm395_vm2, %v387_v22  ;;  %400 = vst.msk [vmem:[#allocation2 + $0x20] sm:$0xff] %vm395_vm2, %v391_v23  ;;  %v388_v30 = vadd.f32 %v359_v28, %v258_v20  ;;  %v392_v31 = vadd.f32 %v375_v29, %v262_v21 }
 0x101   : > { %399 = vst.msk [vmem:[#allocation2 + $0x18] sm:$0xff] %vm395_vm2, %v390_v26  ;;  %403 = vst.msk [vmem:[#allocation2 + $0x38] sm:$0xff] %vm395_vm2, %v394_v27 }
 0x102   : > { %397 = vst.msk [vmem:[#allocation2 + $0x8] sm:$0xff] %vm395_vm2, %v388_v30  ;;  %401 = vst.msk [vmem:[#allocation2 + $0x28] sm:$0xff] %vm395_vm2, %v392_v31 }
 0x106   : > { %v410_v37 = vld [vmem:[#allocation2 + $0x10] sm:$0xff] }
 0x107   : > { %v408_v32 = vld [vmem:[#allocation2] sm:$0xff]  ;;  %v425_v40 = vadd.f32 %v576_v33, %v410_v37  ;;  %v414_v44 = vld [vmem:[#allocation2 + $0x30] sm:$0xff] }
 0x108   : > { %v423_v35 = vadd.f32 %v576_v33, %v408_v32  ;;  %v411_v38 = vld [vmem:[#allocation2 + $0x18] sm:$0xff]  ;;  %v412_v39 = vld [vmem:[#allocation2 + $0x20] sm:$0xff]  ;;  %v429_v47 = vadd.f32 %v576_v33, %v414_v44 }
 0x109   : > { %v409_v34 = vld [vmem:[#allocation2 + $0x8] sm:$0xff]  ;;  %v426_v41 = vadd.f32 %v576_v33, %v411_v38  ;;  %v427_v42 = vadd.f32 %v576_v33, %v412_v39  ;;  %v415_v45 = vld [vmem:[#allocation2 + $0x38] sm:$0xff]  ;;  %433 = vst.msk [vmem:[%s809_s24 + $0x10] sm:$0xff] %vm395_vm2, %v425_v40 }
 0x10a   : > { %v424_v36 = vadd.f32 %v576_v33, %v409_v34  ;;  %v413_v43 = vld [vmem:[#allocation2 + $0x28] sm:$0xff]  ;;  %431 = vst.msk [vmem:[%s809_s24] sm:$0xff] %vm395_vm2, %v423_v35  ;;  %v430_v48 = vadd.f32 %v576_v33, %v415_v45  ;;  %437 = vst.msk [vmem:[%s809_s24 + $0x30] sm:$0xff] %vm395_vm2, %v429_v47 }
 0x10b   : > { %v428_v46 = vadd.f32 %v576_v33, %v413_v43  ;;  %434 = vst.msk [vmem:[%s809_s24 + $0x18] sm:$0xff] %vm395_vm2, %v426_v41  ;;  %435 = vst.msk [vmem:[%s809_s24 + $0x20] sm:$0xff] %vm395_vm2, %v427_v42 }
 0x10c   : > { %432 = vst.msk [vmem:[%s809_s24 + $0x8] sm:$0xff] %vm395_vm2, %v424_v36  ;;  %438 = vst.msk [vmem:[%s809_s24 + $0x38] sm:$0xff] %vm395_vm2, %v430_v48 }
 0x10d   : > { %436 = vst.msk [vmem:[%s809_s24 + $0x28] sm:$0xff] %vm395_vm2, %v428_v46 }
 0x10e PF: > { %s15_s20 = sadd.s32 1, %s720_s20   ;;  %s866_s14 = smov %s708_s17 }
 0x10f   : > { %p12_p12 = scmp.ge.s32.totalorder %s15_s20, 34   ;;  %s867_s15 = smov %s712_s18 }
 0x110   : > { %s868_s16 = smov %s716_s19  ;;  %s869_s17 = smov %s873_s2 }
 0x111   : > { %s870_s18 = smov %s877_s21  ;;  %s871_s19 = smov %s881_s22 }
 0x112   :  { %14 = sbr.rel (!%p12_p12) target bundleno = 4 (0x4), region = 73 }

// kernel: scmnet_forward.63
= control target key start
LH: loop header
LB: loop body
LE: loop exit
PB: predicated region body
PF: predicated region fallthrough
CT: control target
= control target key end

     0   :  { %s823_s14 = smov 0   ;;  %s825_s15 = smov 0   ;;  %s949_s0 = inlined_call_operand.vmem [shape: bf16[2,9,64,128], index: 0, kind: input, shape index: {}]   ;;  %s950_s1 = inlined_call_operand.vmem [shape: bf16[2,128,1], index: 1, kind: input, shape index: {}]   ;;  %s951_s2 = inlined_call_operand.<no memory space> [shape: f32[1,1], index: 2, kind: input, shape index: {}]   ;;  %s952_s3 = inlined_call_operand.vmem [shape: f32[2,8,64,1], index: 3, kind: output, shape index: {}]  }
   0x1   :  { %v8_v0 = vstv %s951_s2  ;;  %s827_s16 = smov 0   ;;  %s829_s17 = smov 0  }
   0x2   :  { %9 = vst [vmem:[#allocation3] sm:$0x1] %v8_v0  ;;  %s831_s18 = smov 0   ;;  %s833_s19 = smov 0  }
   0x3   :  { %s835_s20 = smov 0  }
   0x4 LB: > { %s27_s2 = sadd.s32 1, %s785_s17  ;;  %s30_s21 = sadd.s32 1, %s789_s18  ;;  %s797_s20 = sphi %s835_s20, %s15_s20   ;;  %s793_s19 = sphi %s833_s19, %s958_s19   ;;  %s789_s18 = sphi %s831_s18, %s957_s18   ;;  %s785_s17 = sphi %s829_s17, %s956_s17   ;;  %s781_s16 = sphi %s827_s16, %s955_s16   ;;  %s777_s15 = sphi %s825_s15, %s954_s15   ;;  %s773_s14 = sphi %s823_s14, %s953_s14  }
   0x5   : > { %p28_p0 = scmp.ge.s32.totalorder %s27_s2, 2  ;;  %p595_p1 = scmp.ge.s32.totalorder %s797_s20, 1 }
   0x6   : > { %p180_p2 = scmp.lt.s32.totalorder %s797_s20, 33  ;;  %s34_s22 = sadd.s32 1, %s793_s19 }
   0x7   : > { %s960_s2 = smov (%p28_p0, %s27_s2), 0  ;;  %s962_s21 = smov (!%p28_p0, %s30_s21), %s789_s18 }
   0x8   : > { %p181_p3 = pnand %p595_p1, %p180_p2  ;;  %p32_p4 = scmp.ge.s32.totalorder %s962_s21, 8 }
   0x9   : > { %s218_s23 = sadd.s32 (!%p181_p3), %s773_s14, %s777_s15  ;;  %p219_p6 = scmp.lt.s32.totalorder (!%p181_p3), %s781_s16, 1 }
   0xa   : > { %s964_s21 = smov (%p32_p4, %s962_s21), 0  ;;  %s966_s22 = smov (!%p32_p4, %s34_s22), %s793_s19 }
   0xb   : > { %p36_p5 = scmp.ge.s32.totalorder %s966_s22, 2  ;;  %184 = sbr.rel (%p181_p3) target bundleno = 294 (0x126), region = 32 }
   0xc   : > { %p221_p7 = scmp.lt.s32.totalorder (!%p181_p3), %s218_s23, 8  ;;  %p229_p8 = scmp.lt.s32.totalorder (!%p181_p3), %s773_s14, 1 }
   0xd   : > { %s968_s22 = smov (%p36_p5, %s966_s22), 0  ;;  %p236_p9 = scmp.lt.s32.totalorder (!%p181_p3), %s777_s15, 7 }
   0xe   : > { %p603_p10 = scmp.ne.s32.totalorder (!%p181_p3), %s773_s14, 0 }
  0x12   : > { %s970_s16 = smov (!%p219_p6, %s781_s16), 1  ;;  %s972_s23 = smov (!%p221_p7, %s218_s23), 8 }
  0x13   : > { %s673_s24 = smul.u32 72, %s970_s16  ;;  %s596_s25 = sshll.u32 %s972_s23, 3  ;;  %vm248_vm0 = vcmask (!%p603_p10), 7168   ;;  %v799_v1 = vmov (!%p603_p10), 0.0  }
  0x14   : > { %s601_s4 = sshll.u32 %s970_s16, 6  ;;  %s974_s15 = smov (!%p236_p9, %s777_s15), 7  ;;  %249 = vst.msk [vmem:[#allocation2] sm:$0xff] (!%p603_p10), %vm248_vm0, %v799_v1  ;;  %250 = vst.msk [vmem:[#allocation2 + $0x8] sm:$0xff] (!%p603_p10), %vm248_vm0, %v799_v1 }
  0x15   : > { %s225_s26 = sadd.s32 %s673_s24, %s596_s25  ;;  %s600_s10 = sshll.u32 %s974_s15, 3  ;;  %251 = vst.msk [vmem:[#allocation2 + $0x10] sm:$0xff] (!%p603_p10), %vm248_vm0, %v799_v1  ;;  %252 = vst.msk [vmem:[#allocation2 + $0x18] sm:$0xff] (!%p603_p10), %vm248_vm0, %v799_v1 }
  0x16   : > { %s597_s27 = sshll.u32 %s225_s26, 2  ;;  %s240_s11 = sadd.s32 %s601_s4, %s600_s10  ;;  %253 = vst.msk [vmem:[#allocation2 + $0x20] sm:$0xff] (!%p603_p10), %vm248_vm0, %v799_v1  ;;  %254 = vst.msk [vmem:[#allocation2 + $0x28] sm:$0xff] (!%p603_p10), %vm248_vm0, %v799_v1 }
  0x17   : > { %s876_s30 = scalar_lea.vmem %s949_s0, %s597_s27  ;;  %s602_s12 = sshll.u32 %s240_s11, 3  ;;  %255 = vst.msk [vmem:[#allocation2 + $0x30] sm:$0xff] (!%p603_p10), %vm248_vm0, %v799_v1  ;;  %256 = vst.msk [vmem:[#allocation2 + $0x38] sm:$0xff] (!%p603_p10), %vm248_vm0, %v799_v1 }
  0x18   : > { %s230_s5 = scalar_select %p229_p8, %s773_s14, 1 }
  0x19   : > { %s888_s24 = scalar_lea.vmem %s952_s3, %s602_s12  ;;  %247 = sbr.rel (%p603_p10) target bundleno = 32 (0x20), region = 36 }
  0x1a   : > { %s620_s6 = sshll.u32 %s230_s5, 6 }
  0x1b   : > { %s883_s9 = scalar_lea.vmem %s950_s1, %s620_s6 }
  0x20 PF: > { %v731_v2 = vld [vmem:[%s883_s9] sm:$0xff]   ;;  %v732_v3 = vld [vmem:[%s883_s9 + $0x8] sm:$0xff]   ;;  %v733_v4 = vld [vmem:[%s883_s9 + $0x10] sm:$0xff]   ;;  %vm434_vm1 = vcmask 7168   ;;  %p616_p11 = scmp.ne.s32.totalorder %s773_s14, 1 }
  0x21   : > { %633 = vmatprep.subr.bf16.mxu0 %v731_v2  ;;  %657 = vmatprep.subr.bf16.mxu1 %v731_v2  ;;  %v734_v5 = vld [vmem:[%s883_s9 + $0x18] sm:$0xff]   ;;  %v739_v6 = vld [vmem:[%s876_s30] sm:$0xff]   ;;  %v740_v7 = vld [vmem:[%s876_s30 + $0x10] sm:$0xff]  }
  0x22   : > { %634 = vmatpush3.bf16.msra.mxu0 %v731_v2  ;;  %665 = vmatpush3.bf16.msra.mxu1 %v731_v2  ;;  %v735_v8 = vld [vmem:[%s883_s9 + $0x20] sm:$0xff]   ;;  %v736_v9 = vld [vmem:[%s883_s9 + $0x28] sm:$0xff]   ;;  %v737_v10 = vld [vmem:[%s883_s9 + $0x30] sm:$0xff]  }
  0x23   : > { %635 = vmatprep.subr.bf16.mxu0 %v732_v3  ;;  %658 = vmatprep.subr.bf16.mxu1 %v732_v3  ;;  %v738_v11 = vld [vmem:[%s883_s9 + $0x38] sm:$0xff]   ;;  %v741_v12 = vld [vmem:[%s876_s30 + $0x8] sm:$0xff]   ;;  %v259_v14 = vld [vmem:[#allocation2 + $0x10] sm:$0xff] }
  0x24   : > { %649 = vmatprep.mubr.bf16.mxu0 %v739_v6  ;;  %653 = vmatprep.mubr.bf16.mxu1 %v740_v7  ;;  %v742_v13 = vld [vmem:[%s876_s30 + $0x18] sm:$0xff]   ;;  %v263_v15 = vld [vmem:[#allocation2 + $0x30] sm:$0xff]  ;;  %v257_v16 = vld [vmem:[#allocation2] sm:$0xff] }
  0x25   : > { %v261_v17 = vld [vmem:[#allocation2 + $0x20] sm:$0xff]  ;;  %v260_v20 = vld [vmem:[#allocation2 + $0x18] sm:$0xff]  ;;  %v258_v26 = vld [vmem:[#allocation2 + $0x8] sm:$0xff] }
  0x26   : > { %636 = vmatpush3.bf16.msra.mxu0 %v732_v3  ;;  %666 = vmatpush3.bf16.msra.mxu1 %v732_v3  ;;  %v264_v21 = vld [vmem:[#allocation2 + $0x38] sm:$0xff]  ;;  %v262_v27 = vld [vmem:[#allocation2 + $0x28] sm:$0xff]  ;;  %v617_v39 = vld [vmem:[#allocation3] ss:$0 sm:$0xff] (!%p616_p11) }
  0x27   : > { %637 = vmatprep.subr.bf16.mxu0 %v733_v4  ;;  %659 = vmatprep.subr.bf16.mxu1 %v733_v4 }
  0x2a   : > { %638 = vmatpush3.bf16.msra.mxu0 %v733_v4  ;;  %667 = vmatpush3.bf16.msra.mxu1 %v733_v4 }
  0x2b   : > { %639 = vmatprep.subr.bf16.mxu0 %v734_v5  ;;  %660 = vmatprep.subr.bf16.mxu1 %v734_v5 }
  0x2e   : > { %640 = vmatpush3.bf16.msra.mxu0 %v734_v5  ;;  %668 = vmatpush3.bf16.msra.mxu1 %v734_v5 }
  0x2f   : > { %641 = vmatprep.subr.bf16.mxu0 %v735_v8  ;;  %661 = vmatprep.subr.bf16.mxu1 %v735_v8 }
  0x32   : > { %642 = vmatpush3.bf16.msra.mxu0 %v735_v8  ;;  %669 = vmatpush3.bf16.msra.mxu1 %v735_v8 }
  0x33   : > { %643 = vmatprep.subr.bf16.mxu0 %v736_v9  ;;  %662 = vmatprep.subr.bf16.mxu1 %v736_v9 }
  0x36   : > { %644 = vmatpush3.bf16.msra.mxu0 %v736_v9  ;;  %670 = vmatpush3.bf16.msra.mxu1 %v736_v9 }
  0x37   : > { %645 = vmatprep.subr.bf16.mxu0 %v737_v10  ;;  %663 = vmatprep.subr.bf16.mxu1 %v737_v10 }
  0x3a   : > { %646 = vmatpush3.bf16.msra.mxu0 %v737_v10  ;;  %671 = vmatpush3.bf16.msra.mxu1 %v737_v10 }
  0x3b   : > { %647 = vmatprep.subr.bf16.mxu0 %v738_v11  ;;  %664 = vmatprep.subr.bf16.mxu1 %v738_v11 }
  0x3e   : > { %648 = vmatpush3.bf16.msra.mxu0 %v738_v11  ;;  %672 = vmatpush3.bf16.msra.mxu1 %v738_v11 }
  0x41   : > { %650 = vmatmul.mubr.bf16.vlgmr.msra.gmra.mrb[0].mxu0 %v741_v12  ;;  %654 = vmatmul.mubr.bf16.vlgmr.msra.gmra.mrb[0].mxu1 %v742_v13 }
 0x114   : > { %v651_v18 = vpop.f32.mrb[0].mxu0  ;;  %v655_v19 = vpop.f32.mrb[0].mxu1  ;;  %446 = sbr.rel (%p616_p11) target bundleno = 294 (0x126), region = 40 }
 0x115   : > { %v428_v22 = vadd.f32 %v651_v18, %v259_v14  ;;  %v432_v23 = vadd.f32 %v655_v19, %v263_v15  ;;  %v395_v24 = vpop.f32.mrb[1].mxu0  ;;  %v411_v25 = vpop.f32.mrb[1].mxu1 }
 0x116   : > { %v426_v28 = vadd.f32 %v395_v24, %v257_v16  ;;  %v430_v29 = vadd.f32 %v411_v25, %v261_v17  ;;  %v652_v30 = vpop.f32.mrb[2].mxu0  ;;  %v656_v31 = vpop.f32.mrb[2].mxu1 }
 0x117   : > { %437 = vst.msk [vmem:[#allocation2 + $0x10] sm:$0xff] %vm434_vm1, %v428_v22  ;;  %441 = vst.msk [vmem:[#allocation2 + $0x30] sm:$0xff] %vm434_vm1, %v432_v23  ;;  %v429_v32 = vadd.f32 %v652_v30, %v260_v20  ;;  %v433_v33 = vadd.f32 %v656_v31, %v264_v21  ;;  %v398_v34 = vpop.f32.mrb[3].mxu0  ;;  %v414_v35 = vpop.f32.mrb[3].mxu1 }
 0x118   : > { %435 = vst.msk [vmem:[#allocation2] sm:$0xff] %vm434_vm1, %v426_v28  ;;  %439 = vst.msk [vmem:[#allocation2 + $0x20] sm:$0xff] %vm434_vm1, %v430_v29  ;;  %v427_v36 = vadd.f32 %v398_v34, %v258_v26  ;;  %v431_v37 = vadd.f32 %v414_v35, %v262_v27 }
 0x119   : > { %438 = vst.msk [vmem:[#allocation2 + $0x18] sm:$0xff] %vm434_vm1, %v429_v32  ;;  %442 = vst.msk [vmem:[#allocation2 + $0x38] sm:$0xff] %vm434_vm1, %v433_v33 }
 0x11a   : > { %436 = vst.msk [vmem:[#allocation2 + $0x8] sm:$0xff] %vm434_vm1, %v427_v36  ;;  %440 = vst.msk [vmem:[#allocation2 + $0x28] sm:$0xff] %vm434_vm1, %v431_v37 }
 0x11e   : > { %v449_v43 = vld [vmem:[#allocation2 + $0x10] sm:$0xff] }
 0x11f   : > { %v447_v38 = vld [vmem:[#allocation2] sm:$0xff]  ;;  %v464_v46 = vadd.f32 %v617_v39, %v449_v43  ;;  %v453_v50 = vld [vmem:[#allocation2 + $0x30] sm:$0xff] }
 0x120   : > { %v462_v41 = vadd.f32 %v617_v39, %v447_v38  ;;  %v450_v44 = vld [vmem:[#allocation2 + $0x18] sm:$0xff]  ;;  %v451_v45 = vld [vmem:[#allocation2 + $0x20] sm:$0xff]  ;;  %v468_v53 = vadd.f32 %v617_v39, %v453_v50 }
 0x121   : > { %v448_v40 = vld [vmem:[#allocation2 + $0x8] sm:$0xff]  ;;  %v465_v47 = vadd.f32 %v617_v39, %v450_v44  ;;  %v466_v48 = vadd.f32 %v617_v39, %v451_v45  ;;  %v454_v51 = vld [vmem:[#allocation2 + $0x38] sm:$0xff]  ;;  %472 = vst.msk [vmem:[%s888_s24 + $0x10] sm:$0xff] %vm434_vm1, %v464_v46 }
 0x122   : > { %v463_v42 = vadd.f32 %v617_v39, %v448_v40  ;;  %v452_v49 = vld [vmem:[#allocation2 + $0x28] sm:$0xff]  ;;  %470 = vst.msk [vmem:[%s888_s24] sm:$0xff] %vm434_vm1, %v462_v41  ;;  %v469_v54 = vadd.f32 %v617_v39, %v454_v51  ;;  %476 = vst.msk [vmem:[%s888_s24 + $0x30] sm:$0xff] %vm434_vm1, %v468_v53 }
 0x123   : > { %v467_v52 = vadd.f32 %v617_v39, %v452_v49  ;;  %473 = vst.msk [vmem:[%s888_s24 + $0x18] sm:$0xff] %vm434_vm1, %v465_v47  ;;  %474 = vst.msk [vmem:[%s888_s24 + $0x20] sm:$0xff] %vm434_vm1, %v466_v48 }
 0x124   : > { %471 = vst.msk [vmem:[%s888_s24 + $0x8] sm:$0xff] %vm434_vm1, %v463_v42  ;;  %477 = vst.msk [vmem:[%s888_s24 + $0x38] sm:$0xff] %vm434_vm1, %v469_v54 }
 0x125   : > { %475 = vst.msk [vmem:[%s888_s24 + $0x28] sm:$0xff] %vm434_vm1, %v467_v52 }
 0x126 PF: > { %s15_s20 = sadd.s32 1, %s797_s20   ;;  %s953_s14 = smov %s785_s17 }
 0x127   : > { %p12_p12 = scmp.ge.s32.totalorder %s15_s20, 34   ;;  %s954_s15 = smov %s789_s18 }
 0x128   : > { %s955_s16 = smov %s793_s19  ;;  %s956_s17 = smov %s960_s2 }
 0x129   : > { %s957_s18 = smov %s964_s21  ;;  %s958_s19 = smov %s968_s22 }
 0x12a   :  { %14 = sbr.rel (!%p12_p12) target bundleno = 4 (0x4), region = 73 }

</bundles_post_ra>
